<compile_context>
chip_gen: v7x
topology: tpu7x:2x2x1
jax: 0.10.0
libtpu: 0.0.40
codegen_flags: <defaults>
</compile_context>

<pallas_src>
import math

import numpy as np

import jax
import jax.numpy as jnp
from jax.experimental import pallas as pl
from jax.experimental.pallas import tpu as pltpu  # noqa: F401  (TPU backend)

# ---------------- configuration (small, consistent with VideoTransformer) ------
IMAGE_SIZE   = 16
PATCH_SIZE   = 8
NUM_FRAMES   = 4
TUBE_SIZE    = 2           # ViViT default
IN_CHANNELS  = 3           # ViViT default
HIDDEN_DIM   = 32          # dim
NUM_HEADS    = 2
NUM_LAYERS   = 2           # depth
NUM_SUBJECTS = 3
NUM_ACTIONS  = 5
DIM_HEAD     = 64          # ViViT Attention default (independent of hidden_dim)
SCALE_DIM    = 4           # mlp_dim = dim * scale_dim
DEC_FFN_DIM  = 2048        # nn.TransformerDecoderLayer default dim_feedforward
LN_EPS       = 1e-5
BATCH        = 2

T_TUBES   = NUM_FRAMES // TUBE_SIZE
N_PATCHES = (IMAGE_SIZE // PATCH_SIZE) ** 2
N_TOKENS  = N_PATCHES + 1
NQ_TOT    = NUM_SUBJECTS + NUM_ACTIONS
MASK_NEG  = -1e30


# ----------------------------- in-kernel helpers --------------------------------

def _ln(x, g, b):
    mu = jnp.mean(x, axis=-1, keepdims=True)
    xc = x - mu
    var = jnp.mean(xc * xc, axis=-1, keepdims=True)
    return xc * jax.lax.rsqrt(var + LN_EPS) * g + b


def _gelu(x):                      # exact erf GELU (torch nn.GELU default)
    return 0.5 * x * (1.0 + jax.lax.erf(x * (1.0 / math.sqrt(2.0))))


def _masked_softmax(s, bias):
    s = s + bias                                  # bias is 0 / -1e30 (additive mask)
    s = s - jnp.max(s, axis=-1, keepdims=True)
    e = jnp.exp(s)
    return e * pl.reciprocal(jnp.sum(e, axis=-1, keepdims=True), approx=True)


def _encoder_stack_apply(x, bias, w):
    """Apply a 2-layer ViViT transformer (+ its final LayerNorm) to x (rows, D)."""
    (ln1g, ln1b, wq, wk, wv, wo, bo, ln2g, ln2b,
     wff1, bff1, wff2, bff2, ng, nb) = w
    scale = DIM_HEAD ** -0.5
    for l in range(NUM_LAYERS):
        h = _ln(x, ln1g[l], ln1b[l])
        acc = None
        for hh in range(NUM_HEADS):
            qh = jnp.dot(h, wq[l, hh], preferred_element_type=jnp.float32)
            kh = jnp.dot(h, wk[l, hh], preferred_element_type=jnp.float32)
            vh = jnp.dot(h, wv[l, hh], preferred_element_type=jnp.float32)
            s = jax.lax.dot_general(qh, kh, (((1,), (1,)), ((), ())),
                                    preferred_element_type=jnp.float32) * scale
            p = _masked_softmax(s, bias)
            oh = jnp.dot(p, vh, preferred_element_type=jnp.float32)
            c = jnp.dot(oh, wo[l, hh], preferred_element_type=jnp.float32)
            acc = c if acc is None else acc + c
        x = x + acc + bo[l]
        h = _ln(x, ln2g[l], ln2b[l])
        f = _gelu(jnp.dot(h, wff1[l], preferred_element_type=jnp.float32) + bff1[l])
        x = x + jnp.dot(f, wff2[l], preferred_element_type=jnp.float32) + bff2[l]
    return _ln(x, ng[...], nb[...])


def _dec_mha(x, kv, w, bias, scale):
    """torch nn.MultiheadAttention equivalent (per-head weights pre-split)."""
    (wq, bq, wk, bk, wv, bv, wo, bo) = w
    acc = None
    for h in range(NUM_HEADS):
        qh = jnp.dot(x, wq[h], preferred_element_type=jnp.float32) + bq[h]
        kh = jnp.dot(kv, wk[h], preferred_element_type=jnp.float32) + bk[h]
        vh = jnp.dot(kv, wv[h], preferred_element_type=jnp.float32) + bv[h]
        s = jax.lax.dot_general(qh, kh, (((1,), (1,)), ((), ())),
                                preferred_element_type=jnp.float32) * scale
        p = _masked_softmax(s, bias)
        oh = jnp.dot(p, vh, preferred_element_type=jnp.float32)
        c = jnp.dot(oh, wo[h], preferred_element_type=jnp.float32)
        acc = c if acc is None else acc + c
    return acc + bo[...]


# ----------------------------- Pallas kernels -----------------------------------

def _vivit_encoder_kernel(*refs):
    """patch-embed -> spatial transformer -> cls select -> temporal transformer."""
    patches, scat, base, pw, pb, smask = refs[0:6]
    sw = refs[6:21]          # 15 stacked spatial-transformer weight refs
    selcls = refs[21]
    tmask = refs[22]
    tw = refs[23:38]         # 15 stacked temporal-transformer weight refs
    o_ref = refs[38]

    # Conv3d patch embedding as im2col matmul, scattered into token rows,
    # plus cls-token / positional-embedding base.
    emb = jnp.dot(patches[...], pw[...], preferred_element_type=jnp.float32) + pb[...]
    x0 = base[...] + jnp.dot(scat[...], emb, preferred_element_type=jnp.float32)

    # spatial transformer over all (B*Tt) sequences at once (block-diag mask)
    xs = _encoder_stack_apply(x0, smask[...], sw)

    # pick the cls row of every spatial sequence -> temporal tokens
    xt0 = jnp.dot(selcls[...], xs, preferred_element_type=jnp.float32)

    # temporal transformer over B sequences of length Tt
    xt = _encoder_stack_apply(xt0, tmask[...], tw)
    o_ref[...] = xt


def _decoder_kernel(*refs):
    """Two weight-shared TransformerDecoder layers for batched sub+act queries."""
    q0, mem, sbias, cbias = refs[0:4]
    sa = refs[4:12]                               # self-attn  (wq,bq,wk,bk,wv,bv,wo,bo)
    ca = refs[12:20]                              # cross-attn (same layout)
    w1, b1, w2, b2 = refs[20:24]
    ln1g, ln1b, ln2g, ln2b, ln3g, ln3b = refs[24:30]
    ng, nb = refs[30:32]
    o_ref = refs[32]

    hd = HIDDEN_DIM // NUM_HEADS
    scale = hd ** -0.5
    x = q0[...]
    m = mem[...]
    sb = sbias[...]
    cb = cbias[...]
    for _ in range(NUM_LAYERS):                   # cloned layers share weights
        x = _ln(x + _dec_mha(x, x, sa, sb, scale), ln1g[...], ln1b[...])
        x = _ln(x + _dec_mha(x, m, ca, cb, scale), ln2g[...], ln2b[...])
        f = jnp.maximum(
            jnp.dot(x, w1[...], preferred_element_type=jnp.float32) + b1[...], 0.0)
        f = jnp.dot(f, w2[...], preferred_element_type=jnp.float32) + b2[...]
        x = _ln(x + f, ln3g[...], ln3b[...])
    o_ref[...] = _ln(x, ng[...], nb[...])         # fused final model LayerNorm


# ----------------------------- weight re-packing (XLA side) ---------------------

def _encoder_weight_refs(tr):
    """Stack per-layer ViViT transformer weights; split q/k/v/out per head."""
    D, H, Dh, mlp = HIDDEN_DIM, NUM_HEADS, DIM_HEAD, HIDDEN_DIM * SCALE_DIM
    layers = tr["layers"]

    def st(fn):
        return jnp.stack([fn(l) for l in layers])

    wqkv = st(lambda l: l["w_qkv"].reshape(D, 3, H, Dh).transpose(1, 2, 0, 3))  # (L,3,H,D,Dh)
    return (
        st(lambda l: l["ln1_g"].reshape(1, D)),
        st(lambda l: l["ln1_b"].reshape(1, D)),
        wqkv[:, 0], wqkv[:, 1], wqkv[:, 2],                  # wq, wk, wv  (L,H,D,Dh)
        st(lambda l: l["w_out"].reshape(H, Dh, D)),          # wo          (L,H,Dh,D)
        st(lambda l: l["b_out"].reshape(1, D)),
        st(lambda l: l["ln2_g"].reshape(1, D)),
        st(lambda l: l["ln2_b"].reshape(1, D)),
        st(lambda l: l["w_ff1"]),                            # (L,D,mlp)
        st(lambda l: l["b_ff1"].reshape(1, mlp)),
        st(lambda l: l["w_ff2"]),                            # (L,mlp,D)
        st(lambda l: l["b_ff2"].reshape(1, D)),
        tr["norm_g"].reshape(1, D),
        tr["norm_b"].reshape(1, D),
    )


def _mha_weight_refs(p):
    """Split a torch-style MultiheadAttention weight set per head."""
    D, H = HIDDEN_DIM, NUM_HEADS
    hd = D // H
    return (
        p["w_q"].reshape(D, H, hd).transpose(1, 0, 2), p["b_q"].reshape(H, 1, hd),
        p["w_k"].reshape(D, H, hd).transpose(1, 0, 2), p["b_k"].reshape(H, 1, hd),
        p["w_v"].reshape(D, H, hd).transpose(1, 0, 2), p["b_v"].reshape(H, 1, hd),
        p["w_o"].reshape(H, hd, D), p["b_o"].reshape(1, D),
    )


def _seg_bias(seg):
    seg = np.asarray(seg)
    return np.where(seg[:, None] == seg[None, :], 0.0, MASK_NEG).astype(np.float32)


# ----------------------------- full forward pass --------------------------------

def video_transformer_forward(x, params):
    vp = params["vivit"]
    B = x.shape[0]
    D = HIDDEN_DIM
    Hp = IMAGE_SIZE // PATCH_SIZE
    n_seq_s = B * T_TUBES
    MS = n_seq_s * N_TOKENS                   # total spatial token rows
    MT = n_seq_s                              # temporal token rows (B*Tt)
    NP_TOT = n_seq_s * N_PATCHES              # total patches
    KP = IN_CHANNELS * TUBE_SIZE * PATCH_SIZE * PATCH_SIZE

    # ---- im2col patches (tiny; XLA fuses this into the kernel input copy) ------
    # TODO(synk): the non-overlapping Conv3d is lowered as im2col + matmul; the
    # 8-D reshape/transpose stays in XLA (6 KiB input, negligible).
    xr = x.reshape(B, T_TUBES, TUBE_SIZE, IN_CHANNELS, Hp, PATCH_SIZE, Hp, PATCH_SIZE)
    xr = xr.transpose(0, 1, 4, 6, 3, 2, 5, 7)
    patches = xr.reshape(NP_TOT, KP)

    # ---- cls token + positional embedding base (parameter-only tensor) ---------
    pos = vp["pos_embedding"][0, :, :N_TOKENS, :]                 # (Tt, 5, D)
    base = pos.at[:, 0, :].add(vp["space_token"][0, 0])
    base = jnp.broadcast_to(base[None], (B, T_TUBES, N_TOKENS, D)).reshape(MS, D)

    # ---- static scatter / selection matrices and attention masks ---------------
    scat = np.zeros((MS, NP_TOT), np.float32)
    selcls = np.zeros((MT, MS), np.float32)
    for s in range(n_seq_s):
        selcls[s, s * N_TOKENS] = 1.0
        for pi in range(N_PATCHES):
            scat[s * N_TOKENS + 1 + pi, s * N_PATCHES + pi] = 1.0
    smask = _seg_bias(np.arange(MS) // N_TOKENS)                  # spatial block-diag
    tmask = _seg_bias(np.arange(MT) // T_TUBES)                   # temporal block-diag

    sw = _encoder_weight_refs(vp["space_tr"])
    tw = _encoder_weight_refs(vp["temporal_tr"])

    # ---- kernel 1: embed + spatial + temporal transformers ---------------------
    mem = pl.pallas_call(
        _vivit_encoder_kernel,
        out_shape=jax.ShapeDtypeStruct((MT, D), jnp.float32),
    )(patches, jnp.asarray(scat), base, vp["patch_w"], vp["patch_b"].reshape(1, D),
      jnp.asarray(smask), *sw, jnp.asarray(selcls), jnp.asarray(tmask), *tw)

    # ---- kernel 2: batched (sub + act) transformer decoder + final norm --------
    subq = jnp.broadcast_to(vp["sub_queries"], (B, NUM_SUBJECTS, D))
    actq = jnp.broadcast_to(vp["act_queries"], (B, NUM_ACTIONS, D))
    q_flat = jnp.concatenate([subq, actq], axis=1).reshape(B * NQ_TOT, D)

    seg_q = np.concatenate(
        [np.concatenate([np.full(NUM_SUBJECTS, 2 * b), np.full(NUM_ACTIONS, 2 * b + 1)])
         for b in range(B)])
    sbias = _seg_bias(seg_q)                                       # self-attn mask
    qb = np.arange(B * NQ_TOT) // NQ_TOT
    kb = np.arange(MT) // T_TUBES
    cbias = np.where(qb[:, None] == kb[None, :], 0.0, MASK_NEG).astype(np.float32)

    dp = vp["dec"]
    sa = _mha_weight_refs(dp["self_attn"])
    ca = _mha_weight_refs(dp["cross_attn"])

    dec = pl.pallas_call(
        _decoder_kernel,
        out_shape=jax.ShapeDtypeStruct((B * NQ_TOT, D), jnp.float32),
    )(q_flat, mem, jnp.asarray(sbias), jnp.asarray(cbias), *sa, *ca,
      dp["w1"], dp["b1"].reshape(1, DEC_FFN_DIM), dp["w2"], dp["b2"].reshape(1, D),
      dp["ln1_g"].reshape(1, D), dp["ln1_b"].reshape(1, D),
      dp["ln2_g"].reshape(1, D), dp["ln2_b"].reshape(1, D),
      dp["ln3_g"].reshape(1, D), dp["ln3_b"].reshape(1, D),
      params["norm_g"].reshape(1, D), params["norm_b"].reshape(1, D))

    # ---- tiny epilogue: class heads + mean pooling (plain XLA) -----------------
    y = dec.reshape(B, NQ_TOT, D)
    fs = y[:, :NUM_SUBJECTS]
    fa = y[:, NUM_SUBJECTS:]
    out_sub = jnp.squeeze(jnp.einsum("bnd,de->bne", fs, params["w_sub"]) + params["b_sub"],
                          axis=-1)
    out_act = jnp.squeeze(jnp.einsum("bnd,de->bne", fa, params["w_act"]) + params["b_act"],
                          axis=-1)
    feat_sub = jnp.mean(fs, axis=1)
    feat_act = jnp.mean(fa, axis=1)
    return out_sub, out_act, feat_sub, feat_act, subq, actq


# ----------------------------- deterministic init -------------------------------

def _orthogonal_queries(key, n_classes, n_dim):
    init = jax.random.normal(key, (n_dim, n_dim), jnp.float32)
    init = init / jnp.maximum(jnp.linalg.norm(init, axis=1, keepdims=True), 1e-12)
    q, r = jnp.linalg.qr(init)
    q = q * jnp.sign(jnp.diagonal(r))[None, :]
    vecs = q[:n_classes]
    vecs = vecs / jnp.maximum(jnp.linalg.norm(vecs, axis=1, keepdims=True), 1e-12)
    return vecs


def init_params(key):
    keys = iter(jax.random.split(key, 80))

    def rnd(shape, scale=0.02):
        return jax.random.normal(next(keys), shape, jnp.float32) * scale

    D = HIDDEN_DIM
    inner = NUM_HEADS * DIM_HEAD
    mlp = D * SCALE_DIM

    def vivit_tr_params():
        layers = []
        for _ in range(NUM_LAYERS):
            layers.append(dict(
                ln1_g=jnp.ones((D,)), ln1_b=jnp.zeros((D,)),
                w_qkv=rnd((D, 3 * inner)),
                w_out=rnd((inner, D)), b_out=jnp.zeros((D,)),
                ln2_g=jnp.ones((D,)), ln2_b=jnp.zeros((D,)),
                w_ff1=rnd((D, mlp)), b_ff1=jnp.zeros((mlp,)),
                w_ff2=rnd((mlp, D)), b_ff2=jnp.zeros((D,)),
            ))
        return dict(layers=layers, norm_g=jnp.ones((D,)), norm_b=jnp.zeros((D,)))

    def mha_params():
        return dict(
            w_q=rnd((D, D)), b_q=jnp.zeros((D,)),
            w_k=rnd((D, D)), b_k=jnp.zeros((D,)),
            w_v=rnd((D, D)), b_v=jnp.zeros((D,)),
            w_o=rnd((D, D)), b_o=jnp.zeros((D,)),
        )

    dec_layer = dict(
        self_attn=mha_params(), cross_attn=mha_params(),
        w1=rnd((D, DEC_FFN_DIM)), b1=jnp.zeros((DEC_FFN_DIM,)),
        w2=rnd((DEC_FFN_DIM, D)), b2=jnp.zeros((D,)),
        ln1_g=jnp.ones((D,)), ln1_b=jnp.zeros((D,)),
        ln2_g=jnp.ones((D,)), ln2_b=jnp.zeros((D,)),
        ln3_g=jnp.ones((D,)), ln3_b=jnp.zeros((D,)),
    )

    k_patch = IN_CHANNELS * TUBE_SIZE * PATCH_SIZE * PATCH_SIZE
    conv_w = rnd((D, IN_CHANNELS, TUBE_SIZE, PATCH_SIZE, PATCH_SIZE), scale=0.05)
    patch_w = conv_w.reshape(D, k_patch).T                       # (K, D)

    return dict(
        vivit=dict(
            patch_w=patch_w, patch_b=jnp.zeros((D,)),
            pos_embedding=rnd((1, T_TUBES, N_PATCHES + 1, D)),
            space_token=rnd((1, 1, D)),
            space_tr=vivit_tr_params(),
            temporal_tr=vivit_tr_params(),
            dec=dec_layer,                                       # shared clone init
            sub_queries=_orthogonal_queries(next(keys), NUM_SUBJECTS, D)[None],
            act_queries=_orthogonal_queries(next(keys), NUM_ACTIONS, D)[None],
        ),
        norm_g=jnp.ones((D,)), norm_b=jnp.zeros((D,)),
        w_sub=rnd((D, 1)), b_sub=jnp.zeros((1,)),
        w_act=rnd((D, 1)), b_act=jnp.zeros((1,)),
    )


# ----------------------------------- main ---------------------------------------

if __name__ == "__main__":
    key = jax.random.PRNGKey(0)
    pkey, xkey = jax.random.split(key)
    params = init_params(pkey)
    x = jax.random.normal(
        xkey, (BATCH, NUM_FRAMES, IN_CHANNELS, IMAGE_SIZE, IMAGE_SIZE), jnp.float32)

    fwd = jax.jit(video_transformer_forward)
    outs = fwd(x, params)
    outs = jax.tree_util.tree_map(jax.block_until_ready, outs)

    out_sub, out_act, feat_sub, feat_act, subq, actq = outs
    assert out_sub.shape == (BATCH, NUM_SUBJECTS)
    assert out_act.shape == (BATCH, NUM_ACTIONS)
    assert feat_sub.shape == (BATCH, HIDDEN_DIM)
    assert feat_act.shape == (BATCH, HIDDEN_DIM)
    assert subq.shape == (BATCH, NUM_SUBJECTS, HIDDEN_DIM)
    assert actq.shape == (BATCH, NUM_ACTIONS, HIDDEN_DIM)
    assert bool(jnp.all(jnp.isfinite(out_sub))) and bool(jnp.all(jnp.isfinite(out_act)))
    print("KERNEL_OK")
</pallas_src>

<mosaic_0001>
module attributes {stable_mosaic.version = 11 : i64} {
  func.func @_decoder_kernel(%arg0: memref<16x32xf32, #tpu.memory_space<vmem>>, %arg1: memref<4x32xf32, #tpu.memory_space<vmem>>, %arg2: memref<16x16xf32, #tpu.memory_space<vmem>>, %arg3: memref<16x4xf32, #tpu.memory_space<vmem>>, %arg4: memref<2x32x16xf32, #tpu.memory_space<vmem>>, %arg5: memref<2x1x16xf32, #tpu.memory_space<vmem>>, %arg6: memref<2x32x16xf32, #tpu.memory_space<vmem>>, %arg7: memref<2x1x16xf32, #tpu.memory_space<vmem>>, %arg8: memref<2x32x16xf32, #tpu.memory_space<vmem>>, %arg9: memref<2x1x16xf32, #tpu.memory_space<vmem>>, %arg10: memref<2x16x32xf32, #tpu.memory_space<vmem>>, %arg11: memref<1x32xf32, #tpu.memory_space<vmem>>, %arg12: memref<2x32x16xf32, #tpu.memory_space<vmem>>, %arg13: memref<2x1x16xf32, #tpu.memory_space<vmem>>, %arg14: memref<2x32x16xf32, #tpu.memory_space<vmem>>, %arg15: memref<2x1x16xf32, #tpu.memory_space<vmem>>, %arg16: memref<2x32x16xf32, #tpu.memory_space<vmem>>, %arg17: memref<2x1x16xf32, #tpu.memory_space<vmem>>, %arg18: memref<2x16x32xf32, #tpu.memory_space<vmem>>, %arg19: memref<1x32xf32, #tpu.memory_space<vmem>>, %arg20: memref<32x2048xf32, #tpu.memory_space<vmem>>, %arg21: memref<1x2048xf32, #tpu.memory_space<vmem>>, %arg22: memref<2048x32xf32, #tpu.memory_space<vmem>>, %arg23: memref<1x32xf32, #tpu.memory_space<vmem>>, %arg24: memref<1x32xf32, #tpu.memory_space<vmem>>, %arg25: memref<1x32xf32, #tpu.memory_space<vmem>>, %arg26: memref<1x32xf32, #tpu.memory_space<vmem>>, %arg27: memref<1x32xf32, #tpu.memory_space<vmem>>, %arg28: memref<1x32xf32, #tpu.memory_space<vmem>>, %arg29: memref<1x32xf32, #tpu.memory_space<vmem>>, %arg30: memref<1x32xf32, #tpu.memory_space<vmem>>, %arg31: memref<1x32xf32, #tpu.memory_space<vmem>>, %arg32: memref<16x32xf32, #tpu.memory_space<vmem>>) attributes {dimension_semantics = [], scalar_prefetch = 0 : i64, scratch_operands = 0 : i64, tpu.core_type = #tpu.core_type<tc>} {
    %c0 = arith.constant 0 : index
    %c0_0 = arith.constant 0 : index
    %0 = vector.load %arg0[%c0, %c0_0] : memref<16x32xf32, #tpu.memory_space<vmem>>, vector<16x32xf32>
    %c0_1 = arith.constant 0 : index
    %c0_2 = arith.constant 0 : index
    %1 = vector.load %arg1[%c0_1, %c0_2] : memref<4x32xf32, #tpu.memory_space<vmem>>, vector<4x32xf32>
    %c0_3 = arith.constant 0 : index
    %c0_4 = arith.constant 0 : index
    %2 = vector.load %arg2[%c0_3, %c0_4] : memref<16x16xf32, #tpu.memory_space<vmem>>, vector<16x16xf32>
    %c0_5 = arith.constant 0 : index
    %c0_6 = arith.constant 0 : index
    %3 = vector.load %arg3[%c0_5, %c0_6] : memref<16x4xf32, #tpu.memory_space<vmem>>, vector<16x4xf32>
    %c0_7 = arith.constant 0 : index
    %c0_8 = arith.constant 0 : index
    %c0_9 = arith.constant 0 : index
    %4 = vector.load %arg4[%c0_7, %c0_8, %c0_9] : memref<2x32x16xf32, #tpu.memory_space<vmem>>, vector<1x32x16xf32>
    %5 = vector.shape_cast %4 : vector<1x32x16xf32> to vector<32x16xf32>
    %cst = arith.constant dense<0.000000e+00> : vector<16x16xf32>
    %6 = tpu.matmul %0, %5, %cst {dimension_numbers = #tpu.dot_dimension_numbers<[1], [0], [0], [1], [0, 0, 1, 1], [], []>} : vector<16x32xf32>, vector<32x16xf32>, vector<16x16xf32> -> vector<16x16xf32>
    %c0_10 = arith.constant 0 : index
    %c0_11 = arith.constant 0 : index
    %c0_12 = arith.constant 0 : index
    %7 = vector.load %arg5[%c0_10, %c0_11, %c0_12] : memref<2x1x16xf32, #tpu.memory_space<vmem>>, vector<1x1x16xf32>
    %8 = vector.shape_cast %7 : vector<1x1x16xf32> to vector<1x16xf32>
    %9 = vector.broadcast %8 : vector<1x16xf32> to vector<16x16xf32>
    %10 = arith.addf %6, %9 : vector<16x16xf32>
    %c0_13 = arith.constant 0 : index
    %c0_14 = arith.constant 0 : index
    %c0_15 = arith.constant 0 : index
    %11 = vector.load %arg6[%c0_13, %c0_14, %c0_15] : memref<2x32x16xf32, #tpu.memory_space<vmem>>, vector<1x32x16xf32>
    %12 = vector.shape_cast %11 : vector<1x32x16xf32> to vector<32x16xf32>
    %cst_16 = arith.constant dense<0.000000e+00> : vector<16x16xf32>
    %13 = tpu.matmul %0, %12, %cst_16 {dimension_numbers = #tpu.dot_dimension_numbers<[1], [0], [0], [1], [0, 0, 1, 1], [], []>} : vector<16x32xf32>, vector<32x16xf32>, vector<16x16xf32> -> vector<16x16xf32>
    %c0_17 = arith.constant 0 : index
    %c0_18 = arith.constant 0 : index
    %c0_19 = arith.constant 0 : index
    %14 = vector.load %arg7[%c0_17, %c0_18, %c0_19] : memref<2x1x16xf32, #tpu.memory_space<vmem>>, vector<1x1x16xf32>
    %15 = vector.shape_cast %14 : vector<1x1x16xf32> to vector<1x16xf32>
    %16 = vector.broadcast %15 : vector<1x16xf32> to vector<16x16xf32>
    %17 = arith.addf %13, %16 : vector<16x16xf32>
    %c0_20 = arith.constant 0 : index
    %c0_21 = arith.constant 0 : index
    %c0_22 = arith.constant 0 : index
    %18 = vector.load %arg8[%c0_20, %c0_21, %c0_22] : memref<2x32x16xf32, #tpu.memory_space<vmem>>, vector<1x32x16xf32>
    %19 = vector.shape_cast %18 : vector<1x32x16xf32> to vector<32x16xf32>
    %cst_23 = arith.constant dense<0.000000e+00> : vector<16x16xf32>
    %20 = tpu.matmul %0, %19, %cst_23 {dimension_numbers = #tpu.dot_dimension_numbers<[1], [0], [0], [1], [0, 0, 1, 1], [], []>} : vector<16x32xf32>, vector<32x16xf32>, vector<16x16xf32> -> vector<16x16xf32>
    %c0_24 = arith.constant 0 : index
    %c0_25 = arith.constant 0 : index
    %c0_26 = arith.constant 0 : index
    %21 = vector.load %arg9[%c0_24, %c0_25, %c0_26] : memref<2x1x16xf32, #tpu.memory_space<vmem>>, vector<1x1x16xf32>
    %22 = vector.shape_cast %21 : vector<1x1x16xf32> to vector<1x16xf32>
    %23 = vector.broadcast %22 : vector<1x16xf32> to vector<16x16xf32>
    %24 = arith.addf %20, %23 : vector<16x16xf32>
    %cst_27 = arith.constant dense<0.000000e+00> : vector<16x16xf32>
    %25 = tpu.matmul %10, %17, %cst_27 {dimension_numbers = #tpu.dot_dimension_numbers<[1], [1], [0], [0], [0, 0, 1, 0], [], []>} : vector<16x16xf32>, vector<16x16xf32>, vector<16x16xf32> -> vector<16x16xf32>
    %cst_28 = arith.constant 2.500000e-01 : f32
    %26 = vector.broadcast %cst_28 : f32 to vector<16x16xf32>
    %27 = arith.mulf %25, %26 : vector<16x16xf32>
    %28 = arith.addf %27, %2 : vector<16x16xf32>
    %cst_29 = arith.constant dense<0xFF800000> : vector<16xf32>
    %29 = vector.multi_reduction <maximumf>, %28, %cst_29 [1] : vector<16x16xf32> to vector<16xf32>
    %30 = vector.shape_cast %29 : vector<16xf32> to vector<16x1xf32>
    %31 = vector.broadcast %30 : vector<16x1xf32> to vector<16x16xf32>
    %32 = arith.subf %28, %31 : vector<16x16xf32>
    %33 = math.exp %32 : vector<16x16xf32>
    %cst_30 = arith.constant dense<0.000000e+00> : vector<16xf32>
    %34 = vector.multi_reduction <add>, %33, %cst_30 [1] : vector<16x16xf32> to vector<16xf32>
    %35 = vector.shape_cast %34 : vector<16xf32> to vector<16x1xf32>
    %36 = tpu.reciprocal %35 {approx = true} : vector<16x1xf32> -> vector<16x1xf32>
    %37 = vector.broadcast %36 : vector<16x1xf32> to vector<16x16xf32>
    %38 = arith.mulf %33, %37 : vector<16x16xf32>
    %cst_31 = arith.constant dense<0.000000e+00> : vector<16x16xf32>
    %39 = tpu.matmul %38, %24, %cst_31 {dimension_numbers = #tpu.dot_dimension_numbers<[1], [0], [0], [1], [0, 0, 1, 1], [], []>} : vector<16x16xf32>, vector<16x16xf32>, vector<16x16xf32> -> vector<16x16xf32>
    %c0_32 = arith.constant 0 : index
    %c0_33 = arith.constant 0 : index
    %c0_34 = arith.constant 0 : index
    %40 = vector.load %arg10[%c0_32, %c0_33, %c0_34] : memref<2x16x32xf32, #tpu.memory_space<vmem>>, vector<1x16x32xf32>
    %41 = vector.shape_cast %40 : vector<1x16x32xf32> to vector<16x32xf32>
    %cst_35 = arith.constant dense<0.000000e+00> : vector<16x32xf32>
    %42 = tpu.matmul %39, %41, %cst_35 {dimension_numbers = #tpu.dot_dimension_numbers<[1], [0], [0], [1], [0, 0, 1, 1], [], []>} : vector<16x16xf32>, vector<16x32xf32>, vector<16x32xf32> -> vector<16x32xf32>
    %c1 = arith.constant 1 : index
    %c0_36 = arith.constant 0 : index
    %c0_37 = arith.constant 0 : index
    %43 = vector.load %arg4[%c1, %c0_36, %c0_37] : memref<2x32x16xf32, #tpu.memory_space<vmem>>, vector<1x32x16xf32>
    %44 = vector.shape_cast %43 : vector<1x32x16xf32> to vector<32x16xf32>
    %cst_38 = arith.constant dense<0.000000e+00> : vector<16x16xf32>
    %45 = tpu.matmul %0, %44, %cst_38 {dimension_numbers = #tpu.dot_dimension_numbers<[1], [0], [0], [1], [0, 0, 1, 1], [], []>} : vector<16x32xf32>, vector<32x16xf32>, vector<16x16xf32> -> vector<16x16xf32>
    %c1_39 = arith.constant 1 : index
    %c0_40 = arith.constant 0 : index
    %c0_41 = arith.constant 0 : index
    %46 = vector.load %arg5[%c1_39, %c0_40, %c0_41] : memref<2x1x16xf32, #tpu.memory_space<vmem>>, vector<1x1x16xf32>
    %47 = vector.shape_cast %46 : vector<1x1x16xf32> to vector<1x16xf32>
    %48 = vector.broadcast %47 : vector<1x16xf32> to vector<16x16xf32>
    %49 = arith.addf %45, %48 : vector<16x16xf32>
    %c1_42 = arith.constant 1 : index
    %c0_43 = arith.constant 0 : index
    %c0_44 = arith.constant 0 : index
    %50 = vector.load %arg6[%c1_42, %c0_43, %c0_44] : memref<2x32x16xf32, #tpu.memory_space<vmem>>, vector<1x32x16xf32>
    %51 = vector.shape_cast %50 : vector<1x32x16xf32> to vector<32x16xf32>
    %cst_45 = arith.constant dense<0.000000e+00> : vector<16x16xf32>
    %52 = tpu.matmul %0, %51, %cst_45 {dimension_numbers = #tpu.dot_dimension_numbers<[1], [0], [0], [1], [0, 0, 1, 1], [], []>} : vector<16x32xf32>, vector<32x16xf32>, vector<16x16xf32> -> vector<16x16xf32>
    %c1_46 = arith.constant 1 : index
    %c0_47 = arith.constant 0 : index
    %c0_48 = arith.constant 0 : index
    %53 = vector.load %arg7[%c1_46, %c0_47, %c0_48] : memref<2x1x16xf32, #tpu.memory_space<vmem>>, vector<1x1x16xf32>
    %54 = vector.shape_cast %53 : vector<1x1x16xf32> to vector<1x16xf32>
    %55 = vector.broadcast %54 : vector<1x16xf32> to vector<16x16xf32>
    %56 = arith.addf %52, %55 : vector<16x16xf32>
    %c1_49 = arith.constant 1 : index
    %c0_50 = arith.constant 0 : index
    %c0_51 = arith.constant 0 : index
    %57 = vector.load %arg8[%c1_49, %c0_50, %c0_51] : memref<2x32x16xf32, #tpu.memory_space<vmem>>, vector<1x32x16xf32>
    %58 = vector.shape_cast %57 : vector<1x32x16xf32> to vector<32x16xf32>
    %cst_52 = arith.constant dense<0.000000e+00> : vector<16x16xf32>
    %59 = tpu.matmul %0, %58, %cst_52 {dimension_numbers = #tpu.dot_dimension_numbers<[1], [0], [0], [1], [0, 0, 1, 1], [], []>} : vector<16x32xf32>, vector<32x16xf32>, vector<16x16xf32> -> vector<16x16xf32>
    %c1_53 = arith.constant 1 : index
    %c0_54 = arith.constant 0 : index
    %c0_55 = arith.constant 0 : index
    %60 = vector.load %arg9[%c1_53, %c0_54, %c0_55] : memref<2x1x16xf32, #tpu.memory_space<vmem>>, vector<1x1x16xf32>
    %61 = vector.shape_cast %60 : vector<1x1x16xf32> to vector<1x16xf32>
    %62 = vector.broadcast %61 : vector<1x16xf32> to vector<16x16xf32>
    %63 = arith.addf %59, %62 : vector<16x16xf32>
    %cst_56 = arith.constant dense<0.000000e+00> : vector<16x16xf32>
    %64 = tpu.matmul %49, %56, %cst_56 {dimension_numbers = #tpu.dot_dimension_numbers<[1], [1], [0], [0], [0, 0, 1, 0], [], []>} : vector<16x16xf32>, vector<16x16xf32>, vector<16x16xf32> -> vector<16x16xf32>
    %cst_57 = arith.constant 2.500000e-01 : f32
    %65 = vector.broadcast %cst_57 : f32 to vector<16x16xf32>
    %66 = arith.mulf %64, %65 : vector<16x16xf32>
    %67 = arith.addf %66, %2 : vector<16x16xf32>
    %cst_58 = arith.constant dense<0xFF800000> : vector<16xf32>
    %68 = vector.multi_reduction <maximumf>, %67, %cst_58 [1] : vector<16x16xf32> to vector<16xf32>
    %69 = vector.shape_cast %68 : vector<16xf32> to vector<16x1xf32>
    %70 = vector.broadcast %69 : vector<16x1xf32> to vector<16x16xf32>
    %71 = arith.subf %67, %70 : vector<16x16xf32>
    %72 = math.exp %71 : vector<16x16xf32>
    %cst_59 = arith.constant dense<0.000000e+00> : vector<16xf32>
    %73 = vector.multi_reduction <add>, %72, %cst_59 [1] : vector<16x16xf32> to vector<16xf32>
    %74 = vector.shape_cast %73 : vector<16xf32> to vector<16x1xf32>
    %75 = tpu.reciprocal %74 {approx = true} : vector<16x1xf32> -> vector<16x1xf32>
    %76 = vector.broadcast %75 : vector<16x1xf32> to vector<16x16xf32>
    %77 = arith.mulf %72, %76 : vector<16x16xf32>
    %cst_60 = arith.constant dense<0.000000e+00> : vector<16x16xf32>
    %78 = tpu.matmul %77, %63, %cst_60 {dimension_numbers = #tpu.dot_dimension_numbers<[1], [0], [0], [1], [0, 0, 1, 1], [], []>} : vector<16x16xf32>, vector<16x16xf32>, vector<16x16xf32> -> vector<16x16xf32>
    %c1_61 = arith.constant 1 : index
    %c0_62 = arith.constant 0 : index
    %c0_63 = arith.constant 0 : index
    %79 = vector.load %arg10[%c1_61, %c0_62, %c0_63] : memref<2x16x32xf32, #tpu.memory_space<vmem>>, vector<1x16x32xf32>
    %80 = vector.shape_cast %79 : vector<1x16x32xf32> to vector<16x32xf32>
    %cst_64 = arith.constant dense<0.000000e+00> : vector<16x32xf32>
    %81 = tpu.matmul %78, %80, %cst_64 {dimension_numbers = #tpu.dot_dimension_numbers<[1], [0], [0], [1], [0, 0, 1, 1], [], []>} : vector<16x16xf32>, vector<16x32xf32>, vector<16x32xf32> -> vector<16x32xf32>
    %82 = arith.addf %42, %81 : vector<16x32xf32>
    %c0_65 = arith.constant 0 : index
    %c0_66 = arith.constant 0 : index
    %83 = vector.load %arg11[%c0_65, %c0_66] : memref<1x32xf32, #tpu.memory_space<vmem>>, vector<1x32xf32>
    %84 = vector.broadcast %83 : vector<1x32xf32> to vector<16x32xf32>
    %85 = arith.addf %82, %84 : vector<16x32xf32>
    %86 = arith.addf %0, %85 : vector<16x32xf32>
    %c0_67 = arith.constant 0 : index
    %c0_68 = arith.constant 0 : index
    %87 = vector.load %arg24[%c0_67, %c0_68] : memref<1x32xf32, #tpu.memory_space<vmem>>, vector<1x32xf32>
    %c0_69 = arith.constant 0 : index
    %c0_70 = arith.constant 0 : index
    %88 = vector.load %arg25[%c0_69, %c0_70] : memref<1x32xf32, #tpu.memory_space<vmem>>, vector<1x32xf32>
    %cst_71 = arith.constant dense<0.000000e+00> : vector<16xf32>
    %89 = vector.multi_reduction <add>, %86, %cst_71 [1] : vector<16x32xf32> to vector<16xf32>
    %90 = vector.shape_cast %89 : vector<16xf32> to vector<16x1xf32>
    %cst_72 = arith.constant 3.200000e+01 : f32
    %91 = vector.broadcast %cst_72 : f32 to vector<16x1xf32>
    %92 = arith.divf %90, %91 : vector<16x1xf32>
    %93 = vector.broadcast %92 : vector<16x1xf32> to vector<16x32xf32>
    %94 = arith.subf %86, %93 : vector<16x32xf32>
    %95 = arith.mulf %94, %94 : vector<16x32xf32>
    %cst_73 = arith.constant dense<0.000000e+00> : vector<16xf32>
    %96 = vector.multi_reduction <add>, %95, %cst_73 [1] : vector<16x32xf32> to vector<16xf32>
    %97 = vector.shape_cast %96 : vector<16xf32> to vector<16x1xf32>
    %cst_74 = arith.constant 3.200000e+01 : f32
    %98 = vector.broadcast %cst_74 : f32 to vector<16x1xf32>
    %99 = arith.divf %97, %98 : vector<16x1xf32>
    %cst_75 = arith.constant 9.99999974E-6 : f32
    %100 = vector.broadcast %cst_75 : f32 to vector<16x1xf32>
    %101 = arith.addf %99, %100 : vector<16x1xf32>
    %102 = math.rsqrt %101 : vector<16x1xf32>
    %103 = vector.broadcast %102 : vector<16x1xf32> to vector<16x32xf32>
    %104 = arith.mulf %94, %103 : vector<16x32xf32>
    %105 = vector.broadcast %87 : vector<1x32xf32> to vector<16x32xf32>
    %106 = arith.mulf %104, %105 : vector<16x32xf32>
    %107 = vector.broadcast %88 : vector<1x32xf32> to vector<16x32xf32>
    %108 = arith.addf %106, %107 : vector<16x32xf32>
    %c0_76 = arith.constant 0 : index
    %c0_77 = arith.constant 0 : index
    %c0_78 = arith.constant 0 : index
    %109 = vector.load %arg12[%c0_76, %c0_77, %c0_78] : memref<2x32x16xf32, #tpu.memory_space<vmem>>, vector<1x32x16xf32>
    %110 = vector.shape_cast %109 : vector<1x32x16xf32> to vector<32x16xf32>
    %cst_79 = arith.constant dense<0.000000e+00> : vector<16x16xf32>
    %111 = tpu.matmul %108, %110, %cst_79 {dimension_numbers = #tpu.dot_dimension_numbers<[1], [0], [0], [1], [0, 0, 1, 1], [], []>} : vector<16x32xf32>, vector<32x16xf32>, vector<16x16xf32> -> vector<16x16xf32>
    %c0_80 = arith.constant 0 : index
    %c0_81 = arith.constant 0 : index
    %c0_82 = arith.constant 0 : index
    %112 = vector.load %arg13[%c0_80, %c0_81, %c0_82] : memref<2x1x16xf32, #tpu.memory_space<vmem>>, vector<1x1x16xf32>
    %113 = vector.shape_cast %112 : vector<1x1x16xf32> to vector<1x16xf32>
    %114 = vector.broadcast %113 : vector<1x16xf32> to vector<16x16xf32>
    %115 = arith.addf %111, %114 : vector<16x16xf32>
    %c0_83 = arith.constant 0 : index
    %c0_84 = arith.constant 0 : index
    %c0_85 = arith.constant 0 : index
    %116 = vector.load %arg14[%c0_83, %c0_84, %c0_85] : memref<2x32x16xf32, #tpu.memory_space<vmem>>, vector<1x32x16xf32>
    %117 = vector.shape_cast %116 : vector<1x32x16xf32> to vector<32x16xf32>
    %cst_86 = arith.constant dense<0.000000e+00> : vector<4x16xf32>
    %118 = tpu.matmul %1, %117, %cst_86 {dimension_numbers = #tpu.dot_dimension_numbers<[1], [0], [0], [1], [0, 0, 1, 1], [], []>} : vector<4x32xf32>, vector<32x16xf32>, vector<4x16xf32> -> vector<4x16xf32>
    %c0_87 = arith.constant 0 : index
    %c0_88 = arith.constant 0 : index
    %c0_89 = arith.constant 0 : index
    %119 = vector.load %arg15[%c0_87, %c0_88, %c0_89] : memref<2x1x16xf32, #tpu.memory_space<vmem>>, vector<1x1x16xf32>
    %120 = vector.shape_cast %119 : vector<1x1x16xf32> to vector<1x16xf32>
    %121 = vector.broadcast %120 : vector<1x16xf32> to vector<4x16xf32>
    %122 = arith.addf %118, %121 : vector<4x16xf32>
    %c0_90 = arith.constant 0 : index
    %c0_91 = arith.constant 0 : index
    %c0_92 = arith.constant 0 : index
    %123 = vector.load %arg16[%c0_90, %c0_91, %c0_92] : memref<2x32x16xf32, #tpu.memory_space<vmem>>, vector<1x32x16xf32>
    %124 = vector.shape_cast %123 : vector<1x32x16xf32> to vector<32x16xf32>
    %cst_93 = arith.constant dense<0.000000e+00> : vector<4x16xf32>
    %125 = tpu.matmul %1, %124, %cst_93 {dimension_numbers = #tpu.dot_dimension_numbers<[1], [0], [0], [1], [0, 0, 1, 1], [], []>} : vector<4x32xf32>, vector<32x16xf32>, vector<4x16xf32> -> vector<4x16xf32>
    %c0_94 = arith.constant 0 : index
    %c0_95 = arith.constant 0 : index
    %c0_96 = arith.constant 0 : index
    %126 = vector.load %arg17[%c0_94, %c0_95, %c0_96] : memref<2x1x16xf32, #tpu.memory_space<vmem>>, vector<1x1x16xf32>
    %127 = vector.shape_cast %126 : vector<1x1x16xf32> to vector<1x16xf32>
    %128 = vector.broadcast %127 : vector<1x16xf32> to vector<4x16xf32>
    %129 = arith.addf %125, %128 : vector<4x16xf32>
    %cst_97 = arith.constant dense<0.000000e+00> : vector<16x4xf32>
    %130 = tpu.matmul %115, %122, %cst_97 {dimension_numbers = #tpu.dot_dimension_numbers<[1], [1], [0], [0], [0, 0, 1, 0], [], []>} : vector<16x16xf32>, vector<4x16xf32>, vector<16x4xf32> -> vector<16x4xf32>
    %cst_98 = arith.constant 2.500000e-01 : f32
    %131 = vector.broadcast %cst_98 : f32 to vector<16x4xf32>
    %132 = arith.mulf %130, %131 : vector<16x4xf32>
    %133 = arith.addf %132, %3 : vector<16x4xf32>
    %cst_99 = arith.constant dense<0xFF800000> : vector<16xf32>
    %134 = vector.multi_reduction <maximumf>, %133, %cst_99 [1] : vector<16x4xf32> to vector<16xf32>
    %135 = vector.shape_cast %134 : vector<16xf32> to vector<16x1xf32>
    %136 = vector.broadcast %135 : vector<16x1xf32> to vector<16x4xf32>
    %137 = arith.subf %133, %136 : vector<16x4xf32>
    %138 = math.exp %137 : vector<16x4xf32>
    %cst_100 = arith.constant dense<0.000000e+00> : vector<16xf32>
    %139 = vector.multi_reduction <add>, %138, %cst_100 [1] : vector<16x4xf32> to vector<16xf32>
    %140 = vector.shape_cast %139 : vector<16xf32> to vector<16x1xf32>
    %141 = tpu.reciprocal %140 {approx = true} : vector<16x1xf32> -> vector<16x1xf32>
    %142 = vector.broadcast %141 : vector<16x1xf32> to vector<16x4xf32>
    %143 = arith.mulf %138, %142 : vector<16x4xf32>
    %cst_101 = arith.constant dense<0.000000e+00> : vector<16x16xf32>
    %144 = tpu.matmul %143, %129, %cst_101 {dimension_numbers = #tpu.dot_dimension_numbers<[1], [0], [0], [1], [0, 0, 1, 1], [], []>} : vector<16x4xf32>, vector<4x16xf32>, vector<16x16xf32> -> vector<16x16xf32>
    %c0_102 = arith.constant 0 : index
    %c0_103 = arith.constant 0 : index
    %c0_104 = arith.constant 0 : index
    %145 = vector.load %arg18[%c0_102, %c0_103, %c0_104] : memref<2x16x32xf32, #tpu.memory_space<vmem>>, vector<1x16x32xf32>
    %146 = vector.shape_cast %145 : vector<1x16x32xf32> to vector<16x32xf32>
    %cst_105 = arith.constant dense<0.000000e+00> : vector<16x32xf32>
    %147 = tpu.matmul %144, %146, %cst_105 {dimension_numbers = #tpu.dot_dimension_numbers<[1], [0], [0], [1], [0, 0, 1, 1], [], []>} : vector<16x16xf32>, vector<16x32xf32>, vector<16x32xf32> -> vector<16x32xf32>
    %c1_106 = arith.constant 1 : index
    %c0_107 = arith.constant 0 : index
    %c0_108 = arith.constant 0 : index
    %148 = vector.load %arg12[%c1_106, %c0_107, %c0_108] : memref<2x32x16xf32, #tpu.memory_space<vmem>>, vector<1x32x16xf32>
    %149 = vector.shape_cast %148 : vector<1x32x16xf32> to vector<32x16xf32>
    %cst_109 = arith.constant dense<0.000000e+00> : vector<16x16xf32>
    %150 = tpu.matmul %108, %149, %cst_109 {dimension_numbers = #tpu.dot_dimension_numbers<[1], [0], [0], [1], [0, 0, 1, 1], [], []>} : vector<16x32xf32>, vector<32x16xf32>, vector<16x16xf32> -> vector<16x16xf32>
    %c1_110 = arith.constant 1 : index
    %c0_111 = arith.constant 0 : index
    %c0_112 = arith.constant 0 : index
    %151 = vector.load %arg13[%c1_110, %c0_111, %c0_112] : memref<2x1x16xf32, #tpu.memory_space<vmem>>, vector<1x1x16xf32>
    %152 = vector.shape_cast %151 : vector<1x1x16xf32> to vector<1x16xf32>
    %153 = vector.broadcast %152 : vector<1x16xf32> to vector<16x16xf32>
    %154 = arith.addf %150, %153 : vector<16x16xf32>
    %c1_113 = arith.constant 1 : index
    %c0_114 = arith.constant 0 : index
    %c0_115 = arith.constant 0 : index
    %155 = vector.load %arg14[%c1_113, %c0_114, %c0_115] : memref<2x32x16xf32, #tpu.memory_space<vmem>>, vector<1x32x16xf32>
    %156 = vector.shape_cast %155 : vector<1x32x16xf32> to vector<32x16xf32>
    %cst_116 = arith.constant dense<0.000000e+00> : vector<4x16xf32>
    %157 = tpu.matmul %1, %156, %cst_116 {dimension_numbers = #tpu.dot_dimension_numbers<[1], [0], [0], [1], [0, 0, 1, 1], [], []>} : vector<4x32xf32>, vector<32x16xf32>, vector<4x16xf32> -> vector<4x16xf32>
    %c1_117 = arith.constant 1 : index
    %c0_118 = arith.constant 0 : index
    %c0_119 = arith.constant 0 : index
    %158 = vector.load %arg15[%c1_117, %c0_118, %c0_119] : memref<2x1x16xf32, #tpu.memory_space<vmem>>, vector<1x1x16xf32>
    %159 = vector.shape_cast %158 : vector<1x1x16xf32> to vector<1x16xf32>
    %160 = vector.broadcast %159 : vector<1x16xf32> to vector<4x16xf32>
    %161 = arith.addf %157, %160 : vector<4x16xf32>
    %c1_120 = arith.constant 1 : index
    %c0_121 = arith.constant 0 : index
    %c0_122 = arith.constant 0 : index
    %162 = vector.load %arg16[%c1_120, %c0_121, %c0_122] : memref<2x32x16xf32, #tpu.memory_space<vmem>>, vector<1x32x16xf32>
    %163 = vector.shape_cast %162 : vector<1x32x16xf32> to vector<32x16xf32>
    %cst_123 = arith.constant dense<0.000000e+00> : vector<4x16xf32>
    %164 = tpu.matmul %1, %163, %cst_123 {dimension_numbers = #tpu.dot_dimension_numbers<[1], [0], [0], [1], [0, 0, 1, 1], [], []>} : vector<4x32xf32>, vector<32x16xf32>, vector<4x16xf32> -> vector<4x16xf32>
    %c1_124 = arith.constant 1 : index
    %c0_125 = arith.constant 0 : index
    %c0_126 = arith.constant 0 : index
    %165 = vector.load %arg17[%c1_124, %c0_125, %c0_126] : memref<2x1x16xf32, #tpu.memory_space<vmem>>, vector<1x1x16xf32>
    %166 = vector.shape_cast %165 : vector<1x1x16xf32> to vector<1x16xf32>
    %167 = vector.broadcast %166 : vector<1x16xf32> to vector<4x16xf32>
    %168 = arith.addf %164, %167 : vector<4x16xf32>
    %cst_127 = arith.constant dense<0.000000e+00> : vector<16x4xf32>
    %169 = tpu.matmul %154, %161, %cst_127 {dimension_numbers = #tpu.dot_dimension_numbers<[1], [1], [0], [0], [0, 0, 1, 0], [], []>} : vector<16x16xf32>, vector<4x16xf32>, vector<16x4xf32> -> vector<16x4xf32>
    %cst_128 = arith.constant 2.500000e-01 : f32
    %170 = vector.broadcast %cst_128 : f32 to vector<16x4xf32>
    %171 = arith.mulf %169, %170 : vector<16x4xf32>
    %172 = arith.addf %171, %3 : vector<16x4xf32>
    %cst_129 = arith.constant dense<0xFF800000> : vector<16xf32>
    %173 = vector.multi_reduction <maximumf>, %172, %cst_129 [1] : vector<16x4xf32> to vector<16xf32>
    %174 = vector.shape_cast %173 : vector<16xf32> to vector<16x1xf32>
    %175 = vector.broadcast %174 : vector<16x1xf32> to vector<16x4xf32>
    %176 = arith.subf %172, %175 : vector<16x4xf32>
    %177 = math.exp %176 : vector<16x4xf32>
    %cst_130 = arith.constant dense<0.000000e+00> : vector<16xf32>
    %178 = vector.multi_reduction <add>, %177, %cst_130 [1] : vector<16x4xf32> to vector<16xf32>
    %179 = vector.shape_cast %178 : vector<16xf32> to vector<16x1xf32>
    %180 = tpu.reciprocal %179 {approx = true} : vector<16x1xf32> -> vector<16x1xf32>
    %181 = vector.broadcast %180 : vector<16x1xf32> to vector<16x4xf32>
    %182 = arith.mulf %177, %181 : vector<16x4xf32>
    %cst_131 = arith.constant dense<0.000000e+00> : vector<16x16xf32>
    %183 = tpu.matmul %182, %168, %cst_131 {dimension_numbers = #tpu.dot_dimension_numbers<[1], [0], [0], [1], [0, 0, 1, 1], [], []>} : vector<16x4xf32>, vector<4x16xf32>, vector<16x16xf32> -> vector<16x16xf32>
    %c1_132 = arith.constant 1 : index
    %c0_133 = arith.constant 0 : index
    %c0_134 = arith.constant 0 : index
    %184 = vector.load %arg18[%c1_132, %c0_133, %c0_134] : memref<2x16x32xf32, #tpu.memory_space<vmem>>, vector<1x16x32xf32>
    %185 = vector.shape_cast %184 : vector<1x16x32xf32> to vector<16x32xf32>
    %cst_135 = arith.constant dense<0.000000e+00> : vector<16x32xf32>
    %186 = tpu.matmul %183, %185, %cst_135 {dimension_numbers = #tpu.dot_dimension_numbers<[1], [0], [0], [1], [0, 0, 1, 1], [], []>} : vector<16x16xf32>, vector<16x32xf32>, vector<16x32xf32> -> vector<16x32xf32>
    %187 = arith.addf %147, %186 : vector<16x32xf32>
    %c0_136 = arith.constant 0 : index
    %c0_137 = arith.constant 0 : index
    %188 = vector.load %arg19[%c0_136, %c0_137] : memref<1x32xf32, #tpu.memory_space<vmem>>, vector<1x32xf32>
    %189 = vector.broadcast %188 : vector<1x32xf32> to vector<16x32xf32>
    %190 = arith.addf %187, %189 : vector<16x32xf32>
    %191 = arith.addf %108, %190 : vector<16x32xf32>
    %c0_138 = arith.constant 0 : index
    %c0_139 = arith.constant 0 : index
    %192 = vector.load %arg26[%c0_138, %c0_139] : memref<1x32xf32, #tpu.memory_space<vmem>>, vector<1x32xf32>
    %c0_140 = arith.constant 0 : index
    %c0_141 = arith.constant 0 : index
    %193 = vector.load %arg27[%c0_140, %c0_141] : memref<1x32xf32, #tpu.memory_space<vmem>>, vector<1x32xf32>
    %cst_142 = arith.constant dense<0.000000e+00> : vector<16xf32>
    %194 = vector.multi_reduction <add>, %191, %cst_142 [1] : vector<16x32xf32> to vector<16xf32>
    %195 = vector.shape_cast %194 : vector<16xf32> to vector<16x1xf32>
    %cst_143 = arith.constant 3.200000e+01 : f32
    %196 = vector.broadcast %cst_143 : f32 to vector<16x1xf32>
    %197 = arith.divf %195, %196 : vector<16x1xf32>
    %198 = vector.broadcast %197 : vector<16x1xf32> to vector<16x32xf32>
    %199 = arith.subf %191, %198 : vector<16x32xf32>
    %200 = arith.mulf %199, %199 : vector<16x32xf32>
    %cst_144 = arith.constant dense<0.000000e+00> : vector<16xf32>
    %201 = vector.multi_reduction <add>, %200, %cst_144 [1] : vector<16x32xf32> to vector<16xf32>
    %202 = vector.shape_cast %201 : vector<16xf32> to vector<16x1xf32>
    %cst_145 = arith.constant 3.200000e+01 : f32
    %203 = vector.broadcast %cst_145 : f32 to vector<16x1xf32>
    %204 = arith.divf %202, %203 : vector<16x1xf32>
    %cst_146 = arith.constant 9.99999974E-6 : f32
    %205 = vector.broadcast %cst_146 : f32 to vector<16x1xf32>
    %206 = arith.addf %204, %205 : vector<16x1xf32>
    %207 = math.rsqrt %206 : vector<16x1xf32>
    %208 = vector.broadcast %207 : vector<16x1xf32> to vector<16x32xf32>
    %209 = arith.mulf %199, %208 : vector<16x32xf32>
    %210 = vector.broadcast %192 : vector<1x32xf32> to vector<16x32xf32>
    %211 = arith.mulf %209, %210 : vector<16x32xf32>
    %212 = vector.broadcast %193 : vector<1x32xf32> to vector<16x32xf32>
    %213 = arith.addf %211, %212 : vector<16x32xf32>
    %c0_147 = arith.constant 0 : index
    %c0_148 = arith.constant 0 : index
    %214 = vector.load %arg20[%c0_147, %c0_148] : memref<32x2048xf32, #tpu.memory_space<vmem>>, vector<32x2048xf32>
    %cst_149 = arith.constant dense<0.000000e+00> : vector<16x2048xf32>
    %215 = tpu.matmul %213, %214, %cst_149 {dimension_numbers = #tpu.dot_dimension_numbers<[1], [0], [0], [1], [0, 0, 1, 1], [], []>} : vector<16x32xf32>, vector<32x2048xf32>, vector<16x2048xf32> -> vector<16x2048xf32>
    %c0_150 = arith.constant 0 : index
    %c0_151 = arith.constant 0 : index
    %216 = vector.load %arg21[%c0_150, %c0_151] : memref<1x2048xf32, #tpu.memory_space<vmem>>, vector<1x2048xf32>
    %217 = vector.broadcast %216 : vector<1x2048xf32> to vector<16x2048xf32>
    %218 = arith.addf %215, %217 : vector<16x2048xf32>
    %cst_152 = arith.constant 0.000000e+00 : f32
    %219 = vector.broadcast %cst_152 : f32 to vector<16x2048xf32>
    %220 = arith.maximumf %218, %219 : vector<16x2048xf32>
    %c0_153 = arith.constant 0 : index
    %c0_154 = arith.constant 0 : index
    %221 = vector.load %arg22[%c0_153, %c0_154] : memref<2048x32xf32, #tpu.memory_space<vmem>>, vector<2048x32xf32>
    %cst_155 = arith.constant dense<0.000000e+00> : vector<16x32xf32>
    %222 = tpu.matmul %220, %221, %cst_155 {dimension_numbers = #tpu.dot_dimension_numbers<[1], [0], [0], [1], [0, 0, 1, 1], [], []>} : vector<16x2048xf32>, vector<2048x32xf32>, vector<16x32xf32> -> vector<16x32xf32>
    %c0_156 = arith.constant 0 : index
    %c0_157 = arith.constant 0 : index
    %223 = vector.load %arg23[%c0_156, %c0_157] : memref<1x32xf32, #tpu.memory_space<vmem>>, vector<1x32xf32>
    %224 = vector.broadcast %223 : vector<1x32xf32> to vector<16x32xf32>
    %225 = arith.addf %222, %224 : vector<16x32xf32>
    %226 = arith.addf %213, %225 : vector<16x32xf32>
    %c0_158 = arith.constant 0 : index
    %c0_159 = arith.constant 0 : index
    %227 = vector.load %arg28[%c0_158, %c0_159] : memref<1x32xf32, #tpu.memory_space<vmem>>, vector<1x32xf32>
    %c0_160 = arith.constant 0 : index
    %c0_161 = arith.constant 0 : index
    %228 = vector.load %arg29[%c0_160, %c0_161] : memref<1x32xf32, #tpu.memory_space<vmem>>, vector<1x32xf32>
    %cst_162 = arith.constant dense<0.000000e+00> : vector<16xf32>
    %229 = vector.multi_reduction <add>, %226, %cst_162 [1] : vector<16x32xf32> to vector<16xf32>
    %230 = vector.shape_cast %229 : vector<16xf32> to vector<16x1xf32>
    %cst_163 = arith.constant 3.200000e+01 : f32
    %231 = vector.broadcast %cst_163 : f32 to vector<16x1xf32>
    %232 = arith.divf %230, %231 : vector<16x1xf32>
    %233 = vector.broadcast %232 : vector<16x1xf32> to vector<16x32xf32>
    %234 = arith.subf %226, %233 : vector<16x32xf32>
    %235 = arith.mulf %234, %234 : vector<16x32xf32>
    %cst_164 = arith.constant dense<0.000000e+00> : vector<16xf32>
    %236 = vector.multi_reduction <add>, %235, %cst_164 [1] : vector<16x32xf32> to vector<16xf32>
    %237 = vector.shape_cast %236 : vector<16xf32> to vector<16x1xf32>
    %cst_165 = arith.constant 3.200000e+01 : f32
    %238 = vector.broadcast %cst_165 : f32 to vector<16x1xf32>
    %239 = arith.divf %237, %238 : vector<16x1xf32>
    %cst_166 = arith.constant 9.99999974E-6 : f32
    %240 = vector.broadcast %cst_166 : f32 to vector<16x1xf32>
    %241 = arith.addf %239, %240 : vector<16x1xf32>
    %242 = math.rsqrt %241 : vector<16x1xf32>
    %243 = vector.broadcast %242 : vector<16x1xf32> to vector<16x32xf32>
    %244 = arith.mulf %234, %243 : vector<16x32xf32>
    %245 = vector.broadcast %227 : vector<1x32xf32> to vector<16x32xf32>
    %246 = arith.mulf %244, %245 : vector<16x32xf32>
    %247 = vector.broadcast %228 : vector<1x32xf32> to vector<16x32xf32>
    %248 = arith.addf %246, %247 : vector<16x32xf32>
    %c0_167 = arith.constant 0 : index
    %c0_168 = arith.constant 0 : index
    %c0_169 = arith.constant 0 : index
    %249 = vector.load %arg4[%c0_167, %c0_168, %c0_169] : memref<2x32x16xf32, #tpu.memory_space<vmem>>, vector<1x32x16xf32>
    %250 = vector.shape_cast %249 : vector<1x32x16xf32> to vector<32x16xf32>
    %cst_170 = arith.constant dense<0.000000e+00> : vector<16x16xf32>
    %251 = tpu.matmul %248, %250, %cst_170 {dimension_numbers = #tpu.dot_dimension_numbers<[1], [0], [0], [1], [0, 0, 1, 1], [], []>} : vector<16x32xf32>, vector<32x16xf32>, vector<16x16xf32> -> vector<16x16xf32>
    %c0_171 = arith.constant 0 : index
    %c0_172 = arith.constant 0 : index
    %c0_173 = arith.constant 0 : index
    %252 = vector.load %arg5[%c0_171, %c0_172, %c0_173] : memref<2x1x16xf32, #tpu.memory_space<vmem>>, vector<1x1x16xf32>
    %253 = vector.shape_cast %252 : vector<1x1x16xf32> to vector<1x16xf32>
    %254 = vector.broadcast %253 : vector<1x16xf32> to vector<16x16xf32>
    %255 = arith.addf %251, %254 : vector<16x16xf32>
    %c0_174 = arith.constant 0 : index
    %c0_175 = arith.constant 0 : index
    %c0_176 = arith.constant 0 : index
    %256 = vector.load %arg6[%c0_174, %c0_175, %c0_176] : memref<2x32x16xf32, #tpu.memory_space<vmem>>, vector<1x32x16xf32>
    %257 = vector.shape_cast %256 : vector<1x32x16xf32> to vector<32x16xf32>
    %cst_177 = arith.constant dense<0.000000e+00> : vector<16x16xf32>
    %258 = tpu.matmul %248, %257, %cst_177 {dimension_numbers = #tpu.dot_dimension_numbers<[1], [0], [0], [1], [0, 0, 1, 1], [], []>} : vector<16x32xf32>, vector<32x16xf32>, vector<16x16xf32> -> vector<16x16xf32>
    %c0_178 = arith.constant 0 : index
    %c0_179 = arith.constant 0 : index
    %c0_180 = arith.constant 0 : index
    %259 = vector.load %arg7[%c0_178, %c0_179, %c0_180] : memref<2x1x16xf32, #tpu.memory_space<vmem>>, vector<1x1x16xf32>
    %260 = vector.shape_cast %259 : vector<1x1x16xf32> to vector<1x16xf32>
    %261 = vector.broadcast %260 : vector<1x16xf32> to vector<16x16xf32>
    %262 = arith.addf %258, %261 : vector<16x16xf32>
    %c0_181 = arith.constant 0 : index
    %c0_182 = arith.constant 0 : index
    %c0_183 = arith.constant 0 : index
    %263 = vector.load %arg8[%c0_181, %c0_182, %c0_183] : memref<2x32x16xf32, #tpu.memory_space<vmem>>, vector<1x32x16xf32>
    %264 = vector.shape_cast %263 : vector<1x32x16xf32> to vector<32x16xf32>
    %cst_184 = arith.constant dense<0.000000e+00> : vector<16x16xf32>
    %265 = tpu.matmul %248, %264, %cst_184 {dimension_numbers = #tpu.dot_dimension_numbers<[1], [0], [0], [1], [0, 0, 1, 1], [], []>} : vector<16x32xf32>, vector<32x16xf32>, vector<16x16xf32> -> vector<16x16xf32>
    %c0_185 = arith.constant 0 : index
    %c0_186 = arith.constant 0 : index
    %c0_187 = arith.constant 0 : index
    %266 = vector.load %arg9[%c0_185, %c0_186, %c0_187] : memref<2x1x16xf32, #tpu.memory_space<vmem>>, vector<1x1x16xf32>
    %267 = vector.shape_cast %266 : vector<1x1x16xf32> to vector<1x16xf32>
    %268 = vector.broadcast %267 : vector<1x16xf32> to vector<16x16xf32>
    %269 = arith.addf %265, %268 : vector<16x16xf32>
    %cst_188 = arith.constant dense<0.000000e+00> : vector<16x16xf32>
    %270 = tpu.matmul %255, %262, %cst_188 {dimension_numbers = #tpu.dot_dimension_numbers<[1], [1], [0], [0], [0, 0, 1, 0], [], []>} : vector<16x16xf32>, vector<16x16xf32>, vector<16x16xf32> -> vector<16x16xf32>
    %cst_189 = arith.constant 2.500000e-01 : f32
    %271 = vector.broadcast %cst_189 : f32 to vector<16x16xf32>
    %272 = arith.mulf %270, %271 : vector<16x16xf32>
    %273 = arith.addf %272, %2 : vector<16x16xf32>
    %cst_190 = arith.constant dense<0xFF800000> : vector<16xf32>
    %274 = vector.multi_reduction <maximumf>, %273, %cst_190 [1] : vector<16x16xf32> to vector<16xf32>
    %275 = vector.shape_cast %274 : vector<16xf32> to vector<16x1xf32>
    %276 = vector.broadcast %275 : vector<16x1xf32> to vector<16x16xf32>
    %277 = arith.subf %273, %276 : vector<16x16xf32>
    %278 = math.exp %277 : vector<16x16xf32>
    %cst_191 = arith.constant dense<0.000000e+00> : vector<16xf32>
    %279 = vector.multi_reduction <add>, %278, %cst_191 [1] : vector<16x16xf32> to vector<16xf32>
    %280 = vector.shape_cast %279 : vector<16xf32> to vector<16x1xf32>
    %281 = tpu.reciprocal %280 {approx = true} : vector<16x1xf32> -> vector<16x1xf32>
    %282 = vector.broadcast %281 : vector<16x1xf32> to vector<16x16xf32>
    %283 = arith.mulf %278, %282 : vector<16x16xf32>
    %cst_192 = arith.constant dense<0.000000e+00> : vector<16x16xf32>
    %284 = tpu.matmul %283, %269, %cst_192 {dimension_numbers = #tpu.dot_dimension_numbers<[1], [0], [0], [1], [0, 0, 1, 1], [], []>} : vector<16x16xf32>, vector<16x16xf32>, vector<16x16xf32> -> vector<16x16xf32>
    %c0_193 = arith.constant 0 : index
    %c0_194 = arith.constant 0 : index
    %c0_195 = arith.constant 0 : index
    %285 = vector.load %arg10[%c0_193, %c0_194, %c0_195] : memref<2x16x32xf32, #tpu.memory_space<vmem>>, vector<1x16x32xf32>
    %286 = vector.shape_cast %285 : vector<1x16x32xf32> to vector<16x32xf32>
    %cst_196 = arith.constant dense<0.000000e+00> : vector<16x32xf32>
    %287 = tpu.matmul %284, %286, %cst_196 {dimension_numbers = #tpu.dot_dimension_numbers<[1], [0], [0], [1], [0, 0, 1, 1], [], []>} : vector<16x16xf32>, vector<16x32xf32>, vector<16x32xf32> -> vector<16x32xf32>
    %c1_197 = arith.constant 1 : index
    %c0_198 = arith.constant 0 : index
    %c0_199 = arith.constant 0 : index
    %288 = vector.load %arg4[%c1_197, %c0_198, %c0_199] : memref<2x32x16xf32, #tpu.memory_space<vmem>>, vector<1x32x16xf32>
    %289 = vector.shape_cast %288 : vector<1x32x16xf32> to vector<32x16xf32>
    %cst_200 = arith.constant dense<0.000000e+00> : vector<16x16xf32>
    %290 = tpu.matmul %248, %289, %cst_200 {dimension_numbers = #tpu.dot_dimension_numbers<[1], [0], [0], [1], [0, 0, 1, 1], [], []>} : vector<16x32xf32>, vector<32x16xf32>, vector<16x16xf32> -> vector<16x16xf32>
    %c1_201 = arith.constant 1 : index
    %c0_202 = arith.constant 0 : index
    %c0_203 = arith.constant 0 : index
    %291 = vector.load %arg5[%c1_201, %c0_202, %c0_203] : memref<2x1x16xf32, #tpu.memory_space<vmem>>, vector<1x1x16xf32>
    %292 = vector.shape_cast %291 : vector<1x1x16xf32> to vector<1x16xf32>
    %293 = vector.broadcast %292 : vector<1x16xf32> to vector<16x16xf32>
    %294 = arith.addf %290, %293 : vector<16x16xf32>
    %c1_204 = arith.constant 1 : index
    %c0_205 = arith.constant 0 : index
    %c0_206 = arith.constant 0 : index
    %295 = vector.load %arg6[%c1_204, %c0_205, %c0_206] : memref<2x32x16xf32, #tpu.memory_space<vmem>>, vector<1x32x16xf32>
    %296 = vector.shape_cast %295 : vector<1x32x16xf32> to vector<32x16xf32>
    %cst_207 = arith.constant dense<0.000000e+00> : vector<16x16xf32>
    %297 = tpu.matmul %248, %296, %cst_207 {dimension_numbers = #tpu.dot_dimension_numbers<[1], [0], [0], [1], [0, 0, 1, 1], [], []>} : vector<16x32xf32>, vector<32x16xf32>, vector<16x16xf32> -> vector<16x16xf32>
    %c1_208 = arith.constant 1 : index
    %c0_209 = arith.constant 0 : index
    %c0_210 = arith.constant 0 : index
    %298 = vector.load %arg7[%c1_208, %c0_209, %c0_210] : memref<2x1x16xf32, #tpu.memory_space<vmem>>, vector<1x1x16xf32>
    %299 = vector.shape_cast %298 : vector<1x1x16xf32> to vector<1x16xf32>
    %300 = vector.broadcast %299 : vector<1x16xf32> to vector<16x16xf32>
    %301 = arith.addf %297, %300 : vector<16x16xf32>
    %c1_211 = arith.constant 1 : index
    %c0_212 = arith.constant 0 : index
    %c0_213 = arith.constant 0 : index
    %302 = vector.load %arg8[%c1_211, %c0_212, %c0_213] : memref<2x32x16xf32, #tpu.memory_space<vmem>>, vector<1x32x16xf32>
    %303 = vector.shape_cast %302 : vector<1x32x16xf32> to vector<32x16xf32>
    %cst_214 = arith.constant dense<0.000000e+00> : vector<16x16xf32>
    %304 = tpu.matmul %248, %303, %cst_214 {dimension_numbers = #tpu.dot_dimension_numbers<[1], [0], [0], [1], [0, 0, 1, 1], [], []>} : vector<16x32xf32>, vector<32x16xf32>, vector<16x16xf32> -> vector<16x16xf32>
    %c1_215 = arith.constant 1 : index
    %c0_216 = arith.constant 0 : index
    %c0_217 = arith.constant 0 : index
    %305 = vector.load %arg9[%c1_215, %c0_216, %c0_217] : memref<2x1x16xf32, #tpu.memory_space<vmem>>, vector<1x1x16xf32>
    %306 = vector.shape_cast %305 : vector<1x1x16xf32> to vector<1x16xf32>
    %307 = vector.broadcast %306 : vector<1x16xf32> to vector<16x16xf32>
    %308 = arith.addf %304, %307 : vector<16x16xf32>
    %cst_218 = arith.constant dense<0.000000e+00> : vector<16x16xf32>
    %309 = tpu.matmul %294, %301, %cst_218 {dimension_numbers = #tpu.dot_dimension_numbers<[1], [1], [0], [0], [0, 0, 1, 0], [], []>} : vector<16x16xf32>, vector<16x16xf32>, vector<16x16xf32> -> vector<16x16xf32>
    %cst_219 = arith.constant 2.500000e-01 : f32
    %310 = vector.broadcast %cst_219 : f32 to vector<16x16xf32>
    %311 = arith.mulf %309, %310 : vector<16x16xf32>
    %312 = arith.addf %311, %2 : vector<16x16xf32>
    %cst_220 = arith.constant dense<0xFF800000> : vector<16xf32>
    %313 = vector.multi_reduction <maximumf>, %312, %cst_220 [1] : vector<16x16xf32> to vector<16xf32>
    %314 = vector.shape_cast %313 : vector<16xf32> to vector<16x1xf32>
    %315 = vector.broadcast %314 : vector<16x1xf32> to vector<16x16xf32>
    %316 = arith.subf %312, %315 : vector<16x16xf32>
    %317 = math.exp %316 : vector<16x16xf32>
    %cst_221 = arith.constant dense<0.000000e+00> : vector<16xf32>
    %318 = vector.multi_reduction <add>, %317, %cst_221 [1] : vector<16x16xf32> to vector<16xf32>
    %319 = vector.shape_cast %318 : vector<16xf32> to vector<16x1xf32>
    %320 = tpu.reciprocal %319 {approx = true} : vector<16x1xf32> -> vector<16x1xf32>
    %321 = vector.broadcast %320 : vector<16x1xf32> to vector<16x16xf32>
    %322 = arith.mulf %317, %321 : vector<16x16xf32>
    %cst_222 = arith.constant dense<0.000000e+00> : vector<16x16xf32>
    %323 = tpu.matmul %322, %308, %cst_222 {dimension_numbers = #tpu.dot_dimension_numbers<[1], [0], [0], [1], [0, 0, 1, 1], [], []>} : vector<16x16xf32>, vector<16x16xf32>, vector<16x16xf32> -> vector<16x16xf32>
    %c1_223 = arith.constant 1 : index
    %c0_224 = arith.constant 0 : index
    %c0_225 = arith.constant 0 : index
    %324 = vector.load %arg10[%c1_223, %c0_224, %c0_225] : memref<2x16x32xf32, #tpu.memory_space<vmem>>, vector<1x16x32xf32>
    %325 = vector.shape_cast %324 : vector<1x16x32xf32> to vector<16x32xf32>
    %cst_226 = arith.constant dense<0.000000e+00> : vector<16x32xf32>
    %326 = tpu.matmul %323, %325, %cst_226 {dimension_numbers = #tpu.dot_dimension_numbers<[1], [0], [0], [1], [0, 0, 1, 1], [], []>} : vector<16x16xf32>, vector<16x32xf32>, vector<16x32xf32> -> vector<16x32xf32>
    %327 = arith.addf %287, %326 : vector<16x32xf32>
    %c0_227 = arith.constant 0 : index
    %c0_228 = arith.constant 0 : index
    %328 = vector.load %arg11[%c0_227, %c0_228] : memref<1x32xf32, #tpu.memory_space<vmem>>, vector<1x32xf32>
    %329 = vector.broadcast %328 : vector<1x32xf32> to vector<16x32xf32>
    %330 = arith.addf %327, %329 : vector<16x32xf32>
    %331 = arith.addf %248, %330 : vector<16x32xf32>
    %c0_229 = arith.constant 0 : index
    %c0_230 = arith.constant 0 : index
    %332 = vector.load %arg24[%c0_229, %c0_230] : memref<1x32xf32, #tpu.memory_space<vmem>>, vector<1x32xf32>
    %c0_231 = arith.constant 0 : index
    %c0_232 = arith.constant 0 : index
    %333 = vector.load %arg25[%c0_231, %c0_232] : memref<1x32xf32, #tpu.memory_space<vmem>>, vector<1x32xf32>
    %cst_233 = arith.constant dense<0.000000e+00> : vector<16xf32>
    %334 = vector.multi_reduction <add>, %331, %cst_233 [1] : vector<16x32xf32> to vector<16xf32>
    %335 = vector.shape_cast %334 : vector<16xf32> to vector<16x1xf32>
    %cst_234 = arith.constant 3.200000e+01 : f32
    %336 = vector.broadcast %cst_234 : f32 to vector<16x1xf32>
    %337 = arith.divf %335, %336 : vector<16x1xf32>
    %338 = vector.broadcast %337 : vector<16x1xf32> to vector<16x32xf32>
    %339 = arith.subf %331, %338 : vector<16x32xf32>
    %340 = arith.mulf %339, %339 : vector<16x32xf32>
    %cst_235 = arith.constant dense<0.000000e+00> : vector<16xf32>
    %341 = vector.multi_reduction <add>, %340, %cst_235 [1] : vector<16x32xf32> to vector<16xf32>
    %342 = vector.shape_cast %341 : vector<16xf32> to vector<16x1xf32>
    %cst_236 = arith.constant 3.200000e+01 : f32
    %343 = vector.broadcast %cst_236 : f32 to vector<16x1xf32>
    %344 = arith.divf %342, %343 : vector<16x1xf32>
    %cst_237 = arith.constant 9.99999974E-6 : f32
    %345 = vector.broadcast %cst_237 : f32 to vector<16x1xf32>
    %346 = arith.addf %344, %345 : vector<16x1xf32>
    %347 = math.rsqrt %346 : vector<16x1xf32>
    %348 = vector.broadcast %347 : vector<16x1xf32> to vector<16x32xf32>
    %349 = arith.mulf %339, %348 : vector<16x32xf32>
    %350 = vector.broadcast %332 : vector<1x32xf32> to vector<16x32xf32>
    %351 = arith.mulf %349, %350 : vector<16x32xf32>
    %352 = vector.broadcast %333 : vector<1x32xf32> to vector<16x32xf32>
    %353 = arith.addf %351, %352 : vector<16x32xf32>
    %c0_238 = arith.constant 0 : index
    %c0_239 = arith.constant 0 : index
    %c0_240 = arith.constant 0 : index
    %354 = vector.load %arg12[%c0_238, %c0_239, %c0_240] : memref<2x32x16xf32, #tpu.memory_space<vmem>>, vector<1x32x16xf32>
    %355 = vector.shape_cast %354 : vector<1x32x16xf32> to vector<32x16xf32>
    %cst_241 = arith.constant dense<0.000000e+00> : vector<16x16xf32>
    %356 = tpu.matmul %353, %355, %cst_241 {dimension_numbers = #tpu.dot_dimension_numbers<[1], [0], [0], [1], [0, 0, 1, 1], [], []>} : vector<16x32xf32>, vector<32x16xf32>, vector<16x16xf32> -> vector<16x16xf32>
    %c0_242 = arith.constant 0 : index
    %c0_243 = arith.constant 0 : index
    %c0_244 = arith.constant 0 : index
    %357 = vector.load %arg13[%c0_242, %c0_243, %c0_244] : memref<2x1x16xf32, #tpu.memory_space<vmem>>, vector<1x1x16xf32>
    %358 = vector.shape_cast %357 : vector<1x1x16xf32> to vector<1x16xf32>
    %359 = vector.broadcast %358 : vector<1x16xf32> to vector<16x16xf32>
    %360 = arith.addf %356, %359 : vector<16x16xf32>
    %c0_245 = arith.constant 0 : index
    %c0_246 = arith.constant 0 : index
    %c0_247 = arith.constant 0 : index
    %361 = vector.load %arg14[%c0_245, %c0_246, %c0_247] : memref<2x32x16xf32, #tpu.memory_space<vmem>>, vector<1x32x16xf32>
    %362 = vector.shape_cast %361 : vector<1x32x16xf32> to vector<32x16xf32>
    %cst_248 = arith.constant dense<0.000000e+00> : vector<4x16xf32>
    %363 = tpu.matmul %1, %362, %cst_248 {dimension_numbers = #tpu.dot_dimension_numbers<[1], [0], [0], [1], [0, 0, 1, 1], [], []>} : vector<4x32xf32>, vector<32x16xf32>, vector<4x16xf32> -> vector<4x16xf32>
    %c0_249 = arith.constant 0 : index
    %c0_250 = arith.constant 0 : index
    %c0_251 = arith.constant 0 : index
    %364 = vector.load %arg15[%c0_249, %c0_250, %c0_251] : memref<2x1x16xf32, #tpu.memory_space<vmem>>, vector<1x1x16xf32>
    %365 = vector.shape_cast %364 : vector<1x1x16xf32> to vector<1x16xf32>
    %366 = vector.broadcast %365 : vector<1x16xf32> to vector<4x16xf32>
    %367 = arith.addf %363, %366 : vector<4x16xf32>
    %c0_252 = arith.constant 0 : index
    %c0_253 = arith.constant 0 : index
    %c0_254 = arith.constant 0 : index
    %368 = vector.load %arg16[%c0_252, %c0_253, %c0_254] : memref<2x32x16xf32, #tpu.memory_space<vmem>>, vector<1x32x16xf32>
    %369 = vector.shape_cast %368 : vector<1x32x16xf32> to vector<32x16xf32>
    %cst_255 = arith.constant dense<0.000000e+00> : vector<4x16xf32>
    %370 = tpu.matmul %1, %369, %cst_255 {dimension_numbers = #tpu.dot_dimension_numbers<[1], [0], [0], [1], [0, 0, 1, 1], [], []>} : vector<4x32xf32>, vector<32x16xf32>, vector<4x16xf32> -> vector<4x16xf32>
    %c0_256 = arith.constant 0 : index
    %c0_257 = arith.constant 0 : index
    %c0_258 = arith.constant 0 : index
    %371 = vector.load %arg17[%c0_256, %c0_257, %c0_258] : memref<2x1x16xf32, #tpu.memory_space<vmem>>, vector<1x1x16xf32>
    %372 = vector.shape_cast %371 : vector<1x1x16xf32> to vector<1x16xf32>
    %373 = vector.broadcast %372 : vector<1x16xf32> to vector<4x16xf32>
    %374 = arith.addf %370, %373 : vector<4x16xf32>
    %cst_259 = arith.constant dense<0.000000e+00> : vector<16x4xf32>
    %375 = tpu.matmul %360, %367, %cst_259 {dimension_numbers = #tpu.dot_dimension_numbers<[1], [1], [0], [0], [0, 0, 1, 0], [], []>} : vector<16x16xf32>, vector<4x16xf32>, vector<16x4xf32> -> vector<16x4xf32>
    %cst_260 = arith.constant 2.500000e-01 : f32
    %376 = vector.broadcast %cst_260 : f32 to vector<16x4xf32>
    %377 = arith.mulf %375, %376 : vector<16x4xf32>
    %378 = arith.addf %377, %3 : vector<16x4xf32>
    %cst_261 = arith.constant dense<0xFF800000> : vector<16xf32>
    %379 = vector.multi_reduction <maximumf>, %378, %cst_261 [1] : vector<16x4xf32> to vector<16xf32>
    %380 = vector.shape_cast %379 : vector<16xf32> to vector<16x1xf32>
    %381 = vector.broadcast %380 : vector<16x1xf32> to vector<16x4xf32>
    %382 = arith.subf %378, %381 : vector<16x4xf32>
    %383 = math.exp %382 : vector<16x4xf32>
    %cst_262 = arith.constant dense<0.000000e+00> : vector<16xf32>
    %384 = vector.multi_reduction <add>, %383, %cst_262 [1] : vector<16x4xf32> to vector<16xf32>
    %385 = vector.shape_cast %384 : vector<16xf32> to vector<16x1xf32>
    %386 = tpu.reciprocal %385 {approx = true} : vector<16x1xf32> -> vector<16x1xf32>
    %387 = vector.broadcast %386 : vector<16x1xf32> to vector<16x4xf32>
    %388 = arith.mulf %383, %387 : vector<16x4xf32>
    %cst_263 = arith.constant dense<0.000000e+00> : vector<16x16xf32>
    %389 = tpu.matmul %388, %374, %cst_263 {dimension_numbers = #tpu.dot_dimension_numbers<[1], [0], [0], [1], [0, 0, 1, 1], [], []>} : vector<16x4xf32>, vector<4x16xf32>, vector<16x16xf32> -> vector<16x16xf32>
    %c0_264 = arith.constant 0 : index
    %c0_265 = arith.constant 0 : index
    %c0_266 = arith.constant 0 : index
    %390 = vector.load %arg18[%c0_264, %c0_265, %c0_266] : memref<2x16x32xf32, #tpu.memory_space<vmem>>, vector<1x16x32xf32>
    %391 = vector.shape_cast %390 : vector<1x16x32xf32> to vector<16x32xf32>
    %cst_267 = arith.constant dense<0.000000e+00> : vector<16x32xf32>
    %392 = tpu.matmul %389, %391, %cst_267 {dimension_numbers = #tpu.dot_dimension_numbers<[1], [0], [0], [1], [0, 0, 1, 1], [], []>} : vector<16x16xf32>, vector<16x32xf32>, vector<16x32xf32> -> vector<16x32xf32>
    %c1_268 = arith.constant 1 : index
    %c0_269 = arith.constant 0 : index
    %c0_270 = arith.constant 0 : index
    %393 = vector.load %arg12[%c1_268, %c0_269, %c0_270] : memref<2x32x16xf32, #tpu.memory_space<vmem>>, vector<1x32x16xf32>
    %394 = vector.shape_cast %393 : vector<1x32x16xf32> to vector<32x16xf32>
    %cst_271 = arith.constant dense<0.000000e+00> : vector<16x16xf32>
    %395 = tpu.matmul %353, %394, %cst_271 {dimension_numbers = #tpu.dot_dimension_numbers<[1], [0], [0], [1], [0, 0, 1, 1], [], []>} : vector<16x32xf32>, vector<32x16xf32>, vector<16x16xf32> -> vector<16x16xf32>
    %c1_272 = arith.constant 1 : index
    %c0_273 = arith.constant 0 : index
    %c0_274 = arith.constant 0 : index
    %396 = vector.load %arg13[%c1_272, %c0_273, %c0_274] : memref<2x1x16xf32, #tpu.memory_space<vmem>>, vector<1x1x16xf32>
    %397 = vector.shape_cast %396 : vector<1x1x16xf32> to vector<1x16xf32>
    %398 = vector.broadcast %397 : vector<1x16xf32> to vector<16x16xf32>
    %399 = arith.addf %395, %398 : vector<16x16xf32>
    %c1_275 = arith.constant 1 : index
    %c0_276 = arith.constant 0 : index
    %c0_277 = arith.constant 0 : index
    %400 = vector.load %arg14[%c1_275, %c0_276, %c0_277] : memref<2x32x16xf32, #tpu.memory_space<vmem>>, vector<1x32x16xf32>
    %401 = vector.shape_cast %400 : vector<1x32x16xf32> to vector<32x16xf32>
    %cst_278 = arith.constant dense<0.000000e+00> : vector<4x16xf32>
    %402 = tpu.matmul %1, %401, %cst_278 {dimension_numbers = #tpu.dot_dimension_numbers<[1], [0], [0], [1], [0, 0, 1, 1], [], []>} : vector<4x32xf32>, vector<32x16xf32>, vector<4x16xf32> -> vector<4x16xf32>
    %c1_279 = arith.constant 1 : index
    %c0_280 = arith.constant 0 : index
    %c0_281 = arith.constant 0 : index
    %403 = vector.load %arg15[%c1_279, %c0_280, %c0_281] : memref<2x1x16xf32, #tpu.memory_space<vmem>>, vector<1x1x16xf32>
    %404 = vector.shape_cast %403 : vector<1x1x16xf32> to vector<1x16xf32>
    %405 = vector.broadcast %404 : vector<1x16xf32> to vector<4x16xf32>
    %406 = arith.addf %402, %405 : vector<4x16xf32>
    %c1_282 = arith.constant 1 : index
    %c0_283 = arith.constant 0 : index
    %c0_284 = arith.constant 0 : index
    %407 = vector.load %arg16[%c1_282, %c0_283, %c0_284] : memref<2x32x16xf32, #tpu.memory_space<vmem>>, vector<1x32x16xf32>
    %408 = vector.shape_cast %407 : vector<1x32x16xf32> to vector<32x16xf32>
    %cst_285 = arith.constant dense<0.000000e+00> : vector<4x16xf32>
    %409 = tpu.matmul %1, %408, %cst_285 {dimension_numbers = #tpu.dot_dimension_numbers<[1], [0], [0], [1], [0, 0, 1, 1], [], []>} : vector<4x32xf32>, vector<32x16xf32>, vector<4x16xf32> -> vector<4x16xf32>
    %c1_286 = arith.constant 1 : index
    %c0_287 = arith.constant 0 : index
    %c0_288 = arith.constant 0 : index
    %410 = vector.load %arg17[%c1_286, %c0_287, %c0_288] : memref<2x1x16xf32, #tpu.memory_space<vmem>>, vector<1x1x16xf32>
    %411 = vector.shape_cast %410 : vector<1x1x16xf32> to vector<1x16xf32>
    %412 = vector.broadcast %411 : vector<1x16xf32> to vector<4x16xf32>
    %413 = arith.addf %409, %412 : vector<4x16xf32>
    %cst_289 = arith.constant dense<0.000000e+00> : vector<16x4xf32>
    %414 = tpu.matmul %399, %406, %cst_289 {dimension_numbers = #tpu.dot_dimension_numbers<[1], [1], [0], [0], [0, 0, 1, 0], [], []>} : vector<16x16xf32>, vector<4x16xf32>, vector<16x4xf32> -> vector<16x4xf32>
    %cst_290 = arith.constant 2.500000e-01 : f32
    %415 = vector.broadcast %cst_290 : f32 to vector<16x4xf32>
    %416 = arith.mulf %414, %415 : vector<16x4xf32>
    %417 = arith.addf %416, %3 : vector<16x4xf32>
    %cst_291 = arith.constant dense<0xFF800000> : vector<16xf32>
    %418 = vector.multi_reduction <maximumf>, %417, %cst_291 [1] : vector<16x4xf32> to vector<16xf32>
    %419 = vector.shape_cast %418 : vector<16xf32> to vector<16x1xf32>
    %420 = vector.broadcast %419 : vector<16x1xf32> to vector<16x4xf32>
    %421 = arith.subf %417, %420 : vector<16x4xf32>
    %422 = math.exp %421 : vector<16x4xf32>
    %cst_292 = arith.constant dense<0.000000e+00> : vector<16xf32>
    %423 = vector.multi_reduction <add>, %422, %cst_292 [1] : vector<16x4xf32> to vector<16xf32>
    %424 = vector.shape_cast %423 : vector<16xf32> to vector<16x1xf32>
    %425 = tpu.reciprocal %424 {approx = true} : vector<16x1xf32> -> vector<16x1xf32>
    %426 = vector.broadcast %425 : vector<16x1xf32> to vector<16x4xf32>
    %427 = arith.mulf %422, %426 : vector<16x4xf32>
    %cst_293 = arith.constant dense<0.000000e+00> : vector<16x16xf32>
    %428 = tpu.matmul %427, %413, %cst_293 {dimension_numbers = #tpu.dot_dimension_numbers<[1], [0], [0], [1], [0, 0, 1, 1], [], []>} : vector<16x4xf32>, vector<4x16xf32>, vector<16x16xf32> -> vector<16x16xf32>
    %c1_294 = arith.constant 1 : index
    %c0_295 = arith.constant 0 : index
    %c0_296 = arith.constant 0 : index
    %429 = vector.load %arg18[%c1_294, %c0_295, %c0_296] : memref<2x16x32xf32, #tpu.memory_space<vmem>>, vector<1x16x32xf32>
    %430 = vector.shape_cast %429 : vector<1x16x32xf32> to vector<16x32xf32>
    %cst_297 = arith.constant dense<0.000000e+00> : vector<16x32xf32>
    %431 = tpu.matmul %428, %430, %cst_297 {dimension_numbers = #tpu.dot_dimension_numbers<[1], [0], [0], [1], [0, 0, 1, 1], [], []>} : vector<16x16xf32>, vector<16x32xf32>, vector<16x32xf32> -> vector<16x32xf32>
    %432 = arith.addf %392, %431 : vector<16x32xf32>
    %c0_298 = arith.constant 0 : index
    %c0_299 = arith.constant 0 : index
    %433 = vector.load %arg19[%c0_298, %c0_299] : memref<1x32xf32, #tpu.memory_space<vmem>>, vector<1x32xf32>
    %434 = vector.broadcast %433 : vector<1x32xf32> to vector<16x32xf32>
    %435 = arith.addf %432, %434 : vector<16x32xf32>
    %436 = arith.addf %353, %435 : vector<16x32xf32>
    %c0_300 = arith.constant 0 : index
    %c0_301 = arith.constant 0 : index
    %437 = vector.load %arg26[%c0_300, %c0_301] : memref<1x32xf32, #tpu.memory_space<vmem>>, vector<1x32xf32>
    %c0_302 = arith.constant 0 : index
    %c0_303 = arith.constant 0 : index
    %438 = vector.load %arg27[%c0_302, %c0_303] : memref<1x32xf32, #tpu.memory_space<vmem>>, vector<1x32xf32>
    %cst_304 = arith.constant dense<0.000000e+00> : vector<16xf32>
    %439 = vector.multi_reduction <add>, %436, %cst_304 [1] : vector<16x32xf32> to vector<16xf32>
    %440 = vector.shape_cast %439 : vector<16xf32> to vector<16x1xf32>
    %cst_305 = arith.constant 3.200000e+01 : f32
    %441 = vector.broadcast %cst_305 : f32 to vector<16x1xf32>
    %442 = arith.divf %440, %441 : vector<16x1xf32>
    %443 = vector.broadcast %442 : vector<16x1xf32> to vector<16x32xf32>
    %444 = arith.subf %436, %443 : vector<16x32xf32>
    %445 = arith.mulf %444, %444 : vector<16x32xf32>
    %cst_306 = arith.constant dense<0.000000e+00> : vector<16xf32>
    %446 = vector.multi_reduction <add>, %445, %cst_306 [1] : vector<16x32xf32> to vector<16xf32>
    %447 = vector.shape_cast %446 : vector<16xf32> to vector<16x1xf32>
    %cst_307 = arith.constant 3.200000e+01 : f32
    %448 = vector.broadcast %cst_307 : f32 to vector<16x1xf32>
    %449 = arith.divf %447, %448 : vector<16x1xf32>
    %cst_308 = arith.constant 9.99999974E-6 : f32
    %450 = vector.broadcast %cst_308 : f32 to vector<16x1xf32>
    %451 = arith.addf %449, %450 : vector<16x1xf32>
    %452 = math.rsqrt %451 : vector<16x1xf32>
    %453 = vector.broadcast %452 : vector<16x1xf32> to vector<16x32xf32>
    %454 = arith.mulf %444, %453 : vector<16x32xf32>
    %455 = vector.broadcast %437 : vector<1x32xf32> to vector<16x32xf32>
    %456 = arith.mulf %454, %455 : vector<16x32xf32>
    %457 = vector.broadcast %438 : vector<1x32xf32> to vector<16x32xf32>
    %458 = arith.addf %456, %457 : vector<16x32xf32>
    %c0_309 = arith.constant 0 : index
    %c0_310 = arith.constant 0 : index
    %459 = vector.load %arg20[%c0_309, %c0_310] : memref<32x2048xf32, #tpu.memory_space<vmem>>, vector<32x2048xf32>
    %cst_311 = arith.constant dense<0.000000e+00> : vector<16x2048xf32>
    %460 = tpu.matmul %458, %459, %cst_311 {dimension_numbers = #tpu.dot_dimension_numbers<[1], [0], [0], [1], [0, 0, 1, 1], [], []>} : vector<16x32xf32>, vector<32x2048xf32>, vector<16x2048xf32> -> vector<16x2048xf32>
    %c0_312 = arith.constant 0 : index
    %c0_313 = arith.constant 0 : index
    %461 = vector.load %arg21[%c0_312, %c0_313] : memref<1x2048xf32, #tpu.memory_space<vmem>>, vector<1x2048xf32>
    %462 = vector.broadcast %461 : vector<1x2048xf32> to vector<16x2048xf32>
    %463 = arith.addf %460, %462 : vector<16x2048xf32>
    %cst_314 = arith.constant 0.000000e+00 : f32
    %464 = vector.broadcast %cst_314 : f32 to vector<16x2048xf32>
    %465 = arith.maximumf %463, %464 : vector<16x2048xf32>
    %c0_315 = arith.constant 0 : index
    %c0_316 = arith.constant 0 : index
    %466 = vector.load %arg22[%c0_315, %c0_316] : memref<2048x32xf32, #tpu.memory_space<vmem>>, vector<2048x32xf32>
    %cst_317 = arith.constant dense<0.000000e+00> : vector<16x32xf32>
    %467 = tpu.matmul %465, %466, %cst_317 {dimension_numbers = #tpu.dot_dimension_numbers<[1], [0], [0], [1], [0, 0, 1, 1], [], []>} : vector<16x2048xf32>, vector<2048x32xf32>, vector<16x32xf32> -> vector<16x32xf32>
    %c0_318 = arith.constant 0 : index
    %c0_319 = arith.constant 0 : index
    %468 = vector.load %arg23[%c0_318, %c0_319] : memref<1x32xf32, #tpu.memory_space<vmem>>, vector<1x32xf32>
    %469 = vector.broadcast %468 : vector<1x32xf32> to vector<16x32xf32>
    %470 = arith.addf %467, %469 : vector<16x32xf32>
    %471 = arith.addf %458, %470 : vector<16x32xf32>
    %c0_320 = arith.constant 0 : index
    %c0_321 = arith.constant 0 : index
    %472 = vector.load %arg28[%c0_320, %c0_321] : memref<1x32xf32, #tpu.memory_space<vmem>>, vector<1x32xf32>
    %c0_322 = arith.constant 0 : index
    %c0_323 = arith.constant 0 : index
    %473 = vector.load %arg29[%c0_322, %c0_323] : memref<1x32xf32, #tpu.memory_space<vmem>>, vector<1x32xf32>
    %cst_324 = arith.constant dense<0.000000e+00> : vector<16xf32>
    %474 = vector.multi_reduction <add>, %471, %cst_324 [1] : vector<16x32xf32> to vector<16xf32>
    %475 = vector.shape_cast %474 : vector<16xf32> to vector<16x1xf32>
    %cst_325 = arith.constant 3.200000e+01 : f32
    %476 = vector.broadcast %cst_325 : f32 to vector<16x1xf32>
    %477 = arith.divf %475, %476 : vector<16x1xf32>
    %478 = vector.broadcast %477 : vector<16x1xf32> to vector<16x32xf32>
    %479 = arith.subf %471, %478 : vector<16x32xf32>
    %480 = arith.mulf %479, %479 : vector<16x32xf32>
    %cst_326 = arith.constant dense<0.000000e+00> : vector<16xf32>
    %481 = vector.multi_reduction <add>, %480, %cst_326 [1] : vector<16x32xf32> to vector<16xf32>
    %482 = vector.shape_cast %481 : vector<16xf32> to vector<16x1xf32>
    %cst_327 = arith.constant 3.200000e+01 : f32
    %483 = vector.broadcast %cst_327 : f32 to vector<16x1xf32>
    %484 = arith.divf %482, %483 : vector<16x1xf32>
    %cst_328 = arith.constant 9.99999974E-6 : f32
    %485 = vector.broadcast %cst_328 : f32 to vector<16x1xf32>
    %486 = arith.addf %484, %485 : vector<16x1xf32>
    %487 = math.rsqrt %486 : vector<16x1xf32>
    %488 = vector.broadcast %487 : vector<16x1xf32> to vector<16x32xf32>
    %489 = arith.mulf %479, %488 : vector<16x32xf32>
    %490 = vector.broadcast %472 : vector<1x32xf32> to vector<16x32xf32>
    %491 = arith.mulf %489, %490 : vector<16x32xf32>
    %492 = vector.broadcast %473 : vector<1x32xf32> to vector<16x32xf32>
    %493 = arith.addf %491, %492 : vector<16x32xf32>
    %c0_329 = arith.constant 0 : index
    %c0_330 = arith.constant 0 : index
    %494 = vector.load %arg30[%c0_329, %c0_330] : memref<1x32xf32, #tpu.memory_space<vmem>>, vector<1x32xf32>
    %c0_331 = arith.constant 0 : index
    %c0_332 = arith.constant 0 : index
    %495 = vector.load %arg31[%c0_331, %c0_332] : memref<1x32xf32, #tpu.memory_space<vmem>>, vector<1x32xf32>
    %cst_333 = arith.constant dense<0.000000e+00> : vector<16xf32>
    %496 = vector.multi_reduction <add>, %493, %cst_333 [1] : vector<16x32xf32> to vector<16xf32>
    %497 = vector.shape_cast %496 : vector<16xf32> to vector<16x1xf32>
    %cst_334 = arith.constant 3.200000e+01 : f32
    %498 = vector.broadcast %cst_334 : f32 to vector<16x1xf32>
    %499 = arith.divf %497, %498 : vector<16x1xf32>
    %500 = vector.broadcast %499 : vector<16x1xf32> to vector<16x32xf32>
    %501 = arith.subf %493, %500 : vector<16x32xf32>
    %502 = arith.mulf %501, %501 : vector<16x32xf32>
    %cst_335 = arith.constant dense<0.000000e+00> : vector<16xf32>
    %503 = vector.multi_reduction <add>, %502, %cst_335 [1] : vector<16x32xf32> to vector<16xf32>
    %504 = vector.shape_cast %503 : vector<16xf32> to vector<16x1xf32>
    %cst_336 = arith.constant 3.200000e+01 : f32
    %505 = vector.broadcast %cst_336 : f32 to vector<16x1xf32>
    %506 = arith.divf %504, %505 : vector<16x1xf32>
    %cst_337 = arith.constant 9.99999974E-6 : f32
    %507 = vector.broadcast %cst_337 : f32 to vector<16x1xf32>
    %508 = arith.addf %506, %507 : vector<16x1xf32>
    %509 = math.rsqrt %508 : vector<16x1xf32>
    %510 = vector.broadcast %509 : vector<16x1xf32> to vector<16x32xf32>
    %511 = arith.mulf %501, %510 : vector<16x32xf32>
    %512 = vector.broadcast %494 : vector<1x32xf32> to vector<16x32xf32>
    %513 = arith.mulf %511, %512 : vector<16x32xf32>
    %514 = vector.broadcast %495 : vector<1x32xf32> to vector<16x32xf32>
    %515 = arith.addf %513, %514 : vector<16x32xf32>
    %c0_338 = arith.constant 0 : index
    %c0_339 = arith.constant 0 : index
    %516 = vector.load %arg32[%c0_338, %c0_339] : memref<16x32xf32, #tpu.memory_space<vmem>>, vector<16x32xf32>
    tpu.vector_store %arg32[%c0_338, %c0_339], %515 {strides = array<i32>} : memref<16x32xf32, #tpu.memory_space<vmem>>, vector<16x32xf32>,
    return
  }
}

module attributes {stable_mosaic.version = 11 : i64} {
  func.func @_vivit_encoder_kernel(%arg0: memref<16x384xf32, #tpu.memory_space<vmem>>, %arg1: memref<20x16xf32, #tpu.memory_space<vmem>>, %arg2: memref<20x32xf32, #tpu.memory_space<vmem>>, %arg3: memref<384x32xf32, #tpu.memory_space<vmem>>, %arg4: memref<1x32xf32, #tpu.memory_space<vmem>>, %arg5: memref<20x20xf32, #tpu.memory_space<vmem>>, %arg6: memref<2x1x32xf32, #tpu.memory_space<vmem>>, %arg7: memref<2x1x32xf32, #tpu.memory_space<vmem>>, %arg8: memref<2x2x32x64xf32, #tpu.memory_space<vmem>>, %arg9: memref<2x2x32x64xf32, #tpu.memory_space<vmem>>, %arg10: memref<2x2x32x64xf32, #tpu.memory_space<vmem>>, %arg11: memref<2x2x64x32xf32, #tpu.memory_space<vmem>>, %arg12: memref<2x1x32xf32, #tpu.memory_space<vmem>>, %arg13: memref<2x1x32xf32, #tpu.memory_space<vmem>>, %arg14: memref<2x1x32xf32, #tpu.memory_space<vmem>>, %arg15: memref<2x32x128xf32, #tpu.memory_space<vmem>>, %arg16: memref<2x1x128xf32, #tpu.memory_space<vmem>>, %arg17: memref<2x128x32xf32, #tpu.memory_space<vmem>>, %arg18: memref<2x1x32xf32, #tpu.memory_space<vmem>>, %arg19: memref<1x32xf32, #tpu.memory_space<vmem>>, %arg20: memref<1x32xf32, #tpu.memory_space<vmem>>, %arg21: memref<4x20xf32, #tpu.memory_space<vmem>>, %arg22: memref<4x4xf32, #tpu.memory_space<vmem>>, %arg23: memref<2x1x32xf32, #tpu.memory_space<vmem>>, %arg24: memref<2x1x32xf32, #tpu.memory_space<vmem>>, %arg25: memref<2x2x32x64xf32, #tpu.memory_space<vmem>>, %arg26: memref<2x2x32x64xf32, #tpu.memory_space<vmem>>, %arg27: memref<2x2x32x64xf32, #tpu.memory_space<vmem>>, %arg28: memref<2x2x64x32xf32, #tpu.memory_space<vmem>>, %arg29: memref<2x1x32xf32, #tpu.memory_space<vmem>>, %arg30: memref<2x1x32xf32, #tpu.memory_space<vmem>>, %arg31: memref<2x1x32xf32, #tpu.memory_space<vmem>>, %arg32: memref<2x32x128xf32, #tpu.memory_space<vmem>>, %arg33: memref<2x1x128xf32, #tpu.memory_space<vmem>>, %arg34: memref<2x128x32xf32, #tpu.memory_space<vmem>>, %arg35: memref<2x1x32xf32, #tpu.memory_space<vmem>>, %arg36: memref<1x32xf32, #tpu.memory_space<vmem>>, %arg37: memref<1x32xf32, #tpu.memory_space<vmem>>, %arg38: memref<4x32xf32, #tpu.memory_space<vmem>>) attributes {dimension_semantics = [], scalar_prefetch = 0 : i64, scratch_operands = 0 : i64, tpu.core_type = #tpu.core_type<tc>} {
    %c0 = arith.constant 0 : index
    %c0_0 = arith.constant 0 : index
    %0 = vector.load %arg0[%c0, %c0_0] : memref<16x384xf32, #tpu.memory_space<vmem>>, vector<16x384xf32>
    %c0_1 = arith.constant 0 : index
    %c0_2 = arith.constant 0 : index
    %1 = vector.load %arg3[%c0_1, %c0_2] : memref<384x32xf32, #tpu.memory_space<vmem>>, vector<384x32xf32>
    %cst = arith.constant dense<0.000000e+00> : vector<16x32xf32>
    %2 = tpu.matmul %0, %1, %cst {dimension_numbers = #tpu.dot_dimension_numbers<[1], [0], [0], [1], [0, 0, 1, 1], [], []>} : vector<16x384xf32>, vector<384x32xf32>, vector<16x32xf32> -> vector<16x32xf32>
    %c0_3 = arith.constant 0 : index
    %c0_4 = arith.constant 0 : index
    %3 = vector.load %arg4[%c0_3, %c0_4] : memref<1x32xf32, #tpu.memory_space<vmem>>, vector<1x32xf32>
    %4 = vector.broadcast %3 : vector<1x32xf32> to vector<16x32xf32>
    %5 = arith.addf %2, %4 : vector<16x32xf32>
    %c0_5 = arith.constant 0 : index
    %c0_6 = arith.constant 0 : index
    %6 = vector.load %arg2[%c0_5, %c0_6] : memref<20x32xf32, #tpu.memory_space<vmem>>, vector<20x32xf32>
    %c0_7 = arith.constant 0 : index
    %c0_8 = arith.constant 0 : index
    %7 = vector.load %arg1[%c0_7, %c0_8] : memref<20x16xf32, #tpu.memory_space<vmem>>, vector<20x16xf32>
    %cst_9 = arith.constant dense<0.000000e+00> : vector<20x32xf32>
    %8 = tpu.matmul %7, %5, %cst_9 {dimension_numbers = #tpu.dot_dimension_numbers<[1], [0], [0], [1], [0, 0, 1, 1], [], []>} : vector<20x16xf32>, vector<16x32xf32>, vector<20x32xf32> -> vector<20x32xf32>
    %9 = arith.addf %6, %8 : vector<20x32xf32>
    %c0_10 = arith.constant 0 : index
    %c0_11 = arith.constant 0 : index
    %10 = vector.load %arg5[%c0_10, %c0_11] : memref<20x20xf32, #tpu.memory_space<vmem>>, vector<20x20xf32>
    %c0_12 = arith.constant 0 : index
    %c0_13 = arith.constant 0 : index
    %c0_14 = arith.constant 0 : index
    %11 = vector.load %arg6[%c0_12, %c0_13, %c0_14] : memref<2x1x32xf32, #tpu.memory_space<vmem>>, vector<1x1x32xf32>
    %12 = vector.shape_cast %11 : vector<1x1x32xf32> to vector<1x32xf32>
    %c0_15 = arith.constant 0 : index
    %c0_16 = arith.constant 0 : index
    %c0_17 = arith.constant 0 : index
    %13 = vector.load %arg7[%c0_15, %c0_16, %c0_17] : memref<2x1x32xf32, #tpu.memory_space<vmem>>, vector<1x1x32xf32>
    %14 = vector.shape_cast %13 : vector<1x1x32xf32> to vector<1x32xf32>
    %cst_18 = arith.constant dense<0.000000e+00> : vector<20xf32>
    %15 = vector.multi_reduction <add>, %9, %cst_18 [1] : vector<20x32xf32> to vector<20xf32>
    %16 = vector.shape_cast %15 : vector<20xf32> to vector<20x1xf32>
    %cst_19 = arith.constant 3.200000e+01 : f32
    %17 = vector.broadcast %cst_19 : f32 to vector<20x1xf32>
    %18 = arith.divf %16, %17 : vector<20x1xf32>
    %19 = vector.broadcast %18 : vector<20x1xf32> to vector<20x32xf32>
    %20 = arith.subf %9, %19 : vector<20x32xf32>
    %21 = arith.mulf %20, %20 : vector<20x32xf32>
    %cst_20 = arith.constant dense<0.000000e+00> : vector<20xf32>
    %22 = vector.multi_reduction <add>, %21, %cst_20 [1] : vector<20x32xf32> to vector<20xf32>
    %23 = vector.shape_cast %22 : vector<20xf32> to vector<20x1xf32>
    %cst_21 = arith.constant 3.200000e+01 : f32
    %24 = vector.broadcast %cst_21 : f32 to vector<20x1xf32>
    %25 = arith.divf %23, %24 : vector<20x1xf32>
    %cst_22 = arith.constant 9.99999974E-6 : f32
    %26 = vector.broadcast %cst_22 : f32 to vector<20x1xf32>
    %27 = arith.addf %25, %26 : vector<20x1xf32>
    %28 = math.rsqrt %27 : vector<20x1xf32>
    %29 = vector.broadcast %28 : vector<20x1xf32> to vector<20x32xf32>
    %30 = arith.mulf %20, %29 : vector<20x32xf32>
    %31 = vector.broadcast %12 : vector<1x32xf32> to vector<20x32xf32>
    %32 = arith.mulf %30, %31 : vector<20x32xf32>
    %33 = vector.broadcast %14 : vector<1x32xf32> to vector<20x32xf32>
    %34 = arith.addf %32, %33 : vector<20x32xf32>
    %c0_23 = arith.constant 0 : index
    %c0_24 = arith.constant 0 : index
    %c0_25 = arith.constant 0 : index
    %c0_26 = arith.constant 0 : index
    %35 = vector.load %arg8[%c0_23, %c0_24, %c0_25, %c0_26] : memref<2x2x32x64xf32, #tpu.memory_space<vmem>>, vector<1x1x32x64xf32>
    %36 = vector.shape_cast %35 : vector<1x1x32x64xf32> to vector<32x64xf32>
    %cst_27 = arith.constant dense<0.000000e+00> : vector<20x64xf32>
    %37 = tpu.matmul %34, %36, %cst_27 {dimension_numbers = #tpu.dot_dimension_numbers<[1], [0], [0], [1], [0, 0, 1, 1], [], []>} : vector<20x32xf32>, vector<32x64xf32>, vector<20x64xf32> -> vector<20x64xf32>
    %c0_28 = arith.constant 0 : index
    %c0_29 = arith.constant 0 : index
    %c0_30 = arith.constant 0 : index
    %c0_31 = arith.constant 0 : index
    %38 = vector.load %arg9[%c0_28, %c0_29, %c0_30, %c0_31] : memref<2x2x32x64xf32, #tpu.memory_space<vmem>>, vector<1x1x32x64xf32>
    %39 = vector.shape_cast %38 : vector<1x1x32x64xf32> to vector<32x64xf32>
    %cst_32 = arith.constant dense<0.000000e+00> : vector<20x64xf32>
    %40 = tpu.matmul %34, %39, %cst_32 {dimension_numbers = #tpu.dot_dimension_numbers<[1], [0], [0], [1], [0, 0, 1, 1], [], []>} : vector<20x32xf32>, vector<32x64xf32>, vector<20x64xf32> -> vector<20x64xf32>
    %c0_33 = arith.constant 0 : index
    %c0_34 = arith.constant 0 : index
    %c0_35 = arith.constant 0 : index
    %c0_36 = arith.constant 0 : index
    %41 = vector.load %arg10[%c0_33, %c0_34, %c0_35, %c0_36] : memref<2x2x32x64xf32, #tpu.memory_space<vmem>>, vector<1x1x32x64xf32>
    %42 = vector.shape_cast %41 : vector<1x1x32x64xf32> to vector<32x64xf32>
    %cst_37 = arith.constant dense<0.000000e+00> : vector<20x64xf32>
    %43 = tpu.matmul %34, %42, %cst_37 {dimension_numbers = #tpu.dot_dimension_numbers<[1], [0], [0], [1], [0, 0, 1, 1], [], []>} : vector<20x32xf32>, vector<32x64xf32>, vector<20x64xf32> -> vector<20x64xf32>
    %cst_38 = arith.constant dense<0.000000e+00> : vector<20x20xf32>
    %44 = tpu.matmul %37, %40, %cst_38 {dimension_numbers = #tpu.dot_dimension_numbers<[1], [1], [0], [0], [0, 0, 1, 0], [], []>} : vector<20x64xf32>, vector<20x64xf32>, vector<20x20xf32> -> vector<20x20xf32>
    %cst_39 = arith.constant 1.250000e-01 : f32
    %45 = vector.broadcast %cst_39 : f32 to vector<20x20xf32>
    %46 = arith.mulf %44, %45 : vector<20x20xf32>
    %47 = arith.addf %46, %10 : vector<20x20xf32>
    %cst_40 = arith.constant dense<0xFF800000> : vector<20xf32>
    %48 = vector.multi_reduction <maximumf>, %47, %cst_40 [1] : vector<20x20xf32> to vector<20xf32>
    %49 = vector.shape_cast %48 : vector<20xf32> to vector<20x1xf32>
    %50 = vector.broadcast %49 : vector<20x1xf32> to vector<20x20xf32>
    %51 = arith.subf %47, %50 : vector<20x20xf32>
    %52 = math.exp %51 : vector<20x20xf32>
    %cst_41 = arith.constant dense<0.000000e+00> : vector<20xf32>
    %53 = vector.multi_reduction <add>, %52, %cst_41 [1] : vector<20x20xf32> to vector<20xf32>
    %54 = vector.shape_cast %53 : vector<20xf32> to vector<20x1xf32>
    %55 = tpu.reciprocal %54 {approx = true} : vector<20x1xf32> -> vector<20x1xf32>
    %56 = vector.broadcast %55 : vector<20x1xf32> to vector<20x20xf32>
    %57 = arith.mulf %52, %56 : vector<20x20xf32>
    %cst_42 = arith.constant dense<0.000000e+00> : vector<20x64xf32>
    %58 = tpu.matmul %57, %43, %cst_42 {dimension_numbers = #tpu.dot_dimension_numbers<[1], [0], [0], [1], [0, 0, 1, 1], [], []>} : vector<20x20xf32>, vector<20x64xf32>, vector<20x64xf32> -> vector<20x64xf32>
    %c0_43 = arith.constant 0 : index
    %c0_44 = arith.constant 0 : index
    %c0_45 = arith.constant 0 : index
    %c0_46 = arith.constant 0 : index
    %59 = vector.load %arg11[%c0_43, %c0_44, %c0_45, %c0_46] : memref<2x2x64x32xf32, #tpu.memory_space<vmem>>, vector<1x1x64x32xf32>
    %60 = vector.shape_cast %59 : vector<1x1x64x32xf32> to vector<64x32xf32>
    %cst_47 = arith.constant dense<0.000000e+00> : vector<20x32xf32>
    %61 = tpu.matmul %58, %60, %cst_47 {dimension_numbers = #tpu.dot_dimension_numbers<[1], [0], [0], [1], [0, 0, 1, 1], [], []>} : vector<20x64xf32>, vector<64x32xf32>, vector<20x32xf32> -> vector<20x32xf32>
    %c0_48 = arith.constant 0 : index
    %c1 = arith.constant 1 : index
    %c0_49 = arith.constant 0 : index
    %c0_50 = arith.constant 0 : index
    %62 = vector.load %arg8[%c0_48, %c1, %c0_49, %c0_50] : memref<2x2x32x64xf32, #tpu.memory_space<vmem>>, vector<1x1x32x64xf32>
    %63 = vector.shape_cast %62 : vector<1x1x32x64xf32> to vector<32x64xf32>
    %cst_51 = arith.constant dense<0.000000e+00> : vector<20x64xf32>
    %64 = tpu.matmul %34, %63, %cst_51 {dimension_numbers = #tpu.dot_dimension_numbers<[1], [0], [0], [1], [0, 0, 1, 1], [], []>} : vector<20x32xf32>, vector<32x64xf32>, vector<20x64xf32> -> vector<20x64xf32>
    %c0_52 = arith.constant 0 : index
    %c1_53 = arith.constant 1 : index
    %c0_54 = arith.constant 0 : index
    %c0_55 = arith.constant 0 : index
    %65 = vector.load %arg9[%c0_52, %c1_53, %c0_54, %c0_55] : memref<2x2x32x64xf32, #tpu.memory_space<vmem>>, vector<1x1x32x64xf32>
    %66 = vector.shape_cast %65 : vector<1x1x32x64xf32> to vector<32x64xf32>
    %cst_56 = arith.constant dense<0.000000e+00> : vector<20x64xf32>
    %67 = tpu.matmul %34, %66, %cst_56 {dimension_numbers = #tpu.dot_dimension_numbers<[1], [0], [0], [1], [0, 0, 1, 1], [], []>} : vector<20x32xf32>, vector<32x64xf32>, vector<20x64xf32> -> vector<20x64xf32>
    %c0_57 = arith.constant 0 : index
    %c1_58 = arith.constant 1 : index
    %c0_59 = arith.constant 0 : index
    %c0_60 = arith.constant 0 : index
    %68 = vector.load %arg10[%c0_57, %c1_58, %c0_59, %c0_60] : memref<2x2x32x64xf32, #tpu.memory_space<vmem>>, vector<1x1x32x64xf32>
    %69 = vector.shape_cast %68 : vector<1x1x32x64xf32> to vector<32x64xf32>
    %cst_61 = arith.constant dense<0.000000e+00> : vector<20x64xf32>
    %70 = tpu.matmul %34, %69, %cst_61 {dimension_numbers = #tpu.dot_dimension_numbers<[1], [0], [0], [1], [0, 0, 1, 1], [], []>} : vector<20x32xf32>, vector<32x64xf32>, vector<20x64xf32> -> vector<20x64xf32>
    %cst_62 = arith.constant dense<0.000000e+00> : vector<20x20xf32>
    %71 = tpu.matmul %64, %67, %cst_62 {dimension_numbers = #tpu.dot_dimension_numbers<[1], [1], [0], [0], [0, 0, 1, 0], [], []>} : vector<20x64xf32>, vector<20x64xf32>, vector<20x20xf32> -> vector<20x20xf32>
    %cst_63 = arith.constant 1.250000e-01 : f32
    %72 = vector.broadcast %cst_63 : f32 to vector<20x20xf32>
    %73 = arith.mulf %71, %72 : vector<20x20xf32>
    %74 = arith.addf %73, %10 : vector<20x20xf32>
    %cst_64 = arith.constant dense<0xFF800000> : vector<20xf32>
    %75 = vector.multi_reduction <maximumf>, %74, %cst_64 [1] : vector<20x20xf32> to vector<20xf32>
    %76 = vector.shape_cast %75 : vector<20xf32> to vector<20x1xf32>
    %77 = vector.broadcast %76 : vector<20x1xf32> to vector<20x20xf32>
    %78 = arith.subf %74, %77 : vector<20x20xf32>
    %79 = math.exp %78 : vector<20x20xf32>
    %cst_65 = arith.constant dense<0.000000e+00> : vector<20xf32>
    %80 = vector.multi_reduction <add>, %79, %cst_65 [1] : vector<20x20xf32> to vector<20xf32>
    %81 = vector.shape_cast %80 : vector<20xf32> to vector<20x1xf32>
    %82 = tpu.reciprocal %81 {approx = true} : vector<20x1xf32> -> vector<20x1xf32>
    %83 = vector.broadcast %82 : vector<20x1xf32> to vector<20x20xf32>
    %84 = arith.mulf %79, %83 : vector<20x20xf32>
    %cst_66 = arith.constant dense<0.000000e+00> : vector<20x64xf32>
    %85 = tpu.matmul %84, %70, %cst_66 {dimension_numbers = #tpu.dot_dimension_numbers<[1], [0], [0], [1], [0, 0, 1, 1], [], []>} : vector<20x20xf32>, vector<20x64xf32>, vector<20x64xf32> -> vector<20x64xf32>
    %c0_67 = arith.constant 0 : index
    %c1_68 = arith.constant 1 : index
    %c0_69 = arith.constant 0 : index
    %c0_70 = arith.constant 0 : index
    %86 = vector.load %arg11[%c0_67, %c1_68, %c0_69, %c0_70] : memref<2x2x64x32xf32, #tpu.memory_space<vmem>>, vector<1x1x64x32xf32>
    %87 = vector.shape_cast %86 : vector<1x1x64x32xf32> to vector<64x32xf32>
    %cst_71 = arith.constant dense<0.000000e+00> : vector<20x32xf32>
    %88 = tpu.matmul %85, %87, %cst_71 {dimension_numbers = #tpu.dot_dimension_numbers<[1], [0], [0], [1], [0, 0, 1, 1], [], []>} : vector<20x64xf32>, vector<64x32xf32>, vector<20x32xf32> -> vector<20x32xf32>
    %89 = arith.addf %61, %88 : vector<20x32xf32>
    %90 = arith.addf %9, %89 : vector<20x32xf32>
    %c0_72 = arith.constant 0 : index
    %c0_73 = arith.constant 0 : index
    %c0_74 = arith.constant 0 : index
    %91 = vector.load %arg12[%c0_72, %c0_73, %c0_74] : memref<2x1x32xf32, #tpu.memory_space<vmem>>, vector<1x1x32xf32>
    %92 = vector.shape_cast %91 : vector<1x1x32xf32> to vector<1x32xf32>
    %93 = vector.broadcast %92 : vector<1x32xf32> to vector<20x32xf32>
    %94 = arith.addf %90, %93 : vector<20x32xf32>
    %c0_75 = arith.constant 0 : index
    %c0_76 = arith.constant 0 : index
    %c0_77 = arith.constant 0 : index
    %95 = vector.load %arg13[%c0_75, %c0_76, %c0_77] : memref<2x1x32xf32, #tpu.memory_space<vmem>>, vector<1x1x32xf32>
    %96 = vector.shape_cast %95 : vector<1x1x32xf32> to vector<1x32xf32>
    %c0_78 = arith.constant 0 : index
    %c0_79 = arith.constant 0 : index
    %c0_80 = arith.constant 0 : index
    %97 = vector.load %arg14[%c0_78, %c0_79, %c0_80] : memref<2x1x32xf32, #tpu.memory_space<vmem>>, vector<1x1x32xf32>
    %98 = vector.shape_cast %97 : vector<1x1x32xf32> to vector<1x32xf32>
    %cst_81 = arith.constant dense<0.000000e+00> : vector<20xf32>
    %99 = vector.multi_reduction <add>, %94, %cst_81 [1] : vector<20x32xf32> to vector<20xf32>
    %100 = vector.shape_cast %99 : vector<20xf32> to vector<20x1xf32>
    %cst_82 = arith.constant 3.200000e+01 : f32
    %101 = vector.broadcast %cst_82 : f32 to vector<20x1xf32>
    %102 = arith.divf %100, %101 : vector<20x1xf32>
    %103 = vector.broadcast %102 : vector<20x1xf32> to vector<20x32xf32>
    %104 = arith.subf %94, %103 : vector<20x32xf32>
    %105 = arith.mulf %104, %104 : vector<20x32xf32>
    %cst_83 = arith.constant dense<0.000000e+00> : vector<20xf32>
    %106 = vector.multi_reduction <add>, %105, %cst_83 [1] : vector<20x32xf32> to vector<20xf32>
    %107 = vector.shape_cast %106 : vector<20xf32> to vector<20x1xf32>
    %cst_84 = arith.constant 3.200000e+01 : f32
    %108 = vector.broadcast %cst_84 : f32 to vector<20x1xf32>
    %109 = arith.divf %107, %108 : vector<20x1xf32>
    %cst_85 = arith.constant 9.99999974E-6 : f32
    %110 = vector.broadcast %cst_85 : f32 to vector<20x1xf32>
    %111 = arith.addf %109, %110 : vector<20x1xf32>
    %112 = math.rsqrt %111 : vector<20x1xf32>
    %113 = vector.broadcast %112 : vector<20x1xf32> to vector<20x32xf32>
    %114 = arith.mulf %104, %113 : vector<20x32xf32>
    %115 = vector.broadcast %96 : vector<1x32xf32> to vector<20x32xf32>
    %116 = arith.mulf %114, %115 : vector<20x32xf32>
    %117 = vector.broadcast %98 : vector<1x32xf32> to vector<20x32xf32>
    %118 = arith.addf %116, %117 : vector<20x32xf32>
    %c0_86 = arith.constant 0 : index
    %c0_87 = arith.constant 0 : index
    %c0_88 = arith.constant 0 : index
    %119 = vector.load %arg15[%c0_86, %c0_87, %c0_88] : memref<2x32x128xf32, #tpu.memory_space<vmem>>, vector<1x32x128xf32>
    %120 = vector.shape_cast %119 : vector<1x32x128xf32> to vector<32x128xf32>
    %cst_89 = arith.constant dense<0.000000e+00> : vector<20x128xf32>
    %121 = tpu.matmul %118, %120, %cst_89 {dimension_numbers = #tpu.dot_dimension_numbers<[1], [0], [0], [1], [0, 0, 1, 1], [], []>} : vector<20x32xf32>, vector<32x128xf32>, vector<20x128xf32> -> vector<20x128xf32>
    %c0_90 = arith.constant 0 : index
    %c0_91 = arith.constant 0 : index
    %c0_92 = arith.constant 0 : index
    %122 = vector.load %arg16[%c0_90, %c0_91, %c0_92] : memref<2x1x128xf32, #tpu.memory_space<vmem>>, vector<1x1x128xf32>
    %123 = vector.shape_cast %122 : vector<1x1x128xf32> to vector<1x128xf32>
    %124 = vector.broadcast %123 : vector<1x128xf32> to vector<20x128xf32>
    %125 = arith.addf %121, %124 : vector<20x128xf32>
    %cst_93 = arith.constant 5.000000e-01 : f32
    %126 = vector.broadcast %cst_93 : f32 to vector<20x128xf32>
    %127 = arith.mulf %126, %125 : vector<20x128xf32>
    %cst_94 = arith.constant 0.707106769 : f32
    %128 = vector.broadcast %cst_94 : f32 to vector<20x128xf32>
    %129 = arith.mulf %125, %128 : vector<20x128xf32>
    %130 = math.erf %129 : vector<20x128xf32>
    %cst_95 = arith.constant 1.000000e+00 : f32
    %131 = vector.broadcast %cst_95 : f32 to vector<20x128xf32>
    %132 = arith.addf %131, %130 : vector<20x128xf32>
    %133 = arith.mulf %127, %132 : vector<20x128xf32>
    %c0_96 = arith.constant 0 : index
    %c0_97 = arith.constant 0 : index
    %c0_98 = arith.constant 0 : index
    %134 = vector.load %arg17[%c0_96, %c0_97, %c0_98] : memref<2x128x32xf32, #tpu.memory_space<vmem>>, vector<1x128x32xf32>
    %135 = vector.shape_cast %134 : vector<1x128x32xf32> to vector<128x32xf32>
    %cst_99 = arith.constant dense<0.000000e+00> : vector<20x32xf32>
    %136 = tpu.matmul %133, %135, %cst_99 {dimension_numbers = #tpu.dot_dimension_numbers<[1], [0], [0], [1], [0, 0, 1, 1], [], []>} : vector<20x128xf32>, vector<128x32xf32>, vector<20x32xf32> -> vector<20x32xf32>
    %137 = arith.addf %94, %136 : vector<20x32xf32>
    %c0_100 = arith.constant 0 : index
    %c0_101 = arith.constant 0 : index
    %c0_102 = arith.constant 0 : index
    %138 = vector.load %arg18[%c0_100, %c0_101, %c0_102] : memref<2x1x32xf32, #tpu.memory_space<vmem>>, vector<1x1x32xf32>
    %139 = vector.shape_cast %138 : vector<1x1x32xf32> to vector<1x32xf32>
    %140 = vector.broadcast %139 : vector<1x32xf32> to vector<20x32xf32>
    %141 = arith.addf %137, %140 : vector<20x32xf32>
    %c1_103 = arith.constant 1 : index
    %c0_104 = arith.constant 0 : index
    %c0_105 = arith.constant 0 : index
    %142 = vector.load %arg6[%c1_103, %c0_104, %c0_105] : memref<2x1x32xf32, #tpu.memory_space<vmem>>, vector<1x1x32xf32>
    %143 = vector.shape_cast %142 : vector<1x1x32xf32> to vector<1x32xf32>
    %c1_106 = arith.constant 1 : index
    %c0_107 = arith.constant 0 : index
    %c0_108 = arith.constant 0 : index
    %144 = vector.load %arg7[%c1_106, %c0_107, %c0_108] : memref<2x1x32xf32, #tpu.memory_space<vmem>>, vector<1x1x32xf32>
    %145 = vector.shape_cast %144 : vector<1x1x32xf32> to vector<1x32xf32>
    %cst_109 = arith.constant dense<0.000000e+00> : vector<20xf32>
    %146 = vector.multi_reduction <add>, %141, %cst_109 [1] : vector<20x32xf32> to vector<20xf32>
    %147 = vector.shape_cast %146 : vector<20xf32> to vector<20x1xf32>
    %cst_110 = arith.constant 3.200000e+01 : f32
    %148 = vector.broadcast %cst_110 : f32 to vector<20x1xf32>
    %149 = arith.divf %147, %148 : vector<20x1xf32>
    %150 = vector.broadcast %149 : vector<20x1xf32> to vector<20x32xf32>
    %151 = arith.subf %141, %150 : vector<20x32xf32>
    %152 = arith.mulf %151, %151 : vector<20x32xf32>
    %cst_111 = arith.constant dense<0.000000e+00> : vector<20xf32>
    %153 = vector.multi_reduction <add>, %152, %cst_111 [1] : vector<20x32xf32> to vector<20xf32>
    %154 = vector.shape_cast %153 : vector<20xf32> to vector<20x1xf32>
    %cst_112 = arith.constant 3.200000e+01 : f32
    %155 = vector.broadcast %cst_112 : f32 to vector<20x1xf32>
    %156 = arith.divf %154, %155 : vector<20x1xf32>
    %cst_113 = arith.constant 9.99999974E-6 : f32
    %157 = vector.broadcast %cst_113 : f32 to vector<20x1xf32>
    %158 = arith.addf %156, %157 : vector<20x1xf32>
    %159 = math.rsqrt %158 : vector<20x1xf32>
    %160 = vector.broadcast %159 : vector<20x1xf32> to vector<20x32xf32>
    %161 = arith.mulf %151, %160 : vector<20x32xf32>
    %162 = vector.broadcast %143 : vector<1x32xf32> to vector<20x32xf32>
    %163 = arith.mulf %161, %162 : vector<20x32xf32>
    %164 = vector.broadcast %145 : vector<1x32xf32> to vector<20x32xf32>
    %165 = arith.addf %163, %164 : vector<20x32xf32>
    %c1_114 = arith.constant 1 : index
    %c0_115 = arith.constant 0 : index
    %c0_116 = arith.constant 0 : index
    %c0_117 = arith.constant 0 : index
    %166 = vector.load %arg8[%c1_114, %c0_115, %c0_116, %c0_117] : memref<2x2x32x64xf32, #tpu.memory_space<vmem>>, vector<1x1x32x64xf32>
    %167 = vector.shape_cast %166 : vector<1x1x32x64xf32> to vector<32x64xf32>
    %cst_118 = arith.constant dense<0.000000e+00> : vector<20x64xf32>
    %168 = tpu.matmul %165, %167, %cst_118 {dimension_numbers = #tpu.dot_dimension_numbers<[1], [0], [0], [1], [0, 0, 1, 1], [], []>} : vector<20x32xf32>, vector<32x64xf32>, vector<20x64xf32> -> vector<20x64xf32>
    %c1_119 = arith.constant 1 : index
    %c0_120 = arith.constant 0 : index
    %c0_121 = arith.constant 0 : index
    %c0_122 = arith.constant 0 : index
    %169 = vector.load %arg9[%c1_119, %c0_120, %c0_121, %c0_122] : memref<2x2x32x64xf32, #tpu.memory_space<vmem>>, vector<1x1x32x64xf32>
    %170 = vector.shape_cast %169 : vector<1x1x32x64xf32> to vector<32x64xf32>
    %cst_123 = arith.constant dense<0.000000e+00> : vector<20x64xf32>
    %171 = tpu.matmul %165, %170, %cst_123 {dimension_numbers = #tpu.dot_dimension_numbers<[1], [0], [0], [1], [0, 0, 1, 1], [], []>} : vector<20x32xf32>, vector<32x64xf32>, vector<20x64xf32> -> vector<20x64xf32>
    %c1_124 = arith.constant 1 : index
    %c0_125 = arith.constant 0 : index
    %c0_126 = arith.constant 0 : index
    %c0_127 = arith.constant 0 : index
    %172 = vector.load %arg10[%c1_124, %c0_125, %c0_126, %c0_127] : memref<2x2x32x64xf32, #tpu.memory_space<vmem>>, vector<1x1x32x64xf32>
    %173 = vector.shape_cast %172 : vector<1x1x32x64xf32> to vector<32x64xf32>
    %cst_128 = arith.constant dense<0.000000e+00> : vector<20x64xf32>
    %174 = tpu.matmul %165, %173, %cst_128 {dimension_numbers = #tpu.dot_dimension_numbers<[1], [0], [0], [1], [0, 0, 1, 1], [], []>} : vector<20x32xf32>, vector<32x64xf32>, vector<20x64xf32> -> vector<20x64xf32>
    %cst_129 = arith.constant dense<0.000000e+00> : vector<20x20xf32>
    %175 = tpu.matmul %168, %171, %cst_129 {dimension_numbers = #tpu.dot_dimension_numbers<[1], [1], [0], [0], [0, 0, 1, 0], [], []>} : vector<20x64xf32>, vector<20x64xf32>, vector<20x20xf32> -> vector<20x20xf32>
    %cst_130 = arith.constant 1.250000e-01 : f32
    %176 = vector.broadcast %cst_130 : f32 to vector<20x20xf32>
    %177 = arith.mulf %175, %176 : vector<20x20xf32>
    %178 = arith.addf %177, %10 : vector<20x20xf32>
    %cst_131 = arith.constant dense<0xFF800000> : vector<20xf32>
    %179 = vector.multi_reduction <maximumf>, %178, %cst_131 [1] : vector<20x20xf32> to vector<20xf32>
    %180 = vector.shape_cast %179 : vector<20xf32> to vector<20x1xf32>
    %181 = vector.broadcast %180 : vector<20x1xf32> to vector<20x20xf32>
    %182 = arith.subf %178, %181 : vector<20x20xf32>
    %183 = math.exp %182 : vector<20x20xf32>
    %cst_132 = arith.constant dense<0.000000e+00> : vector<20xf32>
    %184 = vector.multi_reduction <add>, %183, %cst_132 [1] : vector<20x20xf32> to vector<20xf32>
    %185 = vector.shape_cast %184 : vector<20xf32> to vector<20x1xf32>
    %186 = tpu.reciprocal %185 {approx = true} : vector<20x1xf32> -> vector<20x1xf32>
    %187 = vector.broadcast %186 : vector<20x1xf32> to vector<20x20xf32>
    %188 = arith.mulf %183, %187 : vector<20x20xf32>
    %cst_133 = arith.constant dense<0.000000e+00> : vector<20x64xf32>
    %189 = tpu.matmul %188, %174, %cst_133 {dimension_numbers = #tpu.dot_dimension_numbers<[1], [0], [0], [1], [0, 0, 1, 1], [], []>} : vector<20x20xf32>, vector<20x64xf32>, vector<20x64xf32> -> vector<20x64xf32>
    %c1_134 = arith.constant 1 : index
    %c0_135 = arith.constant 0 : index
    %c0_136 = arith.constant 0 : index
    %c0_137 = arith.constant 0 : index
    %190 = vector.load %arg11[%c1_134, %c0_135, %c0_136, %c0_137] : memref<2x2x64x32xf32, #tpu.memory_space<vmem>>, vector<1x1x64x32xf32>
    %191 = vector.shape_cast %190 : vector<1x1x64x32xf32> to vector<64x32xf32>
    %cst_138 = arith.constant dense<0.000000e+00> : vector<20x32xf32>
    %192 = tpu.matmul %189, %191, %cst_138 {dimension_numbers = #tpu.dot_dimension_numbers<[1], [0], [0], [1], [0, 0, 1, 1], [], []>} : vector<20x64xf32>, vector<64x32xf32>, vector<20x32xf32> -> vector<20x32xf32>
    %c1_139 = arith.constant 1 : index
    %c1_140 = arith.constant 1 : index
    %c0_141 = arith.constant 0 : index
    %c0_142 = arith.constant 0 : index
    %193 = vector.load %arg8[%c1_139, %c1_140, %c0_141, %c0_142] : memref<2x2x32x64xf32, #tpu.memory_space<vmem>>, vector<1x1x32x64xf32>
    %194 = vector.shape_cast %193 : vector<1x1x32x64xf32> to vector<32x64xf32>
    %cst_143 = arith.constant dense<0.000000e+00> : vector<20x64xf32>
    %195 = tpu.matmul %165, %194, %cst_143 {dimension_numbers = #tpu.dot_dimension_numbers<[1], [0], [0], [1], [0, 0, 1, 1], [], []>} : vector<20x32xf32>, vector<32x64xf32>, vector<20x64xf32> -> vector<20x64xf32>
    %c1_144 = arith.constant 1 : index
    %c1_145 = arith.constant 1 : index
    %c0_146 = arith.constant 0 : index
    %c0_147 = arith.constant 0 : index
    %196 = vector.load %arg9[%c1_144, %c1_145, %c0_146, %c0_147] : memref<2x2x32x64xf32, #tpu.memory_space<vmem>>, vector<1x1x32x64xf32>
    %197 = vector.shape_cast %196 : vector<1x1x32x64xf32> to vector<32x64xf32>
    %cst_148 = arith.constant dense<0.000000e+00> : vector<20x64xf32>
    %198 = tpu.matmul %165, %197, %cst_148 {dimension_numbers = #tpu.dot_dimension_numbers<[1], [0], [0], [1], [0, 0, 1, 1], [], []>} : vector<20x32xf32>, vector<32x64xf32>, vector<20x64xf32> -> vector<20x64xf32>
    %c1_149 = arith.constant 1 : index
    %c1_150 = arith.constant 1 : index
    %c0_151 = arith.constant 0 : index
    %c0_152 = arith.constant 0 : index
    %199 = vector.load %arg10[%c1_149, %c1_150, %c0_151, %c0_152] : memref<2x2x32x64xf32, #tpu.memory_space<vmem>>, vector<1x1x32x64xf32>
    %200 = vector.shape_cast %199 : vector<1x1x32x64xf32> to vector<32x64xf32>
    %cst_153 = arith.constant dense<0.000000e+00> : vector<20x64xf32>
    %201 = tpu.matmul %165, %200, %cst_153 {dimension_numbers = #tpu.dot_dimension_numbers<[1], [0], [0], [1], [0, 0, 1, 1], [], []>} : vector<20x32xf32>, vector<32x64xf32>, vector<20x64xf32> -> vector<20x64xf32>
    %cst_154 = arith.constant dense<0.000000e+00> : vector<20x20xf32>
    %202 = tpu.matmul %195, %198, %cst_154 {dimension_numbers = #tpu.dot_dimension_numbers<[1], [1], [0], [0], [0, 0, 1, 0], [], []>} : vector<20x64xf32>, vector<20x64xf32>, vector<20x20xf32> -> vector<20x20xf32>
    %cst_155 = arith.constant 1.250000e-01 : f32
    %203 = vector.broadcast %cst_155 : f32 to vector<20x20xf32>
    %204 = arith.mulf %202, %203 : vector<20x20xf32>
    %205 = arith.addf %204, %10 : vector<20x20xf32>
    %cst_156 = arith.constant dense<0xFF800000> : vector<20xf32>
    %206 = vector.multi_reduction <maximumf>, %205, %cst_156 [1] : vector<20x20xf32> to vector<20xf32>
    %207 = vector.shape_cast %206 : vector<20xf32> to vector<20x1xf32>
    %208 = vector.broadcast %207 : vector<20x1xf32> to vector<20x20xf32>
    %209 = arith.subf %205, %208 : vector<20x20xf32>
    %210 = math.exp %209 : vector<20x20xf32>
    %cst_157 = arith.constant dense<0.000000e+00> : vector<20xf32>
    %211 = vector.multi_reduction <add>, %210, %cst_157 [1] : vector<20x20xf32> to vector<20xf32>
    %212 = vector.shape_cast %211 : vector<20xf32> to vector<20x1xf32>
    %213 = tpu.reciprocal %212 {approx = true} : vector<20x1xf32> -> vector<20x1xf32>
    %214 = vector.broadcast %213 : vector<20x1xf32> to vector<20x20xf32>
    %215 = arith.mulf %210, %214 : vector<20x20xf32>
    %cst_158 = arith.constant dense<0.000000e+00> : vector<20x64xf32>
    %216 = tpu.matmul %215, %201, %cst_158 {dimension_numbers = #tpu.dot_dimension_numbers<[1], [0], [0], [1], [0, 0, 1, 1], [], []>} : vector<20x20xf32>, vector<20x64xf32>, vector<20x64xf32> -> vector<20x64xf32>
    %c1_159 = arith.constant 1 : index
    %c1_160 = arith.constant 1 : index
    %c0_161 = arith.constant 0 : index
    %c0_162 = arith.constant 0 : index
    %217 = vector.load %arg11[%c1_159, %c1_160, %c0_161, %c0_162] : memref<2x2x64x32xf32, #tpu.memory_space<vmem>>, vector<1x1x64x32xf32>
    %218 = vector.shape_cast %217 : vector<1x1x64x32xf32> to vector<64x32xf32>
    %cst_163 = arith.constant dense<0.000000e+00> : vector<20x32xf32>
    %219 = tpu.matmul %216, %218, %cst_163 {dimension_numbers = #tpu.dot_dimension_numbers<[1], [0], [0], [1], [0, 0, 1, 1], [], []>} : vector<20x64xf32>, vector<64x32xf32>, vector<20x32xf32> -> vector<20x32xf32>
    %220 = arith.addf %192, %219 : vector<20x32xf32>
    %221 = arith.addf %141, %220 : vector<20x32xf32>
    %c1_164 = arith.constant 1 : index
    %c0_165 = arith.constant 0 : index
    %c0_166 = arith.constant 0 : index
    %222 = vector.load %arg12[%c1_164, %c0_165, %c0_166] : memref<2x1x32xf32, #tpu.memory_space<vmem>>, vector<1x1x32xf32>
    %223 = vector.shape_cast %222 : vector<1x1x32xf32> to vector<1x32xf32>
    %224 = vector.broadcast %223 : vector<1x32xf32> to vector<20x32xf32>
    %225 = arith.addf %221, %224 : vector<20x32xf32>
    %c1_167 = arith.constant 1 : index
    %c0_168 = arith.constant 0 : index
    %c0_169 = arith.constant 0 : index
    %226 = vector.load %arg13[%c1_167, %c0_168, %c0_169] : memref<2x1x32xf32, #tpu.memory_space<vmem>>, vector<1x1x32xf32>
    %227 = vector.shape_cast %226 : vector<1x1x32xf32> to vector<1x32xf32>
    %c1_170 = arith.constant 1 : index
    %c0_171 = arith.constant 0 : index
    %c0_172 = arith.constant 0 : index
    %228 = vector.load %arg14[%c1_170, %c0_171, %c0_172] : memref<2x1x32xf32, #tpu.memory_space<vmem>>, vector<1x1x32xf32>
    %229 = vector.shape_cast %228 : vector<1x1x32xf32> to vector<1x32xf32>
    %cst_173 = arith.constant dense<0.000000e+00> : vector<20xf32>
    %230 = vector.multi_reduction <add>, %225, %cst_173 [1] : vector<20x32xf32> to vector<20xf32>
    %231 = vector.shape_cast %230 : vector<20xf32> to vector<20x1xf32>
    %cst_174 = arith.constant 3.200000e+01 : f32
    %232 = vector.broadcast %cst_174 : f32 to vector<20x1xf32>
    %233 = arith.divf %231, %232 : vector<20x1xf32>
    %234 = vector.broadcast %233 : vector<20x1xf32> to vector<20x32xf32>
    %235 = arith.subf %225, %234 : vector<20x32xf32>
    %236 = arith.mulf %235, %235 : vector<20x32xf32>
    %cst_175 = arith.constant dense<0.000000e+00> : vector<20xf32>
    %237 = vector.multi_reduction <add>, %236, %cst_175 [1] : vector<20x32xf32> to vector<20xf32>
    %238 = vector.shape_cast %237 : vector<20xf32> to vector<20x1xf32>
    %cst_176 = arith.constant 3.200000e+01 : f32
    %239 = vector.broadcast %cst_176 : f32 to vector<20x1xf32>
    %240 = arith.divf %238, %239 : vector<20x1xf32>
    %cst_177 = arith.constant 9.99999974E-6 : f32
    %241 = vector.broadcast %cst_177 : f32 to vector<20x1xf32>
    %242 = arith.addf %240, %241 : vector<20x1xf32>
    %243 = math.rsqrt %242 : vector<20x1xf32>
    %244 = vector.broadcast %243 : vector<20x1xf32> to vector<20x32xf32>
    %245 = arith.mulf %235, %244 : vector<20x32xf32>
    %246 = vector.broadcast %227 : vector<1x32xf32> to vector<20x32xf32>
    %247 = arith.mulf %245, %246 : vector<20x32xf32>
    %248 = vector.broadcast %229 : vector<1x32xf32> to vector<20x32xf32>
    %249 = arith.addf %247, %248 : vector<20x32xf32>
    %c1_178 = arith.constant 1 : index
    %c0_179 = arith.constant 0 : index
    %c0_180 = arith.constant 0 : index
    %250 = vector.load %arg15[%c1_178, %c0_179, %c0_180] : memref<2x32x128xf32, #tpu.memory_space<vmem>>, vector<1x32x128xf32>
    %251 = vector.shape_cast %250 : vector<1x32x128xf32> to vector<32x128xf32>
    %cst_181 = arith.constant dense<0.000000e+00> : vector<20x128xf32>
    %252 = tpu.matmul %249, %251, %cst_181 {dimension_numbers = #tpu.dot_dimension_numbers<[1], [0], [0], [1], [0, 0, 1, 1], [], []>} : vector<20x32xf32>, vector<32x128xf32>, vector<20x128xf32> -> vector<20x128xf32>
    %c1_182 = arith.constant 1 : index
    %c0_183 = arith.constant 0 : index
    %c0_184 = arith.constant 0 : index
    %253 = vector.load %arg16[%c1_182, %c0_183, %c0_184] : memref<2x1x128xf32, #tpu.memory_space<vmem>>, vector<1x1x128xf32>
    %254 = vector.shape_cast %253 : vector<1x1x128xf32> to vector<1x128xf32>
    %255 = vector.broadcast %254 : vector<1x128xf32> to vector<20x128xf32>
    %256 = arith.addf %252, %255 : vector<20x128xf32>
    %cst_185 = arith.constant 5.000000e-01 : f32
    %257 = vector.broadcast %cst_185 : f32 to vector<20x128xf32>
    %258 = arith.mulf %257, %256 : vector<20x128xf32>
    %cst_186 = arith.constant 0.707106769 : f32
    %259 = vector.broadcast %cst_186 : f32 to vector<20x128xf32>
    %260 = arith.mulf %256, %259 : vector<20x128xf32>
    %261 = math.erf %260 : vector<20x128xf32>
    %cst_187 = arith.constant 1.000000e+00 : f32
    %262 = vector.broadcast %cst_187 : f32 to vector<20x128xf32>
    %263 = arith.addf %262, %261 : vector<20x128xf32>
    %264 = arith.mulf %258, %263 : vector<20x128xf32>
    %c1_188 = arith.constant 1 : index
    %c0_189 = arith.constant 0 : index
    %c0_190 = arith.constant 0 : index
    %265 = vector.load %arg17[%c1_188, %c0_189, %c0_190] : memref<2x128x32xf32, #tpu.memory_space<vmem>>, vector<1x128x32xf32>
    %266 = vector.shape_cast %265 : vector<1x128x32xf32> to vector<128x32xf32>
    %cst_191 = arith.constant dense<0.000000e+00> : vector<20x32xf32>
    %267 = tpu.matmul %264, %266, %cst_191 {dimension_numbers = #tpu.dot_dimension_numbers<[1], [0], [0], [1], [0, 0, 1, 1], [], []>} : vector<20x128xf32>, vector<128x32xf32>, vector<20x32xf32> -> vector<20x32xf32>
    %268 = arith.addf %225, %267 : vector<20x32xf32>
    %c1_192 = arith.constant 1 : index
    %c0_193 = arith.constant 0 : index
    %c0_194 = arith.constant 0 : index
    %269 = vector.load %arg18[%c1_192, %c0_193, %c0_194] : memref<2x1x32xf32, #tpu.memory_space<vmem>>, vector<1x1x32xf32>
    %270 = vector.shape_cast %269 : vector<1x1x32xf32> to vector<1x32xf32>
    %271 = vector.broadcast %270 : vector<1x32xf32> to vector<20x32xf32>
    %272 = arith.addf %268, %271 : vector<20x32xf32>
    %c0_195 = arith.constant 0 : index
    %c0_196 = arith.constant 0 : index
    %273 = vector.load %arg19[%c0_195, %c0_196] : memref<1x32xf32, #tpu.memory_space<vmem>>, vector<1x32xf32>
    %c0_197 = arith.constant 0 : index
    %c0_198 = arith.constant 0 : index
    %274 = vector.load %arg20[%c0_197, %c0_198] : memref<1x32xf32, #tpu.memory_space<vmem>>, vector<1x32xf32>
    %cst_199 = arith.constant dense<0.000000e+00> : vector<20xf32>
    %275 = vector.multi_reduction <add>, %272, %cst_199 [1] : vector<20x32xf32> to vector<20xf32>
    %276 = vector.shape_cast %275 : vector<20xf32> to vector<20x1xf32>
    %cst_200 = arith.constant 3.200000e+01 : f32
    %277 = vector.broadcast %cst_200 : f32 to vector<20x1xf32>
    %278 = arith.divf %276, %277 : vector<20x1xf32>
    %279 = vector.broadcast %278 : vector<20x1xf32> to vector<20x32xf32>
    %280 = arith.subf %272, %279 : vector<20x32xf32>
    %281 = arith.mulf %280, %280 : vector<20x32xf32>
    %cst_201 = arith.constant dense<0.000000e+00> : vector<20xf32>
    %282 = vector.multi_reduction <add>, %281, %cst_201 [1] : vector<20x32xf32> to vector<20xf32>
    %283 = vector.shape_cast %282 : vector<20xf32> to vector<20x1xf32>
    %cst_202 = arith.constant 3.200000e+01 : f32
    %284 = vector.broadcast %cst_202 : f32 to vector<20x1xf32>
    %285 = arith.divf %283, %284 : vector<20x1xf32>
    %cst_203 = arith.constant 9.99999974E-6 : f32
    %286 = vector.broadcast %cst_203 : f32 to vector<20x1xf32>
    %287 = arith.addf %285, %286 : vector<20x1xf32>
    %288 = math.rsqrt %287 : vector<20x1xf32>
    %289 = vector.broadcast %288 : vector<20x1xf32> to vector<20x32xf32>
    %290 = arith.mulf %280, %289 : vector<20x32xf32>
    %291 = vector.broadcast %273 : vector<1x32xf32> to vector<20x32xf32>
    %292 = arith.mulf %290, %291 : vector<20x32xf32>
    %293 = vector.broadcast %274 : vector<1x32xf32> to vector<20x32xf32>
    %294 = arith.addf %292, %293 : vector<20x32xf32>
    %c0_204 = arith.constant 0 : index
    %c0_205 = arith.constant 0 : index
    %295 = vector.load %arg21[%c0_204, %c0_205] : memref<4x20xf32, #tpu.memory_space<vmem>>, vector<4x20xf32>
    %cst_206 = arith.constant dense<0.000000e+00> : vector<4x32xf32>
    %296 = tpu.matmul %295, %294, %cst_206 {dimension_numbers = #tpu.dot_dimension_numbers<[1], [0], [0], [1], [0, 0, 1, 1], [], []>} : vector<4x20xf32>, vector<20x32xf32>, vector<4x32xf32> -> vector<4x32xf32>
    %c0_207 = arith.constant 0 : index
    %c0_208 = arith.constant 0 : index
    %297 = vector.load %arg22[%c0_207, %c0_208] : memref<4x4xf32, #tpu.memory_space<vmem>>, vector<4x4xf32>
    %c0_209 = arith.constant 0 : index
    %c0_210 = arith.constant 0 : index
    %c0_211 = arith.constant 0 : index
    %298 = vector.load %arg23[%c0_209, %c0_210, %c0_211] : memref<2x1x32xf32, #tpu.memory_space<vmem>>, vector<1x1x32xf32>
    %299 = vector.shape_cast %298 : vector<1x1x32xf32> to vector<1x32xf32>
    %c0_212 = arith.constant 0 : index
    %c0_213 = arith.constant 0 : index
    %c0_214 = arith.constant 0 : index
    %300 = vector.load %arg24[%c0_212, %c0_213, %c0_214] : memref<2x1x32xf32, #tpu.memory_space<vmem>>, vector<1x1x32xf32>
    %301 = vector.shape_cast %300 : vector<1x1x32xf32> to vector<1x32xf32>
    %cst_215 = arith.constant dense<0.000000e+00> : vector<4xf32>
    %302 = vector.multi_reduction <add>, %296, %cst_215 [1] : vector<4x32xf32> to vector<4xf32>
    %303 = vector.shape_cast %302 : vector<4xf32> to vector<4x1xf32>
    %cst_216 = arith.constant 3.200000e+01 : f32
    %304 = vector.broadcast %cst_216 : f32 to vector<4x1xf32>
    %305 = arith.divf %303, %304 : vector<4x1xf32>
    %306 = vector.broadcast %305 : vector<4x1xf32> to vector<4x32xf32>
    %307 = arith.subf %296, %306 : vector<4x32xf32>
    %308 = arith.mulf %307, %307 : vector<4x32xf32>
    %cst_217 = arith.constant dense<0.000000e+00> : vector<4xf32>
    %309 = vector.multi_reduction <add>, %308, %cst_217 [1] : vector<4x32xf32> to vector<4xf32>
    %310 = vector.shape_cast %309 : vector<4xf32> to vector<4x1xf32>
    %cst_218 = arith.constant 3.200000e+01 : f32
    %311 = vector.broadcast %cst_218 : f32 to vector<4x1xf32>
    %312 = arith.divf %310, %311 : vector<4x1xf32>
    %cst_219 = arith.constant 9.99999974E-6 : f32
    %313 = vector.broadcast %cst_219 : f32 to vector<4x1xf32>
    %314 = arith.addf %312, %313 : vector<4x1xf32>
    %315 = math.rsqrt %314 : vector<4x1xf32>
    %316 = vector.broadcast %315 : vector<4x1xf32> to vector<4x32xf32>
    %317 = arith.mulf %307, %316 : vector<4x32xf32>
    %318 = vector.broadcast %299 : vector<1x32xf32> to vector<4x32xf32>
    %319 = arith.mulf %317, %318 : vector<4x32xf32>
    %320 = vector.broadcast %301 : vector<1x32xf32> to vector<4x32xf32>
    %321 = arith.addf %319, %320 : vector<4x32xf32>
    %c0_220 = arith.constant 0 : index
    %c0_221 = arith.constant 0 : index
    %c0_222 = arith.constant 0 : index
    %c0_223 = arith.constant 0 : index
    %322 = vector.load %arg25[%c0_220, %c0_221, %c0_222, %c0_223] : memref<2x2x32x64xf32, #tpu.memory_space<vmem>>, vector<1x1x32x64xf32>
    %323 = vector.shape_cast %322 : vector<1x1x32x64xf32> to vector<32x64xf32>
    %cst_224 = arith.constant dense<0.000000e+00> : vector<4x64xf32>
    %324 = tpu.matmul %321, %323, %cst_224 {dimension_numbers = #tpu.dot_dimension_numbers<[1], [0], [0], [1], [0, 0, 1, 1], [], []>} : vector<4x32xf32>, vector<32x64xf32>, vector<4x64xf32> -> vector<4x64xf32>
    %c0_225 = arith.constant 0 : index
    %c0_226 = arith.constant 0 : index
    %c0_227 = arith.constant 0 : index
    %c0_228 = arith.constant 0 : index
    %325 = vector.load %arg26[%c0_225, %c0_226, %c0_227, %c0_228] : memref<2x2x32x64xf32, #tpu.memory_space<vmem>>, vector<1x1x32x64xf32>
    %326 = vector.shape_cast %325 : vector<1x1x32x64xf32> to vector<32x64xf32>
    %cst_229 = arith.constant dense<0.000000e+00> : vector<4x64xf32>
    %327 = tpu.matmul %321, %326, %cst_229 {dimension_numbers = #tpu.dot_dimension_numbers<[1], [0], [0], [1], [0, 0, 1, 1], [], []>} : vector<4x32xf32>, vector<32x64xf32>, vector<4x64xf32> -> vector<4x64xf32>
    %c0_230 = arith.constant 0 : index
    %c0_231 = arith.constant 0 : index
    %c0_232 = arith.constant 0 : index
    %c0_233 = arith.constant 0 : index
    %328 = vector.load %arg27[%c0_230, %c0_231, %c0_232, %c0_233] : memref<2x2x32x64xf32, #tpu.memory_space<vmem>>, vector<1x1x32x64xf32>
    %329 = vector.shape_cast %328 : vector<1x1x32x64xf32> to vector<32x64xf32>
    %cst_234 = arith.constant dense<0.000000e+00> : vector<4x64xf32>
    %330 = tpu.matmul %321, %329, %cst_234 {dimension_numbers = #tpu.dot_dimension_numbers<[1], [0], [0], [1], [0, 0, 1, 1], [], []>} : vector<4x32xf32>, vector<32x64xf32>, vector<4x64xf32> -> vector<4x64xf32>
    %cst_235 = arith.constant dense<0.000000e+00> : vector<4x4xf32>
    %331 = tpu.matmul %324, %327, %cst_235 {dimension_numbers = #tpu.dot_dimension_numbers<[1], [1], [0], [0], [0, 0, 1, 0], [], []>} : vector<4x64xf32>, vector<4x64xf32>, vector<4x4xf32> -> vector<4x4xf32>
    %cst_236 = arith.constant 1.250000e-01 : f32
    %332 = vector.broadcast %cst_236 : f32 to vector<4x4xf32>
    %333 = arith.mulf %331, %332 : vector<4x4xf32>
    %334 = arith.addf %333, %297 : vector<4x4xf32>
    %cst_237 = arith.constant dense<0xFF800000> : vector<4xf32>
    %335 = vector.multi_reduction <maximumf>, %334, %cst_237 [1] : vector<4x4xf32> to vector<4xf32>
    %336 = vector.shape_cast %335 : vector<4xf32> to vector<4x1xf32>
    %337 = vector.broadcast %336 : vector<4x1xf32> to vector<4x4xf32>
    %338 = arith.subf %334, %337 : vector<4x4xf32>
    %339 = math.exp %338 : vector<4x4xf32>
    %cst_238 = arith.constant dense<0.000000e+00> : vector<4xf32>
    %340 = vector.multi_reduction <add>, %339, %cst_238 [1] : vector<4x4xf32> to vector<4xf32>
    %341 = vector.shape_cast %340 : vector<4xf32> to vector<4x1xf32>
    %342 = tpu.reciprocal %341 {approx = true} : vector<4x1xf32> -> vector<4x1xf32>
    %343 = vector.broadcast %342 : vector<4x1xf32> to vector<4x4xf32>
    %344 = arith.mulf %339, %343 : vector<4x4xf32>
    %cst_239 = arith.constant dense<0.000000e+00> : vector<4x64xf32>
    %345 = tpu.matmul %344, %330, %cst_239 {dimension_numbers = #tpu.dot_dimension_numbers<[1], [0], [0], [1], [0, 0, 1, 1], [], []>} : vector<4x4xf32>, vector<4x64xf32>, vector<4x64xf32> -> vector<4x64xf32>
    %c0_240 = arith.constant 0 : index
    %c0_241 = arith.constant 0 : index
    %c0_242 = arith.constant 0 : index
    %c0_243 = arith.constant 0 : index
    %346 = vector.load %arg28[%c0_240, %c0_241, %c0_242, %c0_243] : memref<2x2x64x32xf32, #tpu.memory_space<vmem>>, vector<1x1x64x32xf32>
    %347 = vector.shape_cast %346 : vector<1x1x64x32xf32> to vector<64x32xf32>
    %cst_244 = arith.constant dense<0.000000e+00> : vector<4x32xf32>
    %348 = tpu.matmul %345, %347, %cst_244 {dimension_numbers = #tpu.dot_dimension_numbers<[1], [0], [0], [1], [0, 0, 1, 1], [], []>} : vector<4x64xf32>, vector<64x32xf32>, vector<4x32xf32> -> vector<4x32xf32>
    %c0_245 = arith.constant 0 : index
    %c1_246 = arith.constant 1 : index
    %c0_247 = arith.constant 0 : index
    %c0_248 = arith.constant 0 : index
    %349 = vector.load %arg25[%c0_245, %c1_246, %c0_247, %c0_248] : memref<2x2x32x64xf32, #tpu.memory_space<vmem>>, vector<1x1x32x64xf32>
    %350 = vector.shape_cast %349 : vector<1x1x32x64xf32> to vector<32x64xf32>
    %cst_249 = arith.constant dense<0.000000e+00> : vector<4x64xf32>
    %351 = tpu.matmul %321, %350, %cst_249 {dimension_numbers = #tpu.dot_dimension_numbers<[1], [0], [0], [1], [0, 0, 1, 1], [], []>} : vector<4x32xf32>, vector<32x64xf32>, vector<4x64xf32> -> vector<4x64xf32>
    %c0_250 = arith.constant 0 : index
    %c1_251 = arith.constant 1 : index
    %c0_252 = arith.constant 0 : index
    %c0_253 = arith.constant 0 : index
    %352 = vector.load %arg26[%c0_250, %c1_251, %c0_252, %c0_253] : memref<2x2x32x64xf32, #tpu.memory_space<vmem>>, vector<1x1x32x64xf32>
    %353 = vector.shape_cast %352 : vector<1x1x32x64xf32> to vector<32x64xf32>
    %cst_254 = arith.constant dense<0.000000e+00> : vector<4x64xf32>
    %354 = tpu.matmul %321, %353, %cst_254 {dimension_numbers = #tpu.dot_dimension_numbers<[1], [0], [0], [1], [0, 0, 1, 1], [], []>} : vector<4x32xf32>, vector<32x64xf32>, vector<4x64xf32> -> vector<4x64xf32>
    %c0_255 = arith.constant 0 : index
    %c1_256 = arith.constant 1 : index
    %c0_257 = arith.constant 0 : index
    %c0_258 = arith.constant 0 : index
    %355 = vector.load %arg27[%c0_255, %c1_256, %c0_257, %c0_258] : memref<2x2x32x64xf32, #tpu.memory_space<vmem>>, vector<1x1x32x64xf32>
    %356 = vector.shape_cast %355 : vector<1x1x32x64xf32> to vector<32x64xf32>
    %cst_259 = arith.constant dense<0.000000e+00> : vector<4x64xf32>
    %357 = tpu.matmul %321, %356, %cst_259 {dimension_numbers = #tpu.dot_dimension_numbers<[1], [0], [0], [1], [0, 0, 1, 1], [], []>} : vector<4x32xf32>, vector<32x64xf32>, vector<4x64xf32> -> vector<4x64xf32>
    %cst_260 = arith.constant dense<0.000000e+00> : vector<4x4xf32>
    %358 = tpu.matmul %351, %354, %cst_260 {dimension_numbers = #tpu.dot_dimension_numbers<[1], [1], [0], [0], [0, 0, 1, 0], [], []>} : vector<4x64xf32>, vector<4x64xf32>, vector<4x4xf32> -> vector<4x4xf32>
    %cst_261 = arith.constant 1.250000e-01 : f32
    %359 = vector.broadcast %cst_261 : f32 to vector<4x4xf32>
    %360 = arith.mulf %358, %359 : vector<4x4xf32>
    %361 = arith.addf %360, %297 : vector<4x4xf32>
    %cst_262 = arith.constant dense<0xFF800000> : vector<4xf32>
    %362 = vector.multi_reduction <maximumf>, %361, %cst_262 [1] : vector<4x4xf32> to vector<4xf32>
    %363 = vector.shape_cast %362 : vector<4xf32> to vector<4x1xf32>
    %364 = vector.broadcast %363 : vector<4x1xf32> to vector<4x4xf32>
    %365 = arith.subf %361, %364 : vector<4x4xf32>
    %366 = math.exp %365 : vector<4x4xf32>
    %cst_263 = arith.constant dense<0.000000e+00> : vector<4xf32>
    %367 = vector.multi_reduction <add>, %366, %cst_263 [1] : vector<4x4xf32> to vector<4xf32>
    %368 = vector.shape_cast %367 : vector<4xf32> to vector<4x1xf32>
    %369 = tpu.reciprocal %368 {approx = true} : vector<4x1xf32> -> vector<4x1xf32>
    %370 = vector.broadcast %369 : vector<4x1xf32> to vector<4x4xf32>
    %371 = arith.mulf %366, %370 : vector<4x4xf32>
    %cst_264 = arith.constant dense<0.000000e+00> : vector<4x64xf32>
    %372 = tpu.matmul %371, %357, %cst_264 {dimension_numbers = #tpu.dot_dimension_numbers<[1], [0], [0], [1], [0, 0, 1, 1], [], []>} : vector<4x4xf32>, vector<4x64xf32>, vector<4x64xf32> -> vector<4x64xf32>
    %c0_265 = arith.constant 0 : index
    %c1_266 = arith.constant 1 : index
    %c0_267 = arith.constant 0 : index
    %c0_268 = arith.constant 0 : index
    %373 = vector.load %arg28[%c0_265, %c1_266, %c0_267, %c0_268] : memref<2x2x64x32xf32, #tpu.memory_space<vmem>>, vector<1x1x64x32xf32>
    %374 = vector.shape_cast %373 : vector<1x1x64x32xf32> to vector<64x32xf32>
    %cst_269 = arith.constant dense<0.000000e+00> : vector<4x32xf32>
    %375 = tpu.matmul %372, %374, %cst_269 {dimension_numbers = #tpu.dot_dimension_numbers<[1], [0], [0], [1], [0, 0, 1, 1], [], []>} : vector<4x64xf32>, vector<64x32xf32>, vector<4x32xf32> -> vector<4x32xf32>
    %376 = arith.addf %348, %375 : vector<4x32xf32>
    %377 = arith.addf %296, %376 : vector<4x32xf32>
    %c0_270 = arith.constant 0 : index
    %c0_271 = arith.constant 0 : index
    %c0_272 = arith.constant 0 : index
    %378 = vector.load %arg29[%c0_270, %c0_271, %c0_272] : memref<2x1x32xf32, #tpu.memory_space<vmem>>, vector<1x1x32xf32>
    %379 = vector.shape_cast %378 : vector<1x1x32xf32> to vector<1x32xf32>
    %380 = vector.broadcast %379 : vector<1x32xf32> to vector<4x32xf32>
    %381 = arith.addf %377, %380 : vector<4x32xf32>
    %c0_273 = arith.constant 0 : index
    %c0_274 = arith.constant 0 : index
    %c0_275 = arith.constant 0 : index
    %382 = vector.load %arg30[%c0_273, %c0_274, %c0_275] : memref<2x1x32xf32, #tpu.memory_space<vmem>>, vector<1x1x32xf32>
    %383 = vector.shape_cast %382 : vector<1x1x32xf32> to vector<1x32xf32>
    %c0_276 = arith.constant 0 : index
    %c0_277 = arith.constant 0 : index
    %c0_278 = arith.constant 0 : index
    %384 = vector.load %arg31[%c0_276, %c0_277, %c0_278] : memref<2x1x32xf32, #tpu.memory_space<vmem>>, vector<1x1x32xf32>
    %385 = vector.shape_cast %384 : vector<1x1x32xf32> to vector<1x32xf32>
    %cst_279 = arith.constant dense<0.000000e+00> : vector<4xf32>
    %386 = vector.multi_reduction <add>, %381, %cst_279 [1] : vector<4x32xf32> to vector<4xf32>
    %387 = vector.shape_cast %386 : vector<4xf32> to vector<4x1xf32>
    %cst_280 = arith.constant 3.200000e+01 : f32
    %388 = vector.broadcast %cst_280 : f32 to vector<4x1xf32>
    %389 = arith.divf %387, %388 : vector<4x1xf32>
    %390 = vector.broadcast %389 : vector<4x1xf32> to vector<4x32xf32>
    %391 = arith.subf %381, %390 : vector<4x32xf32>
    %392 = arith.mulf %391, %391 : vector<4x32xf32>
    %cst_281 = arith.constant dense<0.000000e+00> : vector<4xf32>
    %393 = vector.multi_reduction <add>, %392, %cst_281 [1] : vector<4x32xf32> to vector<4xf32>
    %394 = vector.shape_cast %393 : vector<4xf32> to vector<4x1xf32>
    %cst_282 = arith.constant 3.200000e+01 : f32
    %395 = vector.broadcast %cst_282 : f32 to vector<4x1xf32>
    %396 = arith.divf %394, %395 : vector<4x1xf32>
    %cst_283 = arith.constant 9.99999974E-6 : f32
    %397 = vector.broadcast %cst_283 : f32 to vector<4x1xf32>
    %398 = arith.addf %396, %397 : vector<4x1xf32>
    %399 = math.rsqrt %398 : vector<4x1xf32>
    %400 = vector.broadcast %399 : vector<4x1xf32> to vector<4x32xf32>
    %401 = arith.mulf %391, %400 : vector<4x32xf32>
    %402 = vector.broadcast %383 : vector<1x32xf32> to vector<4x32xf32>
    %403 = arith.mulf %401, %402 : vector<4x32xf32>
    %404 = vector.broadcast %385 : vector<1x32xf32> to vector<4x32xf32>
    %405 = arith.addf %403, %404 : vector<4x32xf32>
    %c0_284 = arith.constant 0 : index
    %c0_285 = arith.constant 0 : index
    %c0_286 = arith.constant 0 : index
    %406 = vector.load %arg32[%c0_284, %c0_285, %c0_286] : memref<2x32x128xf32, #tpu.memory_space<vmem>>, vector<1x32x128xf32>
    %407 = vector.shape_cast %406 : vector<1x32x128xf32> to vector<32x128xf32>
    %cst_287 = arith.constant dense<0.000000e+00> : vector<4x128xf32>
    %408 = tpu.matmul %405, %407, %cst_287 {dimension_numbers = #tpu.dot_dimension_numbers<[1], [0], [0], [1], [0, 0, 1, 1], [], []>} : vector<4x32xf32>, vector<32x128xf32>, vector<4x128xf32> -> vector<4x128xf32>
    %c0_288 = arith.constant 0 : index
    %c0_289 = arith.constant 0 : index
    %c0_290 = arith.constant 0 : index
    %409 = vector.load %arg33[%c0_288, %c0_289, %c0_290] : memref<2x1x128xf32, #tpu.memory_space<vmem>>, vector<1x1x128xf32>
    %410 = vector.shape_cast %409 : vector<1x1x128xf32> to vector<1x128xf32>
    %411 = vector.broadcast %410 : vector<1x128xf32> to vector<4x128xf32>
    %412 = arith.addf %408, %411 : vector<4x128xf32>
    %cst_291 = arith.constant 5.000000e-01 : f32
    %413 = vector.broadcast %cst_291 : f32 to vector<4x128xf32>
    %414 = arith.mulf %413, %412 : vector<4x128xf32>
    %cst_292 = arith.constant 0.707106769 : f32
    %415 = vector.broadcast %cst_292 : f32 to vector<4x128xf32>
    %416 = arith.mulf %412, %415 : vector<4x128xf32>
    %417 = math.erf %416 : vector<4x128xf32>
    %cst_293 = arith.constant 1.000000e+00 : f32
    %418 = vector.broadcast %cst_293 : f32 to vector<4x128xf32>
    %419 = arith.addf %418, %417 : vector<4x128xf32>
    %420 = arith.mulf %414, %419 : vector<4x128xf32>
    %c0_294 = arith.constant 0 : index
    %c0_295 = arith.constant 0 : index
    %c0_296 = arith.constant 0 : index
    %421 = vector.load %arg34[%c0_294, %c0_295, %c0_296] : memref<2x128x32xf32, #tpu.memory_space<vmem>>, vector<1x128x32xf32>
    %422 = vector.shape_cast %421 : vector<1x128x32xf32> to vector<128x32xf32>
    %cst_297 = arith.constant dense<0.000000e+00> : vector<4x32xf32>
    %423 = tpu.matmul %420, %422, %cst_297 {dimension_numbers = #tpu.dot_dimension_numbers<[1], [0], [0], [1], [0, 0, 1, 1], [], []>} : vector<4x128xf32>, vector<128x32xf32>, vector<4x32xf32> -> vector<4x32xf32>
    %424 = arith.addf %381, %423 : vector<4x32xf32>
    %c0_298 = arith.constant 0 : index
    %c0_299 = arith.constant 0 : index
    %c0_300 = arith.constant 0 : index
    %425 = vector.load %arg35[%c0_298, %c0_299, %c0_300] : memref<2x1x32xf32, #tpu.memory_space<vmem>>, vector<1x1x32xf32>
    %426 = vector.shape_cast %425 : vector<1x1x32xf32> to vector<1x32xf32>
    %427 = vector.broadcast %426 : vector<1x32xf32> to vector<4x32xf32>
    %428 = arith.addf %424, %427 : vector<4x32xf32>
    %c1_301 = arith.constant 1 : index
    %c0_302 = arith.constant 0 : index
    %c0_303 = arith.constant 0 : index
    %429 = vector.load %arg23[%c1_301, %c0_302, %c0_303] : memref<2x1x32xf32, #tpu.memory_space<vmem>>, vector<1x1x32xf32>
    %430 = vector.shape_cast %429 : vector<1x1x32xf32> to vector<1x32xf32>
    %c1_304 = arith.constant 1 : index
    %c0_305 = arith.constant 0 : index
    %c0_306 = arith.constant 0 : index
    %431 = vector.load %arg24[%c1_304, %c0_305, %c0_306] : memref<2x1x32xf32, #tpu.memory_space<vmem>>, vector<1x1x32xf32>
    %432 = vector.shape_cast %431 : vector<1x1x32xf32> to vector<1x32xf32>
    %cst_307 = arith.constant dense<0.000000e+00> : vector<4xf32>
    %433 = vector.multi_reduction <add>, %428, %cst_307 [1] : vector<4x32xf32> to vector<4xf32>
    %434 = vector.shape_cast %433 : vector<4xf32> to vector<4x1xf32>
    %cst_308 = arith.constant 3.200000e+01 : f32
    %435 = vector.broadcast %cst_308 : f32 to vector<4x1xf32>
    %436 = arith.divf %434, %435 : vector<4x1xf32>
    %437 = vector.broadcast %436 : vector<4x1xf32> to vector<4x32xf32>
    %438 = arith.subf %428, %437 : vector<4x32xf32>
    %439 = arith.mulf %438, %438 : vector<4x32xf32>
    %cst_309 = arith.constant dense<0.000000e+00> : vector<4xf32>
    %440 = vector.multi_reduction <add>, %439, %cst_309 [1] : vector<4x32xf32> to vector<4xf32>
    %441 = vector.shape_cast %440 : vector<4xf32> to vector<4x1xf32>
    %cst_310 = arith.constant 3.200000e+01 : f32
    %442 = vector.broadcast %cst_310 : f32 to vector<4x1xf32>
    %443 = arith.divf %441, %442 : vector<4x1xf32>
    %cst_311 = arith.constant 9.99999974E-6 : f32
    %444 = vector.broadcast %cst_311 : f32 to vector<4x1xf32>
    %445 = arith.addf %443, %444 : vector<4x1xf32>
    %446 = math.rsqrt %445 : vector<4x1xf32>
    %447 = vector.broadcast %446 : vector<4x1xf32> to vector<4x32xf32>
    %448 = arith.mulf %438, %447 : vector<4x32xf32>
    %449 = vector.broadcast %430 : vector<1x32xf32> to vector<4x32xf32>
    %450 = arith.mulf %448, %449 : vector<4x32xf32>
    %451 = vector.broadcast %432 : vector<1x32xf32> to vector<4x32xf32>
    %452 = arith.addf %450, %451 : vector<4x32xf32>
    %c1_312 = arith.constant 1 : index
    %c0_313 = arith.constant 0 : index
    %c0_314 = arith.constant 0 : index
    %c0_315 = arith.constant 0 : index
    %453 = vector.load %arg25[%c1_312, %c0_313, %c0_314, %c0_315] : memref<2x2x32x64xf32, #tpu.memory_space<vmem>>, vector<1x1x32x64xf32>
    %454 = vector.shape_cast %453 : vector<1x1x32x64xf32> to vector<32x64xf32>
    %cst_316 = arith.constant dense<0.000000e+00> : vector<4x64xf32>
    %455 = tpu.matmul %452, %454, %cst_316 {dimension_numbers = #tpu.dot_dimension_numbers<[1], [0], [0], [1], [0, 0, 1, 1], [], []>} : vector<4x32xf32>, vector<32x64xf32>, vector<4x64xf32> -> vector<4x64xf32>
    %c1_317 = arith.constant 1 : index
    %c0_318 = arith.constant 0 : index
    %c0_319 = arith.constant 0 : index
    %c0_320 = arith.constant 0 : index
    %456 = vector.load %arg26[%c1_317, %c0_318, %c0_319, %c0_320] : memref<2x2x32x64xf32, #tpu.memory_space<vmem>>, vector<1x1x32x64xf32>
    %457 = vector.shape_cast %456 : vector<1x1x32x64xf32> to vector<32x64xf32>
    %cst_321 = arith.constant dense<0.000000e+00> : vector<4x64xf32>
    %458 = tpu.matmul %452, %457, %cst_321 {dimension_numbers = #tpu.dot_dimension_numbers<[1], [0], [0], [1], [0, 0, 1, 1], [], []>} : vector<4x32xf32>, vector<32x64xf32>, vector<4x64xf32> -> vector<4x64xf32>
    %c1_322 = arith.constant 1 : index
    %c0_323 = arith.constant 0 : index
    %c0_324 = arith.constant 0 : index
    %c0_325 = arith.constant 0 : index
    %459 = vector.load %arg27[%c1_322, %c0_323, %c0_324, %c0_325] : memref<2x2x32x64xf32, #tpu.memory_space<vmem>>, vector<1x1x32x64xf32>
    %460 = vector.shape_cast %459 : vector<1x1x32x64xf32> to vector<32x64xf32>
    %cst_326 = arith.constant dense<0.000000e+00> : vector<4x64xf32>
    %461 = tpu.matmul %452, %460, %cst_326 {dimension_numbers = #tpu.dot_dimension_numbers<[1], [0], [0], [1], [0, 0, 1, 1], [], []>} : vector<4x32xf32>, vector<32x64xf32>, vector<4x64xf32> -> vector<4x64xf32>
    %cst_327 = arith.constant dense<0.000000e+00> : vector<4x4xf32>
    %462 = tpu.matmul %455, %458, %cst_327 {dimension_numbers = #tpu.dot_dimension_numbers<[1], [1], [0], [0], [0, 0, 1, 0], [], []>} : vector<4x64xf32>, vector<4x64xf32>, vector<4x4xf32> -> vector<4x4xf32>
    %cst_328 = arith.constant 1.250000e-01 : f32
    %463 = vector.broadcast %cst_328 : f32 to vector<4x4xf32>
    %464 = arith.mulf %462, %463 : vector<4x4xf32>
    %465 = arith.addf %464, %297 : vector<4x4xf32>
    %cst_329 = arith.constant dense<0xFF800000> : vector<4xf32>
    %466 = vector.multi_reduction <maximumf>, %465, %cst_329 [1] : vector<4x4xf32> to vector<4xf32>
    %467 = vector.shape_cast %466 : vector<4xf32> to vector<4x1xf32>
    %468 = vector.broadcast %467 : vector<4x1xf32> to vector<4x4xf32>
    %469 = arith.subf %465, %468 : vector<4x4xf32>
    %470 = math.exp %469 : vector<4x4xf32>
    %cst_330 = arith.constant dense<0.000000e+00> : vector<4xf32>
    %471 = vector.multi_reduction <add>, %470, %cst_330 [1] : vector<4x4xf32> to vector<4xf32>
    %472 = vector.shape_cast %471 : vector<4xf32> to vector<4x1xf32>
    %473 = tpu.reciprocal %472 {approx = true} : vector<4x1xf32> -> vector<4x1xf32>
    %474 = vector.broadcast %473 : vector<4x1xf32> to vector<4x4xf32>
    %475 = arith.mulf %470, %474 : vector<4x4xf32>
    %cst_331 = arith.constant dense<0.000000e+00> : vector<4x64xf32>
    %476 = tpu.matmul %475, %461, %cst_331 {dimension_numbers = #tpu.dot_dimension_numbers<[1], [0], [0], [1], [0, 0, 1, 1], [], []>} : vector<4x4xf32>, vector<4x64xf32>, vector<4x64xf32> -> vector<4x64xf32>
    %c1_332 = arith.constant 1 : index
    %c0_333 = arith.constant 0 : index
    %c0_334 = arith.constant 0 : index
    %c0_335 = arith.constant 0 : index
    %477 = vector.load %arg28[%c1_332, %c0_333, %c0_334, %c0_335] : memref<2x2x64x32xf32, #tpu.memory_space<vmem>>, vector<1x1x64x32xf32>
    %478 = vector.shape_cast %477 : vector<1x1x64x32xf32> to vector<64x32xf32>
    %cst_336 = arith.constant dense<0.000000e+00> : vector<4x32xf32>
    %479 = tpu.matmul %476, %478, %cst_336 {dimension_numbers = #tpu.dot_dimension_numbers<[1], [0], [0], [1], [0, 0, 1, 1], [], []>} : vector<4x64xf32>, vector<64x32xf32>, vector<4x32xf32> -> vector<4x32xf32>
    %c1_337 = arith.constant 1 : index
    %c1_338 = arith.constant 1 : index
    %c0_339 = arith.constant 0 : index
    %c0_340 = arith.constant 0 : index
    %480 = vector.load %arg25[%c1_337, %c1_338, %c0_339, %c0_340] : memref<2x2x32x64xf32, #tpu.memory_space<vmem>>, vector<1x1x32x64xf32>
    %481 = vector.shape_cast %480 : vector<1x1x32x64xf32> to vector<32x64xf32>
    %cst_341 = arith.constant dense<0.000000e+00> : vector<4x64xf32>
    %482 = tpu.matmul %452, %481, %cst_341 {dimension_numbers = #tpu.dot_dimension_numbers<[1], [0], [0], [1], [0, 0, 1, 1], [], []>} : vector<4x32xf32>, vector<32x64xf32>, vector<4x64xf32> -> vector<4x64xf32>
    %c1_342 = arith.constant 1 : index
    %c1_343 = arith.constant 1 : index
    %c0_344 = arith.constant 0 : index
    %c0_345 = arith.constant 0 : index
    %483 = vector.load %arg26[%c1_342, %c1_343, %c0_344, %c0_345] : memref<2x2x32x64xf32, #tpu.memory_space<vmem>>, vector<1x1x32x64xf32>
    %484 = vector.shape_cast %483 : vector<1x1x32x64xf32> to vector<32x64xf32>
    %cst_346 = arith.constant dense<0.000000e+00> : vector<4x64xf32>
    %485 = tpu.matmul %452, %484, %cst_346 {dimension_numbers = #tpu.dot_dimension_numbers<[1], [0], [0], [1], [0, 0, 1, 1], [], []>} : vector<4x32xf32>, vector<32x64xf32>, vector<4x64xf32> -> vector<4x64xf32>
    %c1_347 = arith.constant 1 : index
    %c1_348 = arith.constant 1 : index
    %c0_349 = arith.constant 0 : index
    %c0_350 = arith.constant 0 : index
    %486 = vector.load %arg27[%c1_347, %c1_348, %c0_349, %c0_350] : memref<2x2x32x64xf32, #tpu.memory_space<vmem>>, vector<1x1x32x64xf32>
    %487 = vector.shape_cast %486 : vector<1x1x32x64xf32> to vector<32x64xf32>
    %cst_351 = arith.constant dense<0.000000e+00> : vector<4x64xf32>
    %488 = tpu.matmul %452, %487, %cst_351 {dimension_numbers = #tpu.dot_dimension_numbers<[1], [0], [0], [1], [0, 0, 1, 1], [], []>} : vector<4x32xf32>, vector<32x64xf32>, vector<4x64xf32> -> vector<4x64xf32>
    %cst_352 = arith.constant dense<0.000000e+00> : vector<4x4xf32>
    %489 = tpu.matmul %482, %485, %cst_352 {dimension_numbers = #tpu.dot_dimension_numbers<[1], [1], [0], [0], [0, 0, 1, 0], [], []>} : vector<4x64xf32>, vector<4x64xf32>, vector<4x4xf32> -> vector<4x4xf32>
    %cst_353 = arith.constant 1.250000e-01 : f32
    %490 = vector.broadcast %cst_353 : f32 to vector<4x4xf32>
    %491 = arith.mulf %489, %490 : vector<4x4xf32>
    %492 = arith.addf %491, %297 : vector<4x4xf32>
    %cst_354 = arith.constant dense<0xFF800000> : vector<4xf32>
    %493 = vector.multi_reduction <maximumf>, %492, %cst_354 [1] : vector<4x4xf32> to vector<4xf32>
    %494 = vector.shape_cast %493 : vector<4xf32> to vector<4x1xf32>
    %495 = vector.broadcast %494 : vector<4x1xf32> to vector<4x4xf32>
    %496 = arith.subf %492, %495 : vector<4x4xf32>
    %497 = math.exp %496 : vector<4x4xf32>
    %cst_355 = arith.constant dense<0.000000e+00> : vector<4xf32>
    %498 = vector.multi_reduction <add>, %497, %cst_355 [1] : vector<4x4xf32> to vector<4xf32>
    %499 = vector.shape_cast %498 : vector<4xf32> to vector<4x1xf32>
    %500 = tpu.reciprocal %499 {approx = true} : vector<4x1xf32> -> vector<4x1xf32>
    %501 = vector.broadcast %500 : vector<4x1xf32> to vector<4x4xf32>
    %502 = arith.mulf %497, %501 : vector<4x4xf32>
    %cst_356 = arith.constant dense<0.000000e+00> : vector<4x64xf32>
    %503 = tpu.matmul %502, %488, %cst_356 {dimension_numbers = #tpu.dot_dimension_numbers<[1], [0], [0], [1], [0, 0, 1, 1], [], []>} : vector<4x4xf32>, vector<4x64xf32>, vector<4x64xf32> -> vector<4x64xf32>
    %c1_357 = arith.constant 1 : index
    %c1_358 = arith.constant 1 : index
    %c0_359 = arith.constant 0 : index
    %c0_360 = arith.constant 0 : index
    %504 = vector.load %arg28[%c1_357, %c1_358, %c0_359, %c0_360] : memref<2x2x64x32xf32, #tpu.memory_space<vmem>>, vector<1x1x64x32xf32>
    %505 = vector.shape_cast %504 : vector<1x1x64x32xf32> to vector<64x32xf32>
    %cst_361 = arith.constant dense<0.000000e+00> : vector<4x32xf32>
    %506 = tpu.matmul %503, %505, %cst_361 {dimension_numbers = #tpu.dot_dimension_numbers<[1], [0], [0], [1], [0, 0, 1, 1], [], []>} : vector<4x64xf32>, vector<64x32xf32>, vector<4x32xf32> -> vector<4x32xf32>
    %507 = arith.addf %479, %506 : vector<4x32xf32>
    %508 = arith.addf %428, %507 : vector<4x32xf32>
    %c1_362 = arith.constant 1 : index
    %c0_363 = arith.constant 0 : index
    %c0_364 = arith.constant 0 : index
    %509 = vector.load %arg29[%c1_362, %c0_363, %c0_364] : memref<2x1x32xf32, #tpu.memory_space<vmem>>, vector<1x1x32xf32>
    %510 = vector.shape_cast %509 : vector<1x1x32xf32> to vector<1x32xf32>
    %511 = vector.broadcast %510 : vector<1x32xf32> to vector<4x32xf32>
    %512 = arith.addf %508, %511 : vector<4x32xf32>
    %c1_365 = arith.constant 1 : index
    %c0_366 = arith.constant 0 : index
    %c0_367 = arith.constant 0 : index
    %513 = vector.load %arg30[%c1_365, %c0_366, %c0_367] : memref<2x1x32xf32, #tpu.memory_space<vmem>>, vector<1x1x32xf32>
    %514 = vector.shape_cast %513 : vector<1x1x32xf32> to vector<1x32xf32>
    %c1_368 = arith.constant 1 : index
    %c0_369 = arith.constant 0 : index
    %c0_370 = arith.constant 0 : index
    %515 = vector.load %arg31[%c1_368, %c0_369, %c0_370] : memref<2x1x32xf32, #tpu.memory_space<vmem>>, vector<1x1x32xf32>
    %516 = vector.shape_cast %515 : vector<1x1x32xf32> to vector<1x32xf32>
    %cst_371 = arith.constant dense<0.000000e+00> : vector<4xf32>
    %517 = vector.multi_reduction <add>, %512, %cst_371 [1] : vector<4x32xf32> to vector<4xf32>
    %518 = vector.shape_cast %517 : vector<4xf32> to vector<4x1xf32>
    %cst_372 = arith.constant 3.200000e+01 : f32
    %519 = vector.broadcast %cst_372 : f32 to vector<4x1xf32>
    %520 = arith.divf %518, %519 : vector<4x1xf32>
    %521 = vector.broadcast %520 : vector<4x1xf32> to vector<4x32xf32>
    %522 = arith.subf %512, %521 : vector<4x32xf32>
    %523 = arith.mulf %522, %522 : vector<4x32xf32>
    %cst_373 = arith.constant dense<0.000000e+00> : vector<4xf32>
    %524 = vector.multi_reduction <add>, %523, %cst_373 [1] : vector<4x32xf32> to vector<4xf32>
    %525 = vector.shape_cast %524 : vector<4xf32> to vector<4x1xf32>
    %cst_374 = arith.constant 3.200000e+01 : f32
    %526 = vector.broadcast %cst_374 : f32 to vector<4x1xf32>
    %527 = arith.divf %525, %526 : vector<4x1xf32>
    %cst_375 = arith.constant 9.99999974E-6 : f32
    %528 = vector.broadcast %cst_375 : f32 to vector<4x1xf32>
    %529 = arith.addf %527, %528 : vector<4x1xf32>
    %530 = math.rsqrt %529 : vector<4x1xf32>
    %531 = vector.broadcast %530 : vector<4x1xf32> to vector<4x32xf32>
    %532 = arith.mulf %522, %531 : vector<4x32xf32>
    %533 = vector.broadcast %514 : vector<1x32xf32> to vector<4x32xf32>
    %534 = arith.mulf %532, %533 : vector<4x32xf32>
    %535 = vector.broadcast %516 : vector<1x32xf32> to vector<4x32xf32>
    %536 = arith.addf %534, %535 : vector<4x32xf32>
    %c1_376 = arith.constant 1 : index
    %c0_377 = arith.constant 0 : index
    %c0_378 = arith.constant 0 : index
    %537 = vector.load %arg32[%c1_376, %c0_377, %c0_378] : memref<2x32x128xf32, #tpu.memory_space<vmem>>, vector<1x32x128xf32>
    %538 = vector.shape_cast %537 : vector<1x32x128xf32> to vector<32x128xf32>
    %cst_379 = arith.constant dense<0.000000e+00> : vector<4x128xf32>
    %539 = tpu.matmul %536, %538, %cst_379 {dimension_numbers = #tpu.dot_dimension_numbers<[1], [0], [0], [1], [0, 0, 1, 1], [], []>} : vector<4x32xf32>, vector<32x128xf32>, vector<4x128xf32> -> vector<4x128xf32>
    %c1_380 = arith.constant 1 : index
    %c0_381 = arith.constant 0 : index
    %c0_382 = arith.constant 0 : index
    %540 = vector.load %arg33[%c1_380, %c0_381, %c0_382] : memref<2x1x128xf32, #tpu.memory_space<vmem>>, vector<1x1x128xf32>
    %541 = vector.shape_cast %540 : vector<1x1x128xf32> to vector<1x128xf32>
    %542 = vector.broadcast %541 : vector<1x128xf32> to vector<4x128xf32>
    %543 = arith.addf %539, %542 : vector<4x128xf32>
    %cst_383 = arith.constant 5.000000e-01 : f32
    %544 = vector.broadcast %cst_383 : f32 to vector<4x128xf32>
    %545 = arith.mulf %544, %543 : vector<4x128xf32>
    %cst_384 = arith.constant 0.707106769 : f32
    %546 = vector.broadcast %cst_384 : f32 to vector<4x128xf32>
    %547 = arith.mulf %543, %546 : vector<4x128xf32>
    %548 = math.erf %547 : vector<4x128xf32>
    %cst_385 = arith.constant 1.000000e+00 : f32
    %549 = vector.broadcast %cst_385 : f32 to vector<4x128xf32>
    %550 = arith.addf %549, %548 : vector<4x128xf32>
    %551 = arith.mulf %545, %550 : vector<4x128xf32>
    %c1_386 = arith.constant 1 : index
    %c0_387 = arith.constant 0 : index
    %c0_388 = arith.constant 0 : index
    %552 = vector.load %arg34[%c1_386, %c0_387, %c0_388] : memref<2x128x32xf32, #tpu.memory_space<vmem>>, vector<1x128x32xf32>
    %553 = vector.shape_cast %552 : vector<1x128x32xf32> to vector<128x32xf32>
    %cst_389 = arith.constant dense<0.000000e+00> : vector<4x32xf32>
    %554 = tpu.matmul %551, %553, %cst_389 {dimension_numbers = #tpu.dot_dimension_numbers<[1], [0], [0], [1], [0, 0, 1, 1], [], []>} : vector<4x128xf32>, vector<128x32xf32>, vector<4x32xf32> -> vector<4x32xf32>
    %555 = arith.addf %512, %554 : vector<4x32xf32>
    %c1_390 = arith.constant 1 : index
    %c0_391 = arith.constant 0 : index
    %c0_392 = arith.constant 0 : index
    %556 = vector.load %arg35[%c1_390, %c0_391, %c0_392] : memref<2x1x32xf32, #tpu.memory_space<vmem>>, vector<1x1x32xf32>
    %557 = vector.shape_cast %556 : vector<1x1x32xf32> to vector<1x32xf32>
    %558 = vector.broadcast %557 : vector<1x32xf32> to vector<4x32xf32>
    %559 = arith.addf %555, %558 : vector<4x32xf32>
    %c0_393 = arith.constant 0 : index
    %c0_394 = arith.constant 0 : index
    %560 = vector.load %arg36[%c0_393, %c0_394] : memref<1x32xf32, #tpu.memory_space<vmem>>, vector<1x32xf32>
    %c0_395 = arith.constant 0 : index
    %c0_396 = arith.constant 0 : index
    %561 = vector.load %arg37[%c0_395, %c0_396] : memref<1x32xf32, #tpu.memory_space<vmem>>, vector<1x32xf32>
    %cst_397 = arith.constant dense<0.000000e+00> : vector<4xf32>
    %562 = vector.multi_reduction <add>, %559, %cst_397 [1] : vector<4x32xf32> to vector<4xf32>
    %563 = vector.shape_cast %562 : vector<4xf32> to vector<4x1xf32>
    %cst_398 = arith.constant 3.200000e+01 : f32
    %564 = vector.broadcast %cst_398 : f32 to vector<4x1xf32>
    %565 = arith.divf %563, %564 : vector<4x1xf32>
    %566 = vector.broadcast %565 : vector<4x1xf32> to vector<4x32xf32>
    %567 = arith.subf %559, %566 : vector<4x32xf32>
    %568 = arith.mulf %567, %567 : vector<4x32xf32>
    %cst_399 = arith.constant dense<0.000000e+00> : vector<4xf32>
    %569 = vector.multi_reduction <add>, %568, %cst_399 [1] : vector<4x32xf32> to vector<4xf32>
    %570 = vector.shape_cast %569 : vector<4xf32> to vector<4x1xf32>
    %cst_400 = arith.constant 3.200000e+01 : f32
    %571 = vector.broadcast %cst_400 : f32 to vector<4x1xf32>
    %572 = arith.divf %570, %571 : vector<4x1xf32>
    %cst_401 = arith.constant 9.99999974E-6 : f32
    %573 = vector.broadcast %cst_401 : f32 to vector<4x1xf32>
    %574 = arith.addf %572, %573 : vector<4x1xf32>
    %575 = math.rsqrt %574 : vector<4x1xf32>
    %576 = vector.broadcast %575 : vector<4x1xf32> to vector<4x32xf32>
    %577 = arith.mulf %567, %576 : vector<4x32xf32>
    %578 = vector.broadcast %560 : vector<1x32xf32> to vector<4x32xf32>
    %579 = arith.mulf %577, %578 : vector<4x32xf32>
    %580 = vector.broadcast %561 : vector<1x32xf32> to vector<4x32xf32>
    %581 = arith.addf %579, %580 : vector<4x32xf32>
    %c0_402 = arith.constant 0 : index
    %c0_403 = arith.constant 0 : index
    %582 = vector.load %arg38[%c0_402, %c0_403] : memref<4x32xf32, #tpu.memory_space<vmem>>, vector<4x32xf32>
    tpu.vector_store %arg38[%c0_402, %c0_403], %581 {strides = array<i32>} : memref<4x32xf32, #tpu.memory_space<vmem>>, vector<4x32xf32>,
    return
  }
}

</mosaic_0001>

<bundles_post_ra>
// kernel: video_transformer_forward.3
= control target key start
LH: loop header
LB: loop body
LE: loop exit
PB: predicated region body
PF: predicated region fallthrough
CT: control target
= control target key end

     0   :  { %s9645_s3 = smov 6   ;;  %s9646_s10 = smov 4   ;;  %vm152_vm0 = vcmask 261120   ;;  %vm406_vm1 = vcmask 130048   ;;  %vm9658_vm3 = vmmov 0   ;;  %vm1627_vm4 = vcmask 31744   ;;  %s11721_s0 = inlined_call_operand.smem [shape: u32[33], index: -1, kind: input, shape index: {}] }
   0x1   :  { %s9688_s6 = sld [smem:[%s11721_s0 + %s9645_s3]]   ;;  %s9647_s14 = smov 7   ;;  %vm9750_vm2 = vmpackc.low %vm406_vm1, %vm406_vm1  ;;  %vm1656_vm5 = vcmask 1043456  }
   0x2   :  { %s1_s9 = sld [smem:[%s11721_s0]]   ;;  %s9648_s18 = smov 5  }
   0x3   :  { %s9696_s13 = sld [smem:[%s11721_s0 + %s9646_s10]]   ;;  %s9649_s22 = smov 8  }
   0x4   :  { %s9739_s17 = sld [smem:[%s11721_s0 + %s9647_s14]]   ;;  %s9650_s26 = smov 2  }
   0x5   :  { %s9744_s21 = sld [smem:[%s11721_s0 + %s9648_s18]]   ;;  %s9651_s30 = smov 9  }
   0x6   :  { %s9763_s25 = sld [smem:[%s11721_s0 + %s9649_s22]]   ;;  %s9652_s4 = smov 10  }
   0x7   :  { %v234_v0 = vld [vmem:[%s9688_s6] sm:$0xff]  ;;  %v235_v1 = vld [vmem:[%s9688_s6 + $0x8] sm:$0xff]  ;;  %v236_v2 = vld [vmem:[%s9688_s6 + $0x10] sm:$0xff]  ;;  %s9784_s29 = sld [smem:[%s11721_s0 + %s9650_s26]]   ;;  %s9653_s8 = smov 11  }
   0x8   :  { %v9701_v3 = vpack.c.bf16 %v235_v1, %v234_v0  ;;  %v237_v4 = vld [vmem:[%s9688_s6 + $0x18] sm:$0xff]  ;;  %v9704_v5 = vld [vmem:[%s1_s9] sm:$0xff]  ;;  %v9727_v13 = vld [vmem:[%s1_s9 + $0x8] sm:$0xff]  ;;  %s9801_s3 = sld [smem:[%s11721_s0 + %s9651_s30]]   ;;  %s9654_s12 = smov 14  }
   0x9   :  { %v141_v6 = vld [vmem:[%s9696_s13] sm:$0xff]  ;;  %v9707_v7 = vpack.c.bf16 %v237_v4, %v236_v2  ;;  %8272 = vmatprep.mubr.msk.f32.mxu1 %vm152_vm0, %v9704_v5  ;;  %v142_v8 = vld [vmem:[%s9696_s13 + $0x8] sm:$0xff]  ;;  %v143_v9 = vld [vmem:[%s9696_s13 + $0x10] sm:$0xff]  ;;  %8261 = vmatprep.mubr.msk.f32.mxu0 %vm152_vm0, %v9704_v5  ;;  %s7229_s7 = sld [smem:[%s11721_s0 + %s9652_s4]]   ;;  %s9655_s16 = smov 12  }
   0xa   :  { %8634 = vmatprep.subr.bf16.mxu1 %v9701_v3  ;;  %v9716_v10 = vpack.c.bf16 %v142_v8, %v141_v6  ;;  %v144_v11 = vld [vmem:[%s9696_s13 + $0x18] sm:$0xff]  ;;  %v7255_v14 = vld [vmem:[%s9739_s17] ss:$0 sm:$0xff]  ;;  %v7276_v53 = vld [vmem:[%s9688_s6 + $0x28] sm:$0xff]  ;;  %s9893_s11 = sld [smem:[%s11721_s0 + %s9653_s8]]   ;;  %s9657_s22 = smov 1  }
   0xb   :  { %8636 = vmatpush3.bf16.msra.mxu1 %v9701_v3  ;;  %v9720_v12 = vpack.c.bf16 %v144_v11, %v143_v9  ;;  %v7252_v18 = vld [vmem:[%s9744_s21] ss:$0 sm:$0xff]  ;;  %v7277_v60 = vld [vmem:[%s9688_s6 + $0x30] sm:$0xff]  ;;  %v7278_v61 = vld [vmem:[%s9688_s6 + $0x38] sm:$0xff]  ;;  %s9905_s15 = sld [smem:[%s11721_s0 + %s9654_s12]]   ;;  %s9660_s26 = smov 24  }
   0xc   :  { %8638 = vmatprep.subr.bf16.mxu1 %v9707_v7  ;;  %8626 = vmatprep.subr.bf16.mxu0 %v9716_v10  ;;  %v320_v26 = vld [vmem:[%s9763_s25] sm:$0xff]  ;;  %v321_v27 = vld [vmem:[%s9763_s25 + $0x8] sm:$0xff]  ;;  %v322_v28 = vld [vmem:[%s9763_s25 + $0x10] sm:$0xff]  ;;  %v9812_v62 = vpack.c.bf16 %v7278_v61, %v7277_v60  ;;  %s9910_s20 = sld [smem:[%s11721_s0 + %s9655_s16]]   ;;  %s9661_s1 = smov 25  }
   0xd   :  { %8628 = vmatpush3.bf16.msra.mxu0 %v9716_v10  ;;  %v9768_v29 = vpack.c.bf16 %v321_v27, %v320_v26  ;;  %v323_v30 = vld [vmem:[%s9763_s25 + $0x18] sm:$0xff]  ;;  %v9787_v34 = vld [vmem:[%s9784_s29] sm:$0xff]  ;;  %v9790_v37 = vld [vmem:[%s9784_s29 + $0x8] sm:$0xff]  ;;  %s9943_s30 = sld [smem:[%s11721_s0 + %s9660_s26]]   ;;  %s9663_s10 = smov 13  }
   0xe   :  { %8630 = vmatprep.subr.bf16.mxu0 %v9720_v12  ;;  %v9771_v31 = vpack.c.bf16 %v323_v30, %v322_v28  ;;  %v7275_v52 = vld [vmem:[%s9688_s6 + $0x20] sm:$0xff]  ;;  %v7268_v1 = vld [vmem:[%s9696_s13 + $0x28] sm:$0xff]  ;;  %v7269_v11 = vld [vmem:[%s9696_s13 + $0x30] sm:$0xff]  ;;  %s9948_s5 = sld [smem:[%s11721_s0 + %s9661_s1]]   ;;  %s9662_s6 = smov 15  }
   0xf   :  { %8640 = vmatpush3.bf16.msra.mxu1 %v9707_v7  ;;  %v9805_v54 = vpack.c.bf16 %v7276_v53, %v7275_v52  ;;  %v7258_v56 = vld [vmem:[%s9801_s3] ss:$0 sm:$0xff]  ;;  %v7272_v27 = vld [vmem:[%s9744_s21 + $0x1] ss:$0 sm:$0xff]  ;;  %s9965_s9 = sld [smem:[%s11721_s0 + %s9662_s6]]   ;;  %s9664_s16 = smov 16  }
  0x10   :  { %v7267_v0 = vld [vmem:[%s9696_s13 + $0x20] sm:$0xff]  ;;  %s9982_s14 = sld [smem:[%s11721_s0 + %s9663_s10]]   ;;  %s9666_s26 = smov 17  }
  0x11   :  { %8632 = vmatpush3.bf16.msra.mxu0 %v9720_v12  ;;  %v9820_v2 = vpack.c.bf16 %v7268_v1, %v7267_v0  ;;  %v7288_v60 = vld [vmem:[%s9801_s3 + $0x1] ss:$0 sm:$0xff]  ;;  %s10033_s1 = sld [smem:[%s11721_s0 + %s9666_s26]]   ;;  %s9669_s12 = smov 20  }
  0x12   :  { %8273 = vmatmul.mubr.msk.f32.vlgmr.msra.gmra.mrb[0].mxu1 %vm152_vm0, %v9727_v13  ;;  %8642 = vmatprep.subr.bf16.mxu0 %v9768_v29  ;;  %s10132_s18 = sld [smem:[%s11721_s0 + %s9669_s12]]   ;;  %s9670_s19 = smov 26  }
  0x13   :  { %s10187_s23 = sld [smem:[%s11721_s0 + %s9670_s19]]   ;;  %s9671_s24 = smov 27  }
  0x14   :  { %8262 = vmatmul.mubr.msk.f32.vlgmr.msra.gmra.mrb[0].mxu0 %vm152_vm0, %v9727_v13  ;;  %s10192_s28 = sld [smem:[%s11721_s0 + %s9671_s24]]   ;;  %s9674_s12 = smov 23  }
  0x15   :  { %8283 = vmatprep.mubr.msk.f32.mxu0 %vm152_vm0, %v9704_v5  ;;  %8644 = vmatpush3.bf16.msra.mxu0 %v9768_v29  ;;  %s9675_s19 = smov 28   ;;  %s9676_s26 = smov 29  }
  0x16   :  { %8646 = vmatprep.subr.bf16.mxu0 %v9771_v31  ;;  %s11226_s24 = sld [smem:[%s11721_s0 + %s9675_s19]]  }
  0x19   :  { %8648 = vmatpush3.bf16.msra.mxu0 %v9771_v31 }
  0x1a   :  { %8668 = vmatprep.subr.bf16.mxu0 %v9805_v54 }
  0x1c   :  { %8284 = vmatmul.mubr.msk.f32.vlgmr.msra.gmra.mrb[2].mxu0 %vm152_vm0, %v9727_v13 }
  0x1d   :  { %8319 = vmatprep.mubr.msk.f32.mxu0 %vm152_vm0, %v9704_v5  ;;  %8670 = vmatpush3.bf16.msra.mxu0 %v9805_v54 }
  0x1e   :  { %8672 = vmatprep.subr.bf16.mxu0 %v9812_v62 }
  0x21   :  { %8674 = vmatpush3.bf16.msra.mxu0 %v9812_v62 }
  0x24   :  { %8320 = vmatmul.mubr.msk.f32.vlgmr.msra.gmra.mrb[4].mxu0 %vm152_vm0, %v9727_v13 }
  0xe5   :  { %v8274_v15 = vpop.f32.mrb[0].mxu1 }
  0xe6   :  { %v317_v16 = vadd.f32 %v8274_v15, %v7255_v14  ;;  %v311_v17 = vpop.f32.mrb[1].mxu1 }
  0xe7   :  { %v312_v19 = vadd.f32 %v7255_v14, %v311_v17  ;;  %v8263_v20 = vpop.f32.mrb[0].mxu0  ;;  %v7270_v14 = vld [vmem:[%s9696_s13 + $0x38] sm:$0xff] }
  0xe8   :  { %v225_v22 = vpop.f32.mrb[1].mxu0  ;;  %v231_v25 = vadd.f32 %v8263_v20, %v7252_v18  ;;  %v9826_v17 = vpack.c.bf16 %v7270_v14, %v7269_v11 }
  0xe9   :  { %v8649_v23 = vpack.c.bf16 %v317_v16, %v312_v19  ;;  %v226_v24 = vadd.f32 %v7252_v18, %v225_v22  ;;  %v7280_v18 = vld [vmem:[%s9739_s17 + $0x1] ss:$0 sm:$0xff] }
  0xeb   :  { %8651 = vmatprep.subr.msk.bf16.mxu1 %vm9750_vm2, %v8649_v23  ;;  %8290 = vmatprep.mubr.msk.f32.mxu1 %vm406_vm1, %v226_v24 }
  0xec   :  { %8654 = vmatpush3.bf16.xpose.msk.msra.mxu1 %vm9750_vm2, %v8649_v23 }
  0xef   :  { %v8285_v55 = vpop.f32.mrb[2].mxu0 }
  0xf0   :  { %v397_v57 = vpop.f32.mrb[3].mxu0  ;;  %v403_v58 = vadd.f32 %v8285_v55, %v7258_v56 }
  0xf1   :  { %v398_v59 = vadd.f32 %v7258_v56, %v397_v57 }
  0xf3   :  { %8291 = vmatmul.mubr.msk.f32.vlgmr.msra.gmra.mrb[2].mxu1 %vm406_vm1, %v231_v25  ;;  %v8655_v63 = vpack.c.bf16 %v403_v58, %v398_v59 }
  0xf5   :  { %8656 = vmatprep.subr.bf16.mxu1 %v8655_v63 }
  0xf6   :  { %8658 = vmatpush3.bf16.msra.mxu1 %v8655_v63 }
  0xf7   :  { %8660 = vmatprep.subr.bf16.mxu1 %v9820_v2  ;;  %v8321_v19 = vpop.f32.mrb[4].mxu0 }
  0xf8   :  { %v776_v20 = vadd.f32 %v8321_v19, %v7280_v18  ;;  %v770_v22 = vpop.f32.mrb[5].mxu0  ;;  %v601_v19 = vld [vmem:[%s7229_s7] sm:$0xff] }
  0xf9   :  { %v771_v23 = vadd.f32 %v7280_v18, %v770_v22 }
  0xfb   :  { %v8683_v24 = vpack.c.bf16 %v776_v20, %v771_v23  ;;  %v602_v20 = vld [vmem:[%s7229_s7 + $0x8] sm:$0xff] }
  0xfc   :  { %v9880_v22 = vpack.c.bf16 %v602_v20, %v601_v19  ;;  %v7305_v19 = vld [vmem:[%s9948_s5] ss:$0 sm:$0xff] }
  0xfd   :  { %8685 = vmatprep.subr.msk.bf16.mxu0 %vm9750_vm2, %v8683_v24 }
  0xfe   :  { %8688 = vmatpush3.bf16.xpose.msk.msra.mxu0 %vm9750_vm2, %v8683_v24  ;;  %11913 = vst [vmem:[#allocation4_spill] sm:$0xff] %v9880_v22 }
 0x1c6   :  { %v8292_v32 = vpop.f32.mrb[2].mxu1 }
 0x1c7   :  { %v485_v33 = vpop.f32.mrb[3].mxu1  ;;  %v495_v35 = vmul.f32 0.25, %v8292_v32 }
 0x1c8   :  { %v494_v36 = vmul.f32 0.25, %v485_v33 }
 0x1c9   :  { %v497_v40 = vadd.f32 %v495_v35, %v9790_v37  ;;  %v7283_v35 = vld [vmem:[%s9763_s25 + $0x20] sm:$0xff] }
 0x1ca   :  { %v496_v38 = vadd.f32 %v494_v36, %v9787_v34  ;;  %v7284_v36 = vld [vmem:[%s9763_s25 + $0x28] sm:$0xff] }
 0x1cb   :  { %v501_v41 = vsel %vm406_vm1, %v497_v40, -inf }
 0x1cc   :  { %v498_v39 = vsel %vm406_vm1, %v496_v38, -inf }
 0x1cd   :  { %499 = vmax.xlane.f32.xlu0 %v498_v39  ;;  %v9853_v39 = vpack.c.bf16 %v7284_v36, %v7283_v35 }
 0x1cf   :  { %11911 = vst [vmem:[#allocation2_spill] sm:$0xff] %v9853_v39 }
 0x1d1   :  { %502 = vmax.xlane.f32.xlu0 %v501_v41 }
 0x25a   :  { %v500_v42 = vpop.xlane.xlu0 %499 }
 0x25b   :  { %v504_v43 = vsub.f32 %v496_v38, %v500_v42  ;;  %v7285_v38 = vld [vmem:[%s9763_s25 + $0x30] sm:$0xff] }
 0x25d   :  { %v506_v44 = vmul.f32 1.442695, %v504_v43 }
 0x25e   :  { %v503_v45 = vpop.xlane.xlu0 %502 }
 0x25f   :  { %9532 = vpow2.f32 %v506_v44  ;;  %v505_v46 = vsub.f32 %v497_v40, %v503_v45  ;;  %v7286_v40 = vld [vmem:[%s9763_s25 + $0x38] sm:$0xff]  ;;  %s7220_s25 = sld [smem:[%s11721_s0 + %s9657_s22]]   ;;  %s9665_s22 = smov 3  }
 0x260   :  { %v9856_v41 = vpack.c.bf16 %v7286_v40, %v7285_v38 }
 0x261   :  { %v508_v47 = vmul.f32 1.442695, %v505_v46 }
 0x262   :  { %11912 = vst [vmem:[#allocation3_spill] sm:$0xff] %v9856_v41 }
 0x263   :  { %9534 = vpow2.f32 %v508_v47 }
 0x269   :  { %v9533_v48 = vpop.eup %9532 }
 0x26a   :  { %v510_v49 = vsel %vm406_vm1, %v9533_v48, 0.0 }
 0x26b   :  { %511 = vadd.xlane.f32.xlu1 %v510_v49 }
 0x26d   :  { %v9535_v50 = vpop.eup %9534 }
 0x26e   :  { %v513_v51 = vsel %vm406_vm1, %v9535_v50, 0.0 }
 0x26f   :  { %514 = vadd.xlane.f32.xlu1 %v513_v51 }
 0x2f8   :  { %v512_v4 = vpop.xlane.xlu1 %511 }
 0x2f9   :  { %9536 = vrcp.f32 %v512_v4  ;;  %v7297_v4 = vld [vmem:[%s7229_s7 + $0x10] sm:$0xff] }
 0x2fc   :  { %v515_v6 = vpop.xlane.xlu1 %514 }
 0x2fd   :  { %9538 = vrcp.f32 %v515_v6  ;;  %v7298_v6 = vld [vmem:[%s7229_s7 + $0x18] sm:$0xff]  ;;  %s9668_s7 = smov 19  }
 0x2fe   :  { %s10112_s10 = sld [smem:[%s11721_s0 + %s9668_s7]]  }
 0x303   :  { %v9537_v8 = vpop.eup %9536 }
 0x304   :  { %v518_v9 = vmul.f32 %v9537_v8, %v9533_v48  ;;  %v9874_v8 = vpack.c.bf16 %v7298_v6, %v7297_v4 }
 0x306   :  { %8297 = vmatprep.mubr.msk.f32.mxu1 %vm406_vm1, %v518_v9  ;;  %8694 = vmatprep.subr.bf16.mxu0 %v9874_v8 }
 0x307   :  { %v9539_v15 = vpop.eup %9538 }
 0x308   :  { %v519_v16 = vmul.f32 %v9539_v15, %v9535_v50 }
 0x30a   :  { %8298 = vmatmul.mubr.msk.f32.vlgmr.msra.gmra.mrb[4].mxu1 %vm406_vm1, %v519_v16 }
 0x30b   :  { %8662 = vmatpush3.bf16.msra.mxu1 %v9820_v2  ;;  %8308 = vmatprep.mubr.msk.f32.mxu1 %vm152_vm0, %v9704_v5 }
 0x30c   :  { %8664 = vmatprep.subr.bf16.mxu1 %v9826_v17 }
 0x30f   :  { %8666 = vmatpush3.bf16.msra.mxu1 %v9826_v17 }
 0x310   :  { %8676 = vmatprep.subr.bf16.mxu1 %v9853_v39 }
 0x312   :  { %8309 = vmatmul.mubr.msk.f32.vlgmr.msra.gmra.mrb[6].mxu1 %vm152_vm0, %v9727_v13 }
 0x313   :  { %8330 = vmatprep.mubr.msk.f32.mxu1 %vm152_vm0, %v9704_v5  ;;  %8678 = vmatpush3.bf16.msra.mxu1 %v9853_v39 }
 0x314   :  { %8680 = vmatprep.subr.bf16.mxu1 %v9856_v41 }
 0x317   :  { %8682 = vmatpush3.bf16.msra.mxu1 %v9856_v41 }
 0x31a   :  { %8331 = vmatmul.mubr.msk.f32.vlgmr.msra.gmra.mrb[8].mxu1 %vm152_vm0, %v9727_v13 }
 0x3dd   :  { %v9843_v25 = vpop.f32.mrb[4].mxu1 }
 0x3de   :  { %v9845_v26 = vpop.f32.mrb[5].mxu1 }
 0x3e5   :  { %v8310_v28 = vpop.f32.mrb[6].mxu1 }
 0x3e6   :  { %v682_v30 = vpop.f32.mrb[7].mxu1  ;;  %v688_v33 = vadd.f32 %v8310_v28, %v7272_v27 }
 0x3e7   :  { %v683_v32 = vadd.f32 %v7272_v27, %v682_v30  ;;  %v7303_v27 = vld [vmem:[%s9893_s11] ss:$0 sm:$0xff] }
 0x3e9   :  { %8337 = vmatprep.mubr.msk.f32.mxu0 %vm406_vm1, %v683_v32 }
 0x3ea   :  { %8338 = vmatmul.mubr.msk.f32.vlgmr.msra.gmra.mrb[6].mxu0 %vm406_vm1, %v688_v33 }
 0x3eb   :  { %8696 = vmatpush3.bf16.msra.mxu0 %v9874_v8 }
 0x3ec   :  { %8698 = vmatprep.subr.bf16.mxu0 %v9880_v22 }
 0x3ed   :  { %v8332_v59 = vpop.f32.mrb[8].mxu1 }
 0x3ee   :  { %v858_v61 = vpop.f32.mrb[9].mxu1  ;;  %v864_v63 = vadd.f32 %v8332_v59, %v7288_v60 }
 0x3ef   :  { %v859_v0 = vadd.f32 %v7288_v60, %v858_v61  ;;  %v11722_v60 = vmov 0.0   ;;  %v9934_v61 = vld [vmem:[%s7220_s25] sm:$0xf]  ;;  %s10016_s25 = sld [smem:[%s11721_s0 + %s9665_s22]]  }
 0x3f1   :  { %v8689_v1 = vpack.c.bf16 %v864_v63, %v859_v0 }
 0x3f3   :  { %8690 = vmatprep.subr.bf16.mxu1 %v8689_v1 }
 0x3f4   :  { %8692 = vmatpush3.bf16.msra.mxu1 %v8689_v1 }
 0x4bd   :  { %v8339_v42 = vpop.f32.mrb[6].mxu0 }
 0x4be   :  { %v955_v43 = vmul.f32 0.25, %v8339_v42  ;;  %v945_v44 = vpop.f32.mrb[7].mxu0 }
 0x4bf   :  { %v954_v45 = vmul.f32 0.25, %v945_v44 }
 0x4c0   :  { %v957_v46 = vadd.f32 %v955_v43, %v9790_v37 }
 0x4c1   :  { %v956_v47 = vadd.f32 %v954_v45, %v9787_v34 }
 0x4c2   :  { %v961_v48 = vsel %vm406_vm1, %v957_v46, -inf }
 0x4c3   :  { %962 = vmax.xlane.f32.xlu1 %v961_v48  ;;  %v958_v49 = vsel %vm406_vm1, %v956_v47, -inf }
 0x4c4   :  { %959 = vmax.xlane.f32.xlu0 %v958_v49  ;;  %v1375_v49 = vld [vmem:[%s9905_s15 + $0x8] sm:$0xff] }
 0x550   :  { %v963_v50 = vpop.xlane.xlu1 %962 }
 0x551   :  { %v965_v51 = vsub.f32 %v957_v46, %v963_v50  ;;  %v960_v52 = vpop.xlane.xlu0 %959 }
 0x552   :  { %v964_v53 = vsub.f32 %v956_v47, %v960_v52  ;;  %v1282_v52 = vld [vmem:[%s9910_s20] sm:$0xff] }
 0x553   :  { %v968_v55 = vmul.f32 1.442695, %v965_v51  ;;  %v9656_v51 = vmov 0.0|0.0  }
 0x554   :  { %v966_v56 = vmul.f32 1.442695, %v964_v53  ;;  %v1283_v53 = vld [vmem:[%s9910_s20 + $0x8] sm:$0xff] }
 0x555   :  { %9540 = vpow2.f32 %v968_v55  ;;  %v9917_v55 = vpack.c.bf16 %v1283_v53, %v1282_v52  ;;  %v10019_v53 = vld [vmem:[%s10016_s25 + $0x8] sm:$0xff] }
 0x556   :  { %9542 = vpow2.f32 %v966_v56  ;;  %v1376_v56 = vld [vmem:[%s9905_s15 + $0x10] sm:$0xff] }
 0x557   :  { %11914 = vst [vmem:[#allocation5_spill] sm:$0xff] %v9917_v55  ;;  %8702 = vmatprep.subr.bf16.mxu1 %v9917_v55 }
 0x55f   :  { %v9541_v57 = vpop.eup %9540 }
 0x560   :  { %v9543_v58 = vpop.eup %9542  ;;  %v973_v37 = vsel %vm406_vm1, %v9541_v57, 0.0 }
 0x561   :  { %974 = vadd.xlane.f32.xlu1 %v973_v37  ;;  %v970_v34 = vsel %vm406_vm1, %v9543_v58, 0.0  ;;  %v1284_v37 = vld [vmem:[%s9910_s20 + $0x10] sm:$0xff] }
 0x562   :  { %971 = vadd.xlane.f32.xlu0 %v970_v34  ;;  %v1285_v34 = vld [vmem:[%s9910_s20 + $0x18] sm:$0xff] }
 0x563   :  { %v9929_v59 = vpack.c.bf16 %v1285_v34, %v1284_v37 }
 0x565   :  { %11915 = vst [vmem:[#allocation6_spill] sm:$0xff] %v9929_v59 }
 0x5ee   :  { %v975_v9 = vpop.xlane.xlu1 %974 }
 0x5ef   :  { %9544 = vrcp.f32 %v975_v9  ;;  %v972_v11 = vpop.xlane.xlu0 %971 }
 0x5f0   :  { %9546 = vrcp.f32 %v972_v11 }
 0x5f9   :  { %v9545_v14 = vpop.eup %9544 }
 0x5fa   :  { %v9547_v15 = vpop.eup %9546  ;;  %v979_v18 = vmul.f32 %v9545_v14, %v9541_v57  ;;  %v1377_v57 = vld [vmem:[%s9905_s15 + $0x18] sm:$0xff]  ;;  %v7304_v14 = vld [vmem:[%s9943_s30] ss:$0 sm:$0xff] }
 0x5fb   :  { %v978_v16 = vmul.f32 %v9547_v15, %v9543_v58  ;;  %v8713_v58 = vpack.c.bf16 %v1377_v57, %v1376_v56 }
 0x5fd   :  { %8344 = vmatprep.mubr.msk.f32.mxu1 %vm406_vm1, %v978_v16 }
 0x5fe   :  { %8345 = vmatmul.mubr.msk.f32.vlgmr.msra.gmra.mrb[10].mxu1 %vm406_vm1, %v979_v18 }
 0x5ff   :  { %8704 = vmatpush3.bf16.msra.mxu1 %v9917_v55 }
 0x600   :  { %8706 = vmatprep.subr.bf16.mxu1 %v9929_v59 }
 0x603   :  { %8708 = vmatpush3.bf16.msra.mxu1 %v9929_v59 }
 0x604   :  { %8715 = vmatprep.subr.bf16.mxu1 %v9656_v51 }
 0x6d1   :  { %v8346_v23 = vpop.f32.mrb[10].mxu1 }
 0x6d2   :  { %v1052_v24 = vpop.f32.mrb[11].mxu1 }
 0x6d3   :  { %8351 = vmatprep.mubr.msk.f32.mxu0 %vm406_vm1, %v1052_v24 }
 0x6d4   :  { %8352 = vmatmul.mubr.msk.f32.vlgmr.msra.gmra.mrb[8].mxu0 %vm406_vm1, %v8346_v23 }
 0x6d5   :  { %8700 = vmatpush3.bf16.msra.mxu0 %v9880_v22  ;;  %8358 = vmatprep.mubr.msk.f32.mxu0 %vm406_vm1, %v9845_v26 }
 0x6d6   :  { %8709 = vmatprep.subr.bf16.mxu0 %v9656_v51 }
 0x6dc   :  { %8359 = vmatmul.mubr.msk.f32.vlgmr.msra.gmra.mrb[8].mxu0 %vm406_vm1, %v9843_v25 }
 0x6dd   :  { %8380 = vmatprep.mubr.msk.f32.mxu0 %vm9658_vm3, %v11722_v60 }
 0x7af   :  { %v8360_v28 = vpop.f32.mrb[8].mxu0 }
 0x7b0   :  { %v1234_v30 = vadd.f32 %v8360_v28, %v7303_v27  ;;  %v1217_v32 = vpop.f32.mrb[9].mxu0  ;;  %v7309_v28 = vld [vmem:[%s9965_s9] ss:$0 sm:$0xff] }
 0x7b1   :  { %v1233_v33 = vadd.f32 %v7303_v27, %v1217_v32 }
 0x7b2   :  { %v1236_v35 = vadd.f32 %v1234_v30, %v9727_v13 }
 0x7b3   :  { %v1235_v36 = vadd.f32 %v1233_v33, %v9704_v5  ;;  %v1374_v5 = vld [vmem:[%s9905_s15] sm:$0xff] }
 0x7b4   :  { %v1242_v26 = vsel %vm152_vm0, %v1236_v35, 0.0  ;;  %v8710_v50 = vpack.c.bf16 %v1375_v49, %v1374_v5 }
 0x7b5   :  { %1243 = vadd.xlane.f32.xlu1 %v1242_v26  ;;  %v1239_v25 = vsel %vm152_vm0, %v1235_v36, 0.0 }
 0x7b6   :  { %1240 = vadd.xlane.f32.xlu0 %v1239_v25  ;;  %8711 = vmatpush3.bf16.msra.mxu0 %v8710_v50  ;;  %v7306_v25 = vld [vmem:[%s9982_s14] ss:$0 sm:$0xff] }
 0x7b7   :  { %8712 = vmatprep.subr.bf16.mxu0 %v9656_v51 }
 0x7ba   :  { %8714 = vmatpush3.bf16.msra.mxu0 %v8713_v58  ;;  %v10022_v58 = vld [vmem:[%s10016_s25] sm:$0xff] }
 0x7bd   :  { %8381 = vmatmul.mubr.msk.f32.vlgmr.msra.gmra.mrb[10].mxu0 %vm152_vm0, %v9934_v61 }
 0x842   :  { %v1244_v38 = vpop.xlane.xlu1 %1243 }
 0x843   :  { %v1247_v40 = vmul.f32 0.03125, %v1244_v38  ;;  %v1241_v42 = vpop.xlane.xlu0 %1240 }
 0x844   :  { %v1246_v43 = vmul.f32 0.03125, %v1241_v42  ;;  %v7322_v42 = vld [vmem:[%s9910_s20 + $0x38] sm:$0xff] }
 0x845   :  { %v1249_v44 = vsub.f32 %v1236_v35, %v1247_v40  ;;  %v7319_v35 = vld [vmem:[%s9910_s20 + $0x20] sm:$0xff]  ;;  %v7321_v40 = vld [vmem:[%s9910_s20 + $0x30] sm:$0xff] }
 0x846   :  { %v1248_v45 = vsub.f32 %v1235_v36, %v1246_v43  ;;  %v7320_v36 = vld [vmem:[%s9910_s20 + $0x28] sm:$0xff]  ;;  %s10004_s20 = sld [smem:[%s11721_s0 + %s9664_s16]]  }
 0x847   :  { %v1251_v46 = vmul.f32 %v1249_v44, %v1249_v44  ;;  %v9976_v26 = vpack.c.bf16 %v7320_v36, %v7319_v35 }
 0x848   :  { %v1250_v47 = vmul.f32 %v1248_v45, %v1248_v45 }
 0x849   :  { %v1255_v48 = vsel %vm152_vm0, %v1251_v46, 0.0  ;;  %11917 = vst [vmem:[#allocation8_spill] sm:$0xff] %v9976_v26  ;;  %v9987_v46 = vpack.c.bf16 %v7322_v42, %v7321_v40  ;;  %v7327_v40 = vld [vmem:[%s9905_s15 + $0x20] sm:$0xff]  ;;  %v7328_v42 = vld [vmem:[%s9905_s15 + $0x28] sm:$0xff] }
 0x84a   :  { %1256 = vadd.xlane.f32.xlu1 %v1255_v48  ;;  %v1252_v13 = vsel %vm152_vm0, %v1250_v47, 0.0 }
 0x84b   :  { %1253 = vadd.xlane.f32.xlu0 %v1252_v13  ;;  %11918 = vst [vmem:[#allocation9_spill] sm:$0xff] %v9987_v46 }
 0x84c   :  { %v1458_v47 = vld [vmem:[%s10004_s20] sm:$0xff]  ;;  %v1459_v48 = vld [vmem:[%s10004_s20 + $0x8] sm:$0xff]  ;;  %v1460_v13 = vld [vmem:[%s10004_s20 + $0x10] sm:$0xff] }
 0x84d   :  { %v8716_v5 = vpack.c.bf16 %v1459_v48, %v1458_v47  ;;  %v1461_v49 = vld [vmem:[%s10004_s20 + $0x18] sm:$0xff]  ;;  %v8730_v47 = vpack.c.bf16 %v7328_v42, %v7327_v40 }
 0x84e   :  { %v8719_v50 = vpack.c.bf16 %v1461_v49, %v1460_v13  ;;  %v7329_v13 = vld [vmem:[%s9905_s15 + $0x30] sm:$0xff] }
 0x890   :  { %v1454_v30 = vpop.f32.mrb[10].mxu0 }
 0x891   :  { %v9968_v32 = vadd.f32 %v7309_v28, %v1454_v30  ;;  %v8382_v33 = vpop.f32.mrb[11].mxu0  ;;  %v7311_v30 = vld [vmem:[%s10033_s1] ss:$0 sm:$0xff] }
 0x893   :  { %11916 = vst [vmem:[#allocation7_spill] sm:$0xff] %v9968_v32  ;;  %8394 = vmatprep.subr.msk.mxu0 %vm406_vm1, %v9968_v32 }
 0x894   :  { %8395 = vmatpush3.xpose.msk.msra.mxu0 %vm406_vm1, %v9968_v32 }
 0x895   :  { %8722 = vmatprep.subr.bf16.mxu0 %v9976_v26 }
 0x8d7   :  { %v1257_v63 = vpop.xlane.xlu1 %1256 }
 0x8d8   :  { %v1259_v0 = vmul.f32 0.03125, %v1257_v63  ;;  %v1254_v1 = vpop.xlane.xlu0 %1253 }
 0x8d9   :  { %v1258_v4 = vmul.f32 0.03125, %v1254_v1 }
 0x8da   :  { %v1261_v6 = vadd.f32 1e-05, %v1259_v0 }
 0x8db   :  { %v1260_v9 = vadd.f32 1e-05, %v1258_v4 }
 0x8dc   :  { %9548 = vrsqrt.f32 %v1261_v6 }
 0x8dd   :  { %9550 = vrsqrt.f32 %v1260_v9 }
 0x8e6   :  { %v9549_v11 = vpop.eup %9548 }
 0x8e7   :  { %v9551_v15 = vpop.eup %9550  ;;  %v1265_v16 = vmul.f32 %v9549_v11, %v1249_v44 }
 0x8e8   :  { %v1264_v18 = vmul.f32 %v9551_v15, %v1248_v45 }
 0x8e9   :  { %v1273_v20 = vmul.f32 %v7304_v14, %v1265_v16 }
 0x8ea   :  { %v1272_v23 = vmul.f32 %v7304_v14, %v1264_v18 }
 0x8eb   :  { %v9954_v27 = vadd.f32 %v7305_v19, %v1273_v20 }
 0x8ec   :  { %v9952_v24 = vadd.f32 %v7305_v19, %v1272_v23 }
 0x8ee   :  { %8369 = vmatprep.mubr.msk.f32.mxu1 %vm152_vm0, %v9952_v24 }
 0x8ef   :  { %8370 = vmatmul.mubr.msk.f32.vlgmr.msra.gmra.mrb[12].mxu1 %vm152_vm0, %v9954_v27 }
 0x8f0   :  { %8391 = vmatprep.mubr.msk.f32.mxu1 %vm9658_vm3, %v11722_v60  ;;  %8717 = vmatpush3.bf16.msra.mxu1 %v8716_v5  ;;  %v7330_v5 = vld [vmem:[%s9905_s15 + $0x38] sm:$0xff]  ;;  %s9667_s15 = smov 18  }
 0x8f1   :  { %8718 = vmatprep.subr.bf16.mxu1 %v9656_v51  ;;  %v8733_v49 = vpack.c.bf16 %v7330_v5, %v7329_v13  ;;  %s7237_s6 = sld [smem:[%s11721_s0 + %s9667_s15]]  }
 0x8f2   :  { %s11231_s15 = sld [smem:[%s11721_s0 + %s9676_s26]]  }
 0x8f4   :  { %8720 = vmatpush3.bf16.msra.mxu1 %v8719_v50  ;;  %v7324_v50 = vld [vmem:[%s9982_s14 + $0x1] ss:$0 sm:$0xff] }
 0x8f7   :  { %8392 = vmatmul.mubr.msk.f32.vlgmr.msra.gmra.mrb[14].mxu1 %vm152_vm0, %v9934_v61  ;;  %v7347_v13 = vld [vmem:[%s7237_s6 + $0x10] sm:$0xff]  ;;  %v7348_v5 = vld [vmem:[%s7237_s6 + $0x18] sm:$0xff] }
 0x9c2   :  { %v8371_v38 = vpop.f32.mrb[12].mxu1 }
 0x9c3   :  { %v1365_v43 = vpop.f32.mrb[13].mxu1  ;;  %v1371_v45 = vadd.f32 %v8371_v38, %v7306_v25 }
 0x9c4   :  { %v1366_v44 = vadd.f32 %v7306_v25, %v1365_v43 }
 0x9c6   :  { %8396 = vmatprep.mubr.msk.f32.mxu0 %vm406_vm1, %v1366_v44 }
 0x9c7   :  { %8397 = vmatmul.mubr.msk.f32.vlgmr.msra.gmra.mrb[12].mxu0 %vm406_vm1, %v1371_v45 }
 0x9c8   :  { %8724 = vmatpush3.bf16.msra.mxu0 %v9976_v26  ;;  %8412 = vmatprep.mubr.msk.f32.mxu0 %vm152_vm0, %v9952_v24 }
 0x9c9   :  { %8726 = vmatprep.subr.bf16.mxu0 %v9987_v46 }
 0x9ca   :  { %v1535_v33 = vpop.f32.mrb[14].mxu1 }
 0x9cb   :  { %v10036_v35 = vadd.f32 %v7311_v30, %v1535_v33  ;;  %v8393_v36 = vpop.f32.mrb[15].mxu1 }
 0x9cc   :  { %8728 = vmatpush3.bf16.msra.mxu0 %v9987_v46 }
 0x9cd   :  { %8735 = vmatprep.subr.bf16.mxu0 %v9656_v51  ;;  %11919 = vst [vmem:[#allocation10_spill] sm:$0xff] %v10036_v35  ;;  %8399 = vmatprep.subr.msk.mxu1 %vm1656_vm5, %v10036_v35 }
 0x9ce   :  { %8400 = vmatpush3.msk.msra.mxu1 %vm1656_vm5, %v10036_v35 }
 0x9cf   :  { %8413 = vmatmul.mubr.msk.f32.vlgmr.msra.gmra.mrb[14].mxu0 %vm152_vm0, %v9954_v27  ;;  %8729 = vmatprep.subr.bf16.mxu1 %v9656_v51 }
 0x9d0   :  { %8434 = vmatprep.mubr.msk.f32.mxu0 %vm9658_vm3, %v11722_v60 }
 0xa9a   :  { %v8398_v52 = vpop.f32.mrb[12].mxu0 }
 0xa9b   :  { %v1624_v56 = vmul.f32 0.25, %v8398_v52  ;;  %v1614_v57 = vpop.f32.mrb[13].mxu0 }
 0xa9c   :  { %v1623_v37 = vmul.f32 0.25, %v1614_v57 }
 0xa9d   :  { %v1626_v34 = vadd.f32 %v1624_v56, %v10019_v53 }
 0xa9e   :  { %v1625_v63 = vadd.f32 %v1623_v37, %v10022_v58  ;;  %v7332_v37 = vld [vmem:[%s9965_s9 + $0x1] ss:$0 sm:$0xff] }
 0xa9f   :  { %v1631_v0 = vsel %vm1627_vm4, %v1626_v34, -inf }
 0xaa0   :  { %1632 = vmax.xlane.f32.xlu1 %v1631_v0  ;;  %v1628_v1 = vsel %vm1627_vm4, %v1625_v63, -inf }
 0xaa1   :  { %1629 = vmax.xlane.f32.xlu0 %v1628_v1 }
 0xaa2   :  { %v8414_v4 = vpop.f32.mrb[14].mxu0 }
 0xaa3   :  { %v1816_v6 = vpop.f32.mrb[15].mxu0  ;;  %v1822_v1 = vadd.f32 %v8414_v4, %v7324_v50 }
 0xaa4   :  { %v1817_v52 = vadd.f32 %v7324_v50, %v1816_v6  ;;  %v7334_v6 = vld [vmem:[%s10004_s20 + $0x20] sm:$0xff] }
 0xb2d   :  { %v1633_v9 = vpop.xlane.xlu1 %1632 }
 0xb2e   :  { %v1635_v11 = vsub.f32 %v1626_v34, %v1633_v9  ;;  %v1630_v14 = vpop.xlane.xlu0 %1629  ;;  %v7335_v9 = vld [vmem:[%s10004_s20 + $0x28] sm:$0xff] }
 0xb2f   :  { %v1634_v15 = vsub.f32 %v1625_v63, %v1630_v14  ;;  %v8736_v14 = vpack.c.bf16 %v7335_v9, %v7334_v6  ;;  %v1735_v6 = vld [vmem:[%s7237_s6] sm:$0xff]  ;;  %v1736_v9 = vld [vmem:[%s7237_s6 + $0x8] sm:$0xff]  ;;  %s9673_s6 = smov 21  }
 0xb30   :  { %v1638_v16 = vmul.f32 1.442695, %v1635_v11  ;;  %v7336_v11 = vld [vmem:[%s10004_s20 + $0x30] sm:$0xff]  ;;  %s10536_s9 = sld [smem:[%s11721_s0 + %s9673_s6]]  }
 0xb31   :  { %v1636_v18 = vmul.f32 1.442695, %v1634_v15  ;;  %v7337_v15 = vld [vmem:[%s10004_s20 + $0x38] sm:$0xff]  ;;  %8737 = vmatpush3.bf16.msra.mxu0 %v8736_v14 }
 0xb32   :  { %9552 = vpow2.f32 %v1638_v16  ;;  %v8739_v16 = vpack.c.bf16 %v7337_v15, %v7336_v11  ;;  %8738 = vmatprep.subr.bf16.mxu0 %v9656_v51  ;;  %v10098_v11 = vpack.c.bf16 %v1736_v9, %v1735_v6  ;;  %v2456_v9 = vld [vmem:[%s10132_s18 + $0x198] sm:$0xff] }
 0xb33   :  { %9554 = vpow2.f32 %v1636_v18 }
 0xb34   :  { %11923 = vst [vmem:[#allocation14_spill] sm:$0xff] %v10098_v11 }
 0xb35   :  { %8740 = vmatpush3.bf16.msra.mxu0 %v8739_v16  ;;  %v7353_v16 = vld [vmem:[%s10112_s10] ss:$0 sm:$0xff] }
 0xb36   :  { %v10790_v59 = vld [vmem:[%s10536_s9 + $0x8] sm:$0xff] }
 0xb38   :  { %8435 = vmatmul.mubr.msk.f32.vlgmr.msra.gmra.mrb[16].mxu0 %vm152_vm0, %v9934_v61 }
 0xb3c   :  { %v9553_v19 = vpop.eup %9552 }
 0xb3d   :  { %v9555_v20 = vpop.eup %9554  ;;  %v1643_v23 = vsel %vm1627_vm4, %v9553_v19, 0.0 }
 0xb3e   :  { %1644 = vadd.xlane.f32.xlu1 %v1643_v23  ;;  %v1640_v28 = vsel %vm1627_vm4, %v9555_v20, 0.0 }
 0xb3f   :  { %1641 = vadd.xlane.f32.xlu0 %v1640_v28 }
 0xbcb   :  { %v1645_v25 = vpop.xlane.xlu1 %1644 }
 0xbcc   :  { %9556 = vrcp.f32 %v1645_v25  ;;  %v1642_v38 = vpop.xlane.xlu0 %1641 }
 0xbcd   :  { %9558 = vrcp.f32 %v1642_v38 }
 0xbd6   :  { %v9557_v43 = vpop.eup %9556 }
 0xbd7   :  { %v9559_v44 = vpop.eup %9558  ;;  %v1649_v48 = vmul.f32 %v9557_v43, %v9553_v19 }
 0xbd8   :  { %v1648_v45 = vmul.f32 %v9559_v44, %v9555_v20  ;;  %v7339_v44 = vld [vmem:[%s10033_s1 + $0x1] ss:$0 sm:$0xff]  ;;  %s9672_s1 = smov 22  }
 0xbd9   :  { %s10278_s4 = sld [smem:[%s11721_s0 + %s9672_s1]]  }
 0xbda   :  { %8401 = vmatprep.mubr.msk.f32.mxu1 %vm1627_vm4, %v1648_v45 }
 0xbdb   :  { %8402 = vmatmul.mubr.msk.f32.vlgmr.msra.gmra.mrb[16].mxu1 %vm1627_vm4, %v1649_v48 }
 0xbdc   :  { %8731 = vmatpush3.bf16.msra.mxu1 %v8730_v47  ;;  %8423 = vmatprep.mubr.msk.f32.mxu1 %vm9658_vm3, %v11722_v60 }
 0xbdd   :  { %8732 = vmatprep.subr.bf16.mxu1 %v9656_v51 }
 0xbdf   :  { %v3352_v35 = vld [vmem:[%s10278_s4 + $0x488] sm:$0xff]  ;;  %v3335_v55 = vld [vmem:[%s10278_s4 + $0x400] sm:$0xff]  ;;  %v3353_v22 = vld [vmem:[%s10278_s4 + $0x490] sm:$0xff] }
 0xbe0   :  { %8734 = vmatpush3.bf16.msra.mxu1 %v8733_v49  ;;  %v10091_v49 = vpack.c.bf16 %v7348_v5, %v7347_v13 }
 0xbe2   :  { %11922 = vst [vmem:[#allocation13_spill] sm:$0xff] %v10091_v49  ;;  %8742 = vmatprep.subr.bf16.mxu0 %v10091_v49 }
 0xbe3   :  { %8424 = vmatmul.mubr.msk.f32.vlgmr.msra.gmra.mrb[18].mxu1 %vm152_vm0, %v9934_v61  ;;  %8744 = vmatpush3.bf16.msra.mxu0 %v10091_v49  ;;  %v3334_v49 = vld [vmem:[%s10278_s4 + $0x3f8] sm:$0xff] }
 0xbe4   :  { %8439 = vmatprep.mubr.msk.f32.mxu1 %vm406_vm1, %v1817_v52  ;;  %8746 = vmatprep.subr.bf16.mxu0 %v10098_v11 }
 0xc0b   :  { %v1987_v45 = vpop.f32.mrb[16].mxu0 }
 0xc0c   :  { %v10082_v47 = vadd.f32 %v7339_v44, %v1987_v45  ;;  %v8436_v48 = vpop.f32.mrb[17].mxu0  ;;  %v2424_v44 = vld [vmem:[%s10132_s18 + $0x98] sm:$0xff]  ;;  %v2405_v45 = vld [vmem:[%s10132_s18] sm:$0xff] }
 0xc0d   :  { %v2421_v48 = vld [vmem:[%s10132_s18 + $0x80] sm:$0xff] }
 0xc0e   :  { %11921 = vst [vmem:[#allocation12_spill] sm:$0xff] %v10082_v47  ;;  %v10144_v5 = vpack.c.bf16 %v2421_v48, %v2405_v45 }
 0xc10   :  { %11926 = vst [vmem:[#allocation17_spill] sm:$0xff] %v10144_v5 }
 0xcae   :  { %v10056_v56 = vpop.f32.mrb[16].mxu1 }
 0xcaf   :  { %v10058_v57 = vpop.f32.mrb[17].mxu1 }
 0xcb6   :  { %v1904_v34 = vpop.f32.mrb[18].mxu1 }
 0xcb7   :  { %v10061_v63 = vadd.f32 %v7332_v37, %v1904_v34  ;;  %v8425_v0 = vpop.f32.mrb[19].mxu1 }
 0xcb9   :  { %11920 = vst [vmem:[#allocation11_spill] sm:$0xff] %v10061_v63  ;;  %8437 = vmatprep.subr.msk.mxu1 %vm406_vm1, %v10061_v63 }
 0xcba   :  { %8438 = vmatpush3.xpose.msk.msra.mxu1 %vm406_vm1, %v10061_v63 }
 0xcbb   :  { %8442 = vmatprep.subr.msk.mxu1 %vm1656_vm5, %v10082_v47 }
 0xcbd   :  { %8440 = vmatmul.mubr.msk.f32.vlgmr.msra.gmra.mrb[20].mxu1 %vm406_vm1, %v1822_v1 }
 0xcbe   :  { %8443 = vmatpush3.msk.msra.mxu1 %vm1656_vm5, %v10082_v47 }
 0xd90   :  { %v8441_v18 = vpop.f32.mrb[20].mxu1 }
 0xd91   :  { %v2076_v19 = vmul.f32 0.25, %v8441_v18  ;;  %v2066_v20 = vpop.f32.mrb[21].mxu1 }
 0xd92   :  { %v2075_v23 = vmul.f32 0.25, %v2066_v20 }
 0xd93   :  { %v2078_v4 = vadd.f32 %v2076_v19, %v10019_v53 }
 0xd94   :  { %v2077_v28 = vadd.f32 %v2075_v23, %v10022_v58 }
 0xd95   :  { %v2082_v30 = vsel %vm1627_vm4, %v2078_v4, -inf }
 0xd96   :  { %2083 = vmax.xlane.f32.xlu1 %v2082_v30  ;;  %v2079_v33 = vsel %vm1627_vm4, %v2077_v28, -inf }
 0xd97   :  { %2080 = vmax.xlane.f32.xlu0 %v2079_v33 }
 0xe23   :  { %v2084_v51 = vpop.xlane.xlu1 %2083 }
 0xe24   :  { %v2086_v36 = vsub.f32 %v2078_v4, %v2084_v51  ;;  %v2081_v25 = vpop.xlane.xlu0 %2080 }
 0xe25   :  { %v2085_v38 = vsub.f32 %v2077_v28, %v2081_v25 }
 0xe26   :  { %v2089_v61 = vmul.f32 1.442695, %v2086_v36 }
 0xe27   :  { %v2087_v40 = vmul.f32 1.442695, %v2085_v38 }
 0xe28   :  { %9560 = vpow2.f32 %v2089_v61 }
 0xe29   :  { %9562 = vpow2.f32 %v2087_v40 }
 0xe32   :  { %v9561_v42 = vpop.eup %9560 }
 0xe33   :  { %v9563_v43 = vpop.eup %9562  ;;  %v2094_v53 = vsel %vm1627_vm4, %v9561_v42, 0.0 }
 0xe34   :  { %2095 = vadd.xlane.f32.xlu1 %v2094_v53  ;;  %v2091_v58 = vsel %vm1627_vm4, %v9563_v43, 0.0  ;;  %v2408_v53 = vld [vmem:[%s10132_s18 + $0x18] sm:$0xff] }
 0xe35   :  { %2092 = vadd.xlane.f32.xlu0 %v2091_v58  ;;  %v10142_v13 = vpack.c.bf16 %v2424_v44, %v2408_v53  ;;  %v7354_v53 = vld [vmem:[%s10187_s23] ss:$0 sm:$0xff] }
 0xe36   :  { %v2409_v44 = vld [vmem:[%s10132_s18 + $0x20] sm:$0xff] }
 0xe37   :  { %11925 = vst [vmem:[#allocation16_spill] sm:$0xff] %v10142_v13 }
 0xec1   :  { %v2096_v50 = vpop.xlane.xlu1 %2095 }
 0xec2   :  { %9564 = vrcp.f32 %v2096_v50  ;;  %v2093_v52 = vpop.xlane.xlu0 %2092  ;;  %v2407_v50 = vld [vmem:[%s10132_s18 + $0x10] sm:$0xff] }
 0xec3   :  { %9566 = vrcp.f32 %v2093_v52  ;;  %v2423_v52 = vld [vmem:[%s10132_s18 + $0x90] sm:$0xff] }
 0xecc   :  { %v9565_v37 = vpop.eup %9564 }
 0xecd   :  { %v9567_v34 = vpop.eup %9566  ;;  %v2100_v1 = vmul.f32 %v9565_v37, %v9561_v42  ;;  %v2406_v42 = vld [vmem:[%s10132_s18 + $0x8] sm:$0xff]  ;;  %v10149_v37 = vpack.c.bf16 %v2423_v52, %v2407_v50  ;;  %v2425_v50 = vld [vmem:[%s10132_s18 + $0xa0] sm:$0xff]  ;;  %v2411_v52 = vld [vmem:[%s10132_s18 + $0x30] sm:$0xff] }
 0xece   :  { %v2099_v0 = vmul.f32 %v9567_v34, %v9563_v43  ;;  %v2422_v43 = vld [vmem:[%s10132_s18 + $0x88] sm:$0xff] }
 0xecf   :  { %v10137_v58 = vpack.c.bf16 %v2422_v43, %v2406_v42  ;;  %11927 = vst [vmem:[#allocation18_spill] sm:$0xff] %v10149_v37  ;;  %v2438_v34 = vld [vmem:[%s10132_s18 + $0x108] sm:$0xff] }
 0xed0   :  { %8444 = vmatprep.mubr.msk.f32.mxu1 %vm1627_vm4, %v2099_v0  ;;  %v2454_v0 = vld [vmem:[%s10132_s18 + $0x188] sm:$0xff] }
 0xed1   :  { %8445 = vmatmul.mubr.msk.f32.vlgmr.msra.gmra.mrb[22].mxu1 %vm1627_vm4, %v2100_v1  ;;  %11924 = vst [vmem:[#allocation15_spill] sm:$0xff] %v10137_v58  ;;  %8750 = vmatprep.subr.bf16.mxu1 %v10137_v58  ;;  %v2440_v1 = vld [vmem:[%s10132_s18 + $0x118] sm:$0xff]  ;;  %v10157_v6 = vpack.c.bf16 %v2454_v0, %v2438_v34  ;;  %v2427_v34 = vld [vmem:[%s10132_s18 + $0xb0] sm:$0xff]  ;;  %v7355_v0 = vld [vmem:[%s10192_s28] ss:$0 sm:$0xff] }
 0xed2   :  { %2623 = vmatprep.mubr.f32.mxu1 %v11722_v60  ;;  %8752 = vmatpush1.bf16.msra.mxu1 %v10144_v5  ;;  %v3332_v5 = vld [vmem:[%s10278_s4 + $0x3e8] sm:$0xff] }
 0xed3   :  { %11928 = vst [vmem:[#allocation19_spill] sm:$0xff] %v10157_v6  ;;  %8754 = vmatprep.subr.bf16.mxu1 %v10157_v6  ;;  %v3284_v58 = vld [vmem:[%s10278_s4 + $0x268] sm:$0xff] }
 0xfa4   :  { %v8446_v14 = vpop.f32.mrb[22].mxu1 }
 0xfa5   :  { %v2176_v15 = vpop.f32.mrb[23].mxu1 }
 0xfa6   :  { %8451 = vmatprep.mubr.msk.f32.mxu0 %vm406_vm1, %v2176_v15  ;;  %v2453_v15 = vld [vmem:[%s10132_s18 + $0x180] sm:$0xff] }
 0xfa7   :  { %8452 = vmatmul.mubr.msk.f32.vlgmr.msra.gmra.mrb[18].mxu0 %vm406_vm1, %v8446_v14  ;;  %v2437_v14 = vld [vmem:[%s10132_s18 + $0x100] sm:$0xff] }
 0xfa8   :  { %8748 = vmatpush3.bf16.msra.mxu0 %v10098_v11  ;;  %8458 = vmatprep.mubr.msk.f32.mxu0 %vm406_vm1, %v10058_v57  ;;  %v3302_v11 = vld [vmem:[%s10278_s4 + $0x2f8] sm:$0xff] }
 0xfa9   :  { %8758 = vmatprep.subr.bf16.mxu0 %v10142_v13  ;;  %v3306_v13 = vld [vmem:[%s10278_s4 + $0x318] sm:$0xff] }
 0xfaf   :  { %8459 = vmatmul.mubr.msk.f32.vlgmr.msra.gmra.mrb[18].mxu0 %vm406_vm1, %v10056_v56 }
 0xfb0   :  { %2700 = vmatprep.mubr.f32.mxu0 %v11722_v60  ;;  %8760 = vmatpush1.bf16.msra.mxu0 %v10149_v37 }
0x1082   :  { %v8460_v18 = vpop.f32.mrb[18].mxu0 }
0x1083   :  { %v2358_v19 = vadd.f32 %v8460_v18, %v7353_v16  ;;  %v2341_v20 = vpop.f32.mrb[19].mxu0  ;;  %v10164_v18 = vpack.c.bf16 %v2453_v15, %v2437_v14  ;;  %v2458_v14 = vld [vmem:[%s10132_s18 + $0x1a8] sm:$0xff]  ;;  %v2444_v15 = vld [vmem:[%s10132_s18 + $0x138] sm:$0xff] }
0x1084   :  { %v2357_v23 = vadd.f32 %v7353_v16, %v2341_v20  ;;  %v10162_v16 = vpack.c.bf16 %v2456_v9, %v2440_v1  ;;  %v2455_v20 = vld [vmem:[%s10132_s18 + $0x190] sm:$0xff]  ;;  %v2442_v1 = vld [vmem:[%s10132_s18 + $0x128] sm:$0xff] }
0x1085   :  { %v2360_v4 = vadd.f32 %v2358_v19, %v9954_v27  ;;  %11930 = vst [vmem:[#allocation21_spill] sm:$0xff] %v10164_v18  ;;  %v2439_v19 = vld [vmem:[%s10132_s18 + $0x110] sm:$0xff]  ;;  %8756 = vmatpush1.bf16.msra.mxu1 %v10164_v18 }
0x1086   :  { %v2359_v57 = vadd.f32 %v2357_v23, %v9952_v24  ;;  %11929 = vst [vmem:[#allocation20_spill] sm:$0xff] %v10162_v16  ;;  %v10169_v23 = vpack.c.bf16 %v2455_v20, %v2439_v19  ;;  %8762 = vmatprep.subr.bf16.mxu0 %v10162_v16  ;;  %v2460_v19 = vld [vmem:[%s10132_s18 + $0x1b8] sm:$0xff]  ;;  %v10206_v20 = vpack.c.bf16 %v2425_v50, %v2409_v44  ;;  %v2413_v44 = vld [vmem:[%s10132_s18 + $0x40] sm:$0xff]  ;;  %v2415_v50 = vld [vmem:[%s10132_s18 + $0x50] sm:$0xff] }
0x1087   :  { %v2366_v56 = vsel %vm152_vm0, %v2360_v4, 0.0 }
0x1088   :  { %2367 = vadd.xlane.f32.xlu1 %v2366_v56  ;;  %v2363_v28 = vsel %vm152_vm0, %v2359_v57, 0.0  ;;  %11931 = vst [vmem:[#allocation22_spill] sm:$0xff] %v10169_v23  ;;  %v2412_v56 = vld [vmem:[%s10132_s18 + $0x38] sm:$0xff]  ;;  %8764 = vmatpush1.bf16.msra.mxu0 %v10169_v23  ;;  %11934 = vst [vmem:[#allocation25_spill] sm:$0xff] %v10206_v20 }
0x1089   :  { %2364 = vadd.xlane.f32.xlu0 %v2363_v28 }
0x1115   :  { %v2368_v30 = vpop.xlane.xlu1 %2367 }
0x1116   :  { %v2370_v33 = vmul.f32 0.03125, %v2368_v30  ;;  %v2365_v51 = vpop.xlane.xlu0 %2364  ;;  %v2428_v30 = vld [vmem:[%s10132_s18 + $0xb8] sm:$0xff] }
0x1117   :  { %v2369_v36 = vmul.f32 0.03125, %v2365_v51 }
0x1118   :  { %v10119_v25 = vsub.f32 %v2360_v4, %v2370_v33  ;;  %v2410_v4 = vld [vmem:[%s10132_s18 + $0x28] sm:$0xff]  ;;  %v10180_v33 = vpack.c.bf16 %v2428_v30, %v2412_v56  ;;  %v2457_v56 = vld [vmem:[%s10132_s18 + $0x1a0] sm:$0xff]  ;;  %v2443_v30 = vld [vmem:[%s10132_s18 + $0x130] sm:$0xff] }
0x1119   :  { %v10121_v38 = vsub.f32 %v2359_v57, %v2369_v36  ;;  %v2426_v57 = vld [vmem:[%s10132_s18 + $0xa8] sm:$0xff] }
0x111a   :  { %v2374_v61 = vmul.f32 %v10119_v25, %v10119_v25  ;;  %v10177_v28 = vpack.c.bf16 %v2426_v57, %v2410_v4  ;;  %11933 = vst [vmem:[#allocation24_spill] sm:$0xff] %v10180_v33  ;;  %8774 = vmatprep.subr.bf16.mxu0 %v10180_v33 }
0x111b   :  { %v2373_v24 = vmul.f32 %v10121_v38, %v10121_v38 }
0x111c   :  { %v2378_v27 = vsel %vm152_vm0, %v2374_v61, 0.0  ;;  %11932 = vst [vmem:[#allocation23_spill] sm:$0xff] %v10177_v28  ;;  %8766 = vmatprep.subr.bf16.mxu1 %v10177_v28  ;;  %v3291_v28 = vld [vmem:[%s10278_s4 + $0x2a0] sm:$0xff] }
0x111d   :  { %2379 = vadd.xlane.f32.xlu1 %v2378_v27  ;;  %v2375_v40 = vsel %vm152_vm0, %v2373_v24, 0.0 }
0x111e   :  { %2376 = vadd.xlane.f32.xlu0 %v2375_v40 }
0x11aa   :  { %v2380_v51 = vpop.xlane.xlu1 %2379 }
0x11ab   :  { %v2382_v36 = vmul.f32 0.03125, %v2380_v51  ;;  %v2377_v61 = vpop.xlane.xlu0 %2376  ;;  %v2459_v51 = vld [vmem:[%s10132_s18 + $0x1b0] sm:$0xff] }
0x11ac   :  { %v2381_v24 = vmul.f32 0.03125, %v2377_v61  ;;  %v10218_v61 = vpack.c.bf16 %v2460_v19, %v2444_v15  ;;  %v2464_v15 = vld [vmem:[%s10132_s18 + $0x1d8] sm:$0xff] }
0x11ad   :  { %v2384_v27 = vadd.f32 1e-05, %v2382_v36  ;;  %v10216_v36 = vpack.c.bf16 %v2458_v14, %v2442_v1  ;;  %v2448_v14 = vld [vmem:[%s10132_s18 + $0x158] sm:$0xff] }
0x11ae   :  { %v2383_v40 = vadd.f32 1e-05, %v2381_v24  ;;  %11937 = vst [vmem:[#allocation28_spill] sm:$0xff] %v10218_v61  ;;  %v2414_v24 = vld [vmem:[%s10132_s18 + $0x48] sm:$0xff] }
0x11af   :  { %9568 = vrsqrt.f32 %v2384_v27  ;;  %11936 = vst [vmem:[#allocation27_spill] sm:$0xff] %v10216_v36  ;;  %v2430_v27 = vld [vmem:[%s10132_s18 + $0xc8] sm:$0xff] }
0x11b0   :  { %9570 = vrsqrt.f32 %v2383_v40  ;;  %v2416_v40 = vld [vmem:[%s10132_s18 + $0x58] sm:$0xff] }
0x11b9   :  { %v9569_v42 = vpop.eup %9568 }
0x11ba   :  { %v9571_v43 = vpop.eup %9570  ;;  %v2388_v45 = vmul.f32 %v9569_v42, %v10119_v25  ;;  %v10208_v25 = vpack.c.bf16 %v2427_v34, %v2411_v52  ;;  %v2432_v42 = vld [vmem:[%s10132_s18 + $0xd8] sm:$0xff]  ;;  %v2431_v52 = vld [vmem:[%s10132_s18 + $0xd0] sm:$0xff]  ;;  %v10244_v34 = vpack.c.bf16 %v2430_v27, %v2414_v24  ;;  %v10272_v27 = vpack.c.bf16 %v2464_v15, %v2448_v14 }
0x11bb   :  { %v2387_v48 = vmul.f32 %v9571_v43, %v10121_v38  ;;  %v2441_v38 = vld [vmem:[%s10132_s18 + $0x120] sm:$0xff]  ;;  %v10246_v1 = vpack.c.bf16 %v2432_v42, %v2416_v40  ;;  %v2418_v40 = vld [vmem:[%s10132_s18 + $0x68] sm:$0xff]  ;;  %v2419_v14 = vld [vmem:[%s10132_s18 + $0x70] sm:$0xff] }
0x11bc   :  { %11935 = vst [vmem:[#allocation26_spill] sm:$0xff] %v10208_v25  ;;  %v2396_v4 = vmul.f32 %v7354_v53, %v2388_v45  ;;  %v10230_v43 = vpack.c.bf16 %v2457_v56, %v2441_v38  ;;  %11940 = vst [vmem:[#allocation31_spill] sm:$0xff] %v10244_v34  ;;  %v10260_v38 = vpack.c.bf16 %v2431_v52, %v2415_v50  ;;  %v2461_v56 = vld [vmem:[%s10132_s18 + $0x1c0] sm:$0xff]  ;;  %v2434_v42 = vld [vmem:[%s10132_s18 + $0xe8] sm:$0xff] }
0x11bd   :  { %v2395_v9 = vmul.f32 %v7354_v53, %v2387_v48  ;;  %v10232_v53 = vpack.c.bf16 %v2459_v51, %v2443_v30  ;;  %v2429_v48 = vld [vmem:[%s10132_s18 + $0xc0] sm:$0xff]  ;;  %11941 = vst [vmem:[#allocation32_spill] sm:$0xff] %v10246_v1  ;;  %v2447_v30 = vld [vmem:[%s10132_s18 + $0x150] sm:$0xff]  ;;  %11945 = vst [vmem:[#allocation36_spill] sm:$0xff] %v10272_v27 }
0x11be   :  { %11938 = vst [vmem:[#allocation29_spill] sm:$0xff] %v10230_v43  ;;  %v10235_v45 = vadd.f32 %v7355_v0, %v2396_v4  ;;  %v10258_v19 = vpack.c.bf16 %v2429_v48, %v2413_v44  ;;  %11943 = vst [vmem:[#allocation34_spill] sm:$0xff] %v10260_v38  ;;  %v2445_v4 = vld [vmem:[%s10132_s18 + $0x140] sm:$0xff]  ;;  %v2463_v51 = vld [vmem:[%s10132_s18 + $0x1d0] sm:$0xff] }
0x11bf   :  { %v10211_v57 = vadd.f32 %v7355_v0, %v2395_v9  ;;  %11939 = vst [vmem:[#allocation30_spill] sm:$0xff] %v10232_v53  ;;  %v2446_v0 = vld [vmem:[%s10132_s18 + $0x148] sm:$0xff]  ;;  %v2420_v44 = vld [vmem:[%s10132_s18 + $0x78] sm:$0xff]  ;;  %v10289_v50 = vpack.c.bf16 %v2461_v56, %v2445_v4  ;;  %v10291_v52 = vpack.c.bf16 %v2463_v51, %v2447_v30  ;;  %v2435_v15 = vld [vmem:[%s10132_s18 + $0xf0] sm:$0xff]  ;;  %v10301_v4 = vpack.c.bf16 %v2434_v42, %v2418_v40 }
0x11c0   :  { %v2462_v9 = vld [vmem:[%s10132_s18 + $0x1c8] sm:$0xff]  ;;  %11942 = vst [vmem:[#allocation33_spill] sm:$0xff] %v10258_v19  ;;  %v2436_v48 = vld [vmem:[%s10132_s18 + $0xf8] sm:$0xff]  ;;  %v10317_v42 = vpack.c.bf16 %v2435_v15, %v2419_v14  ;;  %v3223_v14 = vld [vmem:[%s10278_s4 + $0x80] sm:$0xff] }
0x11c1   :  { %7356 = vmatmul.mubr.msk.f32.vlgmr.msra.gmra.mrb[24].mxu1 %vm152_vm0, %v10211_v57  ;;  %7358 = vmatmul.mubr.msk.f32.vlgmr.msra.gmra.mrb[20].mxu0 %vm152_vm0, %v10211_v57  ;;  %v10270_v24 = vpack.c.bf16 %v2462_v9, %v2446_v0  ;;  %11946 = vst [vmem:[#allocation37_spill] sm:$0xff] %v10289_v50  ;;  %11947 = vst [vmem:[#allocation38_spill] sm:$0xff] %v10291_v52  ;;  %v2417_v0 = vld [vmem:[%s10132_s18 + $0x60] sm:$0xff]  ;;  %v10303_v56 = vpack.c.bf16 %v2436_v48, %v2420_v44  ;;  %v2450_v30 = vld [vmem:[%s10132_s18 + $0x168] sm:$0xff]  ;;  %v11952_v48 = vmov 0.0  }
0x11c2   :  { %8768 = vmatpush1.bf16.msra.mxu1 %v10206_v20  ;;  %8776 = vmatpush1.bf16.msra.mxu0 %v10208_v25  ;;  %v2433_v9 = vld [vmem:[%s10132_s18 + $0xe0] sm:$0xff]  ;;  %11948 = vst [vmem:[#allocation39_spill] sm:$0xff] %v10301_v4  ;;  %v2466_v51 = vld [vmem:[%s10132_s18 + $0x1e8] sm:$0xff]  ;;  %11951 = vst [vmem:[#allocation42_spill] sm:$0xff] %v10317_v42 }
0x11c3   :  { %2629 = vmatprep.mubr.f32.mxu1 %v11722_v60  ;;  %2706 = vmatprep.mubr.f32.mxu0 %v11722_v60  ;;  %11944 = vst [vmem:[#allocation35_spill] sm:$0xff] %v10270_v24  ;;  %11949 = vst [vmem:[#allocation40_spill] sm:$0xff] %v10303_v56  ;;  %v10315_v40 = vpack.c.bf16 %v2433_v9, %v2417_v0  ;;  %v2449_v44 = vld [vmem:[%s10132_s18 + $0x160] sm:$0xff]  ;;  %v10327_v0 = vpack.c.bf16 %v2466_v51, %v2450_v30  ;;  %v3224_v15 = vld [vmem:[%s10278_s4 + $0x88] sm:$0xff] }
0x11c4   :  { %8770 = vmatprep.subr.bf16.mxu1 %v10216_v36  ;;  %8778 = vmatprep.subr.bf16.mxu0 %v10218_v61  ;;  %v3207_v30 = vld [vmem:[%s10278_s4] sm:$0xff]  ;;  %v3208_v51 = vld [vmem:[%s10278_s4 + $0x8] sm:$0xff]  ;;  %v3273_v20 = vld [vmem:[%s10278_s4 + $0x210] sm:$0xff] }
0x11c5   :  { %7357 = vmatmul.mubr.msk.f32.gmra.mrb[26].mxu1 %vm152_vm0, %v10235_v45  ;;  %7359 = vmatmul.mubr.msk.f32.gmra.mrb[22].mxu0 %vm152_vm0, %v10235_v45  ;;  %11950 = vst [vmem:[#allocation41_spill] sm:$0xff] %v10315_v40  ;;  %11953 = vst [vmem:[#allocation43_spill] sm:$0xff] %v10327_v0 }
0x11c6   :  { %8772 = vmatpush1.bf16.msra.mxu1 %v10230_v43  ;;  %8780 = vmatpush1.bf16.msra.mxu0 %v10232_v53  ;;  %v3322_v53 = vld [vmem:[%s10278_s4 + $0x398] sm:$0xff] }
0x11c7   :  { %2777 = vmatprep.mubr.f32.mxu1 %v11722_v60  ;;  %2854 = vmatprep.mubr.f32.mxu0 %v11722_v60 }
0x11c8   :  { %8782 = vmatprep.subr.bf16.mxu1 %v10244_v34  ;;  %8790 = vmatprep.subr.bf16.mxu0 %v10246_v1  ;;  %v3227_v1 = vld [vmem:[%s10278_s4 + $0xa0] sm:$0xff]  ;;  %v3290_v34 = vld [vmem:[%s10278_s4 + $0x298] sm:$0xff] }
0x11c9   :  { %7360 = vmatmul.mubr.msk.f32.vlgmr.msra.gmra.mrb[28].mxu1 %vm152_vm0, %v10211_v57  ;;  %7362 = vmatmul.mubr.msk.f32.vlgmr.msra.gmra.mrb[24].mxu0 %vm152_vm0, %v10211_v57 }
0x11ca   :  { %8784 = vmatpush1.bf16.msra.mxu1 %v10258_v19  ;;  %8792 = vmatpush1.bf16.msra.mxu0 %v10260_v38  ;;  %v2451_v38 = vld [vmem:[%s10132_s18 + $0x170] sm:$0xff] }
0x11cb   :  { %2783 = vmatprep.mubr.f32.mxu1 %v11722_v60  ;;  %2860 = vmatprep.mubr.f32.mxu0 %v11722_v60  ;;  %v2452_v60 = vld [vmem:[%s10132_s18 + $0x178] sm:$0xff]  ;;  %v2467_v19 = vld [vmem:[%s10132_s18 + $0x1f0] sm:$0xff] }
0x11cc   :  { %8786 = vmatprep.subr.bf16.mxu1 %v10270_v24  ;;  %8794 = vmatprep.subr.bf16.mxu0 %v10272_v27  ;;  %v2468_v24 = vld [vmem:[%s10132_s18 + $0x1f8] sm:$0xff]  ;;  %v2465_v27 = vld [vmem:[%s10132_s18 + $0x1e0] sm:$0xff]  ;;  %s11214_s18 = sld [smem:[%s11721_s0 + %s9674_s12]]  }
0x11cd   :  { %7361 = vmatmul.mubr.msk.f32.gmra.mrb[30].mxu1 %vm152_vm0, %v10235_v45  ;;  %7363 = vmatmul.mubr.msk.f32.gmra.mrb[26].mxu0 %vm152_vm0, %v10235_v45  ;;  %v10329_v9 = vpack.c.bf16 %v2468_v24, %v2452_v60  ;;  %v10341_v60 = vpack.c.bf16 %v2465_v27, %v2449_v44  ;;  %v10343_v24 = vpack.c.bf16 %v2467_v19, %v2451_v38  ;;  %v3239_v27 = vld [vmem:[%s10278_s4 + $0x100] sm:$0xff]  ;;  %v3240_v19 = vld [vmem:[%s10278_s4 + $0x108] sm:$0xff]  ;;  %v3225_v38 = vld [vmem:[%s10278_s4 + $0x90] sm:$0xff] }
0x11ce   :  { %8788 = vmatpush1.bf16.msra.mxu1 %v10289_v50  ;;  %8796 = vmatpush1.bf16.msra.mxu0 %v10291_v52  ;;  %v3255_v52 = vld [vmem:[%s10278_s4 + $0x180] sm:$0xff]  ;;  %v3226_v44 = vld [vmem:[%s10278_s4 + $0x98] sm:$0xff] }
0x11cf   :  { %2931 = vmatprep.mubr.f32.mxu1 %v11952_v48  ;;  %3008 = vmatprep.mubr.f32.mxu0 %v11952_v48  ;;  %11954 = vst [vmem:[#allocation44_spill] sm:$0xff] %v10329_v9  ;;  %11955 = vst [vmem:[#allocation45_spill] sm:$0xff] %v10341_v60  ;;  %v3242_v50 = vld [vmem:[%s10278_s4 + $0x118] sm:$0xff] }
0x11d0   :  { %8798 = vmatprep.subr.bf16.mxu1 %v10301_v4  ;;  %8806 = vmatprep.subr.bf16.mxu0 %v10303_v56  ;;  %v3256_v4 = vld [vmem:[%s10278_s4 + $0x188] sm:$0xff]  ;;  %11956 = vst [vmem:[#allocation46_spill] sm:$0xff] %v10343_v24  ;;  %v3241_v56 = vld [vmem:[%s10278_s4 + $0x110] sm:$0xff] }
0x11d1   :  { %7364 = vmatmul.mubr.msk.f32.vlgmr.msra.gmra.mrb[32].mxu1 %vm152_vm0, %v10211_v57  ;;  %7366 = vmatmul.mubr.msk.f32.vlgmr.msra.gmra.mrb[28].mxu0 %vm152_vm0, %v10211_v57 }
0x11d2   :  { %8800 = vmatpush1.bf16.msra.mxu1 %v10315_v40  ;;  %8808 = vmatpush1.bf16.msra.mxu0 %v10317_v42  ;;  %v10351_v40 = vpack.c.bf16 %v3224_v15, %v3223_v14  ;;  %v10353_v42 = vpack.c.bf16 %v3256_v4, %v3255_v52  ;;  %v3258_v14 = vld [vmem:[%s10278_s4 + $0x198] sm:$0xff]  ;;  %v10369_v52 = vpack.c.bf16 %v3208_v51, %v3207_v30  ;;  %v3209_v15 = vld [vmem:[%s10278_s4 + $0x10] sm:$0xff]  ;;  %v3228_v30 = vld [vmem:[%s10278_s4 + $0xa8] sm:$0xff] }
0x11d3   :  { %2937 = vmatprep.mubr.f32.mxu1 %v11952_v48  ;;  %3014 = vmatprep.mubr.f32.mxu0 %v11952_v48  ;;  %v10371_v4 = vpack.c.bf16 %v3240_v19, %v3239_v27  ;;  %v3259_v51 = vld [vmem:[%s10278_s4 + $0x1a0] sm:$0xff]  ;;  %v3260_v27 = vld [vmem:[%s10278_s4 + $0x1a8] sm:$0xff]  ;;  %v10397_v19 = vpack.c.bf16 %v3242_v50, %v3241_v56  ;;  %v3230_v50 = vld [vmem:[%s10278_s4 + $0xb8] sm:$0xff] }
0x11d4   :  { %8802 = vmatprep.subr.bf16.mxu1 %v10327_v0  ;;  %8810 = vmatprep.subr.bf16.mxu0 %v10329_v9  ;;  %11957 = vst [vmem:[#allocation47_spill] sm:$0xff] %v10351_v40  ;;  %11958 = vst [vmem:[#allocation48_spill] sm:$0xff] %v10353_v42  ;;  %v3257_v0 = vld [vmem:[%s10278_s4 + $0x190] sm:$0xff]  ;;  %v3210_v9 = vld [vmem:[%s10278_s4 + $0x18] sm:$0xff] }
0x11d5   :  { %7365 = vmatmul.mubr.msk.f32.gmra.mrb[34].mxu1 %vm152_vm0, %v10235_v45  ;;  %7367 = vmatmul.mubr.msk.f32.gmra.mrb[30].mxu0 %vm152_vm0, %v10235_v45  ;;  %11959 = vst [vmem:[#allocation49_spill] sm:$0xff] %v10369_v52  ;;  %11960 = vst [vmem:[#allocation50_spill] sm:$0xff] %v10371_v4  ;;  %v3261_v56 = vld [vmem:[%s10278_s4 + $0x1b0] sm:$0xff] }
0x11d6   :  { %8804 = vmatpush1.bf16.msra.mxu1 %v10341_v60  ;;  %8812 = vmatpush1.bf16.msra.mxu0 %v10343_v24  ;;  %v10377_v60 = vpack.c.bf16 %v3226_v44, %v3225_v38  ;;  %v10379_v24 = vpack.c.bf16 %v3258_v14, %v3257_v0  ;;  %v10395_v0 = vpack.c.bf16 %v3210_v9, %v3209_v15  ;;  %v3211_v38 = vld [vmem:[%s10278_s4 + $0x20] sm:$0xff]  ;;  %v3212_v44 = vld [vmem:[%s10278_s4 + $0x28] sm:$0xff] }
0x11d7   :  { %3085 = vmatprep.mubr.f32.mxu1 %v11952_v48  ;;  %3162 = vmatprep.mubr.f32.mxu0 %v11952_v48  ;;  %11964 = vst [vmem:[#allocation54_spill] sm:$0xff] %v10397_v19  ;;  %v10403_v14 = vpack.c.bf16 %v3228_v30, %v3227_v1  ;;  %v3262_v1 = vld [vmem:[%s10278_s4 + $0x1b8] sm:$0xff]  ;;  %v10419_v9 = vpack.c.bf16 %v3212_v44, %v3211_v38  ;;  %v3213_v30 = vld [vmem:[%s10278_s4 + $0x30] sm:$0xff]  ;;  %v3231_v38 = vld [vmem:[%s10278_s4 + $0xc0] sm:$0xff] }
0x11d8   :  { %8814 = vmatprep.subr.bf16.mxu1 %v10351_v40  ;;  %8846 = vmatprep.subr.bf16.mxu0 %v10353_v42  ;;  %11961 = vst [vmem:[#allocation51_spill] sm:$0xff] %v10377_v60  ;;  %11962 = vst [vmem:[#allocation52_spill] sm:$0xff] %v10379_v24  ;;  %v10405_v42 = vpack.c.bf16 %v3260_v27, %v3259_v51  ;;  %v3244_v40 = vld [vmem:[%s10278_s4 + $0x128] sm:$0xff]  ;;  %v3214_v51 = vld [vmem:[%s10278_s4 + $0x38] sm:$0xff] }
0x11d9   :  { %7368 = vmatmul.mubr.msk.f32.vlgmr.msra.gmra.mrb[36].mxu1 %vm152_vm0, %v10211_v57  ;;  %7370 = vmatmul.mubr.msk.f32.vlgmr.msra.gmra.mrb[32].mxu0 %vm152_vm0, %v10211_v57  ;;  %11963 = vst [vmem:[#allocation53_spill] sm:$0xff] %v10395_v0  ;;  %11965 = vst [vmem:[#allocation55_spill] sm:$0xff] %v10403_v14  ;;  %v3264_v44 = vld [vmem:[%s10278_s4 + $0x1c8] sm:$0xff] }
0x11da   :  { %3091 = vmatprep.mubr.f32.mxu1 %v11952_v48  ;;  %3168 = vmatprep.mubr.f32.mxu0 %v11952_v48  ;;  %11966 = vst [vmem:[#allocation56_spill] sm:$0xff] %v10405_v42  ;;  %11967 = vst [vmem:[#allocation57_spill] sm:$0xff] %v10419_v9  ;;  %v3331_v48 = vld [vmem:[%s10278_s4 + $0x3e0] sm:$0xff] }
0x11db   :  { %8816 = vmatpush3.bf16.msra.mxu1 %v10369_v52  ;;  %8848 = vmatpush3.bf16.msra.mxu0 %v10371_v4  ;;  %v3243_v52 = vld [vmem:[%s10278_s4 + $0x120] sm:$0xff]  ;;  %v3229_v4 = vld [vmem:[%s10278_s4 + $0xb0] sm:$0xff] }
0x11dc   :  { %8818 = vmatprep.subr.bf16.mxu1 %v10377_v60  ;;  %8850 = vmatprep.subr.bf16.mxu0 %v10379_v24  ;;  %v10421_v15 = vpack.c.bf16 %v3244_v40, %v3243_v52  ;;  %v10427_v27 = vpack.c.bf16 %v3230_v50, %v3229_v4  ;;  %v10429_v24 = vpack.c.bf16 %v3262_v1, %v3261_v56  ;;  %v3245_v60 = vld [vmem:[%s10278_s4 + $0x130] sm:$0xff]  ;;  %v3232_v40 = vld [vmem:[%s10278_s4 + $0xc8] sm:$0xff]  ;;  %v3263_v52 = vld [vmem:[%s10278_s4 + $0x1c0] sm:$0xff] }
0x11dd   :  { %7369 = vmatmul.mubr.msk.f32.gmra.mrb[38].mxu1 %vm152_vm0, %v10235_v45  ;;  %7371 = vmatmul.mubr.msk.f32.gmra.mrb[34].mxu0 %vm152_vm0, %v10235_v45  ;;  %v10439_v4 = vpack.c.bf16 %v3214_v51, %v3213_v30  ;;  %v3215_v56 = vld [vmem:[%s10278_s4 + $0x40] sm:$0xff]  ;;  %v3216_v1 = vld [vmem:[%s10278_s4 + $0x48] sm:$0xff]  ;;  %v3233_v30 = vld [vmem:[%s10278_s4 + $0xd0] sm:$0xff] }
0x11de   :  { %11968 = vst [vmem:[#allocation58_spill] sm:$0xff] %v10421_v15  ;;  %11969 = vst [vmem:[#allocation59_spill] sm:$0xff] %v10427_v27  ;;  %v3266_v51 = vld [vmem:[%s10278_s4 + $0x1d8] sm:$0xff] }
0x11df   :  { %8820 = vmatpush3.bf16.msra.mxu1 %v10395_v0  ;;  %8852 = vmatpush3.bf16.msra.mxu0 %v10397_v19  ;;  %11970 = vst [vmem:[#allocation60_spill] sm:$0xff] %v10429_v24  ;;  %v3246_v0 = vld [vmem:[%s10278_s4 + $0x138] sm:$0xff]  ;;  %11971 = vst [vmem:[#allocation61_spill] sm:$0xff] %v10439_v4  ;;  %v3247_v19 = vld [vmem:[%s10278_s4 + $0x140] sm:$0xff] }
0x11e0   :  { %8822 = vmatprep.subr.bf16.mxu1 %v10403_v14  ;;  %8854 = vmatprep.subr.bf16.mxu0 %v10405_v42  ;;  %v10441_v50 = vpack.c.bf16 %v3246_v0, %v3245_v60  ;;  %v10447_v42 = vpack.c.bf16 %v3232_v40, %v3231_v38  ;;  %v10449_v14 = vpack.c.bf16 %v3264_v44, %v3263_v52  ;;  %v3234_v60 = vld [vmem:[%s10278_s4 + $0xd8] sm:$0xff]  ;;  %v3265_v0 = vld [vmem:[%s10278_s4 + $0x1d0] sm:$0xff] }
0x11e1   :  { %v10459_v38 = vpack.c.bf16 %v3216_v1, %v3215_v56  ;;  %v3217_v52 = vld [vmem:[%s10278_s4 + $0x50] sm:$0xff]  ;;  %v3218_v44 = vld [vmem:[%s10278_s4 + $0x58] sm:$0xff]  ;;  %v3235_v56 = vld [vmem:[%s10278_s4 + $0xe0] sm:$0xff] }
0x11e2   :  { %11972 = vst [vmem:[#allocation62_spill] sm:$0xff] %v10441_v50  ;;  %11973 = vst [vmem:[#allocation63_spill] sm:$0xff] %v10447_v42  ;;  %v3236_v1 = vld [vmem:[%s10278_s4 + $0xe8] sm:$0xff] }
0x11e3   :  { %8824 = vmatpush3.bf16.msra.mxu1 %v10419_v9  ;;  %8856 = vmatpush3.bf16.msra.mxu0 %v10421_v15  ;;  %11974 = vst [vmem:[#allocation64_spill] sm:$0xff] %v10449_v14  ;;  %v3248_v9 = vld [vmem:[%s10278_s4 + $0x148] sm:$0xff]  ;;  %11975 = vst [vmem:[#allocation65_spill] sm:$0xff] %v10459_v38  ;;  %v3249_v15 = vld [vmem:[%s10278_s4 + $0x150] sm:$0xff] }
0x11e4   :  { %8826 = vmatprep.subr.bf16.mxu1 %v10427_v27  ;;  %8858 = vmatprep.subr.bf16.mxu0 %v10429_v24  ;;  %v10461_v40 = vpack.c.bf16 %v3248_v9, %v3247_v19  ;;  %v10467_v24 = vpack.c.bf16 %v3234_v60, %v3233_v30  ;;  %v10469_v27 = vpack.c.bf16 %v3266_v51, %v3265_v0  ;;  %v3267_v19 = vld [vmem:[%s10278_s4 + $0x1e0] sm:$0xff]  ;;  %v3268_v9 = vld [vmem:[%s10278_s4 + $0x1e8] sm:$0xff] }
0x11e5   :  { %v3219_v30 = vld [vmem:[%s10278_s4 + $0x60] sm:$0xff]  ;;  %v10486_v60 = vpack.c.bf16 %v3236_v1, %v3235_v56  ;;  %v10488_v0 = vpack.c.bf16 %v3268_v9, %v3267_v19  ;;  %v3220_v51 = vld [vmem:[%s10278_s4 + $0x68] sm:$0xff]  ;;  %v3238_v56 = vld [vmem:[%s10278_s4 + $0xf8] sm:$0xff] }
0x11e6   :  { %11976 = vst [vmem:[#allocation66_spill] sm:$0xff] %v10461_v40  ;;  %11977 = vst [vmem:[#allocation67_spill] sm:$0xff] %v10467_v24  ;;  %v3269_v1 = vld [vmem:[%s10278_s4 + $0x1f0] sm:$0xff]  ;;  %v3270_v9 = vld [vmem:[%s10278_s4 + $0x1f8] sm:$0xff] }
0x11e7   :  { %8828 = vmatpush3.bf16.msra.mxu1 %v10439_v4  ;;  %8860 = vmatpush3.bf16.msra.mxu0 %v10441_v50  ;;  %11978 = vst [vmem:[#allocation68_spill] sm:$0xff] %v10469_v27  ;;  %v3250_v4 = vld [vmem:[%s10278_s4 + $0x158] sm:$0xff]  ;;  %11981 = vst [vmem:[#allocation71_spill] sm:$0xff] %v10486_v60 }
0x11e8   :  { %8830 = vmatprep.subr.bf16.mxu1 %v10447_v42  ;;  %8862 = vmatprep.subr.bf16.mxu0 %v10449_v14  ;;  %v10479_v42 = vpack.c.bf16 %v3218_v44, %v3217_v52  ;;  %v10481_v14 = vpack.c.bf16 %v3250_v4, %v3249_v15  ;;  %11982 = vst [vmem:[#allocation72_spill] sm:$0xff] %v10488_v0  ;;  %v3252_v52 = vld [vmem:[%s10278_s4 + $0x168] sm:$0xff]  ;;  %v3237_v44 = vld [vmem:[%s10278_s4 + $0xf0] sm:$0xff] }
0x11e9   :  { %v10495_v15 = vpack.c.bf16 %v3220_v51, %v3219_v30  ;;  %v10506_v19 = vpack.c.bf16 %v3238_v56, %v3237_v44  ;;  %v3222_v30 = vld [vmem:[%s10278_s4 + $0x78] sm:$0xff]  ;;  %v10511_v51 = vpack.c.bf16 %v3270_v9, %v3269_v1  ;;  %v3287_v44 = vld [vmem:[%s10278_s4 + $0x280] sm:$0xff]  ;;  %v3288_v56 = vld [vmem:[%s10278_s4 + $0x288] sm:$0xff] }
0x11ea   :  { %11979 = vst [vmem:[#allocation69_spill] sm:$0xff] %v10479_v42  ;;  %11980 = vst [vmem:[#allocation70_spill] sm:$0xff] %v10481_v14  ;;  %v3320_v1 = vld [vmem:[%s10278_s4 + $0x388] sm:$0xff] }
0x11eb   :  { %8832 = vmatpush3.bf16.msra.mxu1 %v10459_v38  ;;  %8864 = vmatpush3.bf16.msra.mxu0 %v10461_v40  ;;  %v3251_v40 = vld [vmem:[%s10278_s4 + $0x160] sm:$0xff]  ;;  %11983 = vst [vmem:[#allocation73_spill] sm:$0xff] %v10495_v15  ;;  %11985 = vst [vmem:[#allocation75_spill] sm:$0xff] %v10506_v19 }
0x11ec   :  { %8834 = vmatprep.subr.bf16.mxu1 %v10467_v24  ;;  %8866 = vmatprep.subr.bf16.mxu0 %v10469_v27  ;;  %v10497_v4 = vpack.c.bf16 %v3252_v52, %v3251_v40  ;;  %v3221_v40 = vld [vmem:[%s10278_s4 + $0x70] sm:$0xff]  ;;  %11986 = vst [vmem:[#allocation76_spill] sm:$0xff] %v10511_v51 }
0x11ed   :  { %v10513_v52 = vpack.c.bf16 %v3222_v30, %v3221_v40  ;;  %v10543_v30 = vld [vmem:[%s10536_s9] sm:$0xff]  ;;  %v3289_v27 = vld [vmem:[%s10278_s4 + $0x290] sm:$0xff] }
0x11ee   :  { %11984 = vst [vmem:[#allocation74_spill] sm:$0xff] %v10497_v4  ;;  %v10591_v37 = vpack.c.bf16 %v3290_v34, %v3289_v27 }
0x11ef   :  { %8836 = vmatpush3.bf16.msra.mxu1 %v10479_v42  ;;  %8868 = vmatpush3.bf16.msra.mxu0 %v10481_v14  ;;  %11987 = vst [vmem:[#allocation77_spill] sm:$0xff] %v10513_v52  ;;  %v10526_v14 = vpack.c.bf16 %v3288_v56, %v3287_v44  ;;  %v3304_v42 = vld [vmem:[%s10278_s4 + $0x308] sm:$0xff] }
0x11f0   :  { %8838 = vmatprep.subr.bf16.mxu1 %v10486_v60  ;;  %8870 = vmatprep.subr.bf16.mxu0 %v10488_v0  ;;  %v3253_v0 = vld [vmem:[%s10278_s4 + $0x170] sm:$0xff]  ;;  %v3319_v60 = vld [vmem:[%s10278_s4 + $0x380] sm:$0xff]  ;;  %11998 = vst [vmem:[#allocation87_spill] sm:$0xff] %v10591_v37 }
0x11f1   :  { %11989 = vst [vmem:[#allocation79_spill] sm:$0xff] %v10526_v14  ;;  %v10529_v9 = vpack.c.bf16 %v3320_v1, %v3319_v60 }
0x11f3   :  { %8840 = vmatpush3.bf16.msra.mxu1 %v10495_v15  ;;  %8872 = vmatpush3.bf16.msra.mxu0 %v10497_v4  ;;  %v3254_v15 = vld [vmem:[%s10278_s4 + $0x178] sm:$0xff]  ;;  %11990 = vst [vmem:[#allocation80_spill] sm:$0xff] %v10529_v9 }
0x11f4   :  { %8842 = vmatprep.subr.bf16.mxu1 %v10506_v19  ;;  %v10518_v4 = vpack.c.bf16 %v3254_v15, %v3253_v0  ;;  %8874 = vmatprep.subr.bf16.mxu0 %v10511_v51  ;;  %v2473_v0 = vlaneseq }
0x11f6   :  { %11988 = vst [vmem:[#allocation78_spill] sm:$0xff] %v10518_v4  ;;  %v10538_v15 = vshrl.u32 %v2473_v0, 7 }
0x11f7   :  { %8844 = vmatpush3.bf16.msra.mxu1 %v10513_v52  ;;  %8876 = vmatpush3.bf16.msra.mxu0 %v10518_v4  ;;  %v3272_v4 = vld [vmem:[%s10278_s4 + $0x208] sm:$0xff] }
0x11f8   :  { %8878 = vmatprep.subr.bf16.mxu1 %v10526_v14  ;;  %8910 = vmatprep.subr.bf16.mxu0 %v10529_v9  ;;  %v11764_v60 = vsub.s32 0, %v10538_v15  ;;  %v11769_v40 = vsub.s32 2, %v10538_v15  ;;  %v11773_v44 = vsub.s32 1, %v10538_v15  ;;  %v11777_v56 = vsub.s32 3, %v10538_v15 }
0x11f9   :  { %v12000_v27 = vsub.s32 7, %v10538_v15  ;;  %v12021_v46 = vsub.s32 4, %v10538_v15 }
0x11fa   :  { %v10550_v1 = vrot.slane %v10543_v30, %v11764_v60  ;;  %v10555_v0 = vrot.slane %v10543_v30, %v11769_v40  ;;  %v10560_v9 = vrot.slane %v10543_v30, %v11773_v44  ;;  %v10565_v14 = vrot.slane %v10543_v30, %v11777_v56  ;;  %v3271_v60 = vld [vmem:[%s10278_s4 + $0x200] sm:$0xff]  ;;  %v3321_v56 = vld [vmem:[%s10278_s4 + $0x390] sm:$0xff] }
0x11fb   :  { %v3303_v40 = vld [vmem:[%s10278_s4 + $0x300] sm:$0xff]  ;;  %v10581_v36 = vpack.c.bf16 %v3272_v4, %v3271_v60  ;;  %v3274_v4 = vld [vmem:[%s10278_s4 + $0x218] sm:$0xff]  ;;  %v10754_v63 = vrot.slane %v10543_v30, %v12021_v46  ;;  %v3285_v46 = vld [vmem:[%s10278_s4 + $0x270] sm:$0xff] }
0x11fc   :  { %11991 = vst [vmem:[#allocation81_spill] sm:$0xff] %v10550_v1  ;;  %11992 = vst [vmem:[#allocation82_spill] sm:$0xff] %v10555_v0  ;;  %v10583_v25 = vpack.c.bf16 %v3304_v42, %v3303_v40  ;;  %v3305_v42 = vld [vmem:[%s10278_s4 + $0x310] sm:$0xff] }
0x11fd   :  { %11993 = vst [vmem:[#allocation83_spill] sm:$0xff] %v10560_v9  ;;  %11994 = vst [vmem:[#allocation84_spill] sm:$0xff] %v10565_v14 }
0x11fe   :  { %11995 = vst [vmem:[#allocation85_spill] sm:$0xff] %v10581_v36  ;;  %11996 = vst [vmem:[#allocation86_spill] sm:$0xff] %v10583_v25 }
0x1294   :  { %v2625_v51 = vpop.f32.mrb[24].mxu1  ;;  %v2702_v19 = vpop.f32.mrb[20].mxu0 }
0x1295   :  { %v2626_v24 = vadd.f32 %v2625_v51, %v10550_v1  ;;  %v2703_v44 = vadd.f32 %v2702_v19, %v10555_v0  ;;  %v2627_v38 = vpop.f32.mrb[25].mxu1  ;;  %v2704_v50 = vpop.f32.mrb[21].mxu0  ;;  %v11997_v51 = vsub.s32 5, %v10538_v15 }
0x1296   :  { %v2628_v43 = vadd.f32 %v2627_v38, %v10560_v9  ;;  %v2705_v52 = vadd.f32 %v2704_v50, %v10565_v14  ;;  %v10593_v50 = vpack.c.bf16 %v3322_v53, %v3321_v56  ;;  %v3324_v56 = vld [vmem:[%s10278_s4 + $0x3a8] sm:$0xff] }
0x1297   :  { %v10588_v19 = vrot.slane %v10543_v30, %v11997_v51  ;;  %v3175_v60 = vmax.f32 %v2626_v24, 0.0  ;;  %v3177_v40 = vmax.f32 %v2703_v44, 0.0  ;;  %v10606_v24 = vrot.slane %v10543_v30, %v12000_v27  ;;  %v3323_v44 = vld [vmem:[%s10278_s4 + $0x3a0] sm:$0xff]  ;;  %v3276_v27 = vld [vmem:[%s10278_s4 + $0x228] sm:$0xff] }
0x1298   :  { %v3176_v33 = vmax.f32 %v2628_v43, 0.0  ;;  %v3178_v23 = vmax.f32 %v2705_v52, 0.0  ;;  %v2631_v16 = vpop.f32.mrb[26].mxu1  ;;  %v2708_v38 = vpop.f32.mrb[22].mxu0  ;;  %11999 = vst [vmem:[#allocation88_spill] sm:$0xff] %v10593_v50 }
0x1299   :  { %v2632_v51 = vadd.f32 %v2631_v16, %v10550_v1  ;;  %v2709_v61 = vadd.f32 %v2708_v38, %v10555_v0  ;;  %v2633_v43 = vpop.f32.mrb[27].mxu1  ;;  %v2710_v52 = vpop.f32.mrb[23].mxu0  ;;  %v3292_v16 = vld [vmem:[%s10278_s4 + $0x2a8] sm:$0xff]  ;;  %v3275_v38 = vld [vmem:[%s10278_s4 + $0x220] sm:$0xff] }
0x129a   :  { %v2634_v34 = vadd.f32 %v2633_v43, %v10560_v9  ;;  %v2711_v53 = vadd.f32 %v2710_v52, %v10565_v14  ;;  %3534 = vmatprep.mubr.f32.mxu1 %v3176_v33  ;;  %3609 = vmatprep.mubr.f32.mxu0 %v3178_v23  ;;  %v10618_v43 = vpack.c.bf16 %v3274_v4, %v3273_v20  ;;  %v3308_v20 = vld [vmem:[%s10278_s4 + $0x328] sm:$0xff]  ;;  %v3326_v9 = vld [vmem:[%s10278_s4 + $0x3b8] sm:$0xff] }
0x129b   :  { %3535 = vmatmul.mubr.f32.vlgmr.msra.gmra.mrb[40].mxu1 %v3175_v60  ;;  %3610 = vmatmul.mubr.f32.vlgmr.msra.gmra.mrb[36].mxu0 %v3177_v40  ;;  %v10620_v52 = vpack.c.bf16 %v3306_v13, %v3305_v42  ;;  %v3307_v60 = vld [vmem:[%s10278_s4 + $0x320] sm:$0xff]  ;;  %v3191_v40 = vmax.f32 %v2632_v51, 0.0  ;;  %v10628_v14 = vpack.c.bf16 %v3324_v56, %v3323_v44  ;;  %v3293_v13 = vld [vmem:[%s10278_s4 + $0x2b0] sm:$0xff]  ;;  %v3278_v56 = vld [vmem:[%s10278_s4 + $0x238] sm:$0xff] }
0x129c   :  { %v3192_v0 = vmax.f32 %v2634_v34, 0.0  ;;  %v3194_v1 = vmax.f32 %v2711_v53, 0.0  ;;  %8880 = vmatpush3.bf16.msra.mxu1 %v10581_v36  ;;  %8912 = vmatpush3.bf16.msra.mxu0 %v10583_v25  ;;  %v10614_v23 = vpop.f32.mrb[28].mxu1  ;;  %v10616_v33 = vpop.f32.mrb[24].mxu0  ;;  %12001 = vst [vmem:[#allocation89_spill] sm:$0xff] %v10618_v43  ;;  %v3193_v34 = vmax.f32 %v2709_v61, 0.0  ;;  %v10626_v25 = vpack.c.bf16 %v3292_v16, %v3291_v28 }
0x129d   :  { %12002 = vst [vmem:[#allocation90_spill] sm:$0xff] %v10620_v52  ;;  %v2781_v53 = vpop.f32.mrb[29].mxu1  ;;  %v2858_v36 = vpop.f32.mrb[25].mxu0  ;;  %8882 = vmatprep.subr.bf16.mxu1 %v10591_v37  ;;  %8914 = vmatprep.subr.bf16.mxu0 %v10593_v50  ;;  %12004 = vst [vmem:[#allocation92_spill] sm:$0xff] %v10628_v14  ;;  %v3294_v61 = vld [vmem:[%s10278_s4 + $0x2b8] sm:$0xff]  ;;  %v3325_v51 = vld [vmem:[%s10278_s4 + $0x3b0] sm:$0xff]  ;;  %v2780_v41 = vadd.f32 %v10614_v23, %v10754_v63 }
0x129e   :  { %12003 = vst [vmem:[#allocation91_spill] sm:$0xff] %v10626_v25  ;;  %v2782_v4 = vadd.f32 %v2781_v53, %v10588_v19  ;;  %v2859_v42 = vadd.f32 %v2858_v36, %v10606_v24  ;;  %3539 = vmatprep.mubr.f32.mxu1 %v3192_v0  ;;  %3614 = vmatprep.mubr.f32.mxu0 %v3194_v1  ;;  %v3277_v44 = vld [vmem:[%s10278_s4 + $0x230] sm:$0xff]  ;;  %v3330_v37 = vld [vmem:[%s10278_s4 + $0x3d8] sm:$0xff]  ;;  %v12028_v23 = vsub.s32 1, %v10538_v15 }
0x129f   :  { %3540 = vmatmul.mubr.f32.gmra.mrb[42].mxu1 %v3191_v40  ;;  %3615 = vmatmul.mubr.f32.gmra.mrb[38].mxu0 %v3193_v34  ;;  %v10643_v1 = vpack.c.bf16 %v3276_v27, %v3275_v38  ;;  %v10645_v0 = vpack.c.bf16 %v3308_v20, %v3307_v60  ;;  %v10655_v53 = vpack.c.bf16 %v3294_v61, %v3293_v13  ;;  %v3309_v38 = vld [vmem:[%s10278_s4 + $0x330] sm:$0xff]  ;;  %v3310_v27 = vld [vmem:[%s10278_s4 + $0x338] sm:$0xff]  ;;  %v3295_v60 = vld [vmem:[%s10278_s4 + $0x2c0] sm:$0xff] }
0x12a0   :  { %v3180_v50 = vmax.f32 %v2782_v4, 0.0  ;;  %v3182_v28 = vmax.f32 %v2859_v42, 0.0  ;;  %8884 = vmatpush3.bf16.msra.mxu1 %v10618_v43  ;;  %8916 = vmatpush3.bf16.msra.mxu0 %v10620_v52  ;;  %v10639_v16 = vpop.f32.mrb[30].mxu1  ;;  %v10641_v36 = vpop.f32.mrb[26].mxu0  ;;  %v10657_v4 = vpack.c.bf16 %v3326_v9, %v3325_v51  ;;  %v3296_v20 = vld [vmem:[%s10278_s4 + $0x2c8] sm:$0xff]  ;;  %v3327_v42 = vld [vmem:[%s10278_s4 + $0x3c0] sm:$0xff]  ;;  %v10671_v61 = vpack.c.bf16 %v3278_v56, %v3277_v44 }
0x12a1   :  { %12005 = vst [vmem:[#allocation93_spill] sm:$0xff] %v10643_v1  ;;  %12006 = vst [vmem:[#allocation94_spill] sm:$0xff] %v10645_v0  ;;  %v10649_v40 = vpop.f32.mrb[31].mxu1  ;;  %v10651_v34 = vpop.f32.mrb[27].mxu0  ;;  %8886 = vmatprep.subr.bf16.mxu1 %v10626_v25  ;;  %8918 = vmatprep.subr.bf16.mxu0 %v10628_v14  ;;  %v3328_v52 = vld [vmem:[%s10278_s4 + $0x3c8] sm:$0xff]  ;;  %v3279_v51 = vld [vmem:[%s10278_s4 + $0x240] sm:$0xff] }
0x12a2   :  { %12007 = vst [vmem:[#allocation95_spill] sm:$0xff] %v10655_v53  ;;  %12008 = vst [vmem:[#allocation96_spill] sm:$0xff] %v10657_v4  ;;  %3684 = vmatprep.mubr.f32.mxu1 %v3180_v50  ;;  %3759 = vmatprep.mubr.f32.mxu0 %v3182_v28  ;;  %v10673_v50 = vpack.c.bf16 %v3310_v27, %v3309_v38  ;;  %v3280_v28 = vld [vmem:[%s10278_s4 + $0x248] sm:$0xff]  ;;  %v3311_v44 = vld [vmem:[%s10278_s4 + $0x340] sm:$0xff] }
0x12a3   :  { %12009 = vst [vmem:[#allocation97_spill] sm:$0xff] %v10671_v61  ;;  %v3312_v56 = vld [vmem:[%s10278_s4 + $0x348] sm:$0xff]  ;;  %v3297_v38 = vld [vmem:[%s10278_s4 + $0x2d0] sm:$0xff]  ;;  %v3298_v27 = vld [vmem:[%s10278_s4 + $0x2d8] sm:$0xff] }
0x12a4   :  { %8888 = vmatpush3.bf16.msra.mxu1 %v10643_v1  ;;  %8920 = vmatpush3.bf16.msra.mxu0 %v10645_v0  ;;  %v10667_v13 = vpop.f32.mrb[32].mxu1  ;;  %v10669_v9 = vpop.f32.mrb[28].mxu0  ;;  %12010 = vst [vmem:[#allocation98_spill] sm:$0xff] %v10673_v50  ;;  %v10683_v0 = vpack.c.bf16 %v3296_v20, %v3295_v60  ;;  %v10685_v1 = vpack.c.bf16 %v3328_v52, %v3327_v42  ;;  %v3329_v43 = vld [vmem:[%s10278_s4 + $0x3d0] sm:$0xff] }
0x12a5   :  { %v10677_v14 = vpop.f32.mrb[33].mxu1  ;;  %v10679_v25 = vpop.f32.mrb[29].mxu0  ;;  %8890 = vmatprep.subr.bf16.mxu1 %v10655_v53  ;;  %8922 = vmatprep.subr.bf16.mxu0 %v10657_v4  ;;  %v10699_v52 = vpack.c.bf16 %v3280_v28, %v3279_v51  ;;  %v10701_v20 = vpack.c.bf16 %v3312_v56, %v3311_v44  ;;  %v3281_v42 = vld [vmem:[%s10278_s4 + $0x250] sm:$0xff]  ;;  %v3282_v53 = vld [vmem:[%s10278_s4 + $0x258] sm:$0xff]  ;;  %v3299_v44 = vld [vmem:[%s10278_s4 + $0x2e0] sm:$0xff] }
0x12a6   :  { %12011 = vst [vmem:[#allocation99_spill] sm:$0xff] %v10683_v0  ;;  %12012 = vst [vmem:[#allocation100_spill] sm:$0xff] %v10685_v1  ;;  %v3313_v51 = vld [vmem:[%s10278_s4 + $0x350] sm:$0xff]  ;;  %v3314_v28 = vld [vmem:[%s10278_s4 + $0x358] sm:$0xff] }
0x12a7   :  { %12013 = vst [vmem:[#allocation101_spill] sm:$0xff] %v10699_v52  ;;  %12014 = vst [vmem:[#allocation102_spill] sm:$0xff] %v10701_v20  ;;  %v3300_v56 = vld [vmem:[%s10278_s4 + $0x2e8] sm:$0xff] }
0x12a8   :  { %8892 = vmatpush3.bf16.msra.mxu1 %v10671_v61  ;;  %8924 = vmatpush3.bf16.msra.mxu0 %v10673_v50  ;;  %v10695_v4 = vpop.f32.mrb[34].mxu1  ;;  %v10697_v60 = vpop.f32.mrb[30].mxu0  ;;  %v10711_v50 = vpack.c.bf16 %v3298_v27, %v3297_v38  ;;  %v10713_v61 = vpack.c.bf16 %v3330_v37, %v3329_v43  ;;  %v10728_v43 = vpack.c.bf16 %v3282_v53, %v3281_v42  ;;  %v3315_v42 = vld [vmem:[%s10278_s4 + $0x360] sm:$0xff] }
0x12a9   :  { %v10705_v18 = vpop.f32.mrb[35].mxu1  ;;  %v10707_v6 = vpop.f32.mrb[31].mxu0  ;;  %8894 = vmatprep.subr.bf16.mxu1 %v10683_v0  ;;  %8926 = vmatprep.subr.bf16.mxu0 %v10685_v1  ;;  %v10730_v27 = vpack.c.bf16 %v3314_v28, %v3313_v51  ;;  %v3283_v1 = vld [vmem:[%s10278_s4 + $0x260] sm:$0xff]  ;;  %v10743_v53 = vpack.c.bf16 %v3332_v5, %v3331_v48  ;;  %v3316_v51 = vld [vmem:[%s10278_s4 + $0x368] sm:$0xff]  ;;  %v3301_v28 = vld [vmem:[%s10278_s4 + $0x2f0] sm:$0xff] }
0x12aa   :  { %12015 = vst [vmem:[#allocation103_spill] sm:$0xff] %v10711_v50  ;;  %12016 = vst [vmem:[#allocation104_spill] sm:$0xff] %v10713_v61  ;;  %v3333_v0 = vld [vmem:[%s10278_s4 + $0x3f0] sm:$0xff] }
0x12ab   :  { %12017 = vst [vmem:[#allocation105_spill] sm:$0xff] %v10728_v43  ;;  %12018 = vst [vmem:[#allocation106_spill] sm:$0xff] %v10730_v27 }
0x12ac   :  { %8896 = vmatpush3.bf16.msra.mxu1 %v10699_v52  ;;  %8928 = vmatpush3.bf16.msra.mxu0 %v10701_v20  ;;  %v10724_v38 = vpop.f32.mrb[36].mxu1  ;;  %v10726_v37 = vpop.f32.mrb[32].mxu0  ;;  %v10741_v20 = vpack.c.bf16 %v3300_v56, %v3299_v44  ;;  %12020 = vst [vmem:[#allocation108_spill] sm:$0xff] %v10743_v53  ;;  %v10762_v44 = vpack.c.bf16 %v3284_v58, %v3283_v1 }
0x12ad   :  { %v10735_v52 = vpop.f32.mrb[37].mxu1  ;;  %v10737_v47 = vpop.f32.mrb[33].mxu0  ;;  %8898 = vmatprep.subr.bf16.mxu1 %v10711_v50  ;;  %8930 = vmatprep.subr.bf16.mxu0 %v10713_v61  ;;  %v10764_v56 = vpack.c.bf16 %v3316_v51, %v3315_v42  ;;  %v3286_v61 = vld [vmem:[%s10278_s4 + $0x278] sm:$0xff]  ;;  %v10780_v58 = vpack.c.bf16 %v3302_v11, %v3301_v28  ;;  %v10782_v1 = vpack.c.bf16 %v3334_v49, %v3333_v0  ;;  %v3351_v51 = vld [vmem:[%s10278_s4 + $0x480] sm:$0xff] }
0x12ae   :  { %12019 = vst [vmem:[#allocation107_spill] sm:$0xff] %v10741_v20  ;;  %v3318_v42 = vld [vmem:[%s10278_s4 + $0x378] sm:$0xff]  ;;  %v10796_v11 = vpack.c.bf16 %v3286_v61, %v3285_v46  ;;  %v10800_v0 = vpack.c.bf16 %v3352_v35, %v3351_v51  ;;  %v3367_v28 = vld [vmem:[%s10278_s4 + $0x500] sm:$0xff]  ;;  %v2788_v35 = vadd.f32 %v10649_v40, %v10588_v19  ;;  %v12029_v51 = vsub.s32 3, %v10538_v15 }
0x12af   :  { %12022 = vst [vmem:[#allocation109_spill] sm:$0xff] %v10764_v56  ;;  %12024 = vst [vmem:[#allocation110_spill] sm:$0xff] %v10780_v58  ;;  %v3354_v61 = vld [vmem:[%s10278_s4 + $0x498] sm:$0xff] }
0x12b0   :  { %8900 = vmatpush3.bf16.msra.mxu1 %v10728_v43  ;;  %8932 = vmatpush3.bf16.msra.mxu0 %v10730_v27  ;;  %v10758_v5 = vpop.f32.mrb[38].mxu1  ;;  %v10760_v48 = vpop.f32.mrb[34].mxu0  ;;  %v3317_v43 = vld [vmem:[%s10278_s4 + $0x370] sm:$0xff]  ;;  %v12023_v27 = vsub.s32 6, %v10538_v15  ;;  %12025 = vst [vmem:[#allocation111_spill] sm:$0xff] %v10782_v1  ;;  %12026 = vst [vmem:[#allocation112_spill] sm:$0xff] %v10800_v0 }
0x12b1   :  { %v10774_v26 = vpop.f32.mrb[39].mxu1  ;;  %v10776_v32 = vpop.f32.mrb[35].mxu0  ;;  %8902 = vmatprep.subr.bf16.mxu1 %v10741_v20  ;;  %8934 = vmatprep.subr.bf16.mxu0 %v10743_v53  ;;  %v3336_v20 = vld [vmem:[%s10278_s4 + $0x408] sm:$0xff]  ;;  %v10798_v49 = vpack.c.bf16 %v3318_v42, %v3317_v43  ;;  %v3385_v43 = vld [vmem:[%s10278_s4 + $0x590] sm:$0xff]  ;;  %v3386_v46 = vld [vmem:[%s10278_s4 + $0x598] sm:$0xff]  ;;  %v2865_v42 = vadd.f32 %v10651_v34, %v10606_v24  ;;  %v10836_v34 = vpack.c.bf16 %v3354_v61, %v3353_v22 }
0x12b2   :  { %v10772_v50 = vrot.slane %v10543_v30, %v12023_v27  ;;  %v3383_v30 = vld [vmem:[%s10278_s4 + $0x580] sm:$0xff]  ;;  %v3384_v27 = vld [vmem:[%s10278_s4 + $0x588] sm:$0xff]  ;;  %v3337_v22 = vld [vmem:[%s10278_s4 + $0x410] sm:$0xff] }
0x12b3   :  { %v3368_v53 = vld [vmem:[%s10278_s4 + $0x508] sm:$0xff]  ;;  %12031 = vst [vmem:[#allocation115_spill] sm:$0xff] %v10836_v34  ;;  %v3198_v61 = vmax.f32 %v2865_v42, 0.0 }
0x12b4   :  { %8904 = vmatpush3.bf16.msra.mxu1 %v10762_v44  ;;  %8936 = vmatpush3.bf16.msra.mxu0 %v10764_v56  ;;  %v2857_v39 = vadd.f32 %v10616_v33, %v10772_v50  ;;  %v10811_v56 = vpack.c.bf16 %v3384_v27, %v3383_v30  ;;  %v10823_v33 = vrot.slane %v10790_v59, %v12028_v23  ;;  %v3340_v42 = vld [vmem:[%s10278_s4 + $0x428] sm:$0xff] }
0x12b5   :  { %8906 = vmatprep.subr.bf16.mxu1 %v10780_v58  ;;  %8938 = vmatprep.subr.bf16.mxu0 %v10782_v1  ;;  %v10828_v30 = vrot.slane %v10790_v59, %v12029_v51  ;;  %v10830_v27 = vpack.c.bf16 %v3336_v20, %v3335_v55  ;;  %v10834_v40 = vpack.c.bf16 %v3368_v53, %v3367_v28  ;;  %v3179_v1 = vmax.f32 %v2780_v41, 0.0  ;;  %v3338_v53 = vld [vmem:[%s10278_s4 + $0x418] sm:$0xff]  ;;  %v3387_v51 = vld [vmem:[%s10278_s4 + $0x5a0] sm:$0xff] }
0x12b6   :  { %12027 = vst [vmem:[#allocation113_spill] sm:$0xff] %v10811_v56  ;;  %v10838_v23 = vpack.c.bf16 %v3386_v46, %v3385_v43  ;;  %v3181_v58 = vmax.f32 %v2857_v39, 0.0  ;;  %v2786_v55 = vadd.f32 %v10639_v16, %v10754_v63  ;;  %v2863_v20 = vadd.f32 %v10641_v36, %v10772_v50  ;;  %v3369_v16 = vld [vmem:[%s10278_s4 + $0x510] sm:$0xff]  ;;  %v3370_v43 = vld [vmem:[%s10278_s4 + $0x518] sm:$0xff]  ;;  %v3355_v36 = vld [vmem:[%s10278_s4 + $0x4a0] sm:$0xff] }
0x12b7   :  { %12030 = vst [vmem:[#allocation114_spill] sm:$0xff] %v10834_v40  ;;  %v3196_v28 = vmax.f32 %v2788_v35, 0.0  ;;  %v2936_v39 = vadd.f32 %v10677_v14, %v10823_v33  ;;  %v3013_v41 = vadd.f32 %v10679_v25, %v10828_v30  ;;  %v3356_v46 = vld [vmem:[%s10278_s4 + $0x4a8] sm:$0xff]  ;;  %v10860_v25 = vpack.c.bf16 %v3338_v53, %v3337_v22  ;;  %v3371_v22 = vld [vmem:[%s10278_s4 + $0x520] sm:$0xff] }
0x12b8   :  { %8908 = vmatpush3.bf16.msra.mxu1 %v10796_v11  ;;  %8940 = vmatpush3.bf16.msra.mxu0 %v10798_v49  ;;  %12032 = vst [vmem:[#allocation116_spill] sm:$0xff] %v10838_v23  ;;  %v3195_v35 = vmax.f32 %v2786_v55, 0.0  ;;  %v3197_v14 = vmax.f32 %v2863_v20, 0.0  ;;  %v10868_v55 = vpack.c.bf16 %v3356_v46, %v3355_v36  ;;  %v3372_v53 = vld [vmem:[%s10278_s4 + $0x528] sm:$0xff]  ;;  %v3341_v36 = vld [vmem:[%s10278_s4 + $0x430] sm:$0xff]  ;;  %v3342_v46 = vld [vmem:[%s10278_s4 + $0x438] sm:$0xff] }
0x12b9   :  { %8942 = vmatprep.subr.bf16.mxu1 %v10800_v0  ;;  %8974 = vmatprep.subr.bf16.mxu0 %v10811_v56  ;;  %v3388_v56 = vld [vmem:[%s10278_s4 + $0x5a8] sm:$0xff]  ;;  %12033 = vst [vmem:[#allocation117_spill] sm:$0xff] %v10860_v25  ;;  %v3186_v0 = vmax.f32 %v3013_v41, 0.0  ;;  %v3390_v41 = vld [vmem:[%s10278_s4 + $0x5b8] sm:$0xff] }
0x12ba   :  { %12035 = vst [vmem:[#allocation119_spill] sm:$0xff] %v10868_v55  ;;  %v10870_v20 = vpack.c.bf16 %v3388_v56, %v3387_v51 }
0x12bb   :  { %3685 = vmatmul.mubr.f32.vlgmr.msra.gmra.mrb[44].mxu1 %v3179_v1  ;;  %3760 = vmatmul.mubr.f32.vlgmr.msra.gmra.mrb[40].mxu0 %v3181_v58  ;;  %v10862_v1 = vpack.c.bf16 %v3370_v43, %v3369_v16  ;;  %v3339_v58 = vld [vmem:[%s10278_s4 + $0x420] sm:$0xff]  ;;  %v3358_v16 = vld [vmem:[%s10278_s4 + $0x4b8] sm:$0xff]  ;;  %v10882_v43 = vpack.c.bf16 %v3372_v53, %v3371_v22  ;;  %v3392_v22 = vld [vmem:[%s10278_s4 + $0x5c8] sm:$0xff]  ;;  %v10900_v53 = vpack.c.bf16 %v3342_v46, %v3341_v36 }
0x12bc   :  { %3689 = vmatprep.mubr.f32.mxu1 %v3196_v28  ;;  %3764 = vmatprep.mubr.f32.mxu0 %v3198_v61  ;;  %v3184_v28 = vmax.f32 %v2936_v39, 0.0  ;;  %12036 = vst [vmem:[#allocation120_spill] sm:$0xff] %v10870_v20  ;;  %v3357_v61 = vld [vmem:[%s10278_s4 + $0x4b0] sm:$0xff]  ;;  %v10880_v56 = vpack.c.bf16 %v3340_v42, %v3339_v58  ;;  %v3359_v58 = vld [vmem:[%s10278_s4 + $0x4c0] sm:$0xff]  ;;  %v3360_v42 = vld [vmem:[%s10278_s4 + $0x4c8] sm:$0xff] }
0x12bd   :  { %8944 = vmatpush3.bf16.msra.mxu1 %v10830_v27  ;;  %8976 = vmatpush3.bf16.msra.mxu0 %v10834_v40  ;;  %12034 = vst [vmem:[#allocation118_spill] sm:$0xff] %v10862_v1  ;;  %v3389_v39 = vld [vmem:[%s10278_s4 + $0x5b0] sm:$0xff]  ;;  %12038 = vst [vmem:[#allocation122_spill] sm:$0xff] %v10882_v43  ;;  %v10888_v51 = vpack.c.bf16 %v3358_v16, %v3357_v61  ;;  %v3343_v16 = vld [vmem:[%s10278_s4 + $0x440] sm:$0xff] }
0x12be   :  { %8946 = vmatprep.subr.bf16.mxu1 %v10836_v34  ;;  %8978 = vmatprep.subr.bf16.mxu0 %v10838_v23  ;;  %12037 = vst [vmem:[#allocation121_spill] sm:$0xff] %v10880_v56  ;;  %12041 = vst [vmem:[#allocation125_spill] sm:$0xff] %v10900_v53  ;;  %v3361_v36 = vld [vmem:[%s10278_s4 + $0x4d0] sm:$0xff]  ;;  %v3362_v46 = vld [vmem:[%s10278_s4 + $0x4d8] sm:$0xff] }
0x12bf   :  { %3690 = vmatmul.mubr.f32.gmra.mrb[46].mxu1 %v3195_v35  ;;  %3765 = vmatmul.mubr.f32.gmra.mrb[42].mxu0 %v3197_v14  ;;  %12039 = vst [vmem:[#allocation123_spill] sm:$0xff] %v10888_v51  ;;  %v3373_v35 = vld [vmem:[%s10278_s4 + $0x530] sm:$0xff]  ;;  %v3374_v14 = vld [vmem:[%s10278_s4 + $0x538] sm:$0xff]  ;;  %v3399_v23 = vld [vmem:[%s10278_s4 + $0x600] sm:$0xff] }
0x12c0   :  { %3834 = vmatprep.mubr.f32.mxu1 %v3184_v28  ;;  %3909 = vmatprep.mubr.f32.mxu0 %v3186_v0  ;;  %v10890_v0 = vpack.c.bf16 %v3390_v41, %v3389_v39  ;;  %v3391_v28 = vld [vmem:[%s10278_s4 + $0x5c0] sm:$0xff]  ;;  %v10902_v61 = vpack.c.bf16 %v3374_v14, %v3373_v35  ;;  %v3344_v39 = vld [vmem:[%s10278_s4 + $0x448] sm:$0xff]  ;;  %v10908_v41 = vpack.c.bf16 %v3360_v42, %v3359_v58  ;;  %v3393_v35 = vld [vmem:[%s10278_s4 + $0x5d0] sm:$0xff] }
0x12c1   :  { %8948 = vmatpush3.bf16.msra.mxu1 %v10860_v25  ;;  %8980 = vmatpush3.bf16.msra.mxu0 %v10862_v1  ;;  %v3394_v14 = vld [vmem:[%s10278_s4 + $0x5d8] sm:$0xff]  ;;  %v10920_v58 = vpack.c.bf16 %v3344_v39, %v3343_v16  ;;  %v3363_v16 = vld [vmem:[%s10278_s4 + $0x4e0] sm:$0xff]  ;;  %v3396_v39 = vld [vmem:[%s10278_s4 + $0x5e8] sm:$0xff]  ;;  %v12055_v1 = vsub.s32 2, %v10538_v15 }
0x12c2   :  { %8950 = vmatprep.subr.bf16.mxu1 %v10868_v55  ;;  %8982 = vmatprep.subr.bf16.mxu0 %v10870_v20  ;;  %12040 = vst [vmem:[#allocation124_spill] sm:$0xff] %v10890_v0  ;;  %12042 = vst [vmem:[#allocation126_spill] sm:$0xff] %v10902_v61  ;;  %v10910_v20 = vpack.c.bf16 %v3392_v22, %v3391_v28  ;;  %v3375_v55 = vld [vmem:[%s10278_s4 + $0x540] sm:$0xff]  ;;  %v3345_v28 = vld [vmem:[%s10278_s4 + $0x450] sm:$0xff] }
0x12c3   :  { %12043 = vst [vmem:[#allocation127_spill] sm:$0xff] %v10908_v41  ;;  %12045 = vst [vmem:[#allocation129_spill] sm:$0xff] %v10920_v58  ;;  %v3346_v22 = vld [vmem:[%s10278_s4 + $0x458] sm:$0xff]  ;;  %v3448_v25 = vld [vmem:[%s10278_s4 + $0x788] sm:$0xff] }
0x12c4   :  { %12044 = vst [vmem:[#allocation128_spill] sm:$0xff] %v10910_v20 }
0x12c5   :  { %8952 = vmatpush3.bf16.msra.mxu1 %v10880_v56  ;;  %8984 = vmatpush3.bf16.msra.mxu0 %v10882_v43  ;;  %v3376_v56 = vld [vmem:[%s10278_s4 + $0x548] sm:$0xff]  ;;  %v3377_v43 = vld [vmem:[%s10278_s4 + $0x550] sm:$0xff] }
0x12c6   :  { %8954 = vmatprep.subr.bf16.mxu1 %v10888_v51  ;;  %8986 = vmatprep.subr.bf16.mxu0 %v10890_v0  ;;  %v10922_v42 = vpack.c.bf16 %v3376_v56, %v3375_v55  ;;  %v10928_v0 = vpack.c.bf16 %v3362_v46, %v3361_v36  ;;  %v10930_v51 = vpack.c.bf16 %v3394_v14, %v3393_v35  ;;  %v3364_v55 = vld [vmem:[%s10278_s4 + $0x4e8] sm:$0xff]  ;;  %v3395_v56 = vld [vmem:[%s10278_s4 + $0x5e0] sm:$0xff] }
0x12c7   :  { %v10940_v36 = vpack.c.bf16 %v3346_v22, %v3345_v28  ;;  %v3347_v35 = vld [vmem:[%s10278_s4 + $0x460] sm:$0xff]  ;;  %v3348_v14 = vld [vmem:[%s10278_s4 + $0x468] sm:$0xff]  ;;  %v3366_v28 = vld [vmem:[%s10278_s4 + $0x4f8] sm:$0xff]  ;;  %v12053_v22 = vsub.s32 0, %v10538_v15 }
0x12c8   :  { %12046 = vst [vmem:[#allocation130_spill] sm:$0xff] %v10922_v42  ;;  %12047 = vst [vmem:[#allocation131_spill] sm:$0xff] %v10928_v0 }
0x12c9   :  { %8956 = vmatpush3.bf16.msra.mxu1 %v10900_v53  ;;  %8988 = vmatpush3.bf16.msra.mxu0 %v10902_v61  ;;  %12048 = vst [vmem:[#allocation132_spill] sm:$0xff] %v10930_v51  ;;  %v3378_v53 = vld [vmem:[%s10278_s4 + $0x558] sm:$0xff]  ;;  %12049 = vst [vmem:[#allocation133_spill] sm:$0xff] %v10940_v36  ;;  %v3380_v61 = vld [vmem:[%s10278_s4 + $0x568] sm:$0xff] }
0x12ca   :  { %8958 = vmatprep.subr.bf16.mxu1 %v10908_v41  ;;  %8990 = vmatprep.subr.bf16.mxu0 %v10910_v20  ;;  %v10942_v46 = vpack.c.bf16 %v3378_v53, %v3377_v43  ;;  %v10948_v20 = vpack.c.bf16 %v3364_v55, %v3363_v16  ;;  %v10950_v41 = vpack.c.bf16 %v3396_v39, %v3395_v56  ;;  %v3397_v43 = vld [vmem:[%s10278_s4 + $0x5f0] sm:$0xff]  ;;  %v3398_v53 = vld [vmem:[%s10278_s4 + $0x5f8] sm:$0xff] }
0x12cb   :  { %v10965_v16 = vpack.c.bf16 %v3348_v14, %v3347_v35  ;;  %v3349_v56 = vld [vmem:[%s10278_s4 + $0x470] sm:$0xff]  ;;  %v3350_v39 = vld [vmem:[%s10278_s4 + $0x478] sm:$0xff]  ;;  %v10981_v35 = vpack.c.bf16 %v3398_v53, %v3397_v43  ;;  %v3416_v14 = vld [vmem:[%s10278_s4 + $0x688] sm:$0xff] }
0x12cc   :  { %12050 = vst [vmem:[#allocation134_spill] sm:$0xff] %v10942_v46  ;;  %12051 = vst [vmem:[#allocation135_spill] sm:$0xff] %v10948_v20  ;;  %v3431_v43 = vld [vmem:[%s10278_s4 + $0x700] sm:$0xff]  ;;  %v3432_v53 = vld [vmem:[%s10278_s4 + $0x708] sm:$0xff] }
0x12cd   :  { %8960 = vmatpush3.bf16.msra.mxu1 %v10920_v58  ;;  %8992 = vmatpush3.bf16.msra.mxu0 %v10922_v42  ;;  %12052 = vst [vmem:[#allocation136_spill] sm:$0xff] %v10950_v41  ;;  %v3379_v58 = vld [vmem:[%s10278_s4 + $0x560] sm:$0xff]  ;;  %v3365_v42 = vld [vmem:[%s10278_s4 + $0x4f0] sm:$0xff]  ;;  %12057 = vst [vmem:[#allocation139_spill] sm:$0xff] %v10981_v35 }
0x12ce   :  { %8962 = vmatprep.subr.bf16.mxu1 %v10928_v0  ;;  %8994 = vmatprep.subr.bf16.mxu0 %v10930_v51  ;;  %v10961_v0 = vrot.slane %v10790_v59, %v12053_v22  ;;  %v10967_v55 = vpack.c.bf16 %v3380_v61, %v3379_v58  ;;  %v3381_v51 = vld [vmem:[%s10278_s4 + $0x570] sm:$0xff]  ;;  %v10975_v22 = vrot.slane %v10790_v59, %v12055_v1  ;;  %v3382_v61 = vld [vmem:[%s10278_s4 + $0x578] sm:$0xff]  ;;  %v3415_v58 = vld [vmem:[%s10278_s4 + $0x680] sm:$0xff] }
0x12cf   :  { %v3400_v1 = vld [vmem:[%s10278_s4 + $0x608] sm:$0xff] }
0x12d0   :  { %12054 = vst [vmem:[#allocation137_spill] sm:$0xff] %v10967_v55  ;;  %v2934_v34 = vadd.f32 %v10667_v13, %v10961_v0  ;;  %v3011_v40 = vadd.f32 %v10669_v9, %v10975_v22  ;;  %v12060_v13 = vsub.s32 5, %v10538_v15 }
0x12d1   :  { %8964 = vmatpush3.bf16.msra.mxu1 %v10940_v36  ;;  %8996 = vmatpush3.bf16.msra.mxu0 %v10942_v46  ;;  %v10979_v46 = vpack.c.bf16 %v3366_v28, %v3365_v42  ;;  %v3447_v36 = vld [vmem:[%s10278_s4 + $0x780] sm:$0xff]  ;;  %v10994_v42 = vpack.c.bf16 %v3382_v61, %v3381_v51  ;;  %v10996_v28 = vpack.c.bf16 %v3416_v14, %v3415_v58  ;;  %v3449_v51 = vld [vmem:[%s10278_s4 + $0x790] sm:$0xff]  ;;  %v12061_v14 = vsub.s32 7, %v10538_v15 }
0x12d2   :  { %8966 = vmatprep.subr.bf16.mxu1 %v10948_v20  ;;  %8998 = vmatprep.subr.bf16.mxu0 %v10950_v41  ;;  %v10992_v41 = vpack.c.bf16 %v3350_v39, %v3349_v56  ;;  %v3417_v20 = vld [vmem:[%s10278_s4 + $0x690] sm:$0xff]  ;;  %v3418_v56 = vld [vmem:[%s10278_s4 + $0x698] sm:$0xff]  ;;  %v2942_v61 = vadd.f32 %v10705_v18, %v10823_v33  ;;  %v3019_v58 = vadd.f32 %v10707_v6, %v10828_v30 }
0x12d3   :  { %12056 = vst [vmem:[#allocation138_spill] sm:$0xff] %v10979_v46  ;;  %12058 = vst [vmem:[#allocation140_spill] sm:$0xff] %v10996_v28  ;;  %v3450_v39 = vld [vmem:[%s10278_s4 + $0x798] sm:$0xff]  ;;  %v11019_v9 = vrot.slane %v10790_v59, %v12060_v13  ;;  %v11030_v18 = vpack.c.bf16 %v3432_v53, %v3431_v43  ;;  %v11032_v6 = vpack.c.bf16 %v3418_v56, %v3417_v20  ;;  %v3401_v20 = vld [vmem:[%s10278_s4 + $0x610] sm:$0xff] }
0x12d4   :  { %v11034_v13 = vpack.c.bf16 %v3450_v39, %v3449_v51  ;;  %v3402_v43 = vld [vmem:[%s10278_s4 + $0x618] sm:$0xff]  ;;  %v3200_v53 = vmax.f32 %v2942_v61, 0.0  ;;  %v3202_v56 = vmax.f32 %v3019_v58, 0.0  ;;  %v3420_v39 = vld [vmem:[%s10278_s4 + $0x6a8] sm:$0xff] }
0x12d5   :  { %8968 = vmatpush3.bf16.msra.mxu1 %v10965_v16  ;;  %9000 = vmatpush3.bf16.msra.mxu0 %v10967_v55  ;;  %v11007_v55 = vpack.c.bf16 %v3448_v25, %v3447_v36  ;;  %v11024_v25 = vrot.slane %v10790_v59, %v12061_v14  ;;  %v11026_v36 = vpack.c.bf16 %v3400_v1, %v3399_v23  ;;  %v3434_v51 = vld [vmem:[%s10278_s4 + $0x718] sm:$0xff]  ;;  %v3451_v14 = vld [vmem:[%s10278_s4 + $0x7a0] sm:$0xff]  ;;  %v3404_v58 = vld [vmem:[%s10278_s4 + $0x628] sm:$0xff] }
0x12d6   :  { %8970 = vmatprep.subr.bf16.mxu1 %v10979_v46  ;;  %9002 = vmatprep.subr.bf16.mxu0 %v10981_v35  ;;  %v3183_v35 = vmax.f32 %v2934_v34, 0.0  ;;  %v3185_v46 = vmax.f32 %v3011_v40, 0.0  ;;  %v2940_v23 = vadd.f32 %v10695_v4, %v10961_v0  ;;  %v3017_v1 = vadd.f32 %v10697_v60, %v10975_v22  ;;  %v3433_v4 = vld [vmem:[%s10278_s4 + $0x710] sm:$0xff]  ;;  %v3419_v60 = vld [vmem:[%s10278_s4 + $0x6a0] sm:$0xff] }
0x12d7   :  { %12059 = vst [vmem:[#allocation141_spill] sm:$0xff] %v11007_v55  ;;  %v3090_v40 = vadd.f32 %v10735_v52, %v11019_v9  ;;  %v3167_v34 = vadd.f32 %v10737_v47, %v11024_v25  ;;  %v11056_v47 = vpack.c.bf16 %v3402_v43, %v3401_v20  ;;  %v3435_v20 = vld [vmem:[%s10278_s4 + $0x720] sm:$0xff]  ;;  %v3436_v43 = vld [vmem:[%s10278_s4 + $0x728] sm:$0xff] }
0x12d8   :  { %v3199_v61 = vmax.f32 %v2940_v23, 0.0  ;;  %v3201_v52 = vmax.f32 %v3017_v1, 0.0  ;;  %v11064_v23 = vpack.c.bf16 %v3420_v39, %v3419_v60  ;;  %v3405_v60 = vld [vmem:[%s10278_s4 + $0x630] sm:$0xff]  ;;  %v3406_v39 = vld [vmem:[%s10278_s4 + $0x638] sm:$0xff] }
0x12d9   :  { %8972 = vmatpush3.bf16.msra.mxu1 %v10992_v41  ;;  %9004 = vmatpush3.bf16.msra.mxu0 %v10994_v42 }
0x12da   :  { %9006 = vmatprep.subr.bf16.mxu1 %v10996_v28  ;;  %9038 = vmatprep.subr.bf16.mxu0 %v11007_v55  ;;  %v3452_v55 = vld [vmem:[%s10278_s4 + $0x7a8] sm:$0xff]  ;;  %v3190_v28 = vmax.f32 %v3167_v34, 0.0  ;;  %12063 = vst [vmem:[#allocation143_spill] sm:$0xff] %v11064_v23  ;;  %v3454_v34 = vld [vmem:[%s10278_s4 + $0x7b8] sm:$0xff] }
0x12db   :  { %v11066_v1 = vpack.c.bf16 %v3452_v55, %v3451_v14 }
0x12dc   :  { %3835 = vmatmul.mubr.f32.vlgmr.msra.gmra.mrb[48].mxu1 %v3183_v35  ;;  %3910 = vmatmul.mubr.f32.vlgmr.msra.gmra.mrb[44].mxu0 %v3185_v46  ;;  %v11058_v35 = vpack.c.bf16 %v3434_v51, %v3433_v4  ;;  %v3403_v46 = vld [vmem:[%s10278_s4 + $0x620] sm:$0xff]  ;;  %v3422_v4 = vld [vmem:[%s10278_s4 + $0x6b8] sm:$0xff]  ;;  %v11078_v51 = vpack.c.bf16 %v3436_v43, %v3435_v20  ;;  %v3456_v20 = vld [vmem:[%s10278_s4 + $0x7c8] sm:$0xff]  ;;  %v11096_v43 = vpack.c.bf16 %v3406_v39, %v3405_v60 }
0x12dd   :  { %3839 = vmatprep.mubr.f32.mxu1 %v3200_v53  ;;  %3914 = vmatprep.mubr.f32.mxu0 %v3202_v56  ;;  %v3188_v53 = vmax.f32 %v3090_v40, 0.0  ;;  %12064 = vst [vmem:[#allocation144_spill] sm:$0xff] %v11066_v1  ;;  %v3421_v56 = vld [vmem:[%s10278_s4 + $0x6b0] sm:$0xff]  ;;  %v11076_v55 = vpack.c.bf16 %v3404_v58, %v3403_v46  ;;  %v3423_v46 = vld [vmem:[%s10278_s4 + $0x6c0] sm:$0xff]  ;;  %v3424_v58 = vld [vmem:[%s10278_s4 + $0x6c8] sm:$0xff] }
0x12de   :  { %9008 = vmatpush3.bf16.msra.mxu1 %v11026_v36  ;;  %9040 = vmatpush3.bf16.msra.mxu0 %v11030_v18  ;;  %12062 = vst [vmem:[#allocation142_spill] sm:$0xff] %v11058_v35  ;;  %v3453_v40 = vld [vmem:[%s10278_s4 + $0x7b0] sm:$0xff]  ;;  %12066 = vst [vmem:[#allocation146_spill] sm:$0xff] %v11078_v51  ;;  %v11084_v14 = vpack.c.bf16 %v3422_v4, %v3421_v56  ;;  %v3407_v4 = vld [vmem:[%s10278_s4 + $0x640] sm:$0xff] }
0x12df   :  { %9010 = vmatprep.subr.bf16.mxu1 %v11032_v6  ;;  %9042 = vmatprep.subr.bf16.mxu0 %v11034_v13  ;;  %12065 = vst [vmem:[#allocation145_spill] sm:$0xff] %v11076_v55  ;;  %12069 = vst [vmem:[#allocation149_spill] sm:$0xff] %v11096_v43  ;;  %v3425_v60 = vld [vmem:[%s10278_s4 + $0x6d0] sm:$0xff]  ;;  %v3426_v39 = vld [vmem:[%s10278_s4 + $0x6d8] sm:$0xff] }
0x12e0   :  { %3840 = vmatmul.mubr.f32.gmra.mrb[50].mxu1 %v3199_v61  ;;  %3915 = vmatmul.mubr.f32.gmra.mrb[46].mxu0 %v3201_v52  ;;  %12067 = vst [vmem:[#allocation147_spill] sm:$0xff] %v11084_v14  ;;  %v3437_v61 = vld [vmem:[%s10278_s4 + $0x730] sm:$0xff]  ;;  %v3438_v52 = vld [vmem:[%s10278_s4 + $0x738] sm:$0xff] }
0x12e1   :  { %3984 = vmatprep.mubr.f32.mxu1 %v3188_v53  ;;  %4059 = vmatprep.mubr.f32.mxu0 %v3190_v28  ;;  %v11086_v28 = vpack.c.bf16 %v3454_v34, %v3453_v40  ;;  %v3455_v53 = vld [vmem:[%s10278_s4 + $0x7c0] sm:$0xff]  ;;  %v11098_v56 = vpack.c.bf16 %v3438_v52, %v3437_v61  ;;  %v3408_v40 = vld [vmem:[%s10278_s4 + $0x648] sm:$0xff]  ;;  %v11104_v34 = vpack.c.bf16 %v3424_v58, %v3423_v46  ;;  %v3457_v61 = vld [vmem:[%s10278_s4 + $0x7d0] sm:$0xff] }
0x12e2   :  { %9012 = vmatpush3.bf16.msra.mxu1 %v11056_v47  ;;  %9044 = vmatpush3.bf16.msra.mxu0 %v11058_v35  ;;  %v3458_v52 = vld [vmem:[%s10278_s4 + $0x7d8] sm:$0xff]  ;;  %v11116_v46 = vpack.c.bf16 %v3408_v40, %v3407_v4  ;;  %v3427_v4 = vld [vmem:[%s10278_s4 + $0x6e0] sm:$0xff]  ;;  %v3460_v40 = vld [vmem:[%s10278_s4 + $0x7e8] sm:$0xff] }
0x12e3   :  { %9014 = vmatprep.subr.bf16.mxu1 %v11064_v23  ;;  %9046 = vmatprep.subr.bf16.mxu0 %v11066_v1  ;;  %12068 = vst [vmem:[#allocation148_spill] sm:$0xff] %v11086_v28  ;;  %12070 = vst [vmem:[#allocation150_spill] sm:$0xff] %v11098_v56  ;;  %v11106_v1 = vpack.c.bf16 %v3456_v20, %v3455_v53  ;;  %v3439_v23 = vld [vmem:[%s10278_s4 + $0x740] sm:$0xff]  ;;  %v3409_v53 = vld [vmem:[%s10278_s4 + $0x650] sm:$0xff] }
0x12e4   :  { %12071 = vst [vmem:[#allocation151_spill] sm:$0xff] %v11104_v34  ;;  %12073 = vst [vmem:[#allocation153_spill] sm:$0xff] %v11116_v46  ;;  %v3410_v20 = vld [vmem:[%s10278_s4 + $0x658] sm:$0xff]  ;;  %v3444_v35 = vld [vmem:[%s10278_s4 + $0x768] sm:$0xff] }
0x12e5   :  { %12072 = vst [vmem:[#allocation152_spill] sm:$0xff] %v11106_v1 }
0x12e6   :  { %9016 = vmatpush3.bf16.msra.mxu1 %v11076_v55  ;;  %9048 = vmatpush3.bf16.msra.mxu0 %v11078_v51  ;;  %v3440_v55 = vld [vmem:[%s10278_s4 + $0x748] sm:$0xff]  ;;  %v3441_v51 = vld [vmem:[%s10278_s4 + $0x750] sm:$0xff] }
0x12e7   :  { %9018 = vmatprep.subr.bf16.mxu1 %v11084_v14  ;;  %9050 = vmatprep.subr.bf16.mxu0 %v11086_v28  ;;  %v11118_v58 = vpack.c.bf16 %v3440_v55, %v3439_v23  ;;  %v11124_v28 = vpack.c.bf16 %v3426_v39, %v3425_v60  ;;  %v11126_v14 = vpack.c.bf16 %v3458_v52, %v3457_v61  ;;  %v3428_v23 = vld [vmem:[%s10278_s4 + $0x6e8] sm:$0xff]  ;;  %v3459_v55 = vld [vmem:[%s10278_s4 + $0x7e0] sm:$0xff] }
0x12e8   :  { %v11136_v60 = vpack.c.bf16 %v3410_v20, %v3409_v53  ;;  %v3411_v61 = vld [vmem:[%s10278_s4 + $0x660] sm:$0xff]  ;;  %v3412_v52 = vld [vmem:[%s10278_s4 + $0x668] sm:$0xff]  ;;  %v3430_v53 = vld [vmem:[%s10278_s4 + $0x6f8] sm:$0xff]  ;;  %v12079_v20 = vsub.s32 4, %v10538_v15 }
0x12e9   :  { %12074 = vst [vmem:[#allocation154_spill] sm:$0xff] %v11118_v58  ;;  %12075 = vst [vmem:[#allocation155_spill] sm:$0xff] %v11124_v28 }
0x12ea   :  { %9020 = vmatpush3.bf16.msra.mxu1 %v11096_v43  ;;  %9052 = vmatpush3.bf16.msra.mxu0 %v11098_v56  ;;  %12076 = vst [vmem:[#allocation156_spill] sm:$0xff] %v11126_v14  ;;  %v3442_v43 = vld [vmem:[%s10278_s4 + $0x758] sm:$0xff]  ;;  %12077 = vst [vmem:[#allocation157_spill] sm:$0xff] %v11136_v60  ;;  %v3443_v56 = vld [vmem:[%s10278_s4 + $0x760] sm:$0xff] }
0x12eb   :  { %9022 = vmatprep.subr.bf16.mxu1 %v11104_v34  ;;  %9054 = vmatprep.subr.bf16.mxu0 %v11106_v1  ;;  %v11138_v39 = vpack.c.bf16 %v3442_v43, %v3441_v51  ;;  %v11144_v1 = vpack.c.bf16 %v3428_v23, %v3427_v4  ;;  %v11146_v34 = vpack.c.bf16 %v3460_v40, %v3459_v55  ;;  %v3461_v51 = vld [vmem:[%s10278_s4 + $0x7f0] sm:$0xff]  ;;  %v3462_v43 = vld [vmem:[%s10278_s4 + $0x7f8] sm:$0xff]  ;;  %v12080_v40 = vsub.s32 6, %v10538_v15 }
0x12ec   :  { %v11161_v4 = vpack.c.bf16 %v3412_v52, %v3411_v61  ;;  %v11163_v23 = vpack.c.bf16 %v3444_v35, %v3443_v56  ;;  %v3413_v55 = vld [vmem:[%s10278_s4 + $0x670] sm:$0xff]  ;;  %v3446_v61 = vld [vmem:[%s10278_s4 + $0x778] sm:$0xff]  ;;  %v3173_v52 = vadd.f32 %v10776_v32, %v11024_v25 }
0x12ed   :  { %12078 = vst [vmem:[#allocation158_spill] sm:$0xff] %v11138_v39 }
0x12ee   :  { %9024 = vmatpush3.bf16.msra.mxu1 %v11116_v46  ;;  %9056 = vmatpush3.bf16.msra.mxu0 %v11118_v58  ;;  %v3429_v46 = vld [vmem:[%s10278_s4 + $0x6f0] sm:$0xff]  ;;  %v11157_v58 = vrot.slane %v10790_v59, %v12079_v20 }
0x12ef   :  { %9026 = vmatprep.subr.bf16.mxu1 %v11124_v28  ;;  %9058 = vmatprep.subr.bf16.mxu0 %v11126_v14  ;;  %v11169_v14 = vrot.slane %v10790_v59, %v12080_v40  ;;  %v11173_v20 = vpack.c.bf16 %v3430_v53, %v3429_v46  ;;  %v11175_v28 = vpack.c.bf16 %v3462_v43, %v3461_v51  ;;  %v3206_v53 = vmax.f32 %v3173_v52, 0.0 }
0x12f0   :  { %v3088_v59 = vadd.f32 %v10724_v38, %v11157_v58  ;;  %v3096_v46 = vadd.f32 %v10774_v26, %v11019_v9  ;;  %v3094_v38 = vadd.f32 %v10758_v5, %v11157_v58  ;;  %v7372_v5 = vld [vmem:[%s11214_s18] ss:$0 sm:$0xff] }
0x12f1   :  { %12081 = vst [vmem:[#allocation159_spill] sm:$0xff] %v11169_v14  ;;  %12082 = vst [vmem:[#allocation160_spill] sm:$0xff] %v11173_v20  ;;  %v3165_v56 = vadd.f32 %v10726_v37, %v11169_v14  ;;  %v3171_v37 = vadd.f32 %v10760_v48, %v11169_v14 }
0x12f2   :  { %9028 = vmatpush3.bf16.msra.mxu1 %v11136_v60  ;;  %9060 = vmatpush3.bf16.msra.mxu0 %v11138_v39  ;;  %12083 = vst [vmem:[#allocation161_spill] sm:$0xff] %v11175_v28  ;;  %v3414_v60 = vld [vmem:[%s10278_s4 + $0x678] sm:$0xff]  ;;  %v3445_v39 = vld [vmem:[%s10278_s4 + $0x770] sm:$0xff]  ;;  %v3204_v26 = vmax.f32 %v3096_v46, 0.0  ;;  %v3203_v32 = vmax.f32 %v3094_v38, 0.0 }
0x12f3   :  { %9030 = vmatprep.subr.bf16.mxu1 %v11144_v1  ;;  %9062 = vmatprep.subr.bf16.mxu0 %v11146_v34  ;;  %v11182_v35 = vpack.c.bf16 %v3414_v60, %v3413_v55  ;;  %v11184_v15 = vpack.c.bf16 %v3446_v61, %v3445_v39  ;;  %v3187_v60 = vmax.f32 %v3088_v59, 0.0  ;;  %v3189_v39 = vmax.f32 %v3165_v56, 0.0 }
0x12f4   :  { %v3205_v51 = vmax.f32 %v3171_v37, 0.0 }
0x12f5   :  { %12084 = vst [vmem:[#allocation162_spill] sm:$0xff] %v11182_v35  ;;  %12085 = vst [vmem:[#allocation163_spill] sm:$0xff] %v11184_v15 }
0x12f6   :  { %9032 = vmatpush3.bf16.msra.mxu1 %v11161_v4  ;;  %9064 = vmatpush3.bf16.msra.mxu0 %v11163_v23 }
0x12f7   :  { %9034 = vmatprep.subr.bf16.mxu1 %v11173_v20  ;;  %9066 = vmatprep.subr.bf16.mxu0 %v11175_v28 }
0x12fa   :  { %9036 = vmatpush3.bf16.msra.mxu1 %v11182_v35  ;;  %9068 = vmatpush3.bf16.msra.mxu0 %v11184_v15 }
0x12fb   :  { %9070 = vmatprep.subr.bf16.mxu1 %v9716_v10  ;;  %9078 = vmatprep.subr.bf16.mxu0 %v9701_v3 }
0x12fd   :  { %3985 = vmatmul.mubr.f32.vlgmr.msra.gmra.mrb[52].mxu1 %v3187_v60  ;;  %4060 = vmatmul.mubr.f32.vlgmr.msra.gmra.mrb[48].mxu0 %v3189_v39 }
0x12fe   :  { %3989 = vmatprep.mubr.f32.mxu1 %v3204_v26  ;;  %4064 = vmatprep.mubr.f32.mxu0 %v3206_v53 }
0x12ff   :  { %9072 = vmatpush3.bf16.msra.mxu1 %v9716_v10  ;;  %9080 = vmatpush3.bf16.msra.mxu0 %v9701_v3 }
0x1300   :  { %9074 = vmatprep.subr.bf16.mxu1 %v9720_v12  ;;  %9082 = vmatprep.subr.bf16.mxu0 %v9707_v7 }
0x1301   :  { %3990 = vmatmul.mubr.f32.gmra.mrb[54].mxu1 %v3203_v32  ;;  %4065 = vmatmul.mubr.f32.gmra.mrb[50].mxu0 %v3205_v51 }
0x1303   :  { %9076 = vmatpush3.bf16.msra.mxu1 %v9720_v12  ;;  %9084 = vmatpush3.bf16.msra.mxu0 %v9707_v7 }
0x1304   :  { %9086 = vmatprep.subr.bf16.mxu1 %v9768_v29 }
0x136e   :  { %v7585_v3 = vpop.f32.mrb[40].mxu1  ;;  %v7623_v10 = vpop.f32.mrb[36].mxu0 }
0x136f   :  { %v7586_v48 = vpop.f32.mrb[41].mxu1  ;;  %v7624_v43 = vpop.f32.mrb[37].mxu0 }
0x1370   :  { %v7587_v55 = vadd.f32 %v7586_v48, %v7585_v3  ;;  %v7625_v40 = vadd.f32 %v7624_v43, %v7623_v10 }
0x1372   :  { %v3537_v61 = vadd.f32 %v7587_v55, %v7372_v5  ;;  %v7588_v12 = vpop.f32.mrb[42].mxu1  ;;  %v7626_v59 = vpop.f32.mrb[38].mxu0 }
0x1373   :  { %v7589_v7 = vpop.f32.mrb[43].mxu1  ;;  %v7627_v56 = vpop.f32.mrb[39].mxu0 }
0x1374   :  { %v3612_v46 = vadd.f32 %v7625_v40, %v3537_v61  ;;  %v7590_v52 = vadd.f32 %v7589_v7, %v7588_v12  ;;  %v7628_v60 = vadd.f32 %v7627_v56, %v7626_v59 }
0x1376   :  { %v3542_v39 = vadd.f32 %v7590_v52, %v7372_v5 }
0x1378   :  { %v3617_v38 = vadd.f32 %v7628_v60, %v3542_v39 }
0x138e   :  { %v7661_v37 = vpop.f32.mrb[44].mxu1  ;;  %v7699_v26 = vpop.f32.mrb[40].mxu0 }
0x138f   :  { %v7662_v53 = vpop.f32.mrb[45].mxu1  ;;  %v7700_v32 = vpop.f32.mrb[41].mxu0 }
0x1390   :  { %v7663_v51 = vadd.f32 %v7662_v53, %v7661_v37  ;;  %v7701_v15 = vadd.f32 %v7700_v32, %v7699_v26 }
0x1392   :  { %v3687_v35 = vadd.f32 %v7663_v51, %v3612_v46  ;;  %v7664_v28 = vpop.f32.mrb[46].mxu1  ;;  %v7702_v3 = vpop.f32.mrb[42].mxu0 }
0x1393   :  { %v7665_v10 = vpop.f32.mrb[47].mxu1  ;;  %v7703_v48 = vpop.f32.mrb[43].mxu0 }
0x1394   :  { %v3762_v43 = vadd.f32 %v7701_v15, %v3687_v35  ;;  %v7666_v55 = vadd.f32 %v7665_v10, %v7664_v28  ;;  %v7704_v20 = vadd.f32 %v7703_v48, %v7702_v3 }
0x1396   :  { %v3692_v14 = vadd.f32 %v7666_v55, %v3617_v38 }
0x1398   :  { %v3767_v40 = vadd.f32 %v7704_v20, %v3692_v14 }
0x13af   :  { %v7737_v61 = vpop.f32.mrb[48].mxu1  ;;  %v7775_v12 = vpop.f32.mrb[44].mxu0 }
0x13b0   :  { %v7738_v5 = vpop.f32.mrb[49].mxu1  ;;  %v7776_v59 = vpop.f32.mrb[45].mxu0 }
0x13b1   :  { %v7739_v7 = vadd.f32 %v7738_v5, %v7737_v61  ;;  %v7777_v56 = vadd.f32 %v7776_v59, %v7775_v12 }
0x13b3   :  { %v3837_v52 = vadd.f32 %v7739_v7, %v3762_v43  ;;  %v7740_v60 = vpop.f32.mrb[50].mxu1  ;;  %v7778_v39 = vpop.f32.mrb[46].mxu0 }
0x13b4   :  { %v7741_v37 = vpop.f32.mrb[51].mxu1  ;;  %v7779_v46 = vpop.f32.mrb[47].mxu0 }
0x13b5   :  { %v3912_v26 = vadd.f32 %v7777_v56, %v3837_v52  ;;  %v7742_v53 = vadd.f32 %v7741_v37, %v7740_v60  ;;  %v7780_v32 = vadd.f32 %v7779_v46, %v7778_v39 }
0x13b7   :  { %v3842_v51 = vadd.f32 %v7742_v53, %v3767_v40 }
0x13b9   :  { %v3917_v35 = vadd.f32 %v7780_v32, %v3842_v51 }
0x13d0   :  { %v7813_v28 = vpop.f32.mrb[52].mxu1  ;;  %v7851_v15 = vpop.f32.mrb[48].mxu0 }
0x13d1   :  { %v7814_v38 = vpop.f32.mrb[53].mxu1  ;;  %v7852_v14 = vpop.f32.mrb[49].mxu0 }
0x13d2   :  { %v7815_v20 = vadd.f32 %v7814_v38, %v7813_v28  ;;  %v7853_v3 = vadd.f32 %v7852_v14, %v7851_v15 }
0x13d4   :  { %v3987_v10 = vadd.f32 %v7815_v20, %v3912_v26  ;;  %v7816_v48 = vpop.f32.mrb[54].mxu1  ;;  %v7854_v55 = vpop.f32.mrb[50].mxu0 }
0x13d5   :  { %v7817_v61 = vpop.f32.mrb[55].mxu1  ;;  %v7855_v43 = vpop.f32.mrb[51].mxu0 }
0x13d6   :  { %v4062_v12 = vadd.f32 %v7853_v3, %v3987_v10  ;;  %v7818_v5 = vadd.f32 %v7817_v61, %v7816_v48  ;;  %v7856_v59 = vadd.f32 %v7855_v43, %v7854_v55  ;;  %v7373_v55 = vld [vmem:[%s11226_s24] ss:$0 sm:$0xff] }
0x13d7   :  { %v7374_v43 = vld [vmem:[%s11231_s15] ss:$0 sm:$0xff] }
0x13d8   :  { %v3992_v7 = vadd.f32 %v7818_v5, %v3917_v35  ;;  %v4070_v56 = vadd.f32 %v4062_v12, %v10211_v57 }
0x13da   :  { %v4067_v52 = vadd.f32 %v7856_v59, %v3992_v7  ;;  %v4074_v40 = vsel %vm152_vm0, %v4070_v56, 0.0 }
0x13db   :  { %4075 = vadd.xlane.f32.xlu0 %v4074_v40 }
0x13dc   :  { %v4071_v60 = vadd.f32 %v4067_v52, %v10235_v45 }
0x13de   :  { %v4077_v39 = vsel %vm152_vm0, %v4071_v60, 0.0 }
0x13df   :  { %4078 = vadd.xlane.f32.xlu1 %v4077_v39  ;;  %v9624_v39 = vld [vmem:[%s9739_s17] ss:$0 sm:$0xff] }
0x1468   :  { %v4076_v37 = vpop.xlane.xlu0 %4075 }
0x1469   :  { %v4080_v46 = vmul.f32 0.03125, %v4076_v37 }
0x146b   :  { %v4082_v26 = vsub.f32 %v4070_v56, %v4080_v46 }
0x146c   :  { %v4079_v53 = vpop.xlane.xlu1 %4078 }
0x146d   :  { %v4081_v32 = vmul.f32 0.03125, %v4079_v53  ;;  %v4084_v51 = vmul.f32 %v4082_v26, %v4082_v26  ;;  %v9625_v53 = vld [vmem:[%s9744_s21] ss:$0 sm:$0xff] }
0x146f   :  { %v4083_v28 = vsub.f32 %v4071_v60, %v4081_v32  ;;  %v4086_v35 = vsel %vm152_vm0, %v4084_v51, 0.0 }
0x1470   :  { %4087 = vadd.xlane.f32.xlu0 %v4086_v35 }
0x1471   :  { %v4085_v57 = vmul.f32 %v4083_v28, %v4083_v28 }
0x1473   :  { %v4089_v15 = vsel %vm152_vm0, %v4085_v57, 0.0 }
0x1474   :  { %4090 = vadd.xlane.f32.xlu1 %v4089_v15 }
0x14fd   :  { %v4088_v38 = vpop.xlane.xlu0 %4087 }
0x14fe   :  { %v4092_v14 = vmul.f32 0.03125, %v4088_v38 }
0x1500   :  { %v4094_v45 = vadd.f32 1e-05, %v4092_v14 }
0x1501   :  { %v4091_v20 = vpop.xlane.xlu1 %4090 }
0x1502   :  { %9572 = vrsqrt.f32 %v4094_v45  ;;  %v4093_v3 = vmul.f32 0.03125, %v4091_v20 }
0x1504   :  { %v4095_v10 = vadd.f32 1e-05, %v4093_v3 }
0x1506   :  { %9574 = vrsqrt.f32 %v4095_v10 }
0x150c   :  { %v9573_v48 = vpop.eup %9572 }
0x150d   :  { %v4098_v61 = vmul.f32 %v9573_v48, %v4082_v26  ;;  %v11273_v48 = vld [vmem:[%s9784_s29 + $0x8] sm:$0xff] }
0x150f   :  { %v4106_v12 = vmul.f32 %v7373_v55, %v4098_v61 }
0x1510   :  { %v9575_v5 = vpop.eup %9574 }
0x1511   :  { %v11235_v59 = vadd.f32 %v7374_v43, %v4106_v12  ;;  %v4099_v7 = vmul.f32 %v9575_v5, %v4083_v28  ;;  %v9626_v28 = vld [vmem:[%s9801_s3] ss:$0 sm:$0xff]  ;;  %v9629_v5 = vld [vmem:[%s9739_s17 + $0x1] ss:$0 sm:$0xff]  ;;  %s9677_s17 = smov 30  }
0x1513   :  { %v4107_v56 = vmul.f32 %v7373_v55, %v4099_v7  ;;  %8469 = vmatprep.mubr.msk.f32.mxu1 %vm152_vm0, %v11235_v59  ;;  %8480 = vmatprep.mubr.msk.f32.mxu0 %vm152_vm0, %v11235_v59  ;;  %v11277_v55 = vld [vmem:[%s9784_s29] sm:$0xff] }
0x1515   :  { %v11241_v52 = vadd.f32 %v7374_v43, %v4107_v56 }
0x1517   :  { %8470 = vmatmul.mubr.msk.f32.vlgmr.msra.gmra.mrb[56].mxu1 %vm152_vm0, %v11241_v52  ;;  %8481 = vmatmul.mubr.msk.f32.vlgmr.msra.gmra.mrb[52].mxu0 %vm152_vm0, %v11241_v52 }
0x1518   :  { %9088 = vmatpush3.bf16.msra.mxu1 %v9768_v29  ;;  %8491 = vmatprep.mubr.msk.f32.mxu1 %vm152_vm0, %v11235_v59 }
0x1519   :  { %9090 = vmatprep.subr.bf16.mxu1 %v9771_v31 }
0x151c   :  { %9092 = vmatpush3.bf16.msra.mxu1 %v9771_v31 }
0x151f   :  { %8492 = vmatmul.mubr.msk.f32.vlgmr.msra.gmra.mrb[58].mxu1 %vm152_vm0, %v11241_v52 }
0x15ea   :  { %v8471_v40 = vpop.f32.mrb[56].mxu1  ;;  %v8482_v60 = vpop.f32.mrb[52].mxu0 }
0x15eb   :  { %v4269_v37 = vadd.f32 %v9624_v39, %v8482_v60  ;;  %v4188_v46 = vpop.f32.mrb[57].mxu1  ;;  %v4263_v26 = vpop.f32.mrb[53].mxu0  ;;  %v4194_v38 = vadd.f32 %v9625_v53, %v8471_v40 }
0x15ec   :  { %v4189_v32 = vadd.f32 %v9625_v53, %v4188_v46  ;;  %v4264_v29 = vadd.f32 %v9624_v39, %v4263_v26 }
0x15ee   :  { %v9093_v51 = vpack.c.bf16 %v4269_v37, %v4264_v29  ;;  %8498 = vmatprep.mubr.msk.f32.mxu0 %vm406_vm1, %v4189_v32 }
0x15f0   :  { %9095 = vmatprep.subr.msk.bf16.mxu0 %vm9750_vm2, %v9093_v51 }
0x15f1   :  { %9098 = vmatpush3.bf16.xpose.msk.msra.mxu0 %vm9750_vm2, %v9093_v51 }
0x15f2   :  { %v8493_v31 = vpop.f32.mrb[58].mxu1  ;;  %9112 = vmatprep.subr.bf16.mxu0 %v9805_v54 }
0x15f3   :  { %v4344_v35 = vadd.f32 %v9626_v28, %v8493_v31  ;;  %v4338_v57 = vpop.f32.mrb[59].mxu1 }
0x15f4   :  { %v4339_v15 = vadd.f32 %v9626_v28, %v4338_v57 }
0x15f6   :  { %v9099_v14 = vpack.c.bf16 %v4344_v35, %v4339_v15 }
0x15f8   :  { %9100 = vmatprep.subr.bf16.mxu1 %v9099_v14  ;;  %8499 = vmatmul.mubr.msk.f32.vlgmr.msra.gmra.mrb[54].mxu0 %vm406_vm1, %v4194_v38 }
0x15f9   :  { %9102 = vmatpush3.bf16.msra.mxu1 %v9099_v14  ;;  %9114 = vmatpush3.bf16.msra.mxu0 %v9805_v54 }
0x15fa   :  { %8527 = vmatprep.mubr.msk.f32.mxu0 %vm152_vm0, %v11235_v59  ;;  %9116 = vmatprep.subr.bf16.mxu0 %v9812_v62 }
0x15fb   :  { %9104 = vmatprep.subr.bf16.mxu1 %v9820_v2 }
0x15fd   :  { %9118 = vmatpush3.bf16.msra.mxu0 %v9812_v62 }
0x1600   :  { %8528 = vmatmul.mubr.msk.f32.vlgmr.msra.gmra.mrb[56].mxu0 %vm152_vm0, %v11241_v52 }
0x16cb   :  { %v8500_v45 = vpop.f32.mrb[54].mxu0 }
0x16cc   :  { %v4435_v20 = vmul.f32 0.25, %v8500_v45  ;;  %v4425_v3 = vpop.f32.mrb[55].mxu0  ;;  %v12086_v45 = vld [vmem:[#allocation2_spill] sm:$0xff] }
0x16cd   :  { %v4434_v10 = vmul.f32 0.25, %v4425_v3 }
0x16ce   :  { %v4437_v54 = vadd.f32 %v11273_v48, %v4435_v20  ;;  %v12087_v20 = vld [vmem:[#allocation3_spill] sm:$0xff] }
0x16cf   :  { %v4436_v61 = vadd.f32 %v11277_v55, %v4434_v10 }
0x16d0   :  { %v4441_v43 = vsel %vm406_vm1, %v4437_v54, -inf }
0x16d1   :  { %4442 = vmax.xlane.f32.xlu1 %v4441_v43  ;;  %v4438_v62 = vsel %vm406_vm1, %v4436_v61, -inf }
0x16d2   :  { %4439 = vmax.xlane.f32.xlu0 %v4438_v62  ;;  %v12088_v62 = vld [vmem:[#allocation4_spill] sm:$0xff] }
0x16d3   :  { %v8529_v12 = vpop.f32.mrb[56].mxu0 }
0x16d4   :  { %v4688_v7 = vadd.f32 %v9629_v5, %v8529_v12  ;;  %v4682_v56 = vpop.f32.mrb[57].mxu0 }
0x16d5   :  { %v4683_v40 = vadd.f32 %v9629_v5, %v4682_v56  ;;  %v9631_v5 = vld [vmem:[%s9801_s3 + $0x1] ss:$0 sm:$0xff]  ;;  %s7249_s3 = sld [smem:[%s11721_s0 + %s9677_s17]]  }
0x16d7   :  { %v9127_v60 = vpack.c.bf16 %v4688_v7, %v4683_v40 }
0x16d9   :  { %9129 = vmatprep.subr.msk.bf16.mxu0 %vm9750_vm2, %v9127_v60 }
0x16da   :  { %9132 = vmatpush3.bf16.xpose.msk.msra.mxu0 %vm9750_vm2, %v9127_v60 }
0x16db   :  { %9138 = vmatprep.subr.bf16.mxu0 %v9874_v8 }
0x175e   :  { %v4443_v39 = vpop.xlane.xlu1 %4442 }
0x175f   :  { %v4445_v37 = vsub.f32 %v4437_v54, %v4443_v39  ;;  %v4440_v46 = vpop.xlane.xlu0 %4439  ;;  %v9630_v54 = vld [vmem:[%s9744_s21 + $0x1] ss:$0 sm:$0xff]  ;;  %v12089_v39 = vld [vmem:[#allocation5_spill] sm:$0xff] }
0x1760   :  { %v4444_v26 = vsub.f32 %v4436_v61, %v4440_v46 }
0x1761   :  { %v4448_v53 = vmul.f32 1.442695, %v4445_v37 }
0x1762   :  { %v4446_v32 = vmul.f32 1.442695, %v4444_v26 }
0x1763   :  { %9576 = vpow2.f32 %v4448_v53 }
0x1764   :  { %9578 = vpow2.f32 %v4446_v32 }
0x176d   :  { %v9577_v29 = vpop.eup %9576 }
0x176e   :  { %v9579_v51 = vpop.eup %9578  ;;  %v4453_v31 = vsel %vm406_vm1, %v9577_v29, 0.0 }
0x176f   :  { %4454 = vadd.xlane.f32.xlu1 %v4453_v31  ;;  %v4450_v28 = vsel %vm406_vm1, %v9579_v51, 0.0 }
0x1770   :  { %4451 = vadd.xlane.f32.xlu0 %v4450_v28 }
0x17fc   :  { %v4455_v21 = vpop.xlane.xlu1 %4454 }
0x17fd   :  { %9580 = vrcp.f32 %v4455_v21  ;;  %v4452_v35 = vpop.xlane.xlu0 %4451 }
0x17fe   :  { %9582 = vrcp.f32 %v4452_v35 }
0x1807   :  { %v9581_v57 = vpop.eup %9580 }
0x1808   :  { %v9583_v15 = vpop.eup %9582  ;;  %v4459_v14 = vmul.f32 %v9581_v57, %v9577_v29 }
0x1809   :  { %v4458_v38 = vmul.f32 %v9583_v15, %v9579_v51 }
0x180b   :  { %8505 = vmatprep.mubr.msk.f32.mxu1 %vm406_vm1, %v4458_v38 }
0x180c   :  { %8506 = vmatmul.mubr.msk.f32.vlgmr.msra.gmra.mrb[60].mxu1 %vm406_vm1, %v4459_v14 }
0x180d   :  { %9106 = vmatpush3.bf16.msra.mxu1 %v9820_v2  ;;  %8516 = vmatprep.mubr.msk.f32.mxu1 %vm152_vm0, %v11235_v59 }
0x180e   :  { %9108 = vmatprep.subr.bf16.mxu1 %v9826_v17 }
0x1811   :  { %9110 = vmatpush3.bf16.msra.mxu1 %v9826_v17 }
0x1812   :  { %9120 = vmatprep.subr.bf16.mxu1 %v12086_v45 }
0x1814   :  { %8517 = vmatmul.mubr.msk.f32.vlgmr.msra.gmra.mrb[62].mxu1 %vm152_vm0, %v11241_v52 }
0x1815   :  { %9122 = vmatpush3.bf16.msra.mxu1 %v12086_v45  ;;  %8538 = vmatprep.mubr.msk.f32.mxu1 %vm152_vm0, %v11235_v59 }
0x1816   :  { %9124 = vmatprep.subr.bf16.mxu1 %v12087_v20 }
0x1819   :  { %9126 = vmatpush3.bf16.msra.mxu1 %v12087_v20 }
0x181c   :  { %8539 = vmatmul.mubr.msk.f32.vlgmr.msra.gmra.mrb[64].mxu1 %vm152_vm0, %v11241_v52 }
0x18df   :  { %v11307_v2 = vpop.f32.mrb[60].mxu1 }
0x18e0   :  { %v4532_v17 = vpop.f32.mrb[61].mxu1 }
0x18e7   :  { %v8518_v3 = vpop.f32.mrb[62].mxu1 }
0x18e8   :  { %v4607_v10 = vpop.f32.mrb[63].mxu1  ;;  %v4613_v43 = vadd.f32 %v9630_v54, %v8518_v3 }
0x18e9   :  { %v4608_v61 = vadd.f32 %v9630_v54, %v4607_v10 }
0x18eb   :  { %8545 = vmatprep.mubr.msk.f32.mxu0 %vm406_vm1, %v4608_v61 }
0x18ec   :  { %8546 = vmatmul.mubr.msk.f32.vlgmr.msra.gmra.mrb[58].mxu0 %vm406_vm1, %v4613_v43  ;;  %v12090_v43 = vld [vmem:[#allocation6_spill] sm:$0xff] }
0x18ed   :  { %9140 = vmatpush3.bf16.msra.mxu0 %v9874_v8 }
0x18ee   :  { %9142 = vmatprep.subr.bf16.mxu0 %v12088_v62 }
0x18ef   :  { %v8540_v12 = vpop.f32.mrb[64].mxu1 }
0x18f0   :  { %v4763_v7 = vadd.f32 %v9631_v5, %v8540_v12  ;;  %v4757_v56 = vpop.f32.mrb[65].mxu1  ;;  %v12091_v12 = vld [vmem:[#allocation10_spill] sm:$0xff] }
0x18f1   :  { %v4758_v40 = vadd.f32 %v9631_v5, %v4757_v56  ;;  %v12092_v56 = vld [vmem:[#allocation7_spill] sm:$0xff] }
0x18f3   :  { %v9133_v60 = vpack.c.bf16 %v4763_v7, %v4758_v40  ;;  %v12093_v40 = vld [vmem:[#allocation8_spill] sm:$0xff] }
0x18f5   :  { %9134 = vmatprep.subr.bf16.mxu1 %v9133_v60 }
0x18f6   :  { %9136 = vmatpush3.bf16.msra.mxu1 %v9133_v60 }
0x18f7   :  { %9146 = vmatprep.subr.bf16.mxu1 %v12089_v39 }
0x19bf   :  { %v8547_v37 = vpop.f32.mrb[58].mxu0 }
0x19c0   :  { %v4854_v46 = vmul.f32 0.25, %v8547_v37  ;;  %v4844_v26 = vpop.f32.mrb[59].mxu0 }
0x19c1   :  { %v4853_v53 = vmul.f32 0.25, %v4844_v26 }
0x19c2   :  { %v4856_v32 = vadd.f32 %v11273_v48, %v4854_v46 }
0x19c3   :  { %v4855_v8 = vadd.f32 %v11277_v55, %v4853_v53 }
0x19c4   :  { %v4860_v29 = vsel %vm406_vm1, %v4856_v32, -inf }
0x19c5   :  { %4861 = vmax.xlane.f32.xlu1 %v4860_v29  ;;  %v4857_v51 = vsel %vm406_vm1, %v4855_v8, -inf }
0x19c6   :  { %4858 = vmax.xlane.f32.xlu0 %v4857_v51 }
0x1a52   :  { %v4862_v31 = vpop.xlane.xlu1 %4861 }
0x1a53   :  { %v4864_v28 = vsub.f32 %v4856_v32, %v4862_v31  ;;  %v4859_v21 = vpop.xlane.xlu0 %4858 }
0x1a54   :  { %v4863_v35 = vsub.f32 %v4855_v8, %v4859_v21 }
0x1a55   :  { %v4867_v57 = vmul.f32 1.442695, %v4864_v28 }
0x1a56   :  { %v4865_v15 = vmul.f32 1.442695, %v4863_v35 }
0x1a57   :  { %9584 = vpow2.f32 %v4867_v57 }
0x1a58   :  { %9586 = vpow2.f32 %v4865_v15 }
0x1a61   :  { %v9585_v38 = vpop.eup %9584 }
0x1a62   :  { %v9587_v14 = vpop.eup %9586  ;;  %v4872_v48 = vsel %vm406_vm1, %v9585_v38, 0.0 }
0x1a63   :  { %4873 = vadd.xlane.f32.xlu1 %v4872_v48  ;;  %v4869_v55 = vsel %vm406_vm1, %v9587_v14, 0.0 }
0x1a64   :  { %4870 = vadd.xlane.f32.xlu0 %v4869_v55 }
0x1af0   :  { %v4874_v45 = vpop.xlane.xlu1 %4873 }
0x1af1   :  { %9588 = vrcp.f32 %v4874_v45  ;;  %v4871_v20 = vpop.xlane.xlu0 %4870 }
0x1af2   :  { %9590 = vrcp.f32 %v4871_v20 }
0x1afb   :  { %v9589_v3 = vpop.eup %9588 }
0x1afc   :  { %v9591_v10 = vpop.eup %9590  ;;  %v4878_v61 = vmul.f32 %v9589_v3, %v9585_v38 }
0x1afd   :  { %v4877_v54 = vmul.f32 %v9591_v10, %v9587_v14 }
0x1aff   :  { %8552 = vmatprep.mubr.msk.f32.mxu1 %vm406_vm1, %v4877_v54  ;;  %v9633_v54 = vld [vmem:[%s9943_s30] ss:$0 sm:$0xff] }
0x1b00   :  { %8553 = vmatmul.mubr.msk.f32.vlgmr.msra.gmra.mrb[66].mxu1 %vm406_vm1, %v4878_v61 }
0x1b01   :  { %9148 = vmatpush3.bf16.msra.mxu1 %v12089_v39  ;;  %v9632_v39 = vld [vmem:[%s9893_s11] ss:$0 sm:$0xff]  ;;  %s9678_s11 = smov 31  }
0x1b02   :  { %9150 = vmatprep.subr.bf16.mxu1 %v12090_v43 }
0x1b05   :  { %9152 = vmatpush3.bf16.msra.mxu1 %v12090_v43 }
0x1b06   :  { %8585 = vmatprep.subr.msk.mxu1 %vm1656_vm5, %v12091_v12 }
0x1bd3   :  { %v8554_v5 = vpop.f32.mrb[66].mxu1 }
0x1bd4   :  { %v4951_v7 = vpop.f32.mrb[67].mxu1 }
0x1bd5   :  { %8559 = vmatprep.mubr.msk.f32.mxu0 %vm406_vm1, %v4951_v7 }
0x1bd6   :  { %8560 = vmatmul.mubr.msk.f32.vlgmr.msra.gmra.mrb[60].mxu0 %vm406_vm1, %v8554_v5  ;;  %v9634_v5 = vld [vmem:[%s9948_s5] ss:$0 sm:$0xff] }
0x1bd7   :  { %9144 = vmatpush3.bf16.msra.mxu0 %v12088_v62  ;;  %8566 = vmatprep.mubr.msk.f32.mxu0 %vm406_vm1, %v4532_v17 }
0x1bd8   :  { %8580 = vmatprep.subr.msk.mxu0 %vm406_vm1, %v12092_v56 }
0x1bde   :  { %8567 = vmatmul.mubr.msk.f32.vlgmr.msra.gmra.mrb[60].mxu0 %vm406_vm1, %v11307_v2 }
0x1be0   :  { %8581 = vmatpush3.xpose.msk.msra.mxu0 %vm406_vm1, %v12092_v56 }
0x1be1   :  { %9154 = vmatprep.subr.bf16.mxu0 %v12093_v40 }
0x1cb1   :  { %v8568_v60 = vpop.f32.mrb[60].mxu0 }
0x1cb2   :  { %v5123_v37 = vadd.f32 %v9632_v39, %v8568_v60  ;;  %v5113_v46 = vpop.f32.mrb[61].mxu0  ;;  %v12094_v60 = vld [vmem:[#allocation11_spill] sm:$0xff] }
0x1cb3   :  { %v5122_v26 = vadd.f32 %v9632_v39, %v5113_v46  ;;  %v9635_v46 = vld [vmem:[%s9982_s14] ss:$0 sm:$0xff] }
0x1cb4   :  { %v5125_v62 = vadd.f32 %v5123_v37, %v11241_v52 }
0x1cb5   :  { %v5124_v17 = vadd.f32 %v5122_v26, %v11235_v59 }
0x1cb6   :  { %v5129_v53 = vsel %vm152_vm0, %v5125_v62, 0.0 }
0x1cb7   :  { %5130 = vadd.xlane.f32.xlu1 %v5129_v53  ;;  %v5126_v32 = vsel %vm152_vm0, %v5124_v17, 0.0  ;;  %v12097_v53 = vld [vmem:[#allocation14_spill] sm:$0xff] }
0x1cb8   :  { %5127 = vadd.xlane.f32.xlu0 %v5126_v32 }
0x1d44   :  { %v5131_v2 = vpop.xlane.xlu1 %5130 }
0x1d45   :  { %v5133_v8 = vmul.f32 0.03125, %v5131_v2  ;;  %v5128_v29 = vpop.xlane.xlu0 %5127 }
0x1d46   :  { %v5132_v51 = vmul.f32 0.03125, %v5128_v29  ;;  %v9636_v29 = vld [vmem:[%s10016_s25 + $0x8] sm:$0xff] }
0x1d47   :  { %v5135_v31 = vsub.f32 %v5125_v62, %v5133_v8 }
0x1d48   :  { %v5134_v28 = vsub.f32 %v5124_v17, %v5132_v51  ;;  %v12096_v17 = vld [vmem:[#allocation13_spill] sm:$0xff] }
0x1d49   :  { %v5137_v21 = vmul.f32 %v5135_v31, %v5135_v31 }
0x1d4a   :  { %v5136_v35 = vmul.f32 %v5134_v28, %v5134_v28 }
0x1d4b   :  { %v5141_v57 = vsel %vm152_vm0, %v5137_v21, 0.0 }
0x1d4c   :  { %5142 = vadd.xlane.f32.xlu1 %v5141_v57  ;;  %v5138_v59 = vsel %vm152_vm0, %v5136_v35, 0.0 }
0x1d4d   :  { %5139 = vadd.xlane.f32.xlu0 %v5138_v59 }
0x1dd9   :  { %v5143_v52 = vpop.xlane.xlu1 %5142 }
0x1dda   :  { %v5145_v15 = vmul.f32 0.03125, %v5143_v52  ;;  %v5140_v38 = vpop.xlane.xlu0 %5139 }
0x1ddb   :  { %v5144_v14 = vmul.f32 0.03125, %v5140_v38 }
0x1ddc   :  { %v5147_v48 = vadd.f32 1e-05, %v5145_v15 }
0x1ddd   :  { %v5146_v55 = vadd.f32 1e-05, %v5144_v14 }
0x1dde   :  { %9592 = vrsqrt.f32 %v5147_v48 }
0x1ddf   :  { %9594 = vrsqrt.f32 %v5146_v55 }
0x1de8   :  { %v9593_v45 = vpop.eup %9592 }
0x1de9   :  { %v9595_v20 = vpop.eup %9594  ;;  %v5151_v3 = vmul.f32 %v9593_v45, %v5135_v31  ;;  %v9637_v31 = vld [vmem:[%s10016_s25] sm:$0xff]  ;;  %s9679_s25 = smov 32  }
0x1dea   :  { %v5150_v10 = vmul.f32 %v9595_v20, %v5134_v28 }
0x1deb   :  { %v5153_v61 = vmul.f32 %v9633_v54, %v5151_v3 }
0x1dec   :  { %v5152_v43 = vmul.f32 %v9633_v54, %v5150_v10 }
0x1ded   :  { %v11351_v56 = vadd.f32 %v9634_v5, %v5153_v61 }
0x1dee   :  { %v11349_v7 = vadd.f32 %v9634_v5, %v5152_v43 }
0x1df0   :  { %8577 = vmatprep.mubr.msk.f32.mxu1 %vm152_vm0, %v11349_v7 }
0x1df1   :  { %8578 = vmatmul.mubr.msk.f32.vlgmr.msra.gmra.mrb[68].mxu1 %vm152_vm0, %v11351_v56 }
0x1df2   :  { %8586 = vmatpush3.msk.msra.mxu1 %vm1656_vm5, %v12091_v12  ;;  %v12095_v12 = vld [vmem:[#allocation9_spill] sm:$0xff] }
0x1df3   :  { %8601 = vmatprep.subr.msk.mxu1 %vm406_vm1, %v12094_v60 }
0x1ec4   :  { %v8579_v39 = vpop.f32.mrb[68].mxu1 }
0x1ec5   :  { %v5228_v37 = vpop.f32.mrb[69].mxu1  ;;  %v5234_v62 = vadd.f32 %v9635_v46, %v8579_v39 }
0x1ec6   :  { %v5229_v26 = vadd.f32 %v9635_v46, %v5228_v37  ;;  %v9638_v46 = vld [vmem:[%s9982_s14 + $0x1] ss:$0 sm:$0xff]  ;;  %s7250_s14 = sld [smem:[%s11721_s0 + %s9678_s11]]  }
0x1ec8   :  { %8582 = vmatprep.mubr.msk.f32.mxu0 %vm406_vm1, %v5229_v26 }
0x1ec9   :  { %8583 = vmatmul.mubr.msk.f32.vlgmr.msra.gmra.mrb[62].mxu0 %vm406_vm1, %v5234_v62 }
0x1eca   :  { %9156 = vmatpush3.bf16.msra.mxu0 %v12093_v40  ;;  %8598 = vmatprep.mubr.msk.f32.mxu0 %vm152_vm0, %v11349_v7 }
0x1ecb   :  { %9158 = vmatprep.subr.bf16.mxu0 %v12095_v12 }
0x1ece   :  { %9160 = vmatpush3.bf16.msra.mxu0 %v12095_v12  ;;  %v12098_v12 = vld [vmem:[#allocation12_spill] sm:$0xff] }
0x1ecf   :  { %9162 = vmatprep.subr.bf16.mxu0 %v12096_v17 }
0x1ed1   :  { %8599 = vmatmul.mubr.msk.f32.vlgmr.msra.gmra.mrb[64].mxu0 %vm152_vm0, %v11351_v56 }
0x1ed2   :  { %9164 = vmatpush3.bf16.msra.mxu0 %v12096_v17  ;;  %v12099_v17 = vld [vmem:[#allocation15_spill] sm:$0xff] }
0x1ed3   :  { %9166 = vmatprep.subr.bf16.mxu0 %v12097_v53 }
0x1f9c   :  { %v8584_v32 = vpop.f32.mrb[62].mxu0 }
0x1f9d   :  { %v5319_v2 = vmul.f32 0.25, %v8584_v32  ;;  %v5309_v8 = vpop.f32.mrb[63].mxu0 }
0x1f9e   :  { %v5318_v40 = vmul.f32 0.25, %v5309_v8 }
0x1f9f   :  { %v5321_v51 = vadd.f32 %v9636_v29, %v5319_v2 }
0x1fa0   :  { %v5320_v28 = vadd.f32 %v9637_v31, %v5318_v40 }
0x1fa1   :  { %v5325_v21 = vsel %vm1627_vm4, %v5321_v51, -inf }
0x1fa2   :  { %5326 = vmax.xlane.f32.xlu1 %v5325_v21  ;;  %v5322_v35 = vsel %vm1627_vm4, %v5320_v28, -inf }
0x1fa3   :  { %5323 = vmax.xlane.f32.xlu0 %v5322_v35 }
0x1fa4   :  { %v8600_v57 = vpop.f32.mrb[64].mxu0 }
0x1fa5   :  { %v5491_v59 = vpop.f32.mrb[65].mxu0  ;;  %v5497_v62 = vadd.f32 %v9638_v46, %v8600_v57 }
0x1fa6   :  { %v5492_v26 = vadd.f32 %v9638_v46, %v5491_v59  ;;  %v12103_v46 = vld [vmem:[#allocation21_spill] sm:$0xff] }
0x202f   :  { %v5327_v52 = vpop.xlane.xlu1 %5326 }
0x2030   :  { %v5329_v15 = vsub.f32 %v5321_v51, %v5327_v52  ;;  %v5324_v38 = vpop.xlane.xlu0 %5323 }
0x2031   :  { %v5328_v14 = vsub.f32 %v5320_v28, %v5324_v38 }
0x2032   :  { %v5332_v48 = vmul.f32 1.442695, %v5329_v15 }
0x2033   :  { %v5330_v55 = vmul.f32 1.442695, %v5328_v14 }
0x2034   :  { %9596 = vpow2.f32 %v5332_v48 }
0x2035   :  { %9598 = vpow2.f32 %v5330_v55 }
0x203e   :  { %v9597_v45 = vpop.eup %9596 }
0x203f   :  { %v9599_v20 = vpop.eup %9598  ;;  %v5337_v3 = vsel %vm1627_vm4, %v9597_v45, 0.0 }
0x2040   :  { %5338 = vadd.xlane.f32.xlu1 %v5337_v3  ;;  %v5334_v10 = vsel %vm1627_vm4, %v9599_v20, 0.0 }
0x2041   :  { %5335 = vadd.xlane.f32.xlu0 %v5334_v10 }
0x20cd   :  { %v5339_v54 = vpop.xlane.xlu1 %5338 }
0x20ce   :  { %9600 = vrcp.f32 %v5339_v54  ;;  %v5336_v61 = vpop.xlane.xlu0 %5335 }
0x20cf   :  { %9602 = vrcp.f32 %v5336_v61 }
0x20d8   :  { %v9601_v43 = vpop.eup %9600 }
0x20d9   :  { %v9603_v5 = vpop.eup %9602  ;;  %v5343_v37 = vmul.f32 %v9601_v43, %v9597_v45 }
0x20da   :  { %v5342_v39 = vmul.f32 %v9603_v5, %v9599_v20  ;;  %v12100_v5 = vld [vmem:[#allocation17_spill] sm:$0xff] }
0x20dc   :  { %8587 = vmatprep.mubr.msk.f32.mxu1 %vm1627_vm4, %v5342_v39  ;;  %v12101_v39 = vmov 0.0  }
0x20dd   :  { %8588 = vmatmul.mubr.msk.f32.vlgmr.msra.gmra.mrb[70].mxu1 %vm1627_vm4, %v5343_v37  ;;  %v12102_v37 = vld [vmem:[#allocation19_spill] sm:$0xff] }
0x20de   :  { %8602 = vmatpush3.xpose.msk.msra.mxu1 %vm406_vm1, %v12094_v60  ;;  %8603 = vmatprep.mubr.msk.f32.mxu1 %vm406_vm1, %v5492_v26  ;;  %v12104_v26 = vld [vmem:[#allocation23_spill] sm:$0xff] }
0x20df   :  { %8606 = vmatprep.subr.msk.mxu1 %vm1656_vm5, %v12098_v12 }
0x20e1   :  { %8604 = vmatmul.mubr.msk.f32.vlgmr.msra.gmra.mrb[72].mxu1 %vm406_vm1, %v5497_v62 }
0x20e2   :  { %8607 = vmatpush3.msk.msra.mxu1 %vm1656_vm5, %v12098_v12 }
0x20e3   :  { %9170 = vmatprep.subr.bf16.mxu1 %v12099_v17  ;;  %v12105_v17 = vld [vmem:[#allocation16_spill] sm:$0xff] }
0x21b0   :  { %v8589_v32 = vpop.f32.mrb[70].mxu1 }
0x21b1   :  { %v5416_v2 = vpop.f32.mrb[71].mxu1 }
0x21b4   :  { %v8605_v8 = vpop.f32.mrb[72].mxu1 }
0x21b5   :  { %v5582_v40 = vmul.f32 0.25, %v8605_v8  ;;  %v5572_v51 = vpop.f32.mrb[73].mxu1  ;;  %v12106_v8 = vld [vmem:[#allocation18_spill] sm:$0xff] }
0x21b6   :  { %v5581_v28 = vmul.f32 0.25, %v5572_v51  ;;  %v12108_v51 = vld [vmem:[#allocation22_spill] sm:$0xff] }
0x21b7   :  { %v5584_v60 = vadd.f32 %v9636_v29, %v5582_v40  ;;  %v12107_v40 = vld [vmem:[#allocation20_spill] sm:$0xff] }
0x21b8   :  { %v5583_v21 = vadd.f32 %v9637_v31, %v5581_v28  ;;  %v12109_v28 = vld [vmem:[#allocation24_spill] sm:$0xff] }
0x21b9   :  { %v5588_v35 = vsel %vm1627_vm4, %v5584_v60, -inf }
0x21ba   :  { %5589 = vmax.xlane.f32.xlu1 %v5588_v35  ;;  %v5585_v57 = vsel %vm1627_vm4, %v5583_v21, -inf }
0x21bb   :  { %5586 = vmax.xlane.f32.xlu0 %v5585_v57 }
0x2247   :  { %v5590_v59 = vpop.xlane.xlu1 %5589 }
0x2248   :  { %v5592_v52 = vsub.f32 %v5584_v60, %v5590_v59  ;;  %v5587_v15 = vpop.xlane.xlu0 %5586 }
0x2249   :  { %v5591_v38 = vsub.f32 %v5583_v21, %v5587_v15  ;;  %v9639_v21 = vld [vmem:[%s10112_s10] ss:$0 sm:$0xff] }
0x224a   :  { %v5595_v14 = vmul.f32 1.442695, %v5592_v52 }
0x224b   :  { %v5593_v48 = vmul.f32 1.442695, %v5591_v38 }
0x224c   :  { %9604 = vpow2.f32 %v5595_v14 }
0x224d   :  { %9606 = vpow2.f32 %v5593_v48 }
0x2256   :  { %v9605_v55 = vpop.eup %9604 }
0x2257   :  { %v9607_v45 = vpop.eup %9606  ;;  %v5600_v20 = vsel %vm1627_vm4, %v9605_v55, 0.0 }
0x2258   :  { %5601 = vadd.xlane.f32.xlu1 %v5600_v20  ;;  %v5597_v29 = vsel %vm1627_vm4, %v9607_v45, 0.0 }
0x2259   :  { %5598 = vadd.xlane.f32.xlu0 %v5597_v29 }
0x22e5   :  { %v5602_v31 = vpop.xlane.xlu1 %5601 }
0x22e6   :  { %9608 = vrcp.f32 %v5602_v31  ;;  %v5599_v3 = vpop.xlane.xlu0 %5598 }
0x22e7   :  { %9610 = vrcp.f32 %v5599_v3 }
0x22f0   :  { %v9609_v10 = vpop.eup %9608 }
0x22f1   :  { %v9611_v54 = vpop.eup %9610  ;;  %v5606_v43 = vmul.f32 %v9609_v10, %v9605_v55 }
0x22f2   :  { %v5605_v61 = vmul.f32 %v9611_v54, %v9607_v45 }
0x22f4   :  { %8608 = vmatprep.mubr.msk.f32.mxu1 %vm1627_vm4, %v5605_v61 }
0x22f5   :  { %8609 = vmatmul.mubr.msk.f32.vlgmr.msra.gmra.mrb[74].mxu1 %vm1627_vm4, %v5606_v43 }
0x22f6   :  { %9172 = vmatpush1.bf16.msra.mxu1 %v12100_v5  ;;  %5954 = vmatprep.mubr.f32.mxu1 %v12101_v39 }
0x22f7   :  { %9174 = vmatprep.subr.bf16.mxu1 %v12102_v37 }
0x22fa   :  { %9176 = vmatpush1.bf16.msra.mxu1 %v12103_v46 }
0x22fb   :  { %9186 = vmatprep.subr.bf16.mxu1 %v12104_v26 }
0x23c8   :  { %v8610_v62 = vpop.f32.mrb[74].mxu1 }
0x23c9   :  { %v5679_v12 = vpop.f32.mrb[75].mxu1 }
0x23ca   :  { %8615 = vmatprep.mubr.msk.f32.mxu0 %vm406_vm1, %v5679_v12 }
0x23cb   :  { %8616 = vmatmul.mubr.msk.f32.vlgmr.msra.gmra.mrb[66].mxu0 %vm406_vm1, %v8610_v62  ;;  %v9640_v62 = vld [vmem:[%s10187_s23] ss:$0 sm:$0xff] }
0x23cc   :  { %9168 = vmatpush3.bf16.msra.mxu0 %v12097_v53  ;;  %8622 = vmatprep.mubr.msk.f32.mxu0 %vm406_vm1, %v5416_v2 }
0x23cd   :  { %9178 = vmatprep.subr.bf16.mxu0 %v12105_v17 }
0x23d3   :  { %8623 = vmatmul.mubr.msk.f32.vlgmr.msra.gmra.mrb[66].mxu0 %vm406_vm1, %v8589_v32 }
0x23d4   :  { %9180 = vmatpush1.bf16.msra.mxu0 %v12106_v8  ;;  %6031 = vmatprep.mubr.f32.mxu0 %v12101_v39  ;;  %v9641_v8 = vld [vmem:[%s10192_s28] ss:$0 sm:$0xff]  ;;  %s7251_s28 = sld [smem:[%s11721_s0 + %s9679_s25]]  }
0x23d5   :  { %9182 = vmatprep.subr.bf16.mxu0 %v12107_v40 }
0x23d8   :  { %9184 = vmatpush1.bf16.msra.mxu0 %v12108_v51  ;;  %v12110_v51 = vld [vmem:[#allocation25_spill] sm:$0xff] }
0x23d9   :  { %9194 = vmatprep.subr.bf16.mxu0 %v12109_v28  ;;  %v12111_v28 = vld [vmem:[#allocation26_spill] sm:$0xff] }
0x24a6   :  { %v8624_v60 = vpop.f32.mrb[66].mxu0 }
0x24a7   :  { %v5851_v35 = vadd.f32 %v9639_v21, %v8624_v60  ;;  %v5841_v53 = vpop.f32.mrb[67].mxu0 }
0x24a8   :  { %v5850_v57 = vadd.f32 %v9639_v21, %v5841_v53  ;;  %v12112_v21 = vld [vmem:[#allocation27_spill] sm:$0xff]  ;;  %v12114_v53 = vld [vmem:[#allocation29_spill] sm:$0xff] }
0x24a9   :  { %v5853_v2 = vadd.f32 %v5851_v35, %v11351_v56  ;;  %v12113_v35 = vld [vmem:[#allocation28_spill] sm:$0xff] }
0x24aa   :  { %v5852_v59 = vadd.f32 %v5850_v57, %v11349_v7  ;;  %v12115_v57 = vld [vmem:[#allocation30_spill] sm:$0xff] }
0x24ab   :  { %v5857_v32 = vsel %vm152_vm0, %v5853_v2, 0.0 }
0x24ac   :  { %5858 = vadd.xlane.f32.xlu1 %v5857_v32  ;;  %v5854_v52 = vsel %vm152_vm0, %v5852_v59, 0.0  ;;  %v12118_v32 = vld [vmem:[#allocation33_spill] sm:$0xff] }
0x24ad   :  { %5855 = vadd.xlane.f32.xlu0 %v5854_v52  ;;  %v12119_v52 = vld [vmem:[#allocation34_spill] sm:$0xff] }
0x2539   :  { %v5859_v15 = vpop.xlane.xlu1 %5858 }
0x253a   :  { %v5861_v38 = vmul.f32 0.03125, %v5859_v15  ;;  %v5856_v14 = vpop.xlane.xlu0 %5855  ;;  %v12120_v15 = vld [vmem:[#allocation35_spill] sm:$0xff] }
0x253b   :  { %v5860_v48 = vmul.f32 0.03125, %v5856_v14  ;;  %v12122_v14 = vld [vmem:[#allocation37_spill] sm:$0xff] }
0x253c   :  { %v5863_v55 = vsub.f32 %v5853_v2, %v5861_v38  ;;  %v12116_v2 = vld [vmem:[#allocation31_spill] sm:$0xff]  ;;  %v12121_v38 = vld [vmem:[#allocation36_spill] sm:$0xff] }
0x253d   :  { %v5862_v45 = vsub.f32 %v5852_v59, %v5860_v48  ;;  %v12117_v59 = vld [vmem:[#allocation32_spill] sm:$0xff]  ;;  %v12123_v48 = vld [vmem:[#allocation38_spill] sm:$0xff] }
0x253e   :  { %v5865_v20 = vmul.f32 %v5863_v55, %v5863_v55 }
0x253f   :  { %v5864_v29 = vmul.f32 %v5862_v45, %v5862_v45 }
0x2540   :  { %v5869_v31 = vsel %vm152_vm0, %v5865_v20, 0.0  ;;  %v12126_v20 = vld [vmem:[#allocation41_spill] sm:$0xff] }
0x2541   :  { %5870 = vadd.xlane.f32.xlu1 %v5869_v31  ;;  %v5866_v7 = vsel %vm152_vm0, %v5864_v29, 0.0  ;;  %v12127_v29 = vld [vmem:[#allocation42_spill] sm:$0xff]  ;;  %v12128_v31 = vld [vmem:[#allocation43_spill] sm:$0xff] }
0x2542   :  { %5867 = vadd.xlane.f32.xlu0 %v5866_v7  ;;  %v12129_v7 = vld [vmem:[#allocation44_spill] sm:$0xff] }
0x25ce   :  { %v5871_v56 = vpop.xlane.xlu1 %5870 }
0x25cf   :  { %v5873_v3 = vmul.f32 0.03125, %v5871_v56  ;;  %v5868_v10 = vpop.xlane.xlu0 %5867  ;;  %v12130_v56 = vld [vmem:[#allocation45_spill] sm:$0xff] }
0x25d0   :  { %v5872_v54 = vmul.f32 0.03125, %v5868_v10  ;;  %v12132_v10 = vld [vmem:[#allocation47_spill] sm:$0xff] }
0x25d1   :  { %v5875_v61 = vadd.f32 1e-05, %v5873_v3  ;;  %v12131_v3 = vld [vmem:[#allocation46_spill] sm:$0xff] }
0x25d2   :  { %v5874_v43 = vadd.f32 1e-05, %v5872_v54  ;;  %v12133_v54 = vld [vmem:[#allocation48_spill] sm:$0xff] }
0x25d3   :  { %9612 = vrsqrt.f32 %v5875_v61  ;;  %v12134_v61 = vld [vmem:[#allocation49_spill] sm:$0xff] }
0x25d4   :  { %9614 = vrsqrt.f32 %v5874_v43  ;;  %v12135_v43 = vld [vmem:[#allocation50_spill] sm:$0xff] }
0x25dd   :  { %v9613_v5 = vpop.eup %9612 }
0x25de   :  { %v9615_v37 = vpop.eup %9614  ;;  %v5879_v46 = vmul.f32 %v9613_v5, %v5863_v55  ;;  %v12124_v55 = vld [vmem:[#allocation39_spill] sm:$0xff] }
0x25df   :  { %v5878_v26 = vmul.f32 %v9615_v37, %v5862_v45  ;;  %v12125_v45 = vld [vmem:[#allocation40_spill] sm:$0xff]  ;;  %v12136_v5 = vld [vmem:[#allocation51_spill] sm:$0xff] }
0x25e0   :  { %v5881_v17 = vmul.f32 %v9640_v62, %v5879_v46  ;;  %v12137_v37 = vld [vmem:[#allocation52_spill] sm:$0xff]  ;;  %v12138_v46 = vld [vmem:[#allocation53_spill] sm:$0xff] }
0x25e1   :  { %v5880_v12 = vmul.f32 %v9640_v62, %v5878_v26  ;;  %v12139_v26 = vld [vmem:[#allocation54_spill] sm:$0xff]  ;;  %v12140_v62 = vld [vmem:[#allocation55_spill] sm:$0xff] }
0x25e2   :  { %v11431_v60 = vadd.f32 %v9641_v8, %v5881_v17  ;;  %v12143_v17 = vld [vmem:[#allocation58_spill] sm:$0xff] }
0x25e3   :  { %v11423_v40 = vadd.f32 %v9641_v8, %v5880_v12  ;;  %v12142_v12 = vld [vmem:[#allocation57_spill] sm:$0xff]  ;;  %v12144_v8 = vld [vmem:[#allocation59_spill] sm:$0xff] }
0x25e5   :  { %7423 = vmatmul.mubr.msk.f32.vlgmr.msra.gmra.mrb[76].mxu1 %vm152_vm0, %v11423_v40  ;;  %7425 = vmatmul.mubr.msk.f32.vlgmr.msra.gmra.mrb[68].mxu0 %vm152_vm0, %v11423_v40 }
0x25e6   :  { %9188 = vmatpush1.bf16.msra.mxu1 %v12110_v51  ;;  %9196 = vmatpush1.bf16.msra.mxu0 %v12111_v28  ;;  %v12145_v51 = vld [vmem:[#allocation60_spill] sm:$0xff]  ;;  %v12146_v28 = vld [vmem:[#allocation61_spill] sm:$0xff] }
0x25e7   :  { %5960 = vmatprep.mubr.f32.mxu1 %v12101_v39  ;;  %6037 = vmatprep.mubr.f32.mxu0 %v12101_v39 }
0x25e8   :  { %9190 = vmatprep.subr.bf16.mxu1 %v12112_v21  ;;  %9198 = vmatprep.subr.bf16.mxu0 %v12113_v35  ;;  %v12147_v21 = vld [vmem:[#allocation62_spill] sm:$0xff]  ;;  %v12148_v35 = vld [vmem:[#allocation63_spill] sm:$0xff] }
0x25e9   :  { %7424 = vmatmul.mubr.msk.f32.gmra.mrb[78].mxu1 %vm152_vm0, %v11431_v60  ;;  %7426 = vmatmul.mubr.msk.f32.gmra.mrb[70].mxu0 %vm152_vm0, %v11431_v60 }
0x25ea   :  { %9192 = vmatpush1.bf16.msra.mxu1 %v12114_v53  ;;  %9200 = vmatpush1.bf16.msra.mxu0 %v12115_v57  ;;  %v12149_v53 = vld [vmem:[#allocation64_spill] sm:$0xff]  ;;  %v12150_v57 = vld [vmem:[#allocation65_spill] sm:$0xff] }
0x25eb   :  { %6108 = vmatprep.mubr.f32.mxu1 %v12101_v39  ;;  %6185 = vmatprep.mubr.f32.mxu0 %v12101_v39 }
0x25ec   :  { %9202 = vmatprep.subr.bf16.mxu1 %v12116_v2  ;;  %9210 = vmatprep.subr.bf16.mxu0 %v12117_v59  ;;  %v12151_v2 = vld [vmem:[#allocation66_spill] sm:$0xff]  ;;  %v12152_v59 = vld [vmem:[#allocation67_spill] sm:$0xff] }
0x25ed   :  { %7427 = vmatmul.mubr.msk.f32.vlgmr.msra.gmra.mrb[80].mxu1 %vm152_vm0, %v11423_v40  ;;  %7429 = vmatmul.mubr.msk.f32.vlgmr.msra.gmra.mrb[72].mxu0 %vm152_vm0, %v11423_v40 }
0x25ee   :  { %9204 = vmatpush1.bf16.msra.mxu1 %v12118_v32  ;;  %9212 = vmatpush1.bf16.msra.mxu0 %v12119_v52  ;;  %v12153_v32 = vld [vmem:[#allocation68_spill] sm:$0xff]  ;;  %v12154_v52 = vld [vmem:[#allocation69_spill] sm:$0xff] }
0x25ef   :  { %6114 = vmatprep.mubr.f32.mxu1 %v12101_v39  ;;  %6191 = vmatprep.mubr.f32.mxu0 %v12101_v39 }
0x25f0   :  { %9206 = vmatprep.subr.bf16.mxu1 %v12120_v15  ;;  %9214 = vmatprep.subr.bf16.mxu0 %v12121_v38  ;;  %v12155_v15 = vld [vmem:[#allocation70_spill] sm:$0xff]  ;;  %v12156_v38 = vld [vmem:[#allocation71_spill] sm:$0xff] }
0x25f1   :  { %7428 = vmatmul.mubr.msk.f32.gmra.mrb[82].mxu1 %vm152_vm0, %v11431_v60  ;;  %7430 = vmatmul.mubr.msk.f32.gmra.mrb[74].mxu0 %vm152_vm0, %v11431_v60 }
0x25f2   :  { %9208 = vmatpush1.bf16.msra.mxu1 %v12122_v14  ;;  %9216 = vmatpush1.bf16.msra.mxu0 %v12123_v48  ;;  %v12157_v14 = vld [vmem:[#allocation72_spill] sm:$0xff]  ;;  %v12158_v48 = vld [vmem:[#allocation73_spill] sm:$0xff] }
0x25f3   :  { %6262 = vmatprep.mubr.f32.mxu1 %v12101_v39  ;;  %6339 = vmatprep.mubr.f32.mxu0 %v12101_v39 }
0x25f4   :  { %9218 = vmatprep.subr.bf16.mxu1 %v12124_v55  ;;  %9226 = vmatprep.subr.bf16.mxu0 %v12125_v45  ;;  %v12159_v55 = vld [vmem:[#allocation74_spill] sm:$0xff]  ;;  %v12160_v45 = vld [vmem:[#allocation75_spill] sm:$0xff] }
0x25f5   :  { %7431 = vmatmul.mubr.msk.f32.vlgmr.msra.gmra.mrb[84].mxu1 %vm152_vm0, %v11423_v40  ;;  %7433 = vmatmul.mubr.msk.f32.vlgmr.msra.gmra.mrb[76].mxu0 %vm152_vm0, %v11423_v40 }
0x25f6   :  { %9220 = vmatpush1.bf16.msra.mxu1 %v12126_v20  ;;  %9228 = vmatpush1.bf16.msra.mxu0 %v12127_v29  ;;  %v12161_v20 = vld [vmem:[#allocation76_spill] sm:$0xff]  ;;  %v12162_v29 = vld [vmem:[#allocation77_spill] sm:$0xff] }
0x25f7   :  { %6268 = vmatprep.mubr.f32.mxu1 %v12101_v39  ;;  %6345 = vmatprep.mubr.f32.mxu0 %v12101_v39 }
0x25f8   :  { %9222 = vmatprep.subr.bf16.mxu1 %v12128_v31  ;;  %9230 = vmatprep.subr.bf16.mxu0 %v12129_v7  ;;  %v12163_v31 = vld [vmem:[#allocation78_spill] sm:$0xff]  ;;  %v12164_v7 = vld [vmem:[#allocation79_spill] sm:$0xff] }
0x25f9   :  { %7432 = vmatmul.mubr.msk.f32.gmra.mrb[86].mxu1 %vm152_vm0, %v11431_v60  ;;  %7434 = vmatmul.mubr.msk.f32.gmra.mrb[78].mxu0 %vm152_vm0, %v11431_v60 }
0x25fa   :  { %9224 = vmatpush1.bf16.msra.mxu1 %v12130_v56  ;;  %9232 = vmatpush1.bf16.msra.mxu0 %v12131_v3  ;;  %v12165_v56 = vld [vmem:[#allocation80_spill] sm:$0xff] }
0x25fb   :  { %6416 = vmatprep.mubr.f32.mxu1 %v12101_v39  ;;  %6493 = vmatprep.mubr.f32.mxu0 %v12101_v39 }
0x25fc   :  { %9234 = vmatprep.subr.bf16.mxu1 %v12132_v10  ;;  %9266 = vmatprep.subr.bf16.mxu0 %v12133_v54  ;;  %v12166_v54 = vld [vmem:[#allocation81_spill] sm:$0xff] }
0x25fd   :  { %7435 = vmatmul.mubr.msk.f32.vlgmr.msra.gmra.mrb[88].mxu1 %vm152_vm0, %v11423_v40  ;;  %7437 = vmatmul.mubr.msk.f32.vlgmr.msra.gmra.mrb[80].mxu0 %vm152_vm0, %v11423_v40 }
0x25fe   :  { %6422 = vmatprep.mubr.f32.mxu1 %v12101_v39  ;;  %6499 = vmatprep.mubr.f32.mxu0 %v12101_v39  ;;  %v12141_v39 = vld [vmem:[#allocation56_spill] sm:$0xff] }
0x25ff   :  { %9236 = vmatpush3.bf16.msra.mxu1 %v12134_v61  ;;  %9268 = vmatpush3.bf16.msra.mxu0 %v12135_v43  ;;  %v12167_v43 = vld [vmem:[#allocation82_spill] sm:$0xff] }
0x2600   :  { %9238 = vmatprep.subr.bf16.mxu1 %v12136_v5  ;;  %9270 = vmatprep.subr.bf16.mxu0 %v12137_v37 }
0x2601   :  { %7436 = vmatmul.mubr.msk.f32.gmra.mrb[90].mxu1 %vm152_vm0, %v11431_v60  ;;  %7438 = vmatmul.mubr.msk.f32.gmra.mrb[82].mxu0 %vm152_vm0, %v11431_v60 }
0x2603   :  { %9240 = vmatpush3.bf16.msra.mxu1 %v12138_v46  ;;  %9272 = vmatpush3.bf16.msra.mxu0 %v12139_v26  ;;  %v12168_v26 = vld [vmem:[#allocation83_spill] sm:$0xff] }
0x2604   :  { %9242 = vmatprep.subr.bf16.mxu1 %v12140_v62  ;;  %9274 = vmatprep.subr.bf16.mxu0 %v12141_v39  ;;  %v12169_v39 = vld [vmem:[#allocation84_spill] sm:$0xff] }
0x2607   :  { %9244 = vmatpush3.bf16.msra.mxu1 %v12142_v12  ;;  %9276 = vmatpush3.bf16.msra.mxu0 %v12143_v17 }
0x2608   :  { %9246 = vmatprep.subr.bf16.mxu1 %v12144_v8  ;;  %9278 = vmatprep.subr.bf16.mxu0 %v12145_v51 }
0x260b   :  { %9248 = vmatpush3.bf16.msra.mxu1 %v12146_v28  ;;  %9280 = vmatpush3.bf16.msra.mxu0 %v12147_v21 }
0x260c   :  { %9250 = vmatprep.subr.bf16.mxu1 %v12148_v35  ;;  %9282 = vmatprep.subr.bf16.mxu0 %v12149_v53 }
0x260f   :  { %9252 = vmatpush3.bf16.msra.mxu1 %v12150_v57  ;;  %9284 = vmatpush3.bf16.msra.mxu0 %v12151_v2 }
0x2610   :  { %9254 = vmatprep.subr.bf16.mxu1 %v12152_v59  ;;  %9286 = vmatprep.subr.bf16.mxu0 %v12153_v32 }
0x2613   :  { %9256 = vmatpush3.bf16.msra.mxu1 %v12154_v52  ;;  %9288 = vmatpush3.bf16.msra.mxu0 %v12155_v15 }
0x2614   :  { %9258 = vmatprep.subr.bf16.mxu1 %v12156_v38  ;;  %9290 = vmatprep.subr.bf16.mxu0 %v12157_v14  ;;  %v12170_v14 = vld [vmem:[#allocation85_spill] sm:$0xff] }
0x2617   :  { %9260 = vmatpush3.bf16.msra.mxu1 %v12158_v48  ;;  %9292 = vmatpush3.bf16.msra.mxu0 %v12159_v55  ;;  %v12171_v48 = vld [vmem:[#allocation86_spill] sm:$0xff] }
0x2618   :  { %9262 = vmatprep.subr.bf16.mxu1 %v12160_v45  ;;  %9294 = vmatprep.subr.bf16.mxu0 %v12161_v20 }
0x261b   :  { %9264 = vmatpush3.bf16.msra.mxu1 %v12162_v29  ;;  %9296 = vmatpush3.bf16.msra.mxu0 %v12163_v31 }
0x261c   :  { %9298 = vmatprep.subr.bf16.mxu1 %v12164_v7  ;;  %9330 = vmatprep.subr.bf16.mxu0 %v12165_v56  ;;  %v12172_v56 = vld [vmem:[#allocation87_spill] sm:$0xff] }
0x26b8   :  { %v5956_v3 = vpop.f32.mrb[76].mxu1  ;;  %v6033_v10 = vpop.f32.mrb[68].mxu0 }
0x26b9   :  { %v5957_v61 = vadd.f32 %v5956_v3, %v12166_v54  ;;  %v6034_v5 = vadd.f32 %v6033_v10, %v12167_v43  ;;  %v5958_v37 = vpop.f32.mrb[77].mxu1  ;;  %v6035_v46 = vpop.f32.mrb[69].mxu0  ;;  %v12173_v3 = vld [vmem:[#allocation88_spill] sm:$0xff] }
0x26ba   :  { %v5959_v62 = vadd.f32 %v5958_v37, %v12168_v26  ;;  %v6036_v12 = vadd.f32 %v6035_v46, %v12169_v39  ;;  %v12175_v37 = vld [vmem:[#allocation90_spill] sm:$0xff] }
0x26bb   :  { %v6506_v21 = vmax.f32 %v5957_v61, 0.0  ;;  %v6508_v35 = vmax.f32 %v6034_v5, 0.0  ;;  %v12174_v5 = vld [vmem:[#allocation89_spill] sm:$0xff] }
0x26bc   :  { %v6507_v17 = vmax.f32 %v5959_v62, 0.0  ;;  %v6509_v8 = vmax.f32 %v6036_v12, 0.0  ;;  %v5962_v51 = vpop.f32.mrb[78].mxu1  ;;  %v6039_v28 = vpop.f32.mrb[70].mxu0  ;;  %v12176_v12 = vld [vmem:[#allocation91_spill] sm:$0xff] }
0x26bd   :  { %v5963_v53 = vadd.f32 %v5962_v51, %v12166_v54  ;;  %v6040_v57 = vadd.f32 %v6039_v28, %v12167_v43  ;;  %v5964_v2 = vpop.f32.mrb[79].mxu1  ;;  %v6041_v59 = vpop.f32.mrb[71].mxu0  ;;  %v12179_v51 = vld [vmem:[#allocation94_spill] sm:$0xff] }
0x26be   :  { %v5965_v32 = vadd.f32 %v5964_v2, %v12168_v26  ;;  %v6042_v52 = vadd.f32 %v6041_v59, %v12169_v39  ;;  %6602 = vmatprep.mubr.f32.mxu1 %v6507_v17  ;;  %6677 = vmatprep.mubr.f32.mxu0 %v6509_v8  ;;  %v12177_v17 = vld [vmem:[#allocation92_spill] sm:$0xff]  ;;  %v12178_v8 = vld [vmem:[#allocation93_spill] sm:$0xff] }
0x26bf   :  { %6603 = vmatmul.mubr.f32.vlgmr.msra.gmra.mrb[92].mxu1 %v6506_v21  ;;  %6678 = vmatmul.mubr.f32.vlgmr.msra.gmra.mrb[84].mxu0 %v6508_v35  ;;  %v6522_v20 = vmax.f32 %v5963_v53, 0.0  ;;  %v6524_v29 = vmax.f32 %v6040_v57, 0.0  ;;  %v12180_v57 = vld [vmem:[#allocation95_spill] sm:$0xff]  ;;  %v12181_v2 = vld [vmem:[#allocation96_spill] sm:$0xff]  ;;  %v12182_v59 = vld [vmem:[#allocation97_spill] sm:$0xff] }
0x26c0   :  { %v6523_v15 = vmax.f32 %v5965_v32, 0.0  ;;  %v6525_v38 = vmax.f32 %v6042_v52, 0.0  ;;  %9300 = vmatpush3.bf16.msra.mxu1 %v12170_v14  ;;  %9332 = vmatpush3.bf16.msra.mxu0 %v12171_v48  ;;  %v6110_v55 = vpop.f32.mrb[80].mxu1  ;;  %v6187_v45 = vpop.f32.mrb[72].mxu0  ;;  %v12183_v32 = vld [vmem:[#allocation98_spill] sm:$0xff]  ;;  %v12184_v48 = vld [vmem:[#allocation99_spill] sm:$0xff] }
0x26c1   :  { %v6112_v31 = vpop.f32.mrb[81].mxu1  ;;  %v6189_v7 = vpop.f32.mrb[73].mxu0  ;;  %9302 = vmatprep.subr.bf16.mxu1 %v12172_v56  ;;  %9334 = vmatprep.subr.bf16.mxu0 %v12173_v3 }
0x26c2   :  { %v6113_v10 = vadd.f32 %v6112_v31, %v10588_v19  ;;  %v6190_v54 = vadd.f32 %v6189_v7, %v10606_v24  ;;  %6607 = vmatprep.mubr.f32.mxu1 %v6523_v15  ;;  %6682 = vmatprep.mubr.f32.mxu0 %v6525_v38  ;;  %v12187_v31 = vld [vmem:[#allocation102_spill] sm:$0xff] }
0x26c3   :  { %6608 = vmatmul.mubr.f32.gmra.mrb[94].mxu1 %v6522_v20  ;;  %6683 = vmatmul.mubr.f32.gmra.mrb[86].mxu0 %v6524_v29  ;;  %v12185_v20 = vld [vmem:[#allocation100_spill] sm:$0xff]  ;;  %v12186_v29 = vld [vmem:[#allocation101_spill] sm:$0xff] }
0x26c4   :  { %v6511_v61 = vmax.f32 %v6113_v10, 0.0  ;;  %v6513_v43 = vmax.f32 %v6190_v54, 0.0  ;;  %9304 = vmatpush3.bf16.msra.mxu1 %v12174_v5  ;;  %9336 = vmatpush3.bf16.msra.mxu0 %v12175_v37  ;;  %v6116_v46 = vpop.f32.mrb[82].mxu1  ;;  %v6193_v26 = vpop.f32.mrb[74].mxu0  ;;  %v12188_v54 = vld [vmem:[#allocation103_spill] sm:$0xff]  ;;  %v12191_v5 = vld [vmem:[#allocation106_spill] sm:$0xff] }
0x26c5   :  { %v6118_v62 = vpop.f32.mrb[83].mxu1  ;;  %v6195_v39 = vpop.f32.mrb[75].mxu0  ;;  %9306 = vmatprep.subr.bf16.mxu1 %v12176_v12  ;;  %9338 = vmatprep.subr.bf16.mxu0 %v12177_v17 }
0x26c6   :  { %6752 = vmatprep.mubr.f32.mxu1 %v6511_v61  ;;  %6827 = vmatprep.mubr.f32.mxu0 %v6513_v43  ;;  %v12189_v61 = vld [vmem:[#allocation104_spill] sm:$0xff]  ;;  %v12190_v43 = vld [vmem:[#allocation105_spill] sm:$0xff] }
0x26c8   :  { %9308 = vmatpush3.bf16.msra.mxu1 %v12178_v8  ;;  %9340 = vmatpush3.bf16.msra.mxu0 %v12179_v51  ;;  %v11549_v28 = vpop.f32.mrb[84].mxu1  ;;  %v11551_v21 = vpop.f32.mrb[76].mxu0  ;;  %v12192_v51 = vld [vmem:[#allocation107_spill] sm:$0xff] }
0x26c9   :  { %v6266_v35 = vpop.f32.mrb[85].mxu1  ;;  %v6343_v53 = vpop.f32.mrb[77].mxu0  ;;  %9310 = vmatprep.subr.bf16.mxu1 %v12180_v57  ;;  %9342 = vmatprep.subr.bf16.mxu0 %v12181_v2  ;;  %v12193_v57 = vld [vmem:[#allocation108_spill] sm:$0xff]  ;;  %v12194_v2 = vld [vmem:[#allocation109_spill] sm:$0xff] }
0x26cc   :  { %9312 = vmatpush3.bf16.msra.mxu1 %v12182_v59  ;;  %9344 = vmatpush3.bf16.msra.mxu0 %v12183_v32  ;;  %v11557_v52 = vpop.f32.mrb[86].mxu1  ;;  %v11559_v15 = vpop.f32.mrb[78].mxu0  ;;  %v6111_v59 = vadd.f32 %v6110_v55, %v10754_v63  ;;  %v6188_v32 = vadd.f32 %v6187_v45, %v10772_v50  ;;  %v6194_v55 = vadd.f32 %v6193_v26, %v10772_v50  ;;  %v12198_v45 = vld [vmem:[#allocation113_spill] sm:$0xff]  ;;  %v12200_v26 = vld [vmem:[#allocation115_spill] sm:$0xff] }
0x26cd   :  { %v11561_v38 = vpop.f32.mrb[87].mxu1  ;;  %v11563_v14 = vpop.f32.mrb[79].mxu0  ;;  %9314 = vmatprep.subr.bf16.mxu1 %v12184_v48  ;;  %9346 = vmatprep.subr.bf16.mxu0 %v12185_v20  ;;  %v12195_v48 = vld [vmem:[#allocation110_spill] sm:$0xff]  ;;  %v12196_v20 = vld [vmem:[#allocation111_spill] sm:$0xff] }
0x26d0   :  { %9316 = vmatpush3.bf16.msra.mxu1 %v12186_v29  ;;  %9348 = vmatpush3.bf16.msra.mxu0 %v12187_v31  ;;  %v11569_v7 = vpop.f32.mrb[88].mxu1  ;;  %v11571_v56 = vpop.f32.mrb[80].mxu0  ;;  %v6119_v29 = vadd.f32 %v6118_v62, %v10588_v19  ;;  %v6196_v31 = vadd.f32 %v6195_v39, %v10606_v24  ;;  %v6267_v19 = vadd.f32 %v6266_v35, %v10823_v33  ;;  %v12201_v62 = vld [vmem:[#allocation116_spill] sm:$0xff]  ;;  %v12202_v39 = vld [vmem:[#allocation117_spill] sm:$0xff]  ;;  %v12203_v35 = vld [vmem:[#allocation118_spill] sm:$0xff] }
0x26d1   :  { %v11573_v3 = vpop.f32.mrb[89].mxu1  ;;  %v11575_v10 = vpop.f32.mrb[81].mxu0  ;;  %9318 = vmatprep.subr.bf16.mxu1 %v12188_v54  ;;  %9350 = vmatprep.subr.bf16.mxu0 %v12189_v61  ;;  %v6510_v54 = vmax.f32 %v6111_v59, 0.0  ;;  %v6117_v61 = vadd.f32 %v6116_v46, %v10754_v63  ;;  %v6344_v24 = vadd.f32 %v6343_v53, %v10828_v30  ;;  %v12199_v63 = vld [vmem:[#allocation114_spill] sm:$0xff]  ;;  %v12204_v53 = vld [vmem:[#allocation119_spill] sm:$0xff] }
0x26d2   :  { %v6515_v50 = vmax.f32 %v6267_v19, 0.0  ;;  %v12208_v59 = vld [vmem:[#allocation123_spill] sm:$0xff]  ;;  %v12222_v19 = vld [vmem:[#allocation137_spill] sm:$0xff] }
0x26d3   :  { %v6517_v46 = vmax.f32 %v6344_v24, 0.0  ;;  %v6265_v24 = vadd.f32 %v11549_v28, %v10961_v0  ;;  %v6271_v28 = vadd.f32 %v11557_v52, %v10961_v0 }
0x26d4   :  { %9320 = vmatpush3.bf16.msra.mxu1 %v12190_v43  ;;  %9352 = vmatpush3.bf16.msra.mxu0 %v12191_v5  ;;  %v11581_v37 = vpop.f32.mrb[90].mxu1  ;;  %v11583_v12 = vpop.f32.mrb[82].mxu0  ;;  %v12197_v43 = vld [vmem:[#allocation112_spill] sm:$0xff]  ;;  %v6527_v5 = vmax.f32 %v6119_v29, 0.0  ;;  %v12212_v29 = vld [vmem:[#allocation127_spill] sm:$0xff] }
0x26d5   :  { %v11585_v17 = vpop.f32.mrb[91].mxu1  ;;  %v11587_v8 = vpop.f32.mrb[83].mxu0  ;;  %9322 = vmatprep.subr.bf16.mxu1 %v12192_v51  ;;  %9354 = vmatprep.subr.bf16.mxu0 %v12193_v57  ;;  %v6529_v51 = vmax.f32 %v6196_v31, 0.0  ;;  %v12205_v57 = vld [vmem:[#allocation120_spill] sm:$0xff]  ;;  %v6530_v0 = vmax.f32 %v6271_v28, 0.0 }
0x26d6   :  { %v12213_v31 = vld [vmem:[#allocation128_spill] sm:$0xff] }
0x26d8   :  { %9324 = vmatpush3.bf16.msra.mxu1 %v10762_v44  ;;  %9356 = vmatpush3.bf16.msra.mxu0 %v12194_v2  ;;  %v6512_v44 = vmax.f32 %v6188_v32, 0.0  ;;  %v12207_v2 = vld [vmem:[#allocation122_spill] sm:$0xff]  ;;  %v12209_v32 = vld [vmem:[#allocation124_spill] sm:$0xff] }
0x26d9   :  { %9326 = vmatprep.subr.bf16.mxu1 %v12195_v48  ;;  %9358 = vmatprep.subr.bf16.mxu0 %v12196_v20  ;;  %v12210_v48 = vld [vmem:[#allocation125_spill] sm:$0xff]  ;;  %v12211_v20 = vld [vmem:[#allocation126_spill] sm:$0xff] }
0x26dc   :  { %9328 = vmatpush3.bf16.msra.mxu1 %v10796_v11  ;;  %9360 = vmatpush3.bf16.msra.mxu0 %v10798_v49  ;;  %v6526_v11 = vmax.f32 %v6117_v61, 0.0  ;;  %v6528_v49 = vmax.f32 %v6194_v55, 0.0  ;;  %v12216_v61 = vld [vmem:[#allocation131_spill] sm:$0xff]  ;;  %v12217_v55 = vld [vmem:[#allocation132_spill] sm:$0xff] }
0x26dd   :  { %9362 = vmatprep.subr.bf16.mxu1 %v12197_v43  ;;  %9394 = vmatprep.subr.bf16.mxu0 %v12198_v45  ;;  %v12218_v43 = vld [vmem:[#allocation133_spill] sm:$0xff]  ;;  %v12219_v45 = vld [vmem:[#allocation134_spill] sm:$0xff] }
0x26df   :  { %6753 = vmatmul.mubr.f32.vlgmr.msra.gmra.mrb[96].mxu1 %v6510_v54  ;;  %6828 = vmatmul.mubr.f32.vlgmr.msra.gmra.mrb[88].mxu0 %v6512_v44  ;;  %v12214_v54 = vld [vmem:[#allocation129_spill] sm:$0xff]  ;;  %v12215_v44 = vld [vmem:[#allocation130_spill] sm:$0xff] }
0x26e0   :  { %6757 = vmatprep.mubr.f32.mxu1 %v6527_v5  ;;  %6832 = vmatprep.mubr.f32.mxu0 %v6529_v51  ;;  %v12220_v5 = vld [vmem:[#allocation135_spill] sm:$0xff]  ;;  %v12221_v51 = vld [vmem:[#allocation136_spill] sm:$0xff] }
0x26e1   :  { %9364 = vmatpush3.bf16.msra.mxu1 %v10830_v27  ;;  %9396 = vmatpush3.bf16.msra.mxu0 %v12199_v63  ;;  %v12206_v27 = vld [vmem:[#allocation121_spill] sm:$0xff]  ;;  %v12224_v63 = vld [vmem:[#allocation139_spill] sm:$0xff] }
0x26e2   :  { %9366 = vmatprep.subr.bf16.mxu1 %v12200_v26  ;;  %9398 = vmatprep.subr.bf16.mxu0 %v12201_v62  ;;  %v12225_v62 = vld [vmem:[#allocation140_spill] sm:$0xff] }
0x26e3   :  { %6758 = vmatmul.mubr.f32.gmra.mrb[98].mxu1 %v6526_v11  ;;  %6833 = vmatmul.mubr.f32.gmra.mrb[90].mxu0 %v6528_v49  ;;  %v6342_v11 = vadd.f32 %v11551_v21, %v10975_v22  ;;  %v12223_v49 = vld [vmem:[#allocation138_spill] sm:$0xff]  ;;  %v6348_v21 = vadd.f32 %v11559_v15, %v10975_v22 }
0x26e4   :  { %6902 = vmatprep.mubr.f32.mxu1 %v6515_v50  ;;  %6977 = vmatprep.mubr.f32.mxu0 %v6517_v46  ;;  %v6273_v50 = vadd.f32 %v11561_v38, %v10823_v33  ;;  %v6350_v46 = vadd.f32 %v11563_v14, %v10828_v30  ;;  %v6421_v30 = vadd.f32 %v11573_v3, %v11019_v9  ;;  %v12227_v15 = vld [vmem:[#allocation142_spill] sm:$0xff]  ;;  %v12228_v14 = vld [vmem:[#allocation143_spill] sm:$0xff]  ;;  %v12229_v3 = vld [vmem:[#allocation144_spill] sm:$0xff] }
0x26e5   :  { %9368 = vmatpush3.bf16.msra.mxu1 %v12202_v39  ;;  %9400 = vmatpush3.bf16.msra.mxu0 %v12203_v35  ;;  %v6516_v26 = vmax.f32 %v6342_v11, 0.0  ;;  %v12226_v39 = vld [vmem:[#allocation141_spill] sm:$0xff]  ;;  %v12235_v35 = vld [vmem:[#allocation150_spill] sm:$0xff] }
0x26e6   :  { %9370 = vmatprep.subr.bf16.mxu1 %v12204_v53  ;;  %9402 = vmatprep.subr.bf16.mxu0 %v12205_v57  ;;  %v6531_v33 = vmax.f32 %v6273_v50, 0.0  ;;  %v6533_v38 = vmax.f32 %v6350_v46, 0.0  ;;  %v6519_v22 = vmax.f32 %v6421_v30, 0.0  ;;  %v12236_v53 = vld [vmem:[#allocation151_spill] sm:$0xff]  ;;  %v12238_v57 = vld [vmem:[#allocation153_spill] sm:$0xff] }
0x26e9   :  { %9372 = vmatpush3.bf16.msra.mxu1 %v12206_v27  ;;  %9404 = vmatpush3.bf16.msra.mxu0 %v12207_v2  ;;  %v12239_v27 = vld [vmem:[#allocation154_spill] sm:$0xff]  ;;  %v12240_v2 = vld [vmem:[#allocation155_spill] sm:$0xff] }
0x26ea   :  { %9374 = vmatprep.subr.bf16.mxu1 %v12208_v59  ;;  %9406 = vmatprep.subr.bf16.mxu0 %v12209_v32  ;;  %v12241_v59 = vld [vmem:[#allocation156_spill] sm:$0xff]  ;;  %v12242_v32 = vld [vmem:[#allocation157_spill] sm:$0xff] }
0x26ed   :  { %9376 = vmatpush3.bf16.msra.mxu1 %v12210_v48  ;;  %9408 = vmatpush3.bf16.msra.mxu0 %v12211_v20  ;;  %v12243_v48 = vld [vmem:[#allocation158_spill] sm:$0xff]  ;;  %v6419_v20 = vadd.f32 %v11569_v7, %v11157_v58  ;;  %v6425_v7 = vadd.f32 %v11581_v37, %v11157_v58 }
0x26ee   :  { %9378 = vmatprep.subr.bf16.mxu1 %v12212_v29  ;;  %9410 = vmatprep.subr.bf16.mxu0 %v12213_v31  ;;  %v12244_v29 = vld [vmem:[#allocation159_spill] sm:$0xff]  ;;  %v9642_v37 = vld [vmem:[%s11214_s18] ss:$0 sm:$0xff] }
0x26ef   :  { %v6496_v31 = vadd.f32 %v11571_v56, %v12244_v29  ;;  %v6502_v56 = vadd.f32 %v11583_v12, %v12244_v29 }
0x26f1   :  { %9380 = vmatpush3.bf16.msra.mxu1 %v12214_v54  ;;  %9412 = vmatpush3.bf16.msra.mxu0 %v12215_v44  ;;  %v12245_v54 = vld [vmem:[#allocation160_spill] sm:$0xff]  ;;  %v12246_v44 = vld [vmem:[#allocation161_spill] sm:$0xff] }
0x26f2   :  { %9382 = vmatprep.subr.bf16.mxu1 %v12216_v61  ;;  %9414 = vmatprep.subr.bf16.mxu0 %v12217_v55  ;;  %v6427_v61 = vadd.f32 %v11585_v17, %v11019_v9  ;;  %v6520_v55 = vmax.f32 %v6496_v31, 0.0  ;;  %v6534_v9 = vmax.f32 %v6425_v7, 0.0 }
0x26f5   :  { %9384 = vmatpush3.bf16.msra.mxu1 %v12218_v43  ;;  %9416 = vmatpush3.bf16.msra.mxu0 %v12219_v45  ;;  %v6535_v43 = vmax.f32 %v6427_v61, 0.0 }
0x26f6   :  { %9386 = vmatprep.subr.bf16.mxu1 %v12220_v5  ;;  %9418 = vmatprep.subr.bf16.mxu0 %v12221_v51 }
0x26f9   :  { %9388 = vmatpush3.bf16.msra.mxu1 %v10965_v16  ;;  %9420 = vmatpush3.bf16.msra.mxu0 %v12222_v19  ;;  %v6514_v16 = vmax.f32 %v6265_v24, 0.0 }
0x26fa   :  { %9390 = vmatprep.subr.bf16.mxu1 %v12223_v49  ;;  %9422 = vmatprep.subr.bf16.mxu0 %v12224_v63 }
0x26fd   :  { %9392 = vmatpush3.bf16.msra.mxu1 %v10992_v41  ;;  %9424 = vmatpush3.bf16.msra.mxu0 %v10994_v42  ;;  %v6498_v41 = vadd.f32 %v11575_v10, %v11024_v25  ;;  %v6532_v42 = vmax.f32 %v6348_v21, 0.0  ;;  %v12232_v10 = vld [vmem:[#allocation147_spill] sm:$0xff] }
0x26fe   :  { %9426 = vmatprep.subr.bf16.mxu1 %v12225_v62  ;;  %9458 = vmatprep.subr.bf16.mxu0 %v12226_v39 }
0x26ff   :  { %v6521_v52 = vmax.f32 %v6498_v41, 0.0 }
0x2700   :  { %6903 = vmatmul.mubr.f32.vlgmr.msra.gmra.mrb[100].mxu1 %v6514_v16  ;;  %6978 = vmatmul.mubr.f32.vlgmr.msra.gmra.mrb[92].mxu0 %v6516_v26 }
0x2701   :  { %6907 = vmatprep.mubr.f32.mxu1 %v6531_v33  ;;  %6982 = vmatprep.mubr.f32.mxu0 %v6533_v38 }
0x2702   :  { %9428 = vmatpush3.bf16.msra.mxu1 %v11026_v36  ;;  %9460 = vmatpush3.bf16.msra.mxu0 %v11030_v18  ;;  %v12230_v36 = vld [vmem:[#allocation145_spill] sm:$0xff]  ;;  %v12231_v18 = vld [vmem:[#allocation146_spill] sm:$0xff] }
0x2703   :  { %9430 = vmatprep.subr.bf16.mxu1 %v11032_v6  ;;  %9462 = vmatprep.subr.bf16.mxu0 %v11034_v13  ;;  %v12233_v6 = vld [vmem:[#allocation148_spill] sm:$0xff]  ;;  %v12234_v13 = vld [vmem:[#allocation149_spill] sm:$0xff] }
0x2704   :  { %6908 = vmatmul.mubr.f32.gmra.mrb[102].mxu1 %v6530_v0  ;;  %6983 = vmatmul.mubr.f32.gmra.mrb[94].mxu0 %v6532_v42 }
0x2705   :  { %7052 = vmatprep.mubr.f32.mxu1 %v6519_v22  ;;  %7127 = vmatprep.mubr.f32.mxu0 %v6521_v52 }
0x2706   :  { %9432 = vmatpush3.bf16.msra.mxu1 %v11056_v47  ;;  %9464 = vmatpush3.bf16.msra.mxu0 %v12227_v15  ;;  %v12237_v47 = vld [vmem:[#allocation152_spill] sm:$0xff] }
0x2707   :  { %9434 = vmatprep.subr.bf16.mxu1 %v12228_v14  ;;  %9466 = vmatprep.subr.bf16.mxu0 %v12229_v3 }
0x270a   :  { %9436 = vmatpush3.bf16.msra.mxu1 %v12230_v36  ;;  %9468 = vmatpush3.bf16.msra.mxu0 %v12231_v18 }
0x270b   :  { %9438 = vmatprep.subr.bf16.mxu1 %v12232_v10  ;;  %9470 = vmatprep.subr.bf16.mxu0 %v12233_v6 }
0x270e   :  { %9440 = vmatpush3.bf16.msra.mxu1 %v12234_v13  ;;  %9472 = vmatpush3.bf16.msra.mxu0 %v12235_v35 }
0x270f   :  { %9442 = vmatprep.subr.bf16.mxu1 %v12236_v53  ;;  %9474 = vmatprep.subr.bf16.mxu0 %v12237_v47 }
0x2712   :  { %9444 = vmatpush3.bf16.msra.mxu1 %v12238_v57  ;;  %9476 = vmatpush3.bf16.msra.mxu0 %v12239_v27 }
0x2713   :  { %9446 = vmatprep.subr.bf16.mxu1 %v12240_v2  ;;  %9478 = vmatprep.subr.bf16.mxu0 %v12241_v59 }
0x2716   :  { %9448 = vmatpush3.bf16.msra.mxu1 %v12242_v32  ;;  %9480 = vmatpush3.bf16.msra.mxu0 %v12243_v48 }
0x2717   :  { %9450 = vmatprep.subr.bf16.mxu1 %v11144_v1  ;;  %9482 = vmatprep.subr.bf16.mxu0 %v11146_v34  ;;  %v6504_v1 = vadd.f32 %v11587_v8, %v11024_v25  ;;  %v12247_v34 = vld [vmem:[#allocation162_spill] sm:$0xff]  ;;  %v6536_v25 = vmax.f32 %v6502_v56, 0.0 }
0x2719   :  { %v6537_v45 = vmax.f32 %v6504_v1, 0.0 }
0x271a   :  { %9452 = vmatpush3.bf16.msra.mxu1 %v11161_v4  ;;  %9484 = vmatpush3.bf16.msra.mxu0 %v11163_v23  ;;  %v12248_v4 = vld [vmem:[#allocation163_spill] sm:$0xff]  ;;  %v6518_v23 = vmax.f32 %v6419_v20, 0.0 }
0x271b   :  { %9454 = vmatprep.subr.bf16.mxu1 %v12245_v54  ;;  %9486 = vmatprep.subr.bf16.mxu0 %v12246_v44 }
0x271e   :  { %9456 = vmatpush3.bf16.msra.mxu1 %v12247_v34  ;;  %9488 = vmatpush3.bf16.msra.mxu0 %v12248_v4 }
0x2721   :  { %7053 = vmatmul.mubr.f32.vlgmr.msra.gmra.mrb[104].mxu1 %v6518_v23  ;;  %7128 = vmatmul.mubr.f32.vlgmr.msra.gmra.mrb[96].mxu0 %v6520_v55 }
0x2722   :  { %7057 = vmatprep.mubr.f32.mxu1 %v6535_v43  ;;  %7132 = vmatprep.mubr.f32.mxu0 %v6537_v45 }
0x2725   :  { %7058 = vmatmul.mubr.f32.gmra.mrb[106].mxu1 %v6534_v9  ;;  %7133 = vmatmul.mubr.f32.gmra.mrb[98].mxu0 %v6536_v25 }
0x2792   :  { %v7981_v17 = vpop.f32.mrb[92].mxu1  ;;  %v8019_v8 = vpop.f32.mrb[84].mxu0 }
0x2793   :  { %v7982_v5 = vpop.f32.mrb[93].mxu1  ;;  %v8020_v51 = vpop.f32.mrb[85].mxu0 }
0x2794   :  { %v7983_v19 = vadd.f32 %v7982_v5, %v7981_v17  ;;  %v8021_v58 = vadd.f32 %v8020_v51, %v8019_v8 }
0x2796   :  { %v6605_v24 = vadd.f32 %v9642_v37, %v7983_v19  ;;  %v7984_v12 = vpop.f32.mrb[94].mxu1  ;;  %v8022_v11 = vpop.f32.mrb[86].mxu0 }
0x2797   :  { %v7985_v49 = vpop.f32.mrb[95].mxu1  ;;  %v8023_v63 = vpop.f32.mrb[87].mxu0 }
0x2798   :  { %v6680_v50 = vadd.f32 %v8021_v58, %v6605_v24  ;;  %v7986_v46 = vadd.f32 %v7985_v49, %v7984_v12  ;;  %v8024_v16 = vadd.f32 %v8023_v63, %v8022_v11 }
0x279a   :  { %v6610_v26 = vadd.f32 %v9642_v37, %v7986_v46 }
0x279c   :  { %v6685_v28 = vadd.f32 %v8024_v16, %v6610_v26 }
0x27b2   :  { %v8057_v21 = vpop.f32.mrb[96].mxu1  ;;  %v8095_v62 = vpop.f32.mrb[88].mxu0 }
0x27b3   :  { %v8058_v39 = vpop.f32.mrb[97].mxu1  ;;  %v8096_v33 = vpop.f32.mrb[89].mxu0 }
0x27b4   :  { %v8059_v38 = vadd.f32 %v8058_v39, %v8057_v21  ;;  %v8097_v30 = vadd.f32 %v8096_v33, %v8095_v62 }
0x27b6   :  { %v6755_v41 = vadd.f32 %v8059_v38, %v6680_v50  ;;  %v8060_v0 = vpop.f32.mrb[98].mxu1  ;;  %v8098_v42 = vpop.f32.mrb[90].mxu0 }
0x27b7   :  { %v8061_v22 = vpop.f32.mrb[99].mxu1  ;;  %v8099_v52 = vpop.f32.mrb[91].mxu0 }
0x27b8   :  { %v6830_v15 = vadd.f32 %v8097_v30, %v6755_v41  ;;  %v8062_v14 = vadd.f32 %v8061_v22, %v8060_v0  ;;  %v8100_v3 = vadd.f32 %v8099_v52, %v8098_v42  ;;  %v9643_v41 = vld [vmem:[%s11226_s24] ss:$0 sm:$0xff] }
0x27b9   :  { %v9644_v22 = vld [vmem:[%s11231_s15] ss:$0 sm:$0xff] }
0x27ba   :  { %v6760_v36 = vadd.f32 %v8062_v14, %v6685_v28 }
0x27bc   :  { %v6835_v18 = vadd.f32 %v8100_v3, %v6760_v36 }
0x27d3   :  { %v8133_v10 = vpop.f32.mrb[100].mxu1  ;;  %v8171_v6 = vpop.f32.mrb[92].mxu0 }
0x27d4   :  { %v8134_v13 = vpop.f32.mrb[101].mxu1  ;;  %v8172_v35 = vpop.f32.mrb[93].mxu0 }
0x27d5   :  { %v8135_v53 = vadd.f32 %v8134_v13, %v8133_v10  ;;  %v8173_v47 = vadd.f32 %v8172_v35, %v8171_v6 }
0x27d7   :  { %v6905_v57 = vadd.f32 %v8135_v53, %v6830_v15  ;;  %v8136_v27 = vpop.f32.mrb[102].mxu1  ;;  %v8174_v2 = vpop.f32.mrb[94].mxu0 }
0x27d8   :  { %v8137_v59 = vpop.f32.mrb[103].mxu1  ;;  %v8175_v32 = vpop.f32.mrb[95].mxu0 }
0x27d9   :  { %v6980_v48 = vadd.f32 %v8173_v47, %v6905_v57  ;;  %v8138_v20 = vadd.f32 %v8137_v59, %v8136_v27  ;;  %v8176_v29 = vadd.f32 %v8175_v32, %v8174_v2 }
0x27db   :  { %v6910_v31 = vadd.f32 %v8138_v20, %v6835_v18 }
0x27dd   :  { %v6985_v54 = vadd.f32 %v8176_v29, %v6910_v31 }
0x27f4   :  { %v8209_v44 = vpop.f32.mrb[104].mxu1  ;;  %v8247_v61 = vpop.f32.mrb[96].mxu0 }
0x27f5   :  { %v8210_v1 = vpop.f32.mrb[105].mxu1  ;;  %v8248_v34 = vpop.f32.mrb[97].mxu0 }
0x27f6   :  { %v8211_v4 = vadd.f32 %v8210_v1, %v8209_v44  ;;  %v8249_v23 = vadd.f32 %v8248_v34, %v8247_v61  ;;  %v7439_v61 = vld [vmem:[%s7249_s3] ss:$0 sm:$0xff] }
0x27f7   :  { %v7440_v34 = vld [vmem:[%s7250_s14] ss:$0 sm:$0xff] }
0x27f8   :  { %v7055_v55 = vadd.f32 %v8211_v4, %v6980_v48  ;;  %v8212_v7 = vpop.f32.mrb[106].mxu1  ;;  %v8250_v56 = vpop.f32.mrb[98].mxu0 }
0x27f9   :  { %v8213_v43 = vpop.f32.mrb[107].mxu1  ;;  %v8251_v45 = vpop.f32.mrb[99].mxu0 }
0x27fa   :  { %v7130_v9 = vadd.f32 %v8249_v23, %v7055_v55  ;;  %v8214_v25 = vadd.f32 %v8213_v43, %v8212_v7  ;;  %v8252_v17 = vadd.f32 %v8251_v45, %v8250_v56 }
0x27fc   :  { %v7060_v8 = vadd.f32 %v8214_v25, %v6985_v54  ;;  %v7138_v5 = vadd.f32 %v7130_v9, %v11423_v40 }
0x27fe   :  { %v7135_v51 = vadd.f32 %v8252_v17, %v7060_v8  ;;  %v7140_v19 = vsel %vm152_vm0, %v7138_v5, 0.0 }
0x27ff   :  { %7141 = vadd.xlane.f32.xlu0 %v7140_v19 }
0x2800   :  { %v7139_v58 = vadd.f32 %v7135_v51, %v11431_v60 }
0x2802   :  { %v7143_v37 = vsel %vm152_vm0, %v7139_v58, 0.0 }
0x2803   :  { %7144 = vadd.xlane.f32.xlu1 %v7143_v37 }
0x288c   :  { %v7142_v24 = vpop.xlane.xlu0 %7141 }
0x288d   :  { %v7146_v12 = vmul.f32 0.03125, %v7142_v24 }
0x288f   :  { %v7148_v11 = vsub.f32 %v7138_v5, %v7146_v12 }
0x2890   :  { %v7145_v49 = vpop.xlane.xlu1 %7144 }
0x2891   :  { %v7147_v63 = vmul.f32 0.03125, %v7145_v49  ;;  %v7150_v50 = vmul.f32 %v7148_v11, %v7148_v11 }
0x2893   :  { %v7149_v46 = vsub.f32 %v7139_v58, %v7147_v63  ;;  %v7152_v16 = vsel %vm152_vm0, %v7150_v50, 0.0 }
0x2894   :  { %7153 = vadd.xlane.f32.xlu0 %v7152_v16 }
0x2895   :  { %v7151_v40 = vmul.f32 %v7149_v46, %v7149_v46 }
0x2897   :  { %v7155_v26 = vsel %vm152_vm0, %v7151_v40, 0.0 }
0x2898   :  { %7156 = vadd.xlane.f32.xlu1 %v7155_v26 }
0x2921   :  { %v7154_v60 = vpop.xlane.xlu0 %7153 }
0x2922   :  { %v7158_v28 = vmul.f32 0.03125, %v7154_v60 }
0x2924   :  { %v7160_v21 = vadd.f32 1e-05, %v7158_v28 }
0x2925   :  { %v7157_v62 = vpop.xlane.xlu1 %7156 }
0x2926   :  { %9616 = vrsqrt.f32 %v7160_v21  ;;  %v7159_v39 = vmul.f32 0.03125, %v7157_v62 }
0x2928   :  { %v7161_v33 = vadd.f32 1e-05, %v7159_v39 }
0x292a   :  { %9618 = vrsqrt.f32 %v7161_v33 }
0x2930   :  { %v9617_v38 = vpop.eup %9616 }
0x2931   :  { %v7164_v30 = vmul.f32 %v9617_v38, %v7148_v11 }
0x2933   :  { %v7166_v0 = vmul.f32 %v9643_v41, %v7164_v30 }
0x2934   :  { %v9619_v42 = vpop.eup %9618 }
0x2935   :  { %v7168_v52 = vadd.f32 %v9644_v22, %v7166_v0  ;;  %v7165_v15 = vmul.f32 %v9619_v42, %v7149_v46 }
0x2937   :  { %v7172_v14 = vsel %vm152_vm0, %v7168_v52, 0.0  ;;  %v7167_v3 = vmul.f32 %v9643_v41, %v7165_v15 }
0x2938   :  { %7173 = vadd.xlane.f32.xlu0 %v7172_v14 }
0x2939   :  { %v7169_v36 = vadd.f32 %v9644_v22, %v7167_v3 }
0x293b   :  { %v7175_v18 = vsel %vm152_vm0, %v7169_v36, 0.0 }
0x293c   :  { %7176 = vadd.xlane.f32.xlu1 %v7175_v18 }
0x29c5   :  { %v7174_v10 = vpop.xlane.xlu0 %7173 }
0x29c6   :  { %v7178_v6 = vmul.f32 0.03125, %v7174_v10 }
0x29c8   :  { %v7180_v13 = vsub.f32 %v7168_v52, %v7178_v6 }
0x29c9   :  { %v7177_v35 = vpop.xlane.xlu1 %7176 }
0x29ca   :  { %v7179_v53 = vmul.f32 0.03125, %v7177_v35  ;;  %v7182_v47 = vmul.f32 %v7180_v13, %v7180_v13 }
0x29cc   :  { %v7181_v57 = vsub.f32 %v7169_v36, %v7179_v53  ;;  %v7184_v27 = vsel %vm152_vm0, %v7182_v47, 0.0 }
0x29cd   :  { %7185 = vadd.xlane.f32.xlu0 %v7184_v27 }
0x29ce   :  { %v7183_v2 = vmul.f32 %v7181_v57, %v7181_v57 }
0x29d0   :  { %v7187_v59 = vsel %vm152_vm0, %v7183_v2, 0.0 }
0x29d1   :  { %7188 = vadd.xlane.f32.xlu1 %v7187_v59 }
0x2a5a   :  { %v7186_v32 = vpop.xlane.xlu0 %7185 }
0x2a5b   :  { %v7190_v48 = vmul.f32 0.03125, %v7186_v32 }
0x2a5d   :  { %v7192_v20 = vadd.f32 1e-05, %v7190_v48 }
0x2a5e   :  { %v7189_v29 = vpop.xlane.xlu1 %7188 }
0x2a5f   :  { %9620 = vrsqrt.f32 %v7192_v20  ;;  %v7191_v31 = vmul.f32 0.03125, %v7189_v29 }
0x2a61   :  { %v7193_v54 = vadd.f32 1e-05, %v7191_v31 }
0x2a63   :  { %9622 = vrsqrt.f32 %v7193_v54 }
0x2a69   :  { %v9621_v44 = vpop.eup %9620 }
0x2a6a   :  { %v7196_v1 = vmul.f32 %v9621_v44, %v7180_v13 }
0x2a6c   :  { %v7204_v4 = vmul.f32 %v7439_v61, %v7196_v1 }
0x2a6d   :  { %v9623_v23 = vpop.eup %9622 }
0x2a6e   :  { %v7212_v55 = vadd.f32 %v7440_v34, %v7204_v4  ;;  %v7197_v7 = vmul.f32 %v9623_v23, %v7181_v57 }
0x2a70   :  { %7214 = vst.msk [vmem:[%s7251_s28] sm:$0xff] %vm152_vm0, %v7212_v55  ;;  %v7205_v56 = vmul.f32 %v7439_v61, %v7197_v7 }
0x2a72   :  { %v7213_v43 = vadd.f32 %v7440_v34, %v7205_v56 }
0x2a74   :  { %7215 = vst.msk [vmem:[%s7251_s28 + $0x8] sm:$0xff] %vm152_vm0, %v7213_v43 }

// kernel: video_transformer_forward.2
= control target key start
LH: loop header
LB: loop body
LE: loop exit
PB: predicated region body
PF: predicated region fallthrough
CT: control target
= control target key end

     0   :  { %s8499_s3 = smov 3   ;;  %vm8501_vm0 = vmmov 0   ;;  %s8503_s10 = smov 4   ;;  %vm375_vm1 = vcmask 130048   ;;  %vm473_vm2 = vcmask 261120   ;;  %vm480_vm3 = vcmask 257024   ;;  %s9877_s0 = inlined_call_operand.smem [shape: u32[39], index: -1, kind: input, shape index: {}] }
   0x1   :  { %s8548_s6 = sld [smem:[%s9877_s0 + %s8499_s3]]   ;;  %s8504_s14 = smov 1   ;;  %vm943_vm4 = vcmask 1043456   ;;  %vm794_vm5 = vcmask 523264   ;;  %vm899_vm7 = vcmask 162816   ;;  %vm906_vm8 = vcmask 158720  }
   0x2   :  { %s8573_s9 = sld [smem:[%s9877_s0]]   ;;  %s8505_s18 = smov 2   ;;  %vm8751_vm6 = vmpackc.low %vm794_vm5, %vm794_vm5  ;;  %vm4008_vm9 = vcmask 27648   ;;  %vm4020_vm10 = vcmask 31744  }
   0x3   :  { %s6116_s13 = sld [smem:[%s9877_s0 + %s8503_s10]]   ;;  %s8506_s22 = smov 8  }
   0x4   :  { %s6113_s17 = sld [smem:[%s9877_s0 + %s8504_s14]]   ;;  %s8507_s26 = smov 10  }
   0x5   :  { %s6114_s21 = sld [smem:[%s9877_s0 + %s8505_s18]]   ;;  %s8508_s30 = smov 6  }
   0x6   :  { %s8660_s25 = sld [smem:[%s9877_s0 + %s8506_s22]]   ;;  %s8509_s4 = smov 7  }
   0x7   :  { %v180_v0 = vld [vmem:[%s8548_s6 + $0x80] sm:$0xff]  ;;  %v181_v1 = vld [vmem:[%s8548_s6 + $0x88] sm:$0xff]  ;;  %v182_v5 = vld [vmem:[%s8548_s6 + $0x90] sm:$0xff]  ;;  %s8665_s29 = sld [smem:[%s9877_s0 + %s8507_s26]]   ;;  %s8510_s8 = smov 9  }
   0x8   :  { %v164_v2 = vld [vmem:[%s8548_s6] sm:$0xff]  ;;  %v7877_v3 = vpack.c.bf16 %v181_v1, %v180_v0  ;;  %v165_v4 = vld [vmem:[%s8548_s6 + $0x8] sm:$0xff]  ;;  %v183_v6 = vld [vmem:[%s8548_s6 + $0x98] sm:$0xff]  ;;  %s8682_s3 = sld [smem:[%s9877_s0 + %s8508_s30]]   ;;  %s8511_s12 = smov 5  }
   0x9   :  { %v7879_v7 = vpack.c.bf16 %v165_v4, %v164_v2  ;;  %v7881_v8 = vpack.c.bf16 %v183_v6, %v182_v5  ;;  %v196_v9 = vld [vmem:[%s8548_s6 + $0x100] sm:$0xff]  ;;  %v197_v10 = vld [vmem:[%s8548_s6 + $0x108] sm:$0xff]  ;;  %v166_v11 = vld [vmem:[%s8548_s6 + $0x10] sm:$0xff]  ;;  %s8687_s7 = sld [smem:[%s9877_s0 + %s8509_s4]]   ;;  %s8512_s16 = smov 11  }
   0xa   :  { %7878 = vmatprep.subr.bf16.mxu0 %v7877_v3  ;;  %v7909_v12 = vpack.c.bf16 %v197_v10, %v196_v9  ;;  %v167_v13 = vld [vmem:[%s8548_s6 + $0x18] sm:$0xff]  ;;  %v184_v14 = vld [vmem:[%s8548_s6 + $0xa0] sm:$0xff]  ;;  %v185_v15 = vld [vmem:[%s8548_s6 + $0xa8] sm:$0xff]  ;;  %s8692_s11 = sld [smem:[%s9877_s0 + %s8510_s8]]   ;;  %s8513_s20 = smov 12  }
   0xb   :  { %7880 = vmatpush3.bf16.msra.mxu0 %v7879_v7  ;;  %v7883_v16 = vpack.c.bf16 %v167_v13, %v166_v11  ;;  %v198_v17 = vld [vmem:[%s8548_s6 + $0x110] sm:$0xff]  ;;  %v199_v18 = vld [vmem:[%s8548_s6 + $0x118] sm:$0xff]  ;;  %v7885_v19 = vpack.c.bf16 %v185_v15, %v184_v14  ;;  %v168_v21 = vld [vmem:[%s8548_s6 + $0x20] sm:$0xff]  ;;  %v8500_v14 = vmov 0.0|0.0   ;;  %v8502_v15 = vmov 0.0   ;;  %s8808_s15 = sld [smem:[%s9877_s0 + %s8511_s12]]   ;;  %s8514_s24 = smov 15  }
   0xc   :  { %7882 = vmatprep.subr.bf16.mxu0 %v7881_v8  ;;  %7910 = vmatprep.subr.bf16.mxu1 %v7909_v12  ;;  %v7913_v20 = vpack.c.bf16 %v199_v18, %v198_v17  ;;  %v169_v22 = vld [vmem:[%s8548_s6 + $0x28] sm:$0xff]  ;;  %v186_v23 = vld [vmem:[%s8548_s6 + $0xb0] sm:$0xff]  ;;  %v187_v24 = vld [vmem:[%s8548_s6 + $0xb8] sm:$0xff]  ;;  %s8899_s19 = sld [smem:[%s9877_s0 + %s8512_s16]]   ;;  %s8515_s30 = smov 17  }
   0xd   :  { %7912 = vmatpush3.bf16.msra.mxu1 %v7909_v12  ;;  %v200_v25 = vld [vmem:[%s8548_s6 + $0x120] sm:$0xff]  ;;  %v201_v26 = vld [vmem:[%s8548_s6 + $0x128] sm:$0xff]  ;;  %v7887_v28 = vpack.c.bf16 %v169_v22, %v168_v21  ;;  %v202_v29 = vld [vmem:[%s8548_s6 + $0x130] sm:$0xff]  ;;  %v7889_v31 = vpack.c.bf16 %v187_v24, %v186_v23  ;;  %s8958_s23 = sld [smem:[%s9877_s0 + %s8513_s20]]   ;;  %s8516_s5 = smov 13  }
   0xe   :  { %7914 = vmatprep.subr.bf16.mxu1 %v7913_v20  ;;  %v7917_v27 = vpack.c.bf16 %v201_v26, %v200_v25  ;;  %v203_v30 = vld [vmem:[%s8548_s6 + $0x138] sm:$0xff]  ;;  %v170_v32 = vld [vmem:[%s8548_s6 + $0x30] sm:$0xff]  ;;  %v188_v34 = vld [vmem:[%s8548_s6 + $0xc0] sm:$0xff]  ;;  %s8997_s28 = sld [smem:[%s9877_s0 + %s8514_s24]]   ;;  %s8517_s10 = smov 14  }
   0xf   :  { %7884 = vmatpush3.bf16.msra.mxu0 %v7883_v16  ;;  %v171_v33 = vld [vmem:[%s8548_s6 + $0x38] sm:$0xff]  ;;  %v189_v35 = vld [vmem:[%s8548_s6 + $0xc8] sm:$0xff]  ;;  %v7921_v36 = vpack.c.bf16 %v203_v30, %v202_v29  ;;  %v204_v38 = vld [vmem:[%s8548_s6 + $0x140] sm:$0xff]  ;;  %s9008_s4 = sld [smem:[%s9877_s0 + %s8515_s30]]   ;;  %s8518_s16 = smov 16  }
  0x10   :  { %7886 = vmatprep.subr.bf16.mxu0 %v7885_v19  ;;  %v7891_v37 = vpack.c.bf16 %v171_v33, %v170_v32  ;;  %v205_v39 = vld [vmem:[%s8548_s6 + $0x148] sm:$0xff]  ;;  %v7893_v40 = vpack.c.bf16 %v189_v35, %v188_v34  ;;  %v172_v41 = vld [vmem:[%s8548_s6 + $0x40] sm:$0xff]  ;;  %v190_v43 = vld [vmem:[%s8548_s6 + $0xd0] sm:$0xff]  ;;  %s9027_s14 = sld [smem:[%s9877_s0 + %s8517_s10]]   ;;  %s8522_s27 = smov 21  }
  0x11   :  { %7916 = vmatpush3.bf16.msra.mxu1 %v7913_v20  ;;  %v173_v42 = vld [vmem:[%s8548_s6 + $0x48] sm:$0xff]  ;;  %v191_v44 = vld [vmem:[%s8548_s6 + $0xd8] sm:$0xff]  ;;  %v7925_v45 = vpack.c.bf16 %v205_v39, %v204_v38  ;;  %v206_v48 = vld [vmem:[%s8548_s6 + $0x150] sm:$0xff]  ;;  %s9061_s20 = sld [smem:[%s9877_s0 + %s8518_s16]]   ;;  %s8523_s2 = smov 25  }
  0x12   :  { %7918 = vmatprep.subr.bf16.mxu1 %v7917_v27  ;;  %v159_v46 = vld [vmem:[%s8573_s9 + $0x8] sm:$0xff]  ;;  %v7895_v47 = vpack.c.bf16 %v173_v42, %v172_v41  ;;  %v207_v49 = vld [vmem:[%s8548_s6 + $0x158] sm:$0xff]  ;;  %v7897_v50 = vpack.c.bf16 %v191_v44, %v190_v43  ;;  %v174_v51 = vld [vmem:[%s8548_s6 + $0x50] sm:$0xff]  ;;  %s6133_s1 = sld [smem:[%s9877_s0 + %s8522_s27]]   ;;  %s8524_s8 = smov 23  }
  0x13   :  { %7888 = vmatpush3.bf16.msra.mxu0 %v7887_v28  ;;  %283 = vmatprep.mubr.f32.mxu0 %v159_v46  ;;  %v175_v52 = vld [vmem:[%s8548_s6 + $0x58] sm:$0xff]  ;;  %v160_v53 = vld [vmem:[%s8573_s9 + $0x10] sm:$0xff]  ;;  %v192_v54 = vld [vmem:[%s8548_s6 + $0xe0] sm:$0xff]  ;;  %v7929_v56 = vpack.c.bf16 %v207_v49, %v206_v48  ;;  %s9467_s12 = sld [smem:[%s9877_s0 + %s8524_s8]]   ;;  %s8526_s18 = smov 24  }
  0x14   :  { %7890 = vmatprep.subr.bf16.mxu0 %v7889_v31  ;;  %v193_v55 = vld [vmem:[%s8548_s6 + $0xe8] sm:$0xff]  ;;  %6972 = vmatprep.mubr.f32.mxu1 %v160_v53  ;;  %v7899_v57 = vpack.c.bf16 %v175_v52, %v174_v51  ;;  %v208_v58 = vld [vmem:[%s8548_s6 + $0x160] sm:$0xff]  ;;  %v194_v63 = vld [vmem:[%s8548_s6 + $0xf0] sm:$0xff]  ;;  %s9477_s22 = sld [smem:[%s9877_s0 + %s8526_s18]]   ;;  %s8527_s24 = smov 27  }
  0x15   :  { %7920 = vmatpush3.bf16.msra.mxu1 %v7917_v27  ;;  %v209_v59 = vld [vmem:[%s8548_s6 + $0x168] sm:$0xff]  ;;  %v7901_v60 = vpack.c.bf16 %v193_v55, %v192_v54  ;;  %v176_v61 = vld [vmem:[%s8548_s6 + $0x60] sm:$0xff]  ;;  %v195_v0 = vld [vmem:[%s8548_s6 + $0xf8] sm:$0xff]  ;;  %s8530_s30 = smov 29  }
  0x16   :  { %7922 = vmatprep.subr.bf16.mxu1 %v7921_v36  ;;  %v177_v62 = vld [vmem:[%s8548_s6 + $0x68] sm:$0xff]  ;;  %v7933_v1 = vpack.c.bf16 %v209_v59, %v208_v58  ;;  %v210_v3 = vld [vmem:[%s8548_s6 + $0x170] sm:$0xff]  ;;  %v211_v4 = vld [vmem:[%s8548_s6 + $0x178] sm:$0xff]  ;;  %v7905_v5 = vpack.c.bf16 %v195_v0, %v194_v63 }
  0x17   :  { %7892 = vmatpush3.bf16.msra.mxu0 %v7891_v37  ;;  %v7903_v2 = vpack.c.bf16 %v177_v62, %v176_v61  ;;  %v178_v6 = vld [vmem:[%s8548_s6 + $0x70] sm:$0xff]  ;;  %v179_v7 = vld [vmem:[%s8548_s6 + $0x78] sm:$0xff]  ;;  %v7937_v8 = vpack.c.bf16 %v211_v4, %v210_v3  ;;  %v158_v10 = vld [vmem:[%s8573_s9] sm:$0xff]  ;;  %s9456_s6 = sld [smem:[%s9877_s0 + %s8523_s2]]  }
  0x18   :  { %7894 = vmatprep.subr.bf16.mxu0 %v7893_v40  ;;  %v7907_v9 = vpack.c.bf16 %v179_v7, %v178_v6  ;;  %v162_v11 = vld [vmem:[%s8573_s9 + $0x20] sm:$0xff]  ;;  %v163_v12 = vld [vmem:[%s8573_s9 + $0x28] sm:$0xff]  ;;  %v161_v13 = vld [vmem:[%s8573_s9 + $0x18] sm:$0xff]  ;;  %s9022_s9 = sld [smem:[%s9877_s0 + %s8516_s5]]   ;;  %s8531_s5 = smov 32  }
  0x19   :  { %7924 = vmatpush3.bf16.msra.mxu1 %v7921_v36  ;;  %v6151_v18 = vld [vmem:[%s6116_s13] ss:$0 sm:$0xff]  ;;  %v373_v31 = vld [vmem:[%s6113_s17 + $0x8] sm:$0xff]  ;;  %v374_v32 = vld [vmem:[%s6113_s17 + $0x10] sm:$0xf]  ;;  %s8525_s13 = smov 26   ;;  %s9627_s10 = sld [smem:[%s9877_s0 + %s8531_s5]]  }
  0x1a   :  { %7926 = vmatprep.subr.bf16.mxu1 %v7925_v45  ;;  %v372_v30 = vld [vmem:[%s6113_s17] sm:$0xff]  ;;  %v370_v37 = vld [vmem:[%s6114_s21 + $0x8] sm:$0xff]  ;;  %v371_v42 = vld [vmem:[%s6114_s21 + $0x10] sm:$0xf]  ;;  %s9472_s17 = sld [smem:[%s9877_s0 + %s8525_s13]]   ;;  %s8532_s13 = smov 34  }
  0x1b   :  { %7896 = vmatpush3.bf16.msra.mxu0 %v7895_v47  ;;  %v369_v33 = vld [vmem:[%s6114_s21] sm:$0xff]  ;;  %v534_v0 = vld [vmem:[%s8660_s25 + $0x8] sm:$0xff]  ;;  %v536_v6 = vld [vmem:[%s8660_s25 + $0x18] sm:$0xff]  ;;  %s8519_s21 = smov 18   ;;  %s9638_s18 = sld [smem:[%s9877_s0 + %s8532_s13]]  }
  0x1c   :  { %7898 = vmatprep.subr.bf16.mxu0 %v7897_v50  ;;  %v533_v63 = vld [vmem:[%s8660_s25] sm:$0xff]  ;;  %v711_v3 = vld [vmem:[%s8665_s29 + $0x8] sm:$0xff]  ;;  %v712_v7 = vld [vmem:[%s8665_s29 + $0x10] sm:$0xff]  ;;  %s9073_s26 = sld [smem:[%s9877_s0 + %s8519_s21]]  }
  0x1d   :  { %7928 = vmatpush3.bf16.msra.mxu1 %v7925_v45 }
  0x1e   :  { %7930 = vmatprep.subr.bf16.mxu1 %v7929_v56 }
  0x1f   :  { %7900 = vmatpush3.bf16.msra.mxu0 %v7899_v57 }
  0x20   :  { %7902 = vmatprep.subr.bf16.mxu0 %v7901_v60 }
  0x21   :  { %7932 = vmatpush3.bf16.msra.mxu1 %v7929_v56 }
  0x22   :  { %7934 = vmatprep.subr.bf16.mxu1 %v7933_v1 }
  0x23   :  { %7904 = vmatpush3.bf16.msra.mxu0 %v7903_v2  ;;  %v7945_v2 = vpack.c.bf16 %v534_v0, %v533_v63 }
  0x24   :  { %7906 = vmatprep.subr.bf16.mxu0 %v7905_v5  ;;  %v535_v5 = vld [vmem:[%s8660_s25 + $0x10] sm:$0xff] }
  0x25   :  { %7936 = vmatpush3.bf16.msra.mxu1 %v7933_v1  ;;  %v710_v1 = vld [vmem:[%s8665_s29] sm:$0xff] }
  0x26   :  { %7938 = vmatprep.subr.bf16.mxu1 %v7937_v8  ;;  %v7957_v4 = vpack.c.bf16 %v711_v3, %v710_v1  ;;  %v6177_v3 = vld [vmem:[%s8660_s25 + $0x28] sm:$0xff] }
  0x27   :  { %7908 = vmatpush3.bf16.msra.mxu0 %v7907_v9  ;;  %v713_v9 = vld [vmem:[%s8665_s29 + $0x18] sm:$0xff] }
  0x28   :  { %7956 = vmatprep.subr.bf16.mxu0 %v8500_v14 }
  0x29   :  { %7940 = vmatpush3.bf16.msra.mxu1 %v7937_v8  ;;  %v7948_v8 = vpack.c.bf16 %v536_v6, %v535_v5  ;;  %v6178_v5 = vld [vmem:[%s8660_s25 + $0x30] sm:$0xff]  ;;  %v6179_v6 = vld [vmem:[%s8660_s25 + $0x38] sm:$0xff] }
  0x2a   :  { %284 = vmatmul.mubr.f32.vlgmr.msra.gmra.mrb[0].mxu0 %v158_v10  ;;  %7941 = vmatprep.subr.bf16.mxu1 %v8500_v14  ;;  %v7960_v10 = vpack.c.bf16 %v713_v9, %v712_v7  ;;  %v7973_v7 = vpack.c.bf16 %v6179_v6, %v6178_v5  ;;  %v6191_v9 = vld [vmem:[%s8665_s29 + $0x28] sm:$0xff] }
  0x2b   :  { %288 = vmatprep.mubr.f32.mxu0 %v162_v11  ;;  %7958 = vmatpush3.bf16.msra.mxu0 %v7957_v4 }
  0x2c   :  { %6973 = vmatmul.mubr.f32.vlgmr.msra.gmra.mrb[0].mxu1 %v163_v12  ;;  %7959 = vmatprep.subr.bf16.mxu0 %v8500_v14 }
  0x2d   :  { %6979 = vmatprep.mubr.msk.f32.mxu1 %vm8501_vm0, %v8502_v15 }
  0x2e   :  { %289 = vmatmul.mubr.f32.gmra.mrb[2].mxu0 %v161_v13 }
  0x2f   :  { %7030 = vmatprep.mubr.msk.f32.mxu0 %vm8501_vm0, %v8502_v15  ;;  %7961 = vmatpush3.bf16.msra.mxu0 %v7960_v10 }
  0x30   :  { %7966 = vmatprep.subr.bf16.mxu0 %v8500_v14 }
  0xfd   :  { %v6523_v16 = vpop.f32.mrb[0].mxu0 }
  0xfe   :  { %v6524_v17 = vpop.f32.mrb[1].mxu0 }
  0xff   :  { %v6525_v19 = vadd.f32 %v6524_v17, %v6523_v16  ;;  %v6974_v20 = vpop.f32.mrb[0].mxu1 }
 0x100   :  { %v360_v21 = vpop.f32.mrb[1].mxu1 }
 0x101   :  { %v6526_v22 = vpop.f32.mrb[2].mxu0  ;;  %v286_v23 = vadd.f32 %v6525_v19, %v6151_v18 }
 0x102   :  { %v6527_v24 = vpop.f32.mrb[3].mxu0 }
 0x103   :  { %v6528_v25 = vadd.f32 %v6527_v24, %v6526_v22  ;;  %v361_v26 = vadd.f32 %v360_v21, %v286_v23  ;;  %v6155_v23 = vld [vmem:[%s8682_s3] ss:$0 sm:$0xff] }
 0x105   :  { %v291_v27 = vadd.f32 %v6528_v25, %v6151_v18  ;;  %v6156_v25 = vld [vmem:[%s8687_s7] ss:$0 sm:$0xff] }
 0x107   :  { %v366_v28 = vadd.f32 %v6974_v20, %v291_v27  ;;  %v627_v27 = vld [vmem:[%s8692_s11 + $0x8] sm:$0xff] }
 0x109   :  { %v7942_v29 = vpack.c.bf16 %v366_v28, %v361_v26  ;;  %v626_v26 = vld [vmem:[%s8692_s11] sm:$0xff] }
 0x10b   :  { %7943 = vmatpush3.bf16.msra.mxu1 %v7942_v29 }
 0x10c   :  { %7944 = vmatprep.subr.bf16.mxu1 %v8500_v14 }
 0x10e   :  { %6980 = vmatmul.mubr.msk.f32.vlgmr.msra.gmra.mrb[2].mxu1 %vm375_vm1, %v372_v30 }
 0x10f   :  { %6982 = vmatprep.mubr.msk.f32.mxu1 %vm8501_vm0, %v8502_v15  ;;  %7946 = vmatpush3.bf16.msra.mxu1 %v7945_v2  ;;  %v6176_v2 = vld [vmem:[%s8660_s25 + $0x20] sm:$0xff] }
 0x110   :  { %7947 = vmatprep.subr.bf16.mxu1 %v8500_v14  ;;  %v7970_v4 = vpack.c.bf16 %v6177_v3, %v6176_v2 }
 0x112   :  { %6983 = vmatmul.mubr.msk.f32.gmra.mrb[4].mxu1 %vm375_vm1, %v373_v31 }
 0x113   :  { %6985 = vmatprep.mubr.msk.f32.mxu1 %vm8501_vm0, %v8502_v15  ;;  %7949 = vmatpush3.bf16.msra.mxu1 %v7948_v8  ;;  %v6190_v8 = vld [vmem:[%s8665_s29 + $0x20] sm:$0xff] }
 0x114   :  { %7950 = vmatprep.subr.bf16.mxu1 %v8500_v14  ;;  %v7982_v10 = vpack.c.bf16 %v6191_v9, %v6190_v8  ;;  %v6183_v8 = vld [vmem:[%s8692_s11 + $0x20] sm:$0xff]  ;;  %v6184_v9 = vld [vmem:[%s8692_s11 + $0x28] sm:$0xff] }
 0x116   :  { %6986 = vmatmul.mubr.msk.f32.gmra.mrb[6].mxu1 %vm375_vm1, %v374_v32  ;;  %v7951_v32 = vpack.c.bf16 %v627_v27, %v626_v26 }
 0x117   :  { %6996 = vmatprep.mubr.msk.f32.mxu1 %vm8501_vm0, %v8502_v15 }
 0x1e1   :  { %v451_v34 = vpop.f32.mrb[2].mxu1 }
 0x1e2   :  { %v8631_v35 = vadd.f32 %v451_v34, %v369_v33  ;;  %v6981_v36 = vpop.f32.mrb[3].mxu1  ;;  %v628_v33 = vld [vmem:[%s8692_s11 + $0x10] sm:$0xff]  ;;  %v629_v34 = vld [vmem:[%s8692_s11 + $0x18] sm:$0xff] }
 0x1e4   :  { %v474_v38 = vsel %vm473_vm2, %v8631_v35, 0.0 }
 0x1e5   :  { %475 = vadd.xlane.f32.xlu0 %v474_v38  ;;  %v456_v39 = vpop.f32.mrb[4].mxu1 }
 0x1e6   :  { %v8635_v40 = vadd.f32 %v456_v39, %v370_v37  ;;  %v6984_v41 = vpop.f32.mrb[5].mxu1 }
 0x1e7   :  { %v7954_v41 = vpack.c.bf16 %v629_v34, %v628_v33 }
 0x1e8   :  { %v477_v43 = vsel %vm473_vm2, %v8635_v40, 0.0 }
 0x1e9   :  { %478 = vadd.xlane.f32.xlu0 %v477_v43  ;;  %v461_v44 = vpop.f32.mrb[6].mxu1 }
 0x1ea   :  { %v8639_v45 = vadd.f32 %v461_v44, %v371_v42  ;;  %v6987_v46 = vpop.f32.mrb[7].mxu1 }
 0x1ec   :  { %v481_v47 = vsel %vm480_vm3, %v8639_v45, 0.0 }
 0x1ed   :  { %482 = vadd.xlane.f32.xlu1 %v481_v47 }
 0x272   :  { %v476_v48 = vpop.xlane.xlu0 %475 }
 0x273   :  { %v485_v49 = vmul.f32 0.03125, %v476_v48 }
 0x275   :  { %v488_v50 = vsub.f32 %v8631_v35, %v485_v49 }
 0x276   :  { %v479_v51 = vpop.xlane.xlu0 %478 }
 0x277   :  { %v486_v52 = vmul.f32 0.03125, %v479_v51  ;;  %v491_v53 = vmul.f32 %v488_v50, %v488_v50 }
 0x279   :  { %v8645_v54 = vsub.f32 %v8635_v40, %v486_v52  ;;  %v494_v55 = vsel %vm473_vm2, %v491_v53, 0.0 }
 0x27a   :  { %495 = vadd.xlane.f32.xlu1 %v494_v55  ;;  %v483_v56 = vpop.xlane.xlu1 %482 }
 0x27b   :  { %v487_v57 = vmul.f32 0.03125, %v483_v56  ;;  %v492_v58 = vmul.f32 %v8645_v54, %v8645_v54 }
 0x27d   :  { %v8651_v59 = vsub.f32 %v8639_v45, %v487_v57  ;;  %v497_v60 = vsel %vm473_vm2, %v492_v58, 0.0 }
 0x27e   :  { %498 = vadd.xlane.f32.xlu0 %v497_v60 }
 0x27f   :  { %v493_v61 = vmul.f32 %v8651_v59, %v8651_v59 }
 0x281   :  { %v500_v62 = vsel %vm480_vm3, %v493_v61, 0.0 }
 0x282   :  { %501 = vadd.xlane.f32.xlu1 %v500_v62 }
 0x307   :  { %v496_v11 = vpop.xlane.xlu1 %495 }
 0x308   :  { %v503_v12 = vmul.f32 0.03125, %v496_v11  ;;  %v6192_v11 = vld [vmem:[%s8665_s29 + $0x30] sm:$0xff] }
 0x30a   :  { %v506_v13 = vadd.f32 1e-05, %v503_v12  ;;  %v6193_v12 = vld [vmem:[%s8665_s29 + $0x38] sm:$0xff] }
 0x30b   :  { %v499_v16 = vpop.xlane.xlu0 %498 }
 0x30c   :  { %8376 = vrsqrt.f32 %v506_v13  ;;  %v504_v17 = vmul.f32 0.03125, %v499_v16  ;;  %v7985_v13 = vpack.c.bf16 %v6193_v12, %v6192_v11  ;;  %v7976_v11 = vpack.c.bf16 %v6184_v9, %v6183_v8  ;;  %v6210_v9 = vld [vmem:[%s8899_s19 + $0x58] sm:$0xff] }
 0x30e   :  { %v507_v18 = vadd.f32 1e-05, %v504_v17  ;;  %v8811_v17 = vld [vmem:[%s8808_s15] sm:$0xff] }
 0x30f   :  { %v502_v19 = vpop.xlane.xlu1 %501 }
 0x310   :  { %8378 = vrsqrt.f32 %v507_v18  ;;  %v505_v20 = vmul.f32 0.03125, %v502_v19 }
 0x312   :  { %v508_v21 = vadd.f32 1e-05, %v505_v20 }
 0x314   :  { %8380 = vrsqrt.f32 %v508_v21 }
 0x316   :  { %v8377_v22 = vpop.eup %8376 }
 0x317   :  { %v512_v24 = vmul.f32 %v8377_v22, %v488_v50  ;;  %v8815_v22 = vld [vmem:[%s8808_s15 + $0x8] sm:$0xff] }
 0x319   :  { %v521_v28 = vmul.f32 %v6155_v23, %v512_v24 }
 0x31a   :  { %v8379_v29 = vpop.eup %8378 }
 0x31b   :  { %v8698_v30 = vadd.f32 %v6156_v25, %v521_v28  ;;  %v513_v31 = vmul.f32 %v8379_v29, %v8645_v54  ;;  %v8820_v28 = vld [vmem:[%s8808_s15 + $0x10] sm:$0xf] }
 0x31d   :  { %v522_v36 = vmul.f32 %v6155_v23, %v513_v31  ;;  %6997 = vmatmul.mubr.msk.f32.vlgmr.msra.gmra.mrb[8].mxu1 %vm473_vm2, %v8698_v30  ;;  %7031 = vmatmul.mubr.msk.f32.vlgmr.msra.gmra.mrb[4].mxu0 %vm473_vm2, %v8698_v30 }
 0x31e   :  { %v8381_v37 = vpop.eup %8380  ;;  %6999 = vmatprep.mubr.msk.f32.mxu1 %vm8501_vm0, %v8502_v15  ;;  %7033 = vmatprep.mubr.msk.f32.mxu0 %vm8501_vm0, %v8502_v15 }
 0x31f   :  { %v8711_v38 = vadd.f32 %v6156_v25, %v522_v36  ;;  %v514_v39 = vmul.f32 %v8381_v37, %v8651_v59  ;;  %7952 = vmatpush3.bf16.msra.mxu1 %v7951_v32 }
 0x320   :  { %7953 = vmatprep.subr.bf16.mxu1 %v8500_v14 }
 0x321   :  { %v523_v42 = vmul.f32 %v6155_v23, %v514_v39  ;;  %7000 = vmatmul.mubr.msk.f32.gmra.mrb[10].mxu1 %vm473_vm2, %v8711_v38  ;;  %7034 = vmatmul.mubr.msk.f32.gmra.mrb[6].mxu0 %vm473_vm2, %v8711_v38 }
 0x322   :  { %7002 = vmatprep.mubr.msk.f32.mxu1 %vm8501_vm0, %v8502_v15  ;;  %7036 = vmatprep.mubr.msk.f32.mxu0 %vm8501_vm0, %v8502_v15 }
 0x323   :  { %v8723_v43 = vadd.f32 %v6156_v25, %v523_v42  ;;  %7955 = vmatpush3.bf16.msra.mxu1 %v7954_v41 }
 0x324   :  { %7962 = vmatprep.subr.bf16.mxu1 %v8500_v14 }
 0x325   :  { %7003 = vmatmul.mubr.msk.f32.gmra.mrb[12].mxu1 %vm473_vm2, %v8723_v43  ;;  %7037 = vmatmul.mubr.msk.f32.gmra.mrb[8].mxu0 %vm473_vm2, %v8723_v43 }
 0x326   :  { %7013 = vmatprep.mubr.msk.f32.mxu1 %vm8501_vm0, %v8502_v15  ;;  %7060 = vmatprep.mubr.msk.f32.mxu0 %vm8501_vm0, %v8502_v15 }
 0x329   :  { %7014 = vmatmul.mubr.msk.f32.vlgmr.msra.gmra.mrb[14].mxu1 %vm473_vm2, %v8698_v30 }
 0x32a   :  { %7016 = vmatprep.mubr.msk.f32.mxu1 %vm8501_vm0, %v8502_v15 }
 0x32d   :  { %7017 = vmatmul.mubr.msk.f32.gmra.mrb[16].mxu1 %vm473_vm2, %v8711_v38 }
 0x32e   :  { %7019 = vmatprep.mubr.msk.f32.mxu1 %vm8501_vm0, %v8502_v15 }
 0x331   :  { %7020 = vmatmul.mubr.msk.f32.gmra.mrb[18].mxu1 %vm473_vm2, %v8723_v43 }
 0x332   :  { %7045 = vmatprep.mubr.msk.f32.mxu1 %vm8501_vm0, %v8502_v15 }
 0x3f0   :  { %v612_v44 = vpop.f32.mrb[8].mxu1  ;;  %v780_v46 = vpop.f32.mrb[4].mxu0 }
 0x3f1   :  { %v6998_v47 = vpop.f32.mrb[9].mxu1  ;;  %v7032_v48 = vpop.f32.mrb[5].mxu0 }
 0x3f4   :  { %v617_v49 = vpop.f32.mrb[10].mxu1  ;;  %v785_v50 = vpop.f32.mrb[6].mxu0 }
 0x3f5   :  { %v7967_v51 = vpack.c.bf16 %v785_v50, %v780_v46  ;;  %v7001_v52 = vpop.f32.mrb[11].mxu1  ;;  %v7035_v53 = vpop.f32.mrb[7].mxu0 }
 0x3f7   :  { %7968 = vmatpush3.bf16.msra.mxu0 %v7967_v51 }
 0x3f8   :  { %v622_v54 = vpop.f32.mrb[12].mxu1  ;;  %v790_v55 = vpop.f32.mrb[8].mxu0  ;;  %7058 = vmatprep.subr.mxu0 %v8502_v15 }
 0x3f9   :  { %v7004_v56 = vpop.f32.mrb[13].mxu1  ;;  %v7038_v57 = vpop.f32.mrb[9].mxu0 }
 0x3fb   :  { %7059 = vmatpush3.msk.msra.mxu0 %vm943_vm4, %v790_v55 }
 0x3fc   :  { %v696_v58 = vpop.f32.mrb[14].mxu1  ;;  %7975 = vmatprep.subr.bf16.mxu0 %v8500_v14 }
 0x3fd   :  { %v7015_v59 = vpop.f32.mrb[15].mxu1 }
 0x400   :  { %v701_v60 = vpop.f32.mrb[16].mxu1 }
 0x401   :  { %v7963_v62 = vpack.c.bf16 %v701_v60, %v696_v58  ;;  %v7018_v63 = vpop.f32.mrb[17].mxu1 }
 0x403   :  { %7965 = vmatpush3.bf16.xpose.msk.msra.mxu1 %vm8751_vm6, %v7963_v62 }
 0x404   :  { %v706_v0 = vpop.f32.mrb[18].mxu1  ;;  %7043 = vmatprep.subr.mxu1 %v8502_v15 }
 0x405   :  { %v7021_v1 = vpop.f32.mrb[19].mxu1 }
 0x40b   :  { %7044 = vmatpush3.xpose.msk.msra.mxu1 %vm794_vm5, %v706_v0 }
 0x40c   :  { %7969 = vmatprep.subr.bf16.mxu1 %v8500_v14 }
 0x40e   :  { %7046 = vmatmul.mubr.msk.f32.vlgmr.msra.gmra.mrb[20].mxu1 %vm794_vm5, %v612_v44 }
 0x40f   :  { %7048 = vmatprep.mubr.msk.f32.mxu1 %vm8501_vm0, %v8502_v15  ;;  %7971 = vmatpush3.bf16.msra.mxu1 %v7970_v4 }
 0x410   :  { %7972 = vmatprep.subr.bf16.mxu1 %v8500_v14 }
 0x412   :  { %7049 = vmatmul.mubr.msk.f32.gmra.mrb[22].mxu1 %vm794_vm5, %v617_v49 }
 0x413   :  { %7051 = vmatprep.mubr.msk.f32.mxu1 %vm8501_vm0, %v8502_v15  ;;  %7974 = vmatpush3.bf16.msra.mxu1 %v7973_v7 }
 0x414   :  { %7981 = vmatprep.subr.bf16.mxu1 %v8500_v14 }
 0x416   :  { %7052 = vmatmul.mubr.msk.f32.gmra.mrb[24].mxu1 %vm794_vm5, %v622_v54 }
 0x417   :  { %7077 = vmatprep.mubr.msk.f32.mxu1 %vm8501_vm0, %v8502_v15 }
 0x41a   :  { %7078 = vmatmul.mubr.msk.f32.vlgmr.msra.gmra.mrb[26].mxu1 %vm473_vm2, %v8698_v30 }
 0x41b   :  { %7080 = vmatprep.mubr.msk.f32.mxu1 %vm8501_vm0, %v8502_v15  ;;  %7983 = vmatpush3.bf16.msra.mxu1 %v7982_v10 }
 0x41c   :  { %7984 = vmatprep.subr.bf16.mxu1 %v8500_v14 }
 0x41e   :  { %7081 = vmatmul.mubr.msk.f32.gmra.mrb[28].mxu1 %vm473_vm2, %v8711_v38 }
 0x41f   :  { %7083 = vmatprep.mubr.msk.f32.mxu1 %vm8501_vm0, %v8502_v15  ;;  %7986 = vmatpush3.bf16.msra.mxu1 %v7985_v13  ;;  %v6185_v13 = vld [vmem:[%s8692_s11 + $0x30] sm:$0xff] }
 0x420   :  { %7991 = vmatprep.subr.bf16.mxu1 %v8500_v14 }
 0x422   :  { %7084 = vmatmul.mubr.msk.f32.gmra.mrb[30].mxu1 %vm473_vm2, %v8723_v43 }
 0x423   :  { %7111 = vmatprep.mubr.msk.f32.mxu1 %vm8501_vm0, %v8502_v15 }
 0x426   :  { %7112 = vmatmul.mubr.msk.f32.vlgmr.msra.gmra.mrb[32].mxu1 %vm473_vm2, %v8698_v30 }
 0x427   :  { %7114 = vmatprep.mubr.msk.f32.mxu1 %vm8501_vm0, %v8502_v15 }
 0x42a   :  { %7115 = vmatmul.mubr.msk.f32.gmra.mrb[34].mxu1 %vm473_vm2, %v8711_v38 }
 0x42b   :  { %7117 = vmatprep.mubr.msk.f32.mxu1 %vm8501_vm0, %v8502_v15 }
 0x42e   :  { %7118 = vmatmul.mubr.msk.f32.gmra.mrb[36].mxu1 %vm473_vm2, %v8723_v43 }
 0x42f   :  { %7141 = vmatprep.mubr.msk.f32.mxu1 %vm8501_vm0, %v8502_v15 }
 0x4e1   :  { %v879_v16 = vpop.f32.mrb[20].mxu1 }
 0x4e2   :  { %v893_v18 = vmul.f32 0.125, %v879_v16  ;;  %v7047_v19 = vpop.f32.mrb[21].mxu1  ;;  %v6186_v16 = vld [vmem:[%s8692_s11 + $0x38] sm:$0xff] }
 0x4e3   :  { %v7979_v19 = vpack.c.bf16 %v6186_v16, %v6185_v13  ;;  %v6213_v16 = vld [vmem:[%s8899_s19 + $0x70] sm:$0xff] }
 0x4e4   :  { %v896_v20 = vadd.f32 %v893_v18, %v8811_v17 }
 0x4e5   :  { %v884_v21 = vpop.f32.mrb[22].mxu1 }
 0x4e6   :  { %v894_v23 = vmul.f32 0.125, %v884_v21  ;;  %v7050_v24 = vpop.f32.mrb[23].mxu1  ;;  %v900_v25 = vsel %vm899_vm7, %v896_v20, -inf }
 0x4e7   :  { %901 = vmax.xlane.f32.xlu0 %v900_v25 }
 0x4e8   :  { %v897_v26 = vadd.f32 %v894_v23, %v8815_v22 }
 0x4e9   :  { %v889_v27 = vpop.f32.mrb[24].mxu1 }
 0x4ea   :  { %v895_v29 = vmul.f32 0.125, %v889_v27  ;;  %v7053_v31 = vpop.f32.mrb[25].mxu1  ;;  %v903_v32 = vsel %vm899_vm7, %v897_v26, -inf }
 0x4eb   :  { %904 = vmax.xlane.f32.xlu1 %v903_v32 }
 0x4ec   :  { %v898_v33 = vadd.f32 %v895_v29, %v8820_v28 }
 0x4ed   :  { %v8824_v34 = vpop.f32.mrb[26].mxu1 }
 0x4ee   :  { %v7079_v36 = vpop.f32.mrb[27].mxu1  ;;  %v907_v37 = vsel %vm906_vm8, %v898_v33, -inf }
 0x4ef   :  { %908 = vmax.xlane.f32.xlu0 %v907_v37 }
 0x4f1   :  { %v8827_v39 = vpop.f32.mrb[28].mxu1 }
 0x4f2   :  { %v7082_v41 = vpop.f32.mrb[29].mxu1 }
 0x4f5   :  { %v8829_v42 = vpop.f32.mrb[30].mxu1 }
 0x4f6   :  { %v7085_v44 = vpop.f32.mrb[31].mxu1 }
 0x4f9   :  { %v1276_v46 = vpop.f32.mrb[32].mxu1 }
 0x4fa   :  { %v7113_v47 = vpop.f32.mrb[33].mxu1 }
 0x4fd   :  { %v1281_v48 = vpop.f32.mrb[34].mxu1 }
 0x4fe   :  { %v7992_v49 = vpack.c.bf16 %v1281_v48, %v1276_v46  ;;  %v7116_v50 = vpop.f32.mrb[35].mxu1 }
 0x500   :  { %7993 = vmatpush3.bf16.msra.mxu1 %v7992_v49 }
 0x501   :  { %v1286_v51 = vpop.f32.mrb[36].mxu1  ;;  %7139 = vmatprep.subr.mxu1 %v8502_v15 }
 0x502   :  { %v7119_v52 = vpop.f32.mrb[37].mxu1 }
 0x504   :  { %7140 = vmatpush3.msk.msra.mxu1 %vm943_vm4, %v1286_v51 }
 0x505   :  { %8006 = vmatprep.subr.bf16.mxu1 %v8500_v14 }
 0x574   :  { %v902_v53 = vpop.xlane.xlu0 %901 }
 0x575   :  { %v910_v54 = vsub.f32 %v896_v20, %v902_v53 }
 0x577   :  { %v913_v55 = vmul.f32 1.442695, %v910_v54 }
 0x578   :  { %v905_v56 = vpop.xlane.xlu1 %904 }
 0x579   :  { %8382 = vpow2.f32 %v913_v55  ;;  %v911_v57 = vsub.f32 %v897_v26, %v905_v56 }
 0x57b   :  { %v915_v58 = vmul.f32 1.442695, %v911_v57 }
 0x57c   :  { %v909_v59 = vpop.xlane.xlu0 %908 }
 0x57d   :  { %8384 = vpow2.f32 %v915_v58  ;;  %v912_v60 = vsub.f32 %v898_v33, %v909_v59 }
 0x57f   :  { %v917_v62 = vmul.f32 1.442695, %v912_v60 }
 0x581   :  { %8386 = vpow2.f32 %v917_v62 }
 0x583   :  { %v8383_v63 = vpop.eup %8382 }
 0x584   :  { %v919_v0 = vsel %vm899_vm7, %v8383_v63, 0.0 }
 0x585   :  { %920 = vadd.xlane.f32.xlu1 %v919_v0 }
 0x587   :  { %v8385_v1 = vpop.eup %8384 }
 0x588   :  { %v922_v2 = vsel %vm899_vm7, %v8385_v1, 0.0 }
 0x589   :  { %923 = vadd.xlane.f32.xlu0 %v922_v2 }
 0x58b   :  { %v8387_v3 = vpop.eup %8386 }
 0x58c   :  { %v925_v4 = vsel %vm906_vm8, %v8387_v3, 0.0 }
 0x58d   :  { %926 = vadd.xlane.f32.xlu1 %v925_v4 }
 0x612   :  { %v921_v5 = vpop.xlane.xlu1 %920 }
 0x613   :  { %8388 = vrcp.f32 %v921_v5  ;;  %v6207_v5 = vld [vmem:[%s8899_s19 + $0x40] sm:$0xff] }
 0x616   :  { %v924_v6 = vpop.xlane.xlu0 %923 }
 0x617   :  { %8390 = vrcp.f32 %v924_v6  ;;  %v6208_v6 = vld [vmem:[%s8899_s19 + $0x48] sm:$0xff] }
 0x618   :  { %v7995_v8 = vpack.c.bf16 %v6208_v6, %v6207_v5 }
 0x61a   :  { %v927_v7 = vpop.xlane.xlu1 %926 }
 0x61b   :  { %8392 = vrcp.f32 %v927_v7  ;;  %v6209_v7 = vld [vmem:[%s8899_s19 + $0x50] sm:$0xff] }
 0x61d   :  { %v8389_v10 = vpop.eup %8388 }
 0x61e   :  { %v931_v12 = vmul.f32 %v8389_v10, %v8383_v63  ;;  %v7998_v10 = vpack.c.bf16 %v6210_v9, %v6209_v7 }
 0x620   :  { %7061 = vmatmul.mubr.msk.f32.vlgmr.msra.gmra.mrb[10].mxu0 %vm899_vm7, %v931_v12  ;;  %v6212_v12 = vld [vmem:[%s8899_s19 + $0x68] sm:$0xff] }
 0x621   :  { %v8391_v18 = vpop.eup %8390  ;;  %7063 = vmatprep.mubr.msk.f32.mxu0 %vm8501_vm0, %v8502_v15  ;;  %7977 = vmatpush3.bf16.msra.mxu0 %v7976_v11  ;;  %v6211_v11 = vld [vmem:[%s8899_s19 + $0x60] sm:$0xff] }
 0x622   :  { %v932_v20 = vmul.f32 %v8391_v18, %v8385_v1  ;;  %7978 = vmatprep.subr.bf16.mxu0 %v8500_v14  ;;  %v8001_v13 = vpack.c.bf16 %v6212_v12, %v6211_v11  ;;  %v6214_v18 = vld [vmem:[%s8899_s19 + $0x78] sm:$0xff] }
 0x624   :  { %7064 = vmatmul.mubr.msk.f32.gmra.mrb[12].mxu0 %vm899_vm7, %v932_v20 }
 0x625   :  { %v8393_v21 = vpop.eup %8392  ;;  %7066 = vmatprep.mubr.msk.f32.mxu0 %vm8501_vm0, %v8502_v15  ;;  %7980 = vmatpush3.bf16.msra.mxu0 %v7979_v19  ;;  %v8004_v19 = vpack.c.bf16 %v6214_v18, %v6213_v16 }
 0x626   :  { %v933_v23 = vmul.f32 %v8393_v21, %v8387_v3  ;;  %7987 = vmatprep.subr.bf16.mxu0 %v8500_v14 }
 0x628   :  { %7067 = vmatmul.mubr.msk.f32.gmra.mrb[14].mxu0 %vm899_vm7, %v933_v23 }
 0x629   :  { %7094 = vmatprep.mubr.msk.f32.mxu0 %vm8501_vm0, %v8502_v15 }
 0x62c   :  { %7095 = vmatmul.mubr.msk.f32.vlgmr.msra.gmra.mrb[16].mxu0 %vm473_vm2, %v8698_v30 }
 0x62d   :  { %7097 = vmatprep.mubr.msk.f32.mxu0 %vm8501_vm0, %v8502_v15 }
 0x630   :  { %7098 = vmatmul.mubr.msk.f32.gmra.mrb[18].mxu0 %vm473_vm2, %v8711_v38 }
 0x631   :  { %7100 = vmatprep.mubr.msk.f32.mxu0 %vm8501_vm0, %v8502_v15 }
 0x634   :  { %7101 = vmatmul.mubr.msk.f32.gmra.mrb[20].mxu0 %vm473_vm2, %v8723_v43 }
 0x635   :  { %7126 = vmatprep.mubr.msk.f32.mxu0 %vm8501_vm0, %v8502_v15 }
 0x6f3   :  { %v8864_v24 = vpop.f32.mrb[10].mxu0 }
 0x6f4   :  { %v7062_v25 = vpop.f32.mrb[11].mxu0 }
 0x6f5   :  { %v1027_v25 = vld [vmem:[%s8899_s19] sm:$0xff] }
 0x6f7   :  { %v8866_v26 = vpop.f32.mrb[12].mxu0 }
 0x6f8   :  { %v7065_v30 = vpop.f32.mrb[13].mxu0 }
 0x6f9   :  { %v1028_v30 = vld [vmem:[%s8899_s19 + $0x8] sm:$0xff] }
 0x6fb   :  { %v8868_v27 = vpop.f32.mrb[14].mxu0 }
 0x6fc   :  { %v7068_v29 = vpop.f32.mrb[15].mxu0 }
 0x6ff   :  { %v1191_v31 = vpop.f32.mrb[16].mxu0 }
 0x700   :  { %v7096_v38 = vpop.f32.mrb[17].mxu0 }
 0x703   :  { %v1196_v32 = vpop.f32.mrb[18].mxu0 }
 0x704   :  { %v7988_v33 = vpack.c.bf16 %v1196_v32, %v1191_v31  ;;  %v7099_v36 = vpop.f32.mrb[19].mxu0  ;;  %v8007_v31 = vpack.c.bf16 %v1028_v30, %v1027_v25  ;;  %v1029_v32 = vld [vmem:[%s8899_s19 + $0x10] sm:$0xff] }
 0x706   :  { %7990 = vmatpush3.bf16.xpose.msk.msra.mxu0 %vm8751_vm6, %v7988_v33  ;;  %v1030_v33 = vld [vmem:[%s8899_s19 + $0x18] sm:$0xff] }
 0x707   :  { %v1201_v43 = vpop.f32.mrb[20].mxu0  ;;  %7124 = vmatprep.subr.mxu0 %v8502_v15 }
 0x708   :  { %v7102_v37 = vpop.f32.mrb[21].mxu0 }
 0x70e   :  { %7125 = vmatpush3.xpose.msk.msra.mxu0 %vm794_vm5, %v1201_v43  ;;  %v8010_v43 = vpack.c.bf16 %v1030_v33, %v1029_v32  ;;  %v1780_v33 = vld [vmem:[%s8997_s28 + $0x10] sm:$0xff] }
 0x70f   :  { %7994 = vmatprep.subr.bf16.mxu0 %v8500_v14 }
 0x711   :  { %7127 = vmatmul.mubr.msk.f32.vlgmr.msra.gmra.mrb[22].mxu0 %vm794_vm5, %v8824_v34 }
 0x712   :  { %7129 = vmatprep.mubr.msk.f32.mxu0 %vm8501_vm0, %v8502_v15  ;;  %7996 = vmatpush3.bf16.msra.mxu0 %v7995_v8 }
 0x713   :  { %7997 = vmatprep.subr.bf16.mxu0 %v8500_v14 }
 0x715   :  { %7130 = vmatmul.mubr.msk.f32.gmra.mrb[24].mxu0 %vm794_vm5, %v8827_v39 }
 0x716   :  { %7132 = vmatprep.mubr.msk.f32.mxu0 %vm8501_vm0, %v8502_v15  ;;  %7999 = vmatpush3.bf16.msra.mxu0 %v7998_v10 }
 0x717   :  { %8000 = vmatprep.subr.bf16.mxu0 %v8500_v14 }
 0x719   :  { %7133 = vmatmul.mubr.msk.f32.gmra.mrb[26].mxu0 %vm794_vm5, %v8829_v42 }
 0x71a   :  { %7166 = vmatprep.mubr.msk.f32.mxu0 %vm8501_vm0, %v8502_v15  ;;  %8002 = vmatpush3.bf16.msra.mxu0 %v8001_v13 }
 0x71b   :  { %8003 = vmatprep.subr.bf16.mxu0 %v8500_v14 }
 0x71e   :  { %8005 = vmatpush3.bf16.msra.mxu0 %v8004_v19 }
 0x71f   :  { %8018 = vmatprep.subr.bf16.mxu0 %v8500_v14 }
 0x7e4   :  { %v1374_v41 = vpop.f32.mrb[22].mxu0 }
 0x7e5   :  { %v1388_v44 = vmul.f32 0.125, %v1374_v41  ;;  %v7128_v46 = vpop.f32.mrb[23].mxu0  ;;  %v1031_v41 = vld [vmem:[%s8899_s19 + $0x20] sm:$0xff] }
 0x7e7   :  { %v1391_v34 = vadd.f32 %v1388_v44, %v8811_v17  ;;  %v1032_v44 = vld [vmem:[%s8899_s19 + $0x28] sm:$0xff] }
 0x7e8   :  { %v1379_v47 = vpop.f32.mrb[24].mxu0 }
 0x7e9   :  { %v1389_v48 = vmul.f32 0.125, %v1379_v47  ;;  %v7131_v49 = vpop.f32.mrb[25].mxu0  ;;  %v1394_v50 = vsel %vm899_vm7, %v1391_v34, -inf }
 0x7ea   :  { %1395 = vmax.xlane.f32.xlu0 %v1394_v50  ;;  %v1034_v49 = vld [vmem:[%s8899_s19 + $0x38] sm:$0xff] }
 0x7eb   :  { %v1392_v39 = vadd.f32 %v1389_v48, %v8815_v22  ;;  %v1033_v48 = vld [vmem:[%s8899_s19 + $0x30] sm:$0xff] }
 0x7ec   :  { %v1384_v51 = vpop.f32.mrb[26].mxu0  ;;  %v8016_v50 = vpack.c.bf16 %v1034_v49, %v1033_v48  ;;  %v1897_v48 = vld [vmem:[%s9008_s4 + $0x20] sm:$0xff]  ;;  %v1898_v49 = vld [vmem:[%s9008_s4 + $0x28] sm:$0xff] }
 0x7ed   :  { %v1390_v52 = vmul.f32 0.125, %v1384_v51  ;;  %v7134_v53 = vpop.f32.mrb[27].mxu0  ;;  %v1397_v42 = vsel %vm899_vm7, %v1392_v39, -inf }
 0x7ee   :  { %1398 = vmax.xlane.f32.xlu1 %v1397_v42 }
 0x7ef   :  { %v1393_v54 = vadd.f32 %v1390_v52, %v8820_v28 }
 0x7f1   :  { %v1400_v55 = vsel %vm906_vm8, %v1393_v54, -inf }
 0x7f2   :  { %1401 = vmax.xlane.f32.xlu0 %v1400_v55 }
 0x877   :  { %v1396_v17 = vpop.xlane.xlu0 %1395 }
 0x878   :  { %v1403_v56 = vsub.f32 %v1391_v34, %v1396_v17  ;;  %v8013_v34 = vpack.c.bf16 %v1032_v44, %v1031_v41  ;;  %v1894_v41 = vld [vmem:[%s9008_s4 + $0x8] sm:$0xff]  ;;  %v1895_v44 = vld [vmem:[%s9008_s4 + $0x10] sm:$0xff] }
 0x87a   :  { %v1406_v57 = vmul.f32 1.442695, %v1403_v56 }
 0x87b   :  { %v1399_v58 = vpop.xlane.xlu1 %1398 }
 0x87c   :  { %8394 = vpow2.f32 %v1406_v57  ;;  %v1404_v59 = vsub.f32 %v1392_v39, %v1399_v58 }
 0x87e   :  { %v1408_v60 = vmul.f32 1.442695, %v1404_v59 }
 0x87f   :  { %v1402_v62 = vpop.xlane.xlu0 %1401 }
 0x880   :  { %8396 = vpow2.f32 %v1408_v60  ;;  %v1405_v22 = vsub.f32 %v1393_v54, %v1402_v62  ;;  %v6221_v60 = vld [vmem:[%s8958_s23] ss:$0 sm:$0xff] }
 0x882   :  { %v1410_v63 = vmul.f32 1.442695, %v1405_v22 }
 0x884   :  { %8398 = vpow2.f32 %v1410_v63 }
 0x886   :  { %v8395_v0 = vpop.eup %8394 }
 0x887   :  { %v1412_v1 = vsel %vm899_vm7, %v8395_v0, 0.0 }
 0x888   :  { %1413 = vadd.xlane.f32.xlu1 %v1412_v1 }
 0x88a   :  { %v8397_v28 = vpop.eup %8396 }
 0x88b   :  { %v1415_v2 = vsel %vm899_vm7, %v8397_v28, 0.0 }
 0x88c   :  { %1416 = vadd.xlane.f32.xlu0 %v1415_v2 }
 0x88e   :  { %v8399_v3 = vpop.eup %8398 }
 0x88f   :  { %v1418_v4 = vsel %vm906_vm8, %v8399_v3, 0.0 }
 0x890   :  { %1419 = vadd.xlane.f32.xlu1 %v1418_v4 }
 0x915   :  { %v1414_v20 = vpop.xlane.xlu1 %1413 }
 0x916   :  { %8400 = vrcp.f32 %v1414_v20 }
 0x919   :  { %v1417_v21 = vpop.xlane.xlu0 %1416 }
 0x91a   :  { %8402 = vrcp.f32 %v1417_v21 }
 0x91d   :  { %v1420_v23 = vpop.xlane.xlu1 %1419 }
 0x91e   :  { %8404 = vrcp.f32 %v1420_v23 }
 0x920   :  { %v8401_v29 = vpop.eup %8400 }
 0x921   :  { %v1424_v38 = vmul.f32 %v8401_v29, %v8395_v0 }
 0x923   :  { %7142 = vmatmul.mubr.msk.f32.vlgmr.msra.gmra.mrb[38].mxu1 %vm899_vm7, %v1424_v38  ;;  %v1779_v38 = vld [vmem:[%s8997_s28 + $0x8] sm:$0xff] }
 0x924   :  { %v8403_v36 = vpop.eup %8402  ;;  %8008 = vmatpush3.bf16.msra.mxu1 %v8007_v31  ;;  %7144 = vmatprep.mubr.msk.f32.mxu1 %vm8501_vm0, %v8502_v15  ;;  %v1778_v31 = vld [vmem:[%s8997_s28] sm:$0xff] }
 0x925   :  { %8009 = vmatprep.subr.bf16.mxu1 %v8500_v14  ;;  %v1425_v37 = vmul.f32 %v8403_v36, %v8397_v28  ;;  %v8019_v32 = vpack.c.bf16 %v1779_v38, %v1778_v31  ;;  %v1781_v36 = vld [vmem:[%s8997_s28 + $0x18] sm:$0xff] }
 0x927   :  { %7145 = vmatmul.mubr.msk.f32.gmra.mrb[40].mxu1 %vm899_vm7, %v1425_v37  ;;  %v1893_v37 = vld [vmem:[%s9008_s4] sm:$0xff] }
 0x928   :  { %v8405_v46 = vpop.eup %8404  ;;  %8011 = vmatpush3.bf16.msra.mxu1 %v8010_v43  ;;  %7147 = vmatprep.mubr.msk.f32.mxu1 %vm8501_vm0, %v8502_v15  ;;  %v8022_v43 = vpack.c.bf16 %v1781_v36, %v1780_v33 }
 0x929   :  { %8012 = vmatprep.subr.bf16.mxu1 %v8500_v14  ;;  %v1426_v47 = vmul.f32 %v8405_v46, %v8399_v3  ;;  %v8025_v46 = vpack.c.bf16 %v1894_v41, %v1893_v37 }
 0x92b   :  { %7148 = vmatmul.mubr.msk.f32.gmra.mrb[42].mxu1 %vm899_vm7, %v1426_v47 }
 0x92c   :  { %8014 = vmatpush3.bf16.msra.mxu1 %v8013_v34  ;;  %7191 = vmatprep.mubr.msk.f32.mxu1 %vm8501_vm0, %v8502_v15  ;;  %v1896_v34 = vld [vmem:[%s9008_s4 + $0x18] sm:$0xff] }
 0x92d   :  { %8015 = vmatprep.subr.bf16.mxu1 %v8500_v14  ;;  %v8028_v47 = vpack.c.bf16 %v1896_v34, %v1895_v44 }
 0x930   :  { %8017 = vmatpush3.bf16.msra.mxu1 %v8016_v50  ;;  %v8031_v50 = vpack.c.bf16 %v1898_v49, %v1897_v48 }
 0x931   :  { %8024 = vmatprep.subr.bf16.mxu1 %v8500_v14 }
 0x933   :  { %7192 = vmatmul.mubr.msk.f32.vlgmr.msra.gmra.mrb[44].mxu1 %vm794_vm5, %v8864_v24 }
 0x934   :  { %7194 = vmatprep.mubr.msk.f32.mxu1 %vm8501_vm0, %v8502_v15  ;;  %8026 = vmatpush3.bf16.msra.mxu1 %v8025_v46 }
 0x935   :  { %8027 = vmatprep.subr.bf16.mxu1 %v8500_v14 }
 0x937   :  { %7195 = vmatmul.mubr.msk.f32.gmra.mrb[46].mxu1 %vm794_vm5, %v8866_v26 }
 0x938   :  { %7197 = vmatprep.mubr.msk.f32.mxu1 %vm8501_vm0, %v8502_v15  ;;  %8029 = vmatpush3.bf16.msra.mxu1 %v8028_v47 }
 0x939   :  { %8030 = vmatprep.subr.bf16.mxu1 %v8500_v14 }
 0x93b   :  { %7198 = vmatmul.mubr.msk.f32.gmra.mrb[48].mxu1 %vm794_vm5, %v8868_v27 }
 0x93c   :  { %7249 = vmatprep.mubr.msk.f32.mxu1 %vm8501_vm0, %v8502_v15  ;;  %8032 = vmatpush3.bf16.msra.mxu1 %v8031_v50 }
 0x93d   :  { %8033 = vmatprep.subr.bf16.mxu1 %v8500_v14 }
 0x9f6   :  { %v1505_v39 = vpop.f32.mrb[38].mxu1 }
 0x9f7   :  { %v7143_v51 = vpop.f32.mrb[39].mxu1  ;;  %7167 = vmatmul.mubr.msk.f32.vlgmr.msra.gmra.mrb[28].mxu0 %vm794_vm5, %v1505_v39 }
 0x9f8   :  { %7169 = vmatprep.mubr.msk.f32.mxu0 %vm8501_vm0, %v8502_v15  ;;  %8020 = vmatpush3.bf16.msra.mxu0 %v8019_v32 }
 0x9f9   :  { %8021 = vmatprep.subr.bf16.mxu0 %v8500_v14 }
 0x9fa   :  { %v1510_v24 = vpop.f32.mrb[40].mxu1 }
 0x9fb   :  { %v7146_v52 = vpop.f32.mrb[41].mxu1  ;;  %7170 = vmatmul.mubr.msk.f32.gmra.mrb[30].mxu0 %vm794_vm5, %v1510_v24 }
 0x9fc   :  { %7172 = vmatprep.mubr.msk.f32.mxu0 %vm8501_vm0, %v8502_v15  ;;  %8023 = vmatpush3.bf16.msra.mxu0 %v8022_v43 }
 0x9fd   :  { %8048 = vmatprep.subr.bf16.mxu0 %v8500_v14 }
 0x9fe   :  { %v1515_v26 = vpop.f32.mrb[42].mxu1 }
 0x9ff   :  { %v7149_v53 = vpop.f32.mrb[43].mxu1  ;;  %7173 = vmatmul.mubr.msk.f32.gmra.mrb[32].mxu0 %vm794_vm5, %v1515_v26 }
 0xa00   :  { %7208 = vmatprep.mubr.msk.f32.mxu0 %vm8501_vm0, %v8502_v15 }
 0xa06   :  { %v1692_v27 = vpop.f32.mrb[44].mxu1 }
 0xa07   :  { %v7193_v42 = vpop.f32.mrb[45].mxu1 }
 0xa0a   :  { %v1697_v54 = vpop.f32.mrb[46].mxu1 }
 0xa0b   :  { %v7196_v55 = vpop.f32.mrb[47].mxu1 }
 0xa0e   :  { %v1702_v17 = vpop.f32.mrb[48].mxu1 }
 0xa0f   :  { %v7199_v56 = vpop.f32.mrb[49].mxu1 }
 0xaca   :  { %v1603_v57 = vpop.f32.mrb[28].mxu0 }
 0xacb   :  { %v1693_v58 = vadd.f32 %v1692_v27, %v1603_v57  ;;  %v7168_v59 = vpop.f32.mrb[29].mxu0  ;;  %v6223_v57 = vld [vmem:[%s9027_s14] ss:$0 sm:$0xff] }
 0xacd   :  { %v1706_v62 = vadd.f32 %v1693_v58, %v8631_v35 }
 0xace   :  { %v1608_v22 = vpop.f32.mrb[30].mxu0 }
 0xacf   :  { %v8962_v63 = vadd.f32 %v6221_v60, %v1706_v62  ;;  %v1698_v0 = vadd.f32 %v1697_v54, %v1608_v22  ;;  %v7171_v1 = vpop.f32.mrb[31].mxu0 }
 0xad1   :  { %v1707_v28 = vadd.f32 %v1698_v0, %v8635_v40  ;;  %v1721_v2 = vsel %vm473_vm2, %v8962_v63, 0.0 }
 0xad2   :  { %v1613_v3 = vpop.f32.mrb[32].mxu0  ;;  %1722 = vadd.xlane.f32.xlu0 %v1721_v2 }
 0xad3   :  { %v8967_v4 = vadd.f32 %v6221_v60, %v1707_v28  ;;  %v1703_v5 = vadd.f32 %v1702_v17, %v1613_v3  ;;  %v7174_v6 = vpop.f32.mrb[33].mxu0  ;;  %v6222_v17 = vld [vmem:[%s9022_s9] ss:$0 sm:$0xff] }
 0xad4   :  { %v1900_v6 = vld [vmem:[%s9008_s4 + $0x38] sm:$0xff] }
 0xad5   :  { %v1708_v7 = vadd.f32 %v1703_v5, %v8639_v45  ;;  %v1724_v35 = vsel %vm473_vm2, %v8967_v4, 0.0  ;;  %v1899_v5 = vld [vmem:[%s9008_s4 + $0x30] sm:$0xff] }
 0xad6   :  { %1725 = vadd.xlane.f32.xlu1 %v1724_v35  ;;  %v1901_v35 = vld [vmem:[%s9008_s4 + $0x40] sm:$0xff] }
 0xad7   :  { %v8972_v8 = vadd.f32 %v6221_v60, %v1708_v7  ;;  %v8034_v7 = vpack.c.bf16 %v1900_v6, %v1899_v5 }
 0xad9   :  { %v1727_v40 = vsel %vm480_vm3, %v8972_v8, 0.0  ;;  %8035 = vmatpush3.bf16.msra.mxu1 %v8034_v7 }
 0xada   :  { %1728 = vadd.xlane.f32.xlu0 %v1727_v40  ;;  %8036 = vmatprep.subr.bf16.mxu1 %v8500_v14  ;;  %v1902_v40 = vld [vmem:[%s9008_s4 + $0x48] sm:$0xff] }
 0xb5f   :  { %v1723_v9 = vpop.xlane.xlu0 %1722 }
 0xb60   :  { %v1730_v10 = vmul.f32 0.03125, %v1723_v9  ;;  %v8037_v9 = vpack.c.bf16 %v1902_v40, %v1901_v35 }
 0xb62   :  { %v8977_v11 = vsub.f32 %v8962_v63, %v1730_v10  ;;  %8038 = vmatpush3.bf16.msra.mxu1 %v8037_v9  ;;  %v1903_v10 = vld [vmem:[%s9008_s4 + $0x50] sm:$0xff] }
 0xb63   :  { %v1726_v12 = vpop.xlane.xlu1 %1725  ;;  %8039 = vmatprep.subr.bf16.mxu1 %v8500_v14 }
 0xb64   :  { %v1731_v13 = vmul.f32 0.03125, %v1726_v12  ;;  %v1736_v45 = vmul.f32 %v8977_v11, %v8977_v11 }
 0xb66   :  { %v8982_v16 = vsub.f32 %v8967_v4, %v1731_v13  ;;  %v1739_v18 = vsel %vm473_vm2, %v1736_v45, 0.0  ;;  %v1905_v13 = vld [vmem:[%s9008_s4 + $0x60] sm:$0xff]  ;;  %v1906_v45 = vld [vmem:[%s9008_s4 + $0x68] sm:$0xff] }
 0xb67   :  { %1740 = vadd.xlane.f32.xlu1 %v1739_v18  ;;  %v1729_v19 = vpop.xlane.xlu0 %1728  ;;  %v1907_v18 = vld [vmem:[%s9008_s4 + $0x70] sm:$0xff] }
 0xb68   :  { %v1732_v20 = vmul.f32 0.03125, %v1729_v19  ;;  %v1737_v21 = vmul.f32 %v8982_v16, %v8982_v16  ;;  %v1908_v19 = vld [vmem:[%s9008_s4 + $0x78] sm:$0xff] }
 0xb6a   :  { %v8988_v23 = vsub.f32 %v8972_v8, %v1732_v20  ;;  %v1742_v25 = vsel %vm473_vm2, %v1737_v21, 0.0  ;;  %v8046_v20 = vpack.c.bf16 %v1908_v19, %v1907_v18  ;;  %v6224_v21 = vld [vmem:[%s9061_s20] ss:$0 sm:$0xff]  ;;  %v6235_v19 = vld [vmem:[%s8660_s25 + $0x50] sm:$0xff] }
 0xb6b   :  { %1743 = vadd.xlane.f32.xlu0 %v1742_v25 }
 0xb6c   :  { %v1738_v30 = vmul.f32 %v8988_v23, %v8988_v23 }
 0xb6e   :  { %v1745_v29 = vsel %vm480_vm3, %v1738_v30, 0.0 }
 0xb6f   :  { %1746 = vadd.xlane.f32.xlu1 %v1745_v29 }
 0xbf4   :  { %v1741_v39 = vpop.xlane.xlu1 %1740 }
 0xbf5   :  { %v1748_v51 = vmul.f32 0.03125, %v1741_v39 }
 0xbf7   :  { %v1751_v24 = vadd.f32 1e-05, %v1748_v51 }
 0xbf8   :  { %v1744_v52 = vpop.xlane.xlu0 %1743 }
 0xbf9   :  { %8406 = vrsqrt.f32 %v1751_v24  ;;  %v1749_v26 = vmul.f32 0.03125, %v1744_v52 }
 0xbfb   :  { %v1752_v53 = vadd.f32 1e-05, %v1749_v26 }
 0xbfc   :  { %v1747_v27 = vpop.xlane.xlu1 %1746 }
 0xbfd   :  { %8408 = vrsqrt.f32 %v1752_v53  ;;  %v1750_v42 = vmul.f32 0.03125, %v1747_v27  ;;  %v6228_v27 = vld [vmem:[%s9073_s26] ss:$0 sm:$0xff] }
 0xbff   :  { %v1753_v54 = vadd.f32 1e-05, %v1750_v42 }
 0xc01   :  { %8410 = vrsqrt.f32 %v1753_v54 }
 0xc03   :  { %v8407_v55 = vpop.eup %8406 }
 0xc04   :  { %v1757_v56 = vmul.f32 %v8407_v55, %v8977_v11  ;;  %v1904_v11 = vld [vmem:[%s9008_s4 + $0x58] sm:$0xff] }
 0xc05   :  { %v8040_v12 = vpack.c.bf16 %v1904_v11, %v1903_v10 }
 0xc06   :  { %v1766_v58 = vmul.f32 %v6222_v17, %v1757_v56 }
 0xc07   :  { %v8409_v59 = vpop.eup %8408  ;;  %8041 = vmatpush3.bf16.msra.mxu1 %v8040_v12 }
 0xc08   :  { %v1775_v60 = vadd.f32 %v6223_v57, %v1766_v58  ;;  %v1758_v62 = vmul.f32 %v8409_v59, %v8982_v16  ;;  %8042 = vmatprep.subr.bf16.mxu1 %v8500_v14  ;;  %v8043_v16 = vpack.c.bf16 %v1906_v45, %v1905_v13  ;;  %v6233_v45 = vld [vmem:[%s8660_s25 + $0x40] sm:$0xff] }
 0xc0a   :  { %7209 = vmatmul.mubr.msk.f32.vlgmr.msra.gmra.mrb[34].mxu0 %vm473_vm2, %v1775_v60  ;;  %v1767_v22 = vmul.f32 %v6222_v17, %v1758_v62 }
 0xc0b   :  { %v8411_v0 = vpop.eup %8410  ;;  %7211 = vmatprep.mubr.msk.f32.mxu0 %vm8501_vm0, %v8502_v15  ;;  %8044 = vmatpush3.bf16.msra.mxu1 %v8043_v16  ;;  %v6234_v16 = vld [vmem:[%s8660_s25 + $0x48] sm:$0xff] }
 0xc0c   :  { %v1776_v1 = vadd.f32 %v6223_v57, %v1767_v22  ;;  %v1759_v28 = vmul.f32 %v8411_v0, %v8988_v23  ;;  %8045 = vmatprep.subr.bf16.mxu1 %v8500_v14  ;;  %v8049_v18 = vpack.c.bf16 %v6234_v16, %v6233_v45 }
 0xc0e   :  { %7212 = vmatmul.mubr.msk.f32.gmra.mrb[36].mxu0 %vm473_vm2, %v1776_v1  ;;  %v1768_v2 = vmul.f32 %v6222_v17, %v1759_v28 }
 0xc0f   :  { %7214 = vmatprep.mubr.msk.f32.mxu0 %vm8501_vm0, %v8502_v15  ;;  %8047 = vmatpush3.bf16.msra.mxu1 %v8046_v20  ;;  %v6236_v20 = vld [vmem:[%s8660_s25 + $0x58] sm:$0xff] }
 0xc10   :  { %v1777_v3 = vadd.f32 %v6223_v57, %v1768_v2  ;;  %8066 = vmatprep.subr.bf16.mxu1 %v8500_v14  ;;  %8050 = vmatpush3.bf16.msra.mxu0 %v8049_v18 }
 0xc11   :  { %8051 = vmatprep.subr.bf16.mxu0 %v8500_v14 }
 0xc12   :  { %7215 = vmatmul.mubr.msk.f32.gmra.mrb[38].mxu0 %vm473_vm2, %v1777_v3 }
 0xc13   :  { %7266 = vmatprep.mubr.msk.f32.mxu0 %vm8501_vm0, %v8502_v15 }
 0xcdd   :  { %v1864_v23 = vpop.f32.mrb[34].mxu0 }
 0xcde   :  { %v1865_v25 = vadd.f32 %v6224_v21, %v1864_v23  ;;  %v7210_v30 = vpop.f32.mrb[35].mxu0 }
 0xce0   :  { %v1881_v29 = vmul.f32 0.70710677, %v1865_v25  ;;  %v1878_v46 = vmul.f32 0.5, %v1865_v25 }
 0xce1   :  { %v1869_v31 = vpop.f32.mrb[36].mxu0 }
 0xce2   :  { %8412 = verf.f32 %v1881_v29  ;;  %v1870_v38 = vadd.f32 %v6224_v21, %v1869_v31  ;;  %v7213_v32 = vpop.f32.mrb[37].mxu0 }
 0xce4   :  { %v1882_v33 = vmul.f32 0.70710677, %v1870_v38  ;;  %v1879_v49 = vmul.f32 0.5, %v1870_v38 }
 0xce5   :  { %v1874_v36 = vpop.f32.mrb[38].mxu0 }
 0xce6   :  { %8414 = verf.f32 %v1882_v33  ;;  %v1875_v43 = vadd.f32 %v6224_v21, %v1874_v36  ;;  %v7216_v37 = vpop.f32.mrb[39].mxu0  ;;  %v8052_v21 = vpack.c.bf16 %v6236_v20, %v6235_v19  ;;  %v6274_v20 = vld [vmem:[%s8660_s25 + $0x70] sm:$0xff] }
 0xce7   :  { %v6231_v37 = vld [vmem:[%s8682_s3 + $0x1] ss:$0 sm:$0xff]  ;;  %s8528_s3 = smov 22  }
 0xce8   :  { %v1883_v41 = vmul.f32 0.70710677, %v1875_v43  ;;  %v1880_v24 = vmul.f32 0.5, %v1875_v43  ;;  %8053 = vmatpush3.bf16.msra.mxu0 %v8052_v21  ;;  %v6275_v21 = vld [vmem:[%s8660_s25 + $0x78] sm:$0xff] }
 0xce9   :  { %8054 = vmatprep.subr.bf16.mxu0 %v8500_v14 }
 0xcea   :  { %8416 = verf.f32 %v1883_v41 }
 0xcec   :  { %v8413_v44 = vpop.eup %8412 }
 0xced   :  { %v1887_v34 = vadd.f32 1.0, %v8413_v44  ;;  %v6240_v44 = vld [vmem:[%s8692_s11 + $0x40] sm:$0xff] }
 0xcef   :  { %v1890_v47 = vmul.f32 %v1887_v34, %v1878_v46  ;;  %v6241_v46 = vld [vmem:[%s8692_s11 + $0x48] sm:$0xff]  ;;  %v6232_v34 = vld [vmem:[%s8687_s7 + $0x1] ss:$0 sm:$0xff] }
 0xcf0   :  { %v8415_v48 = vpop.eup %8414 }
 0xcf1   :  { %v1888_v50 = vadd.f32 1.0, %v8415_v48  ;;  %7250 = vmatmul.mubr.f32.vlgmr.msra.gmra.mrb[50].mxu1 %v1890_v47 }
 0xcf2   :  { %7252 = vmatprep.mubr.msk.f32.mxu1 %vm8501_vm0, %v8502_v15 }
 0xcf3   :  { %v1891_v39 = vmul.f32 %v1888_v50, %v1879_v49  ;;  %v8055_v49 = vpack.c.bf16 %v6241_v46, %v6240_v44  ;;  %v9213_v44 = vld [vmem:[%s8808_s15] sm:$0xff] }
 0xcf4   :  { %v8417_v51 = vpop.eup %8416 }
 0xcf5   :  { %v1889_v52 = vadd.f32 1.0, %v8417_v51  ;;  %7253 = vmatmul.mubr.f32.gmra.mrb[52].mxu1 %v1891_v39  ;;  %v6242_v51 = vld [vmem:[%s8692_s11 + $0x50] sm:$0xff] }
 0xcf6   :  { %7255 = vmatprep.mubr.msk.f32.mxu1 %vm8501_vm0, %v8502_v15 }
 0xcf7   :  { %v1892_v26 = vmul.f32 %v1889_v52, %v1880_v24  ;;  %v6243_v24 = vld [vmem:[%s8692_s11 + $0x58] sm:$0xff] }
 0xcf9   :  { %7256 = vmatmul.mubr.f32.gmra.mrb[54].mxu1 %v1892_v26 }
 0xcfa   :  { %7315 = vmatprep.mubr.msk.f32.mxu1 %vm8501_vm0, %v8502_v15 }
 0xdc4   :  { %v1975_v53 = vpop.f32.mrb[50].mxu1 }
 0xdc5   :  { %v1989_v42 = vadd.f32 %v1975_v53, %v8962_v63  ;;  %v7251_v54 = vpop.f32.mrb[51].mxu1  ;;  %v8058_v53 = vpack.c.bf16 %v6243_v24, %v6242_v51 }
 0xdc7   :  { %v9077_v55 = vadd.f32 %v6228_v27, %v1989_v42 }
 0xdc8   :  { %v1980_v17 = vpop.f32.mrb[52].mxu1 }
 0xdc9   :  { %v1990_v56 = vadd.f32 %v1980_v17, %v8967_v4  ;;  %v7254_v57 = vpop.f32.mrb[53].mxu1  ;;  %v2006_v58 = vsel %vm473_vm2, %v9077_v55, 0.0 }
 0xdca   :  { %2007 = vadd.xlane.f32.xlu0 %v2006_v58  ;;  %v6248_v57 = vld [vmem:[%s8665_s29 + $0x48] sm:$0xff] }
 0xdcb   :  { %v9082_v59 = vadd.f32 %v6228_v27, %v1990_v56  ;;  %v6247_v56 = vld [vmem:[%s8665_s29 + $0x40] sm:$0xff] }
 0xdcc   :  { %v1985_v60 = vpop.f32.mrb[54].mxu1  ;;  %v8061_v58 = vpack.c.bf16 %v6248_v57, %v6247_v56 }
 0xdcd   :  { %v1991_v62 = vadd.f32 %v1985_v60, %v8972_v8  ;;  %v7257_v22 = vpop.f32.mrb[55].mxu1  ;;  %v2009_v63 = vsel %vm473_vm2, %v9082_v59, 0.0  ;;  %v6249_v60 = vld [vmem:[%s8665_s29 + $0x50] sm:$0xff] }
 0xdce   :  { %2010 = vadd.xlane.f32.xlu1 %v2009_v63 }
 0xdcf   :  { %v9087_v0 = vadd.f32 %v6228_v27, %v1991_v62  ;;  %v6250_v62 = vld [vmem:[%s8665_s29 + $0x58] sm:$0xff] }
 0xdd0   :  { %v8064_v22 = vpack.c.bf16 %v6250_v62, %v6249_v60 }
 0xdd1   :  { %v2012_v4 = vsel %vm480_vm3, %v9087_v0, 0.0 }
 0xdd2   :  { %2013 = vadd.xlane.f32.xlu0 %v2012_v4 }
 0xe57   :  { %v2008_v1 = vpop.xlane.xlu0 %2007 }
 0xe58   :  { %v2015_v28 = vmul.f32 0.03125, %v2008_v1 }
 0xe5a   :  { %v2018_v2 = vsub.f32 %v9077_v55, %v2015_v28 }
 0xe5b   :  { %v2011_v3 = vpop.xlane.xlu1 %2010 }
 0xe5c   :  { %v2016_v5 = vmul.f32 0.03125, %v2011_v3  ;;  %v2021_v8 = vmul.f32 %v2018_v2, %v2018_v2 }
 0xe5e   :  { %v2019_v6 = vsub.f32 %v9082_v59, %v2016_v5  ;;  %v2024_v7 = vsel %vm473_vm2, %v2021_v8, 0.0 }
 0xe5f   :  { %2025 = vadd.xlane.f32.xlu1 %v2024_v7  ;;  %v2014_v35 = vpop.xlane.xlu0 %2013 }
 0xe60   :  { %v2017_v40 = vmul.f32 0.03125, %v2014_v35  ;;  %v2022_v9 = vmul.f32 %v2019_v6, %v2019_v6 }
 0xe62   :  { %v2020_v10 = vsub.f32 %v9087_v0, %v2017_v40  ;;  %v2027_v11 = vsel %vm473_vm2, %v2022_v9, 0.0 }
 0xe63   :  { %2028 = vadd.xlane.f32.xlu0 %v2027_v11 }
 0xe64   :  { %v2023_v12 = vmul.f32 %v2020_v10, %v2020_v10 }
 0xe66   :  { %v2030_v13 = vsel %vm480_vm3, %v2023_v12, 0.0  ;;  %v6272_v12 = vld [vmem:[%s8660_s25 + $0x60] sm:$0xff] }
 0xe67   :  { %2031 = vadd.xlane.f32.xlu1 %v2030_v13  ;;  %v6273_v13 = vld [vmem:[%s8660_s25 + $0x68] sm:$0xff]  ;;  %s8520_s25 = smov 19  }
 0xe68   :  { %v8074_v16 = vpack.c.bf16 %v6273_v13, %v6272_v12  ;;  %s6131_s7 = sld [smem:[%s9877_s0 + %s8520_s25]]   ;;  %s8534_s25 = smov 31  }
 0xeec   :  { %v2026_v23 = vpop.xlane.xlu1 %2025 }
 0xeed   :  { %v2033_v25 = vmul.f32 0.03125, %v2026_v23 }
 0xeef   :  { %v2036_v30 = vadd.f32 1e-05, %v2033_v25  ;;  %v8077_v25 = vpack.c.bf16 %v6275_v21, %v6274_v20 }
 0xef0   :  { %v2029_v29 = vpop.xlane.xlu0 %2028 }
 0xef1   :  { %8418 = vrsqrt.f32 %v2036_v30  ;;  %v2034_v31 = vmul.f32 0.03125, %v2029_v29  ;;  %v6286_v29 = vld [vmem:[%s8665_s29 + $0x60] sm:$0xff] }
 0xef3   :  { %v2037_v38 = vadd.f32 1e-05, %v2034_v31  ;;  %v6287_v31 = vld [vmem:[%s8665_s29 + $0x68] sm:$0xff] }
 0xef4   :  { %v2032_v32 = vpop.xlane.xlu1 %2031 }
 0xef5   :  { %8420 = vrsqrt.f32 %v2037_v38  ;;  %v2035_v33 = vmul.f32 0.03125, %v2032_v32  ;;  %v8086_v38 = vpack.c.bf16 %v6287_v31, %v6286_v29  ;;  %v6288_v32 = vld [vmem:[%s8665_s29 + $0x70] sm:$0xff]  ;;  %v6279_v29 = vld [vmem:[%s8692_s11 + $0x60] sm:$0xff]  ;;  %v6280_v31 = vld [vmem:[%s8692_s11 + $0x68] sm:$0xff] }
 0xef7   :  { %v2038_v36 = vadd.f32 1e-05, %v2035_v33  ;;  %v6289_v33 = vld [vmem:[%s8665_s29 + $0x78] sm:$0xff]  ;;  %s9485_s29 = sld [smem:[%s9877_s0 + %s8527_s24]]  }
 0xef9   :  { %8422 = vrsqrt.f32 %v2038_v36  ;;  %v8089_v36 = vpack.c.bf16 %v6289_v33, %v6288_v32  ;;  %v8080_v32 = vpack.c.bf16 %v6280_v31, %v6279_v29  ;;  %v6306_v29 = vld [vmem:[%s8899_s19 + $0xd8] sm:$0xff] }
 0xefb   :  { %v8419_v43 = vpop.eup %8418 }
 0xefc   :  { %v2042_v41 = vmul.f32 %v8419_v43, %v2018_v2 }
 0xefe   :  { %v2051_v47 = vmul.f32 %v6231_v37, %v2042_v41 }
 0xeff   :  { %v8421_v48 = vpop.eup %8420 }
 0xf00   :  { %v9107_v50 = vadd.f32 %v6232_v34, %v2051_v47  ;;  %v2043_v39 = vmul.f32 %v8421_v48, %v2019_v6 }
 0xf02   :  { %v2052_v52 = vmul.f32 %v6231_v37, %v2043_v39  ;;  %7267 = vmatmul.mubr.msk.f32.vlgmr.msra.gmra.mrb[40].mxu0 %vm473_vm2, %v9107_v50  ;;  %v9218_v39 = vld [vmem:[%s8808_s15 + $0x8] sm:$0xff] }
 0xf03   :  { %v8423_v26 = vpop.eup %8422  ;;  %7269 = vmatprep.mubr.msk.f32.mxu0 %vm8501_vm0, %v8502_v15  ;;  %8056 = vmatpush3.bf16.msra.mxu0 %v8055_v49 }
 0xf04   :  { %v9115_v27 = vadd.f32 %v6232_v34, %v2052_v52  ;;  %v2044_v42 = vmul.f32 %v8423_v26, %v2020_v10  ;;  %8057 = vmatprep.subr.bf16.mxu0 %v8500_v14 }
 0xf06   :  { %v2053_v54 = vmul.f32 %v6231_v37, %v2044_v42  ;;  %7270 = vmatmul.mubr.msk.f32.gmra.mrb[42].mxu0 %vm473_vm2, %v9115_v27  ;;  %v9223_v42 = vld [vmem:[%s8808_s15 + $0x10] sm:$0xf]  ;;  %s6134_s15 = sld [smem:[%s9877_s0 + %s8528_s3]]  }
 0xf07   :  { %7272 = vmatprep.mubr.msk.f32.mxu0 %vm8501_vm0, %v8502_v15  ;;  %8059 = vmatpush3.bf16.msra.mxu0 %v8058_v53 }
 0xf08   :  { %v9122_v17 = vadd.f32 %v6232_v34, %v2053_v54  ;;  %8060 = vmatprep.subr.bf16.mxu0 %v8500_v14 }
 0xf0a   :  { %7273 = vmatmul.mubr.msk.f32.gmra.mrb[44].mxu0 %vm473_vm2, %v9122_v17 }
 0xf0b   :  { %7283 = vmatprep.mubr.msk.f32.mxu0 %vm8501_vm0, %v8502_v15 }
 0xf0e   :  { %7284 = vmatmul.mubr.msk.f32.vlgmr.msra.gmra.mrb[46].mxu0 %vm473_vm2, %v9107_v50 }
 0xf0f   :  { %7286 = vmatprep.mubr.msk.f32.mxu0 %vm8501_vm0, %v8502_v15  ;;  %8062 = vmatpush3.bf16.msra.mxu0 %v8061_v58 }
 0xf10   :  { %8063 = vmatprep.subr.bf16.mxu0 %v8500_v14 }
 0xf12   :  { %7287 = vmatmul.mubr.msk.f32.gmra.mrb[48].mxu0 %vm473_vm2, %v9115_v27 }
 0xf13   :  { %7289 = vmatprep.mubr.msk.f32.mxu0 %vm8501_vm0, %v8502_v15  ;;  %8065 = vmatpush3.bf16.msra.mxu0 %v8064_v22 }
 0xf14   :  { %8070 = vmatprep.subr.bf16.mxu0 %v8500_v14 }
 0xf16   :  { %7290 = vmatmul.mubr.msk.f32.gmra.mrb[50].mxu0 %vm473_vm2, %v9122_v17 }
 0xf17   :  { %7300 = vmatprep.mubr.msk.f32.mxu0 %vm8501_vm0, %v8502_v15 }
 0xf1a   :  { %7301 = vmatmul.mubr.msk.f32.vlgmr.msra.gmra.mrb[52].mxu0 %vm473_vm2, %v9107_v50 }
 0xf1b   :  { %7303 = vmatprep.mubr.msk.f32.mxu0 %vm8501_vm0, %v8502_v15 }
 0xf1e   :  { %7304 = vmatmul.mubr.msk.f32.gmra.mrb[54].mxu0 %vm473_vm2, %v9115_v27 }
 0xf1f   :  { %7306 = vmatprep.mubr.msk.f32.mxu0 %vm8501_vm0, %v8502_v15 }
 0xf22   :  { %7307 = vmatmul.mubr.msk.f32.gmra.mrb[56].mxu0 %vm473_vm2, %v9122_v17 }
 0xf23   :  { %7330 = vmatprep.mubr.msk.f32.mxu0 %vm8501_vm0, %v8502_v15 }
 0xfd5   :  { %v2143_v63 = vpop.f32.mrb[40].mxu0 }
 0xfd6   :  { %v7268_v4 = vpop.f32.mrb[41].mxu0 }
 0xfd9   :  { %v2148_v1 = vpop.f32.mrb[42].mxu0 }
 0xfda   :  { %v7271_v28 = vpop.f32.mrb[43].mxu0 }
 0xfdd   :  { %v2153_v2 = vpop.f32.mrb[44].mxu0 }
 0xfde   :  { %v7274_v3 = vpop.f32.mrb[45].mxu0 }
 0xfe1   :  { %v2228_v5 = vpop.f32.mrb[46].mxu0 }
 0xfe2   :  { %v7285_v8 = vpop.f32.mrb[47].mxu0 }
 0xfe5   :  { %v2233_v6 = vpop.f32.mrb[48].mxu0 }
 0xfe6   :  { %v8067_v7 = vpack.c.bf16 %v2233_v6, %v2228_v5  ;;  %v7288_v35 = vpop.f32.mrb[49].mxu0 }
 0xfe8   :  { %8069 = vmatpush3.bf16.xpose.msk.msra.mxu1 %vm8751_vm6, %v8067_v7 }
 0xfe9   :  { %v2238_v40 = vpop.f32.mrb[50].mxu0  ;;  %7313 = vmatprep.subr.mxu1 %v8502_v15 }
 0xfea   :  { %v7291_v9 = vpop.f32.mrb[51].mxu0 }
 0xfed   :  { %v2313_v10 = vpop.f32.mrb[52].mxu0 }
 0xfee   :  { %v7302_v11 = vpop.f32.mrb[53].mxu0 }
 0xff0   :  { %7314 = vmatpush3.xpose.msk.msra.mxu1 %vm794_vm5, %v2238_v40 }
 0xff1   :  { %v2318_v45 = vpop.f32.mrb[54].mxu0  ;;  %8073 = vmatprep.subr.bf16.mxu1 %v8500_v14 }
 0xff2   :  { %v8071_v18 = vpack.c.bf16 %v2318_v45, %v2313_v10  ;;  %v7305_v19 = vpop.f32.mrb[55].mxu0 }
 0xff3   :  { %7316 = vmatmul.mubr.msk.f32.vlgmr.msra.gmra.mrb[56].mxu1 %vm794_vm5, %v2143_v63 }
 0xff4   :  { %8072 = vmatpush3.bf16.msra.mxu0 %v8071_v18  ;;  %7318 = vmatprep.mubr.msk.f32.mxu1 %vm8501_vm0, %v8502_v15 }
 0xff5   :  { %v2323_v23 = vpop.f32.mrb[56].mxu0  ;;  %7328 = vmatprep.subr.mxu0 %v8502_v15  ;;  %8075 = vmatpush3.bf16.msra.mxu1 %v8074_v16 }
 0xff6   :  { %v7308_v30 = vpop.f32.mrb[57].mxu0  ;;  %8076 = vmatprep.subr.bf16.mxu1 %v8500_v14 }
 0xff7   :  { %7319 = vmatmul.mubr.msk.f32.gmra.mrb[58].mxu1 %vm794_vm5, %v2148_v1 }
 0xff8   :  { %7329 = vmatpush3.msk.msra.mxu0 %vm943_vm4, %v2323_v23  ;;  %7321 = vmatprep.mubr.msk.f32.mxu1 %vm8501_vm0, %v8502_v15 }
 0xff9   :  { %8078 = vmatpush3.bf16.msra.mxu1 %v8077_v25  ;;  %8079 = vmatprep.subr.bf16.mxu0 %v8500_v14 }
 0xffa   :  { %8085 = vmatprep.subr.bf16.mxu1 %v8500_v14 }
 0xffb   :  { %7322 = vmatmul.mubr.msk.f32.gmra.mrb[60].mxu1 %vm794_vm5, %v2153_v2 }
 0xffc   :  { %7347 = vmatprep.mubr.msk.f32.mxu1 %vm8501_vm0, %v8502_v15 }
 0xfff   :  { %7348 = vmatmul.mubr.msk.f32.vlgmr.msra.gmra.mrb[62].mxu1 %vm473_vm2, %v9107_v50 }
0x1000   :  { %7350 = vmatprep.mubr.msk.f32.mxu1 %vm8501_vm0, %v8502_v15  ;;  %8087 = vmatpush3.bf16.msra.mxu1 %v8086_v38 }
0x1001   :  { %8088 = vmatprep.subr.bf16.mxu1 %v8500_v14 }
0x1003   :  { %7351 = vmatmul.mubr.msk.f32.gmra.mrb[64].mxu1 %vm473_vm2, %v9115_v27 }
0x1004   :  { %7353 = vmatprep.mubr.msk.f32.mxu1 %vm8501_vm0, %v8502_v15  ;;  %8090 = vmatpush3.bf16.msra.mxu1 %v8089_v36  ;;  %v6281_v36 = vld [vmem:[%s8692_s11 + $0x70] sm:$0xff] }
0x1005   :  { %8095 = vmatprep.subr.bf16.mxu1 %v8500_v14 }
0x1007   :  { %7354 = vmatmul.mubr.msk.f32.gmra.mrb[66].mxu1 %vm473_vm2, %v9122_v17 }
0x1008   :  { %7381 = vmatprep.mubr.msk.f32.mxu1 %vm8501_vm0, %v8502_v15 }
0x100b   :  { %7382 = vmatmul.mubr.msk.f32.vlgmr.msra.gmra.mrb[68].mxu1 %vm473_vm2, %v9107_v50 }
0x100c   :  { %7384 = vmatprep.mubr.msk.f32.mxu1 %vm8501_vm0, %v8502_v15 }
0x100f   :  { %7385 = vmatmul.mubr.msk.f32.gmra.mrb[70].mxu1 %vm473_vm2, %v9115_v27 }
0x1010   :  { %7387 = vmatprep.mubr.msk.f32.mxu1 %vm8501_vm0, %v8502_v15 }
0x1013   :  { %7388 = vmatmul.mubr.msk.f32.gmra.mrb[72].mxu1 %vm473_vm2, %v9122_v17 }
0x1014   :  { %7411 = vmatprep.mubr.msk.f32.mxu1 %vm8501_vm0, %v8502_v15 }
0x10c6   :  { %v2411_v43 = vpop.f32.mrb[56].mxu1 }
0x10c7   :  { %v2425_v37 = vmul.f32 0.125, %v2411_v43  ;;  %v7317_v41 = vpop.f32.mrb[57].mxu1  ;;  %v6282_v43 = vld [vmem:[%s8692_s11 + $0x78] sm:$0xff]  ;;  %s8521_s11 = smov 20  }
0x10c8   :  { %v8083_v41 = vpack.c.bf16 %v6282_v43, %v6281_v36  ;;  %v6309_v36 = vld [vmem:[%s8899_s19 + $0xf0] sm:$0xff]  ;;  %v6310_v43 = vld [vmem:[%s8899_s19 + $0xf8] sm:$0xff] }
0x10c9   :  { %v2428_v46 = vadd.f32 %v9213_v44, %v2425_v37 }
0x10ca   :  { %v2416_v34 = vpop.f32.mrb[58].mxu1 }
0x10cb   :  { %v2426_v47 = vmul.f32 0.125, %v2416_v34  ;;  %v7320_v48 = vpop.f32.mrb[59].mxu1  ;;  %v2431_v49 = vsel %vm899_vm7, %v2428_v46, -inf }
0x10cc   :  { %2432 = vmax.xlane.f32.xlu0 %v2431_v49 }
0x10cd   :  { %v2429_v51 = vadd.f32 %v9218_v39, %v2426_v47 }
0x10ce   :  { %v2421_v24 = vpop.f32.mrb[60].mxu1 }
0x10cf   :  { %v2427_v52 = vmul.f32 0.125, %v2421_v24  ;;  %v7323_v26 = vpop.f32.mrb[61].mxu1  ;;  %v2434_v53 = vsel %vm899_vm7, %v2429_v51, -inf }
0x10d0   :  { %2435 = vmax.xlane.f32.xlu1 %v2434_v53 }
0x10d1   :  { %v2430_v54 = vadd.f32 %v9223_v42, %v2427_v52 }
0x10d2   :  { %v9226_v56 = vpop.f32.mrb[62].mxu1 }
0x10d3   :  { %v7349_v57 = vpop.f32.mrb[63].mxu1  ;;  %v2437_v58 = vsel %vm906_vm8, %v2430_v54, -inf }
0x10d4   :  { %2438 = vmax.xlane.f32.xlu0 %v2437_v58 }
0x10d6   :  { %v9229_v60 = vpop.f32.mrb[64].mxu1 }
0x10d7   :  { %v7352_v62 = vpop.f32.mrb[65].mxu1 }
0x10da   :  { %v9231_v22 = vpop.f32.mrb[66].mxu1 }
0x10db   :  { %v7355_v63 = vpop.f32.mrb[67].mxu1 }
0x10de   :  { %v2806_v4 = vpop.f32.mrb[68].mxu1 }
0x10df   :  { %v7383_v1 = vpop.f32.mrb[69].mxu1 }
0x10e2   :  { %v2811_v28 = vpop.f32.mrb[70].mxu1 }
0x10e3   :  { %v8096_v2 = vpack.c.bf16 %v2811_v28, %v2806_v4  ;;  %v7386_v3 = vpop.f32.mrb[71].mxu1 }
0x10e5   :  { %8097 = vmatpush3.bf16.msra.mxu1 %v8096_v2 }
0x10e6   :  { %v2816_v5 = vpop.f32.mrb[72].mxu1  ;;  %7409 = vmatprep.subr.mxu1 %v8502_v15 }
0x10e7   :  { %v7389_v8 = vpop.f32.mrb[73].mxu1 }
0x10e9   :  { %7410 = vmatpush3.msk.msra.mxu1 %vm943_vm4, %v2816_v5 }
0x10ea   :  { %8110 = vmatprep.subr.bf16.mxu1 %v8500_v14 }
0x1159   :  { %v2433_v6 = vpop.xlane.xlu0 %2432 }
0x115a   :  { %v2440_v7 = vsub.f32 %v2428_v46, %v2433_v6 }
0x115c   :  { %v2443_v35 = vmul.f32 1.442695, %v2440_v7 }
0x115d   :  { %v2436_v40 = vpop.xlane.xlu1 %2435 }
0x115e   :  { %8424 = vpow2.f32 %v2443_v35  ;;  %v2441_v9 = vsub.f32 %v2429_v51, %v2436_v40 }
0x1160   :  { %v2445_v10 = vmul.f32 1.442695, %v2441_v9 }
0x1161   :  { %v2439_v11 = vpop.xlane.xlu0 %2438 }
0x1162   :  { %8426 = vpow2.f32 %v2445_v10  ;;  %v2442_v12 = vsub.f32 %v2430_v54, %v2439_v11 }
0x1164   :  { %v2447_v13 = vmul.f32 1.442695, %v2442_v12 }
0x1166   :  { %8428 = vpow2.f32 %v2447_v13 }
0x1168   :  { %v8425_v45 = vpop.eup %8424 }
0x1169   :  { %v2449_v16 = vsel %vm899_vm7, %v8425_v45, 0.0 }
0x116a   :  { %2450 = vadd.xlane.f32.xlu1 %v2449_v16 }
0x116c   :  { %v8427_v18 = vpop.eup %8426 }
0x116d   :  { %v2452_v19 = vsel %vm899_vm7, %v8427_v18, 0.0 }
0x116e   :  { %2453 = vadd.xlane.f32.xlu0 %v2452_v19 }
0x1170   :  { %v8429_v20 = vpop.eup %8428 }
0x1171   :  { %v2455_v21 = vsel %vm906_vm8, %v8429_v20, 0.0 }
0x1172   :  { %2456 = vadd.xlane.f32.xlu1 %v2455_v21  ;;  %v6303_v21 = vld [vmem:[%s8899_s19 + $0xc0] sm:$0xff] }
0x11f7   :  { %v2451_v23 = vpop.xlane.xlu1 %2450 }
0x11f8   :  { %8430 = vrcp.f32 %v2451_v23  ;;  %v6304_v23 = vld [vmem:[%s8899_s19 + $0xc8] sm:$0xff] }
0x11fb   :  { %v2454_v25 = vpop.xlane.xlu0 %2453 }
0x11fc   :  { %8432 = vrcp.f32 %v2454_v25  ;;  %v6305_v25 = vld [vmem:[%s8899_s19 + $0xd0] sm:$0xff] }
0x11fd   :  { %v8102_v31 = vpack.c.bf16 %v6306_v29, %v6305_v25 }
0x11ff   :  { %v2457_v30 = vpop.xlane.xlu1 %2456 }
0x1200   :  { %8434 = vrcp.f32 %v2457_v30  ;;  %v8099_v30 = vpack.c.bf16 %v6304_v23, %v6303_v21 }
0x1202   :  { %v8431_v38 = vpop.eup %8430 }
0x1203   :  { %v2461_v33 = vmul.f32 %v8431_v38, %v8425_v45  ;;  %v6307_v38 = vld [vmem:[%s8899_s19 + $0xe0] sm:$0xff] }
0x1205   :  { %7331 = vmatmul.mubr.msk.f32.vlgmr.msra.gmra.mrb[58].mxu0 %vm899_vm7, %v2461_v33 }
0x1206   :  { %v8433_v37 = vpop.eup %8432  ;;  %7333 = vmatprep.mubr.msk.f32.mxu0 %vm8501_vm0, %v8502_v15  ;;  %8081 = vmatpush3.bf16.msra.mxu0 %v8080_v32  ;;  %v6308_v32 = vld [vmem:[%s8899_s19 + $0xe8] sm:$0xff] }
0x1207   :  { %v2462_v46 = vmul.f32 %v8433_v37, %v8427_v18  ;;  %8082 = vmatprep.subr.bf16.mxu0 %v8500_v14  ;;  %v8105_v33 = vpack.c.bf16 %v6308_v32, %v6307_v38  ;;  %v8108_v37 = vpack.c.bf16 %v6310_v43, %v6309_v36 }
0x1209   :  { %7334 = vmatmul.mubr.msk.f32.gmra.mrb[60].mxu0 %vm899_vm7, %v2462_v46 }
0x120a   :  { %v8435_v34 = vpop.eup %8434  ;;  %7336 = vmatprep.mubr.msk.f32.mxu0 %vm8501_vm0, %v8502_v15  ;;  %8084 = vmatpush3.bf16.msra.mxu0 %v8083_v41 }
0x120b   :  { %v2463_v47 = vmul.f32 %v8435_v34, %v8429_v20  ;;  %8091 = vmatprep.subr.bf16.mxu0 %v8500_v14 }
0x120d   :  { %7337 = vmatmul.mubr.msk.f32.gmra.mrb[62].mxu0 %vm899_vm7, %v2463_v47  ;;  %v6264_v47 = vld [vmem:[%s8899_s19 + $0x80] sm:$0xff] }
0x120e   :  { %7364 = vmatprep.mubr.msk.f32.mxu0 %vm8501_vm0, %v8502_v15 }
0x1211   :  { %7365 = vmatmul.mubr.msk.f32.vlgmr.msra.gmra.mrb[64].mxu0 %vm473_vm2, %v9107_v50 }
0x1212   :  { %7367 = vmatprep.mubr.msk.f32.mxu0 %vm8501_vm0, %v8502_v15 }
0x1215   :  { %7368 = vmatmul.mubr.msk.f32.gmra.mrb[66].mxu0 %vm473_vm2, %v9115_v27 }
0x1216   :  { %7370 = vmatprep.mubr.msk.f32.mxu0 %vm8501_vm0, %v8502_v15 }
0x1219   :  { %7371 = vmatmul.mubr.msk.f32.gmra.mrb[68].mxu0 %vm473_vm2, %v9122_v17 }
0x121a   :  { %7396 = vmatprep.mubr.msk.f32.mxu0 %vm8501_vm0, %v8502_v15 }
0x12d8   :  { %v9266_v48 = vpop.f32.mrb[58].mxu0 }
0x12d9   :  { %v7332_v49 = vpop.f32.mrb[59].mxu0 }
0x12da   :  { %v6265_v49 = vld [vmem:[%s8899_s19 + $0x88] sm:$0xff] }
0x12dc   :  { %v9268_v51 = vpop.f32.mrb[60].mxu0 }
0x12dd   :  { %v7335_v50 = vpop.f32.mrb[61].mxu0 }
0x12e0   :  { %v9270_v24 = vpop.f32.mrb[62].mxu0 }
0x12e1   :  { %v7338_v52 = vpop.f32.mrb[63].mxu0 }
0x12e2   :  { %v8111_v52 = vpack.c.bf16 %v6265_v49, %v6264_v47 }
0x12e4   :  { %v2721_v26 = vpop.f32.mrb[64].mxu0 }
0x12e5   :  { %v7366_v27 = vpop.f32.mrb[65].mxu0 }
0x12e6   :  { %v6266_v27 = vld [vmem:[%s8899_s19 + $0x90] sm:$0xff] }
0x12e8   :  { %v2726_v53 = vpop.f32.mrb[66].mxu0 }
0x12e9   :  { %v8092_v54 = vpack.c.bf16 %v2726_v53, %v2721_v26  ;;  %v7369_v57 = vpop.f32.mrb[67].mxu0  ;;  %v6267_v53 = vld [vmem:[%s8899_s19 + $0x98] sm:$0xff] }
0x12ea   :  { %v8114_v57 = vpack.c.bf16 %v6267_v53, %v6266_v27  ;;  %v6325_v27 = vld [vmem:[%s8997_s28 + $0x30] sm:$0xff]  ;;  %v6326_v53 = vld [vmem:[%s8997_s28 + $0x38] sm:$0xff] }
0x12eb   :  { %8094 = vmatpush3.bf16.xpose.msk.msra.mxu0 %vm8751_vm6, %v8092_v54 }
0x12ec   :  { %v2731_v17 = vpop.f32.mrb[68].mxu0  ;;  %7394 = vmatprep.subr.mxu0 %v8502_v15 }
0x12ed   :  { %v7372_v58 = vpop.f32.mrb[69].mxu0 }
0x12ee   :  { %v6268_v58 = vld [vmem:[%s8899_s19 + $0xa0] sm:$0xff] }
0x12f3   :  { %7395 = vmatpush3.xpose.msk.msra.mxu0 %vm794_vm5, %v2731_v17 }
0x12f4   :  { %8098 = vmatprep.subr.bf16.mxu0 %v8500_v14 }
0x12f6   :  { %7397 = vmatmul.mubr.msk.f32.vlgmr.msra.gmra.mrb[70].mxu0 %vm794_vm5, %v9226_v56 }
0x12f7   :  { %7399 = vmatprep.mubr.msk.f32.mxu0 %vm8501_vm0, %v8502_v15  ;;  %8100 = vmatpush3.bf16.msra.mxu0 %v8099_v30 }
0x12f8   :  { %8101 = vmatprep.subr.bf16.mxu0 %v8500_v14 }
0x12fa   :  { %7400 = vmatmul.mubr.msk.f32.gmra.mrb[72].mxu0 %vm794_vm5, %v9229_v60 }
0x12fb   :  { %7402 = vmatprep.mubr.msk.f32.mxu0 %vm8501_vm0, %v8502_v15  ;;  %8103 = vmatpush3.bf16.msra.mxu0 %v8102_v31 }
0x12fc   :  { %8104 = vmatprep.subr.bf16.mxu0 %v8500_v14 }
0x12fe   :  { %7403 = vmatmul.mubr.msk.f32.gmra.mrb[74].mxu0 %vm794_vm5, %v9231_v22 }
0x12ff   :  { %7436 = vmatprep.mubr.msk.f32.mxu0 %vm8501_vm0, %v8502_v15  ;;  %8106 = vmatpush3.bf16.msra.mxu0 %v8105_v33 }
0x1300   :  { %8107 = vmatprep.subr.bf16.mxu0 %v8500_v14 }
0x1303   :  { %8109 = vmatpush3.bf16.msra.mxu0 %v8108_v37 }
0x1304   :  { %8122 = vmatprep.subr.bf16.mxu0 %v8500_v14 }
0x13c9   :  { %v2904_v61 = vpop.f32.mrb[70].mxu0 }
0x13ca   :  { %v2918_v62 = vmul.f32 0.125, %v2904_v61  ;;  %v7398_v63 = vpop.f32.mrb[71].mxu0  ;;  %v6269_v61 = vld [vmem:[%s8899_s19 + $0xa8] sm:$0xff] }
0x13cb   :  { %v8117_v63 = vpack.c.bf16 %v6269_v61, %v6268_v58  ;;  %v6334_v58 = vld [vmem:[%s9008_s4 + $0x90] sm:$0xff] }
0x13cc   :  { %v2921_v56 = vadd.f32 %v9213_v44, %v2918_v62 }
0x13cd   :  { %v2909_v4 = vpop.f32.mrb[72].mxu0 }
0x13ce   :  { %v2919_v1 = vmul.f32 0.125, %v2909_v4  ;;  %v7401_v28 = vpop.f32.mrb[73].mxu0  ;;  %v2924_v2 = vsel %vm899_vm7, %v2921_v56, -inf  ;;  %v6270_v4 = vld [vmem:[%s8899_s19 + $0xb0] sm:$0xff] }
0x13cf   :  { %2925 = vmax.xlane.f32.xlu0 %v2924_v2 }
0x13d0   :  { %v2922_v60 = vadd.f32 %v9218_v39, %v2919_v1  ;;  %v6271_v1 = vld [vmem:[%s8899_s19 + $0xb8] sm:$0xff]  ;;  %s8529_s19 = smov 28  }
0x13d1   :  { %v2914_v3 = vpop.f32.mrb[74].mxu0  ;;  %v8120_v28 = vpack.c.bf16 %v6271_v1, %v6270_v4  ;;  %v6337_v4 = vld [vmem:[%s9008_s4 + $0xa8] sm:$0xff] }
0x13d2   :  { %v2920_v5 = vmul.f32 0.125, %v2914_v3  ;;  %v7404_v8 = vpop.f32.mrb[75].mxu0  ;;  %v2927_v22 = vsel %vm899_vm7, %v2922_v60, -inf }
0x13d3   :  { %2928 = vmax.xlane.f32.xlu1 %v2927_v22 }
0x13d4   :  { %v2923_v6 = vadd.f32 %v9223_v42, %v2920_v5 }
0x13d6   :  { %v2930_v7 = vsel %vm906_vm8, %v2923_v6, -inf }
0x13d7   :  { %2931 = vmax.xlane.f32.xlu0 %v2930_v7 }
0x145c   :  { %v2926_v44 = vpop.xlane.xlu0 %2925 }
0x145d   :  { %v2933_v35 = vsub.f32 %v2921_v56, %v2926_v44 }
0x145f   :  { %v2936_v40 = vmul.f32 1.442695, %v2933_v35 }
0x1460   :  { %v2929_v9 = vpop.xlane.xlu1 %2928 }
0x1461   :  { %8436 = vpow2.f32 %v2936_v40  ;;  %v2934_v10 = vsub.f32 %v2922_v60, %v2929_v9 }
0x1463   :  { %v2938_v11 = vmul.f32 1.442695, %v2934_v10  ;;  %v6318_v10 = vld [vmem:[%s8958_s23 + $0x1] ss:$0 sm:$0xff]  ;;  %s6132_s23 = sld [smem:[%s9877_s0 + %s8521_s11]]  }
0x1464   :  { %v2932_v39 = vpop.xlane.xlu0 %2931  ;;  %s9657_s11 = sld [smem:[%s9877_s0 + %s8534_s25]]  }
0x1465   :  { %8438 = vpow2.f32 %v2938_v11  ;;  %v2935_v12 = vsub.f32 %v2923_v6, %v2932_v39 }
0x1467   :  { %v2940_v13 = vmul.f32 1.442695, %v2935_v12 }
0x1469   :  { %8440 = vpow2.f32 %v2940_v13 }
0x146b   :  { %v8437_v42 = vpop.eup %8436 }
0x146c   :  { %v2942_v45 = vsel %vm899_vm7, %v8437_v42, 0.0 }
0x146d   :  { %2943 = vadd.xlane.f32.xlu1 %v2942_v45 }
0x146f   :  { %v8439_v16 = vpop.eup %8438 }
0x1470   :  { %v2945_v18 = vsel %vm899_vm7, %v8439_v16, 0.0 }
0x1471   :  { %2946 = vadd.xlane.f32.xlu0 %v2945_v18 }
0x1473   :  { %v8441_v19 = vpop.eup %8440 }
0x1474   :  { %v2948_v20 = vsel %vm906_vm8, %v8441_v19, 0.0 }
0x1475   :  { %2949 = vadd.xlane.f32.xlu1 %v2948_v20 }
0x14fa   :  { %v2944_v41 = vpop.xlane.xlu1 %2943 }
0x14fb   :  { %8442 = vrcp.f32 %v2944_v41 }
0x14fe   :  { %v2947_v46 = vpop.xlane.xlu0 %2946 }
0x14ff   :  { %8444 = vrcp.f32 %v2947_v46 }
0x1502   :  { %v2950_v34 = vpop.xlane.xlu1 %2949 }
0x1503   :  { %8446 = vrcp.f32 %v2950_v34 }
0x1505   :  { %v8443_v50 = vpop.eup %8442 }
0x1506   :  { %v2954_v26 = vmul.f32 %v8443_v50, %v8437_v42  ;;  %v6323_v50 = vld [vmem:[%s8997_s28 + $0x20] sm:$0xff] }
0x1508   :  { %7412 = vmatmul.mubr.msk.f32.vlgmr.msra.gmra.mrb[74].mxu1 %vm899_vm7, %v2954_v26 }
0x1509   :  { %v8445_v54 = vpop.eup %8444  ;;  %8112 = vmatpush3.bf16.msra.mxu1 %v8111_v52  ;;  %7414 = vmatprep.mubr.msk.f32.mxu1 %vm8501_vm0, %v8502_v15  ;;  %v6324_v52 = vld [vmem:[%s8997_s28 + $0x28] sm:$0xff]  ;;  %s9575_s28 = sld [smem:[%s9877_s0 + %s8529_s19]]  }
0x150a   :  { %8113 = vmatprep.subr.bf16.mxu1 %v8500_v14  ;;  %v2955_v17 = vmul.f32 %v8445_v54, %v8439_v16  ;;  %v8123_v26 = vpack.c.bf16 %v6324_v52, %v6323_v50  ;;  %v8126_v54 = vpack.c.bf16 %v6326_v53, %v6325_v27 }
0x150c   :  { %7415 = vmatmul.mubr.msk.f32.gmra.mrb[76].mxu1 %vm899_vm7, %v2955_v17  ;;  %v6333_v17 = vld [vmem:[%s9008_s4 + $0x88] sm:$0xff] }
0x150d   :  { %v8447_v62 = vpop.eup %8446  ;;  %8115 = vmatpush3.bf16.msra.mxu1 %v8114_v57  ;;  %7417 = vmatprep.mubr.msk.f32.mxu1 %vm8501_vm0, %v8502_v15  ;;  %v6332_v57 = vld [vmem:[%s9008_s4 + $0x80] sm:$0xff] }
0x150e   :  { %8116 = vmatprep.subr.bf16.mxu1 %v8500_v14  ;;  %v2956_v56 = vmul.f32 %v8447_v62, %v8441_v19  ;;  %v8129_v61 = vpack.c.bf16 %v6333_v17, %v6332_v57  ;;  %v6335_v62 = vld [vmem:[%s9008_s4 + $0x98] sm:$0xff] }
0x1510   :  { %7418 = vmatmul.mubr.msk.f32.gmra.mrb[78].mxu1 %vm899_vm7, %v2956_v56  ;;  %v6336_v56 = vld [vmem:[%s9008_s4 + $0xa0] sm:$0xff] }
0x1511   :  { %8118 = vmatpush3.bf16.msra.mxu1 %v8117_v63  ;;  %7461 = vmatprep.mubr.msk.f32.mxu1 %vm8501_vm0, %v8502_v15  ;;  %v8132_v63 = vpack.c.bf16 %v6335_v62, %v6334_v58  ;;  %v8135_v1 = vpack.c.bf16 %v6337_v4, %v6336_v56 }
0x1512   :  { %8119 = vmatprep.subr.bf16.mxu1 %v8500_v14 }
0x1515   :  { %8121 = vmatpush3.bf16.msra.mxu1 %v8120_v28 }
0x1516   :  { %8128 = vmatprep.subr.bf16.mxu1 %v8500_v14 }
0x1518   :  { %7462 = vmatmul.mubr.msk.f32.vlgmr.msra.gmra.mrb[80].mxu1 %vm794_vm5, %v9266_v48 }
0x1519   :  { %7464 = vmatprep.mubr.msk.f32.mxu1 %vm8501_vm0, %v8502_v15  ;;  %8130 = vmatpush3.bf16.msra.mxu1 %v8129_v61 }
0x151a   :  { %8131 = vmatprep.subr.bf16.mxu1 %v8500_v14 }
0x151c   :  { %7465 = vmatmul.mubr.msk.f32.gmra.mrb[82].mxu1 %vm794_vm5, %v9268_v51 }
0x151d   :  { %7467 = vmatprep.mubr.msk.f32.mxu1 %vm8501_vm0, %v8502_v15  ;;  %8133 = vmatpush3.bf16.msra.mxu1 %v8132_v63 }
0x151e   :  { %8134 = vmatprep.subr.bf16.mxu1 %v8500_v14 }
0x1520   :  { %7468 = vmatmul.mubr.msk.f32.gmra.mrb[84].mxu1 %vm794_vm5, %v9270_v24 }
0x1521   :  { %7519 = vmatprep.mubr.msk.f32.mxu1 %vm8501_vm0, %v8502_v15  ;;  %8136 = vmatpush3.bf16.msra.mxu1 %v8135_v1 }
0x1522   :  { %8137 = vmatprep.subr.bf16.mxu1 %v8500_v14 }
0x15db   :  { %v3035_v2 = vpop.f32.mrb[74].mxu1 }
0x15dc   :  { %v7413_v60 = vpop.f32.mrb[75].mxu1  ;;  %7437 = vmatmul.mubr.msk.f32.vlgmr.msra.gmra.mrb[76].mxu0 %vm794_vm5, %v3035_v2 }
0x15dd   :  { %7439 = vmatprep.mubr.msk.f32.mxu0 %vm8501_vm0, %v8502_v15  ;;  %8124 = vmatpush3.bf16.msra.mxu0 %v8123_v26 }
0x15de   :  { %8125 = vmatprep.subr.bf16.mxu0 %v8500_v14 }
0x15df   :  { %v3040_v48 = vpop.f32.mrb[76].mxu1 }
0x15e0   :  { %v7416_v3 = vpop.f32.mrb[77].mxu1  ;;  %7440 = vmatmul.mubr.msk.f32.gmra.mrb[78].mxu0 %vm794_vm5, %v3040_v48 }
0x15e1   :  { %7442 = vmatprep.mubr.msk.f32.mxu0 %vm8501_vm0, %v8502_v15  ;;  %8127 = vmatpush3.bf16.msra.mxu0 %v8126_v54 }
0x15e2   :  { %8152 = vmatprep.subr.bf16.mxu0 %v8500_v14 }
0x15e3   :  { %v3045_v51 = vpop.f32.mrb[78].mxu1 }
0x15e4   :  { %v7419_v24 = vpop.f32.mrb[79].mxu1  ;;  %7443 = vmatmul.mubr.msk.f32.gmra.mrb[80].mxu0 %vm794_vm5, %v3045_v51 }
0x15e5   :  { %7478 = vmatprep.mubr.msk.f32.mxu0 %vm8501_vm0, %v8502_v15 }
0x15eb   :  { %v3222_v5 = vpop.f32.mrb[80].mxu1 }
0x15ec   :  { %v7463_v8 = vpop.f32.mrb[81].mxu1 }
0x15ef   :  { %v3227_v22 = vpop.f32.mrb[82].mxu1 }
0x15f0   :  { %v7466_v6 = vpop.f32.mrb[83].mxu1 }
0x15f1   :  { %v6321_v6 = vld [vmem:[%s9022_s9 + $0x1] ss:$0 sm:$0xff]  ;;  %s8539_s9 = smov 38  }
0x15f3   :  { %v3232_v7 = vpop.f32.mrb[84].mxu1 }
0x15f4   :  { %v7469_v44 = vpop.f32.mrb[85].mxu1 }
0x15f5   :  { %v6322_v44 = vld [vmem:[%s9027_s14 + $0x1] ss:$0 sm:$0xff]  ;;  %s6150_s14 = sld [smem:[%s9877_s0 + %s8539_s9]]  }
0x16af   :  { %v3133_v35 = vpop.f32.mrb[76].mxu0 }
0x16b0   :  { %v3223_v40 = vadd.f32 %v3222_v5, %v3133_v35  ;;  %v7438_v9 = vpop.f32.mrb[77].mxu0 }
0x16b2   :  { %v3236_v11 = vadd.f32 %v3223_v40, %v9077_v55 }
0x16b3   :  { %v3138_v39 = vpop.f32.mrb[78].mxu0 }
0x16b4   :  { %v9354_v12 = vadd.f32 %v6318_v10, %v3236_v11  ;;  %v3228_v13 = vadd.f32 %v3227_v22, %v3138_v39  ;;  %v7441_v42 = vpop.f32.mrb[79].mxu0 }
0x16b6   :  { %v3237_v45 = vadd.f32 %v3228_v13, %v9082_v59  ;;  %v3254_v16 = vsel %vm473_vm2, %v9354_v12, 0.0 }
0x16b7   :  { %v3143_v18 = vpop.f32.mrb[80].mxu0  ;;  %3255 = vadd.xlane.f32.xlu0 %v3254_v16 }
0x16b8   :  { %v9359_v19 = vadd.f32 %v6318_v10, %v3237_v45  ;;  %v3233_v20 = vadd.f32 %v3232_v7, %v3143_v18  ;;  %v7444_v21 = vpop.f32.mrb[81].mxu0  ;;  %v6338_v18 = vld [vmem:[%s9008_s4 + $0xb0] sm:$0xff] }
0x16ba   :  { %v3238_v23 = vadd.f32 %v3233_v20, %v9087_v0  ;;  %v3257_v55 = vsel %vm473_vm2, %v9359_v19, 0.0  ;;  %v6339_v20 = vld [vmem:[%s9008_s4 + $0xb8] sm:$0xff] }
0x16bb   :  { %3258 = vadd.xlane.f32.xlu1 %v3257_v55  ;;  %v8138_v21 = vpack.c.bf16 %v6339_v20, %v6338_v18  ;;  %v6341_v55 = vld [vmem:[%s9008_s4 + $0xc8] sm:$0xff] }
0x16bc   :  { %v9364_v25 = vadd.f32 %v6318_v10, %v3238_v23  ;;  %v6340_v23 = vld [vmem:[%s9008_s4 + $0xc0] sm:$0xff] }
0x16bd   :  { %8139 = vmatpush3.bf16.msra.mxu1 %v8138_v21 }
0x16be   :  { %v3260_v59 = vsel %vm480_vm3, %v9364_v25, 0.0  ;;  %8140 = vmatprep.subr.bf16.mxu1 %v8500_v14 }
0x16bf   :  { %3261 = vadd.xlane.f32.xlu0 %v3260_v59  ;;  %v8141_v59 = vpack.c.bf16 %v6341_v55, %v6340_v23 }
0x16c1   :  { %8142 = vmatpush3.bf16.msra.mxu1 %v8141_v59 }
0x16c2   :  { %8143 = vmatprep.subr.bf16.mxu1 %v8500_v14 }
0x1744   :  { %v3256_v30 = vpop.xlane.xlu0 %3255 }
0x1745   :  { %v3263_v29 = vmul.f32 0.03125, %v3256_v30  ;;  %v6342_v30 = vld [vmem:[%s9008_s4 + $0xd0] sm:$0xff] }
0x1747   :  { %v3266_v31 = vsub.f32 %v9354_v12, %v3263_v29  ;;  %v6343_v29 = vld [vmem:[%s9008_s4 + $0xd8] sm:$0xff] }
0x1748   :  { %v3259_v38 = vpop.xlane.xlu1 %3258 }
0x1749   :  { %v3264_v32 = vmul.f32 0.03125, %v3259_v38  ;;  %v3269_v33 = vmul.f32 %v3266_v31, %v3266_v31  ;;  %v6344_v38 = vld [vmem:[%s9008_s4 + $0xe0] sm:$0xff] }
0x174b   :  { %v3267_v0 = vsub.f32 %v9359_v19, %v3264_v32  ;;  %v3272_v36 = vsel %vm473_vm2, %v3269_v33, 0.0  ;;  %v6345_v32 = vld [vmem:[%s9008_s4 + $0xe8] sm:$0xff] }
0x174c   :  { %3273 = vadd.xlane.f32.xlu1 %v3272_v36  ;;  %v3262_v43 = vpop.xlane.xlu0 %3261  ;;  %v8147_v33 = vpack.c.bf16 %v6345_v32, %v6344_v38  ;;  %v6347_v36 = vld [vmem:[%s9008_s4 + $0xf8] sm:$0xff] }
0x174d   :  { %v3265_v37 = vmul.f32 0.03125, %v3262_v43  ;;  %v3270_v41 = vmul.f32 %v3267_v0, %v3267_v0 }
0x174f   :  { %v3268_v46 = vsub.f32 %v9364_v25, %v3265_v37  ;;  %v3275_v34 = vsel %vm473_vm2, %v3270_v41, 0.0  ;;  %v6328_v37 = vld [vmem:[%s9061_s20 + $0x1] ss:$0 sm:$0xff]  ;;  %s8533_s20 = smov 30  }
0x1750   :  { %3276 = vadd.xlane.f32.xlu0 %v3275_v34 }
0x1751   :  { %v3271_v47 = vmul.f32 %v3268_v46, %v3268_v46 }
0x1753   :  { %v3278_v49 = vsel %vm480_vm3, %v3271_v47, 0.0 }
0x1754   :  { %3279 = vadd.xlane.f32.xlu1 %v3278_v49 }
0x17d9   :  { %v3274_v28 = vpop.xlane.xlu1 %3273 }
0x17da   :  { %v3281_v2 = vmul.f32 0.03125, %v3274_v28 }
0x17dc   :  { %v3284_v60 = vadd.f32 1e-05, %v3281_v2 }
0x17dd   :  { %v3277_v48 = vpop.xlane.xlu0 %3276 }
0x17de   :  { %8448 = vrsqrt.f32 %v3284_v60  ;;  %v3282_v3 = vmul.f32 0.03125, %v3277_v48 }
0x17e0   :  { %v3285_v51 = vadd.f32 1e-05, %v3282_v3 }
0x17e1   :  { %v3280_v24 = vpop.xlane.xlu1 %3279 }
0x17e2   :  { %8450 = vrsqrt.f32 %v3285_v51  ;;  %v3283_v5 = vmul.f32 0.03125, %v3280_v24  ;;  %v6349_v51 = vld [vmem:[%s9073_s26 + $0x1] ss:$0 sm:$0xff]  ;;  %s9652_s26 = sld [smem:[%s9877_s0 + %s8533_s20]]  }
0x17e4   :  { %v3286_v8 = vadd.f32 1e-05, %v3283_v5 }
0x17e6   :  { %8452 = vrsqrt.f32 %v3286_v8 }
0x17e8   :  { %v8449_v22 = vpop.eup %8448 }
0x17e9   :  { %v3290_v7 = vmul.f32 %v8449_v22, %v3266_v31  ;;  %v8144_v31 = vpack.c.bf16 %v6343_v29, %v6342_v30 }
0x17eb   :  { %v3299_v35 = vmul.f32 %v6321_v6, %v3290_v7  ;;  %8145 = vmatpush3.bf16.msra.mxu1 %v8144_v31 }
0x17ec   :  { %v8451_v40 = vpop.eup %8450  ;;  %8146 = vmatprep.subr.bf16.mxu1 %v8500_v14 }
0x17ed   :  { %v3308_v9 = vadd.f32 %v6322_v44, %v3299_v35  ;;  %v3291_v10 = vmul.f32 %v8451_v40, %v3267_v0  ;;  %v6346_v0 = vld [vmem:[%s9008_s4 + $0xf0] sm:$0xff]  ;;  %s9614_s4 = sld [smem:[%s9877_s0 + %s8530_s30]]   ;;  %s8536_s30 = smov 35  }
0x17ee   :  { %v8150_v43 = vpack.c.bf16 %v6347_v36, %v6346_v0  ;;  %s9690_s5 = sld [smem:[%s9877_s0 + %s8536_s30]]  }
0x17ef   :  { %7479 = vmatmul.mubr.msk.f32.vlgmr.msra.gmra.mrb[82].mxu0 %vm473_vm2, %v3308_v9  ;;  %v3300_v11 = vmul.f32 %v6321_v6, %v3291_v10  ;;  %8148 = vmatpush3.bf16.msra.mxu1 %v8147_v33 }
0x17f0   :  { %v8453_v39 = vpop.eup %8452  ;;  %7481 = vmatprep.mubr.msk.f32.mxu0 %vm8501_vm0, %v8502_v15  ;;  %8149 = vmatprep.subr.bf16.mxu1 %v8500_v14 }
0x17f1   :  { %v3309_v13 = vadd.f32 %v6322_v44, %v3300_v11  ;;  %v3292_v42 = vmul.f32 %v8453_v39, %v3268_v46 }
0x17f3   :  { %7482 = vmatmul.mubr.msk.f32.gmra.mrb[84].mxu0 %vm473_vm2, %v3309_v13  ;;  %v3301_v45 = vmul.f32 %v6321_v6, %v3292_v42  ;;  %8151 = vmatpush3.bf16.msra.mxu1 %v8150_v43 }
0x17f4   :  { %7484 = vmatprep.mubr.msk.f32.mxu0 %vm8501_vm0, %v8502_v15  ;;  %7570 = vmatprep.subr.mxu1 %v8502_v15 }
0x17f5   :  { %v3310_v16 = vadd.f32 %v6322_v44, %v3301_v45 }
0x17f7   :  { %7485 = vmatmul.mubr.msk.f32.gmra.mrb[86].mxu0 %vm473_vm2, %v3310_v16 }
0x17f8   :  { %7534 = vmatprep.mubr.msk.f32.mxu0 %vm8501_vm0, %v8502_v15 }
0x18c2   :  { %v3399_v41 = vpop.f32.mrb[82].mxu0 }
0x18c3   :  { %v3400_v46 = vadd.f32 %v6328_v37, %v3399_v41  ;;  %v7480_v34 = vpop.f32.mrb[83].mxu0 }
0x18c5   :  { %v3416_v47 = vmul.f32 0.70710677, %v3400_v46  ;;  %v3413_v58 = vmul.f32 0.5, %v3400_v46 }
0x18c6   :  { %v3404_v49 = vpop.f32.mrb[84].mxu0 }
0x18c7   :  { %8454 = verf.f32 %v3416_v47  ;;  %v3405_v50 = vadd.f32 %v6328_v37, %v3404_v49  ;;  %v7483_v52 = vpop.f32.mrb[85].mxu0  ;;  %v6350_v49 = vld [vmem:[%s6131_s7] ss:$0 sm:$0xff] }
0x18c9   :  { %v3417_v26 = vmul.f32 0.70710677, %v3405_v50  ;;  %v3414_v56 = vmul.f32 0.5, %v3405_v50 }
0x18ca   :  { %v3409_v27 = vpop.f32.mrb[86].mxu0 }
0x18cb   :  { %8456 = verf.f32 %v3417_v26  ;;  %v3410_v53 = vadd.f32 %v6328_v37, %v3409_v27  ;;  %v7486_v54 = vpop.f32.mrb[87].mxu0  ;;  %v6351_v27 = vld [vmem:[%s6132_s23] ss:$0 sm:$0xff] }
0x18cd   :  { %v3418_v57 = vmul.f32 0.70710677, %v3410_v53  ;;  %v3415_v2 = vmul.f32 0.5, %v3410_v53 }
0x18cf   :  { %8458 = verf.f32 %v3418_v57 }
0x18d1   :  { %v8455_v17 = vpop.eup %8454 }
0x18d2   :  { %v3422_v61 = vadd.f32 1.0, %v8455_v17 }
0x18d4   :  { %v3425_v62 = vmul.f32 %v3422_v61, %v3413_v58 }
0x18d5   :  { %v8457_v63 = vpop.eup %8456 }
0x18d6   :  { %v3423_v4 = vadd.f32 1.0, %v8457_v63  ;;  %7520 = vmatmul.mubr.f32.vlgmr.msra.gmra.mrb[86].mxu1 %v3425_v62 }
0x18d7   :  { %7522 = vmatprep.mubr.msk.f32.mxu1 %vm8501_vm0, %v8502_v15 }
0x18d8   :  { %v3426_v1 = vmul.f32 %v3423_v4, %v3414_v56  ;;  %v3598_v56 = vld [vmem:[%s6133_s1] sm:$0xf] }
0x18d9   :  { %v8459_v28 = vpop.eup %8458 }
0x18da   :  { %v3424_v60 = vadd.f32 1.0, %v8459_v28  ;;  %7523 = vmatmul.mubr.f32.gmra.mrb[88].mxu1 %v3426_v1 }
0x18db   :  { %7525 = vmatprep.mubr.msk.f32.mxu1 %vm8501_vm0, %v8502_v15 }
0x18dc   :  { %v3427_v48 = vmul.f32 %v3424_v60, %v3415_v2 }
0x18de   :  { %7526 = vmatmul.mubr.f32.gmra.mrb[90].mxu1 %v3427_v48 }
0x18df   :  { %7572 = vmatprep.mubr.msk.f32.mxu1 %vm8501_vm0, %v8502_v15 }
0x19a9   :  { %v3511_v3 = vpop.f32.mrb[86].mxu1 }
0x19aa   :  { %v3525_v24 = vadd.f32 %v3511_v3, %v9354_v12  ;;  %v7521_v5 = vpop.f32.mrb[87].mxu1 }
0x19ab   :  { %v3706_v5 = vld [vmem:[%s9456_s6 + $0x8] sm:$0xff] }
0x19ac   :  { %v3536_v8 = vadd.f32 %v6349_v51, %v3525_v24  ;;  %v3705_v24 = vld [vmem:[%s9456_s6] sm:$0xff] }
0x19ad   :  { %v3516_v22 = vpop.f32.mrb[88].mxu1 }
0x19ae   :  { %v3526_v6 = vadd.f32 %v3516_v22, %v9359_v19  ;;  %v7524_v7 = vpop.f32.mrb[89].mxu1  ;;  %v3541_v44 = vsel %vm473_vm2, %v3536_v8, 0.0  ;;  %v3707_v22 = vld [vmem:[%s9456_s6 + $0x10] sm:$0xff] }
0x19af   :  { %3542 = vadd.xlane.f32.xlu0 %v3541_v44 }
0x19b0   :  { %v3537_v35 = vadd.f32 %v6349_v51, %v3526_v6  ;;  %v3708_v6 = vld [vmem:[%s9456_s6 + $0x18] sm:$0xff] }
0x19b1   :  { %v3521_v40 = vpop.f32.mrb[90].mxu1  ;;  %v8159_v7 = vpack.c.bf16 %v3708_v6, %v3707_v22 }
0x19b2   :  { %v3527_v9 = vadd.f32 %v3521_v40, %v9364_v25  ;;  %v7527_v10 = vpop.f32.mrb[91].mxu1  ;;  %v3544_v11 = vsel %vm473_vm2, %v3537_v35, 0.0 }
0x19b3   :  { %3545 = vadd.xlane.f32.xlu1 %v3544_v11  ;;  %v6354_v10 = vld [vmem:[%s9467_s12] ss:$0 sm:$0xff] }
0x19b4   :  { %v3538_v39 = vadd.f32 %v6349_v51, %v3527_v9 }
0x19b6   :  { %v3547_v12 = vsel %vm480_vm3, %v3538_v39, 0.0 }
0x19b7   :  { %3548 = vadd.xlane.f32.xlu0 %v3547_v12  ;;  %v3783_v12 = vld [vmem:[%s9472_s17 + $0x8] sm:$0xff] }
0x1a3c   :  { %v3543_v13 = vpop.xlane.xlu0 %3542 }
0x1a3d   :  { %v3550_v42 = vmul.f32 0.03125, %v3543_v13  ;;  %v6355_v13 = vld [vmem:[%s9477_s22] ss:$0 sm:$0xff] }
0x1a3f   :  { %v3553_v45 = vsub.f32 %v3536_v8, %v3550_v42  ;;  %v8156_v8 = vpack.c.bf16 %v3706_v5, %v3705_v24  ;;  %v6368_v24 = vld [vmem:[%s9472_s17 + $0x20] sm:$0xff]  ;;  %v6369_v5 = vld [vmem:[%s9472_s17 + $0x28] sm:$0xff] }
0x1a40   :  { %v3546_v19 = vpop.xlane.xlu1 %3545  ;;  %v8180_v22 = vpack.c.bf16 %v6369_v5, %v6368_v24 }
0x1a41   :  { %v3551_v16 = vmul.f32 0.03125, %v3546_v19  ;;  %v3556_v18 = vmul.f32 %v3553_v45, %v3553_v45 }
0x1a43   :  { %v3554_v20 = vsub.f32 %v3537_v35, %v3551_v16  ;;  %v3559_v21 = vsel %vm473_vm2, %v3556_v18, 0.0  ;;  %v3784_v16 = vld [vmem:[%s9472_s17 + $0x10] sm:$0xff]  ;;  %v3785_v18 = vld [vmem:[%s9472_s17 + $0x18] sm:$0xff] }
0x1a44   :  { %3560 = vadd.xlane.f32.xlu1 %v3559_v21  ;;  %v3549_v23 = vpop.xlane.xlu0 %3548  ;;  %v3856_v21 = vld [vmem:[%s9485_s29] sm:$0xff] }
0x1a45   :  { %v3552_v25 = vmul.f32 0.03125, %v3549_v23  ;;  %v3557_v55 = vmul.f32 %v3554_v20, %v3554_v20  ;;  %v3857_v23 = vld [vmem:[%s9485_s29 + $0x8] sm:$0xff] }
0x1a47   :  { %v3555_v59 = vsub.f32 %v3538_v39, %v3552_v25  ;;  %v3562_v30 = vsel %vm473_vm2, %v3557_v55, 0.0  ;;  %v3782_v39 = vld [vmem:[%s9472_s17] sm:$0xff]  ;;  %v8168_v25 = vpack.c.bf16 %v3857_v23, %v3856_v21  ;;  %v3858_v55 = vld [vmem:[%s9485_s29 + $0x10] sm:$0xff] }
0x1a48   :  { %3563 = vadd.xlane.f32.xlu0 %v3562_v30  ;;  %v6382_v23 = vld [vmem:[%s9575_s28 + $0x40] sm:$0xff] }
0x1a49   :  { %v3558_v29 = vmul.f32 %v3555_v59, %v3555_v59 }
0x1a4b   :  { %v3565_v31 = vsel %vm480_vm3, %v3558_v29, 0.0 }
0x1a4c   :  { %3566 = vadd.xlane.f32.xlu1 %v3565_v31 }
0x1ad1   :  { %v3561_v38 = vpop.xlane.xlu1 %3560 }
0x1ad2   :  { %v3568_v32 = vmul.f32 0.03125, %v3561_v38  ;;  %v6363_v38 = vld [vmem:[%s9456_s6 + $0x20] sm:$0xff] }
0x1ad4   :  { %v3571_v33 = vadd.f32 1e-05, %v3568_v32  ;;  %v6364_v32 = vld [vmem:[%s9456_s6 + $0x28] sm:$0xff] }
0x1ad5   :  { %v3564_v0 = vpop.xlane.xlu0 %3563 }
0x1ad6   :  { %8460 = vrsqrt.f32 %v3571_v33  ;;  %v3569_v36 = vmul.f32 0.03125, %v3564_v0 }
0x1ad8   :  { %v3572_v43 = vadd.f32 1e-05, %v3569_v36  ;;  %v8174_v36 = vpack.c.bf16 %v6364_v32, %v6363_v38  ;;  %v6387_v38 = vld [vmem:[%s9575_s28 + $0x68] sm:$0xff] }
0x1ad9   :  { %v3567_v37 = vpop.xlane.xlu1 %3566 }
0x1ada   :  { %8462 = vrsqrt.f32 %v3572_v43  ;;  %v3570_v41 = vmul.f32 0.03125, %v3567_v37  ;;  %v6365_v43 = vld [vmem:[%s9456_s6 + $0x30] sm:$0xff]  ;;  %v6366_v37 = vld [vmem:[%s9456_s6 + $0x38] sm:$0xff] }
0x1adc   :  { %v3573_v46 = vadd.f32 1e-05, %v3570_v41  ;;  %v8177_v41 = vpack.c.bf16 %v6366_v37, %v6365_v43  ;;  %v4097_v37 = vld [vmem:[%s9575_s28] sm:$0xff] }
0x1ade   :  { %8464 = vrsqrt.f32 %v3573_v46  ;;  %v6373_v46 = vld [vmem:[%s9485_s29 + $0x20] sm:$0xff] }
0x1ae0   :  { %v8461_v34 = vpop.eup %8460 }
0x1ae1   :  { %v3577_v47 = vmul.f32 %v8461_v34, %v3553_v45  ;;  %v8162_v45 = vpack.c.bf16 %v3783_v12, %v3782_v39  ;;  %v6374_v34 = vld [vmem:[%s9485_s29 + $0x28] sm:$0xff] }
0x1ae3   :  { %v3586_v26 = vmul.f32 %v6350_v49, %v3577_v47 }
0x1ae4   :  { %v8463_v50 = vpop.eup %8462 }
0x1ae5   :  { %v3578_v52 = vmul.f32 %v8463_v50, %v3554_v20  ;;  %v3595_v17 = vadd.f32 %v6351_v27, %v3586_v26  ;;  %v8165_v20 = vpack.c.bf16 %v3785_v18, %v3784_v16  ;;  %v8186_v50 = vpack.c.bf16 %v6374_v34, %v6373_v46  ;;  %v6376_v26 = vld [vmem:[%s9485_s29 + $0x38] sm:$0xff] }
0x1ae7   :  { %v3587_v53 = vmul.f32 %v6350_v49, %v3578_v52  ;;  %v6375_v52 = vld [vmem:[%s9485_s29 + $0x30] sm:$0xff] }
0x1ae8   :  { %v8465_v54 = vpop.eup %8464 }
0x1ae9   :  { %v3579_v57 = vmul.f32 %v8465_v54, %v3555_v59  ;;  %v3596_v58 = vadd.f32 %v6351_v27, %v3587_v53  ;;  %v3859_v59 = vld [vmem:[%s9485_s29 + $0x18] sm:$0xff]  ;;  %v9542_v54 = vld [vmem:[%s6134_s15] sm:$0xf]  ;;  %s8535_s15 = smov 33  }
0x1aea   :  { %v8171_v30 = vpack.c.bf16 %v3859_v59, %v3858_v55  ;;  %v6384_v55 = vld [vmem:[%s9575_s28 + $0x50] sm:$0xff]  ;;  %s9682_s27 = sld [smem:[%s9877_s0 + %s8535_s15]]  }
0x1aeb   :  { %v8153_v61 = vpack.c.bf16 %v3596_v58, %v3595_v17  ;;  %v3588_v62 = vmul.f32 %v6350_v49, %v3579_v57 }
0x1aed   :  { %8154 = vmatpush3.bf16.msra.mxu0 %v8153_v61  ;;  %v3597_v63 = vadd.f32 %v6351_v27, %v3588_v62  ;;  %v8189_v27 = vpack.c.bf16 %v6376_v26, %v6375_v52  ;;  %v4101_v26 = vld [vmem:[%s9575_s28 + $0x20] sm:$0xff] }
0x1aee   :  { %7532 = vmatprep.subr.mxu0 %v8502_v15 }
0x1af1   :  { %7533 = vmatpush3.msk.msra.mxu0 %vm943_vm4, %v3597_v63 }
0x1af2   :  { %7535 = vmatmul.mubr.msk.f32.vlgmr.msra.gmra.mrb[88].mxu0 %vm899_vm7, %v3598_v56  ;;  %8155 = vmatprep.subr.bf16.mxu0 %v8500_v14 }
0x1af3   :  { %7545 = vmatprep.mubr.msk.f32.mxu0 %vm8501_vm0, %v8502_v15  ;;  %8157 = vmatpush3.bf16.msra.mxu0 %v8156_v8 }
0x1af4   :  { %8158 = vmatprep.subr.bf16.mxu0 %v8500_v14 }
0x1af7   :  { %8160 = vmatpush3.bf16.msra.mxu0 %v8159_v7  ;;  %v6370_v7 = vld [vmem:[%s9472_s17 + $0x30] sm:$0xff] }
0x1af8   :  { %8161 = vmatprep.subr.bf16.mxu0 %v8500_v14 }
0x1bc5   :  { %v9447_v4 = vpop.f32.mrb[88].mxu0 }
0x1bc6   :  { %v7536_v1 = vpop.f32.mrb[89].mxu0  ;;  %v3678_v28 = vsel %vm480_vm3, %v9447_v4, 0.0 }
0x1bc7   :  { %3679 = vadd.xlane.f32.xlu0 %v3678_v28 }
0x1c54   :  { %v3680_v2 = vpop.xlane.xlu0 %3679 }
0x1c55   :  { %v3681_v60 = vmul.f32 0.03125, %v3680_v2 }
0x1c57   :  { %v3682_v48 = vsub.f32 %v9447_v4, %v3681_v60 }
0x1c59   :  { %v3683_v3 = vmul.f32 %v3682_v48, %v3682_v48 }
0x1c5b   :  { %v3684_v51 = vsel %vm480_vm3, %v3683_v3, 0.0 }
0x1c5c   :  { %3685 = vadd.xlane.f32.xlu1 %v3684_v51 }
0x1ce9   :  { %v3686_v44 = vpop.xlane.xlu1 %3685 }
0x1cea   :  { %v3687_v35 = vmul.f32 0.03125, %v3686_v44  ;;  %v6371_v44 = vld [vmem:[%s9472_s17 + $0x38] sm:$0xff] }
0x1cec   :  { %v3688_v40 = vadd.f32 1e-05, %v3687_v35  ;;  %v8183_v35 = vpack.c.bf16 %v6371_v44, %v6370_v7  ;;  %v4689_v7 = vld [vmem:[%s9627_s10 + $0x8] sm:$0xff] }
0x1cee   :  { %8466 = vrsqrt.f32 %v3688_v40 }
0x1cf8   :  { %v8467_v9 = vpop.eup %8466 }
0x1cf9   :  { %v3690_v11 = vmul.f32 %v8467_v9, %v3682_v48 }
0x1cfb   :  { %v3697_v42 = vmul.f32 %v6354_v10, %v3690_v11 }
0x1cfd   :  { %v9488_v19 = vadd.f32 %v6355_v13, %v3697_v42 }
0x1cff   :  { %7546 = vmatmul.mubr.msk.f32.vlgmr.msra.gmra.mrb[90].mxu0 %vm473_vm2, %v9488_v19 }
0x1d00   :  { %8163 = vmatpush3.bf16.msra.mxu0 %v8162_v45  ;;  %7556 = vmatprep.mubr.msk.f32.mxu0 %vm8501_vm0, %v8502_v15 }
0x1d01   :  { %8164 = vmatprep.subr.bf16.mxu0 %v8500_v14 }
0x1d04   :  { %8166 = vmatpush3.bf16.msra.mxu0 %v8165_v20 }
0x1d05   :  { %8167 = vmatprep.subr.bf16.mxu0 %v8500_v14 }
0x1d07   :  { %7557 = vmatmul.mubr.msk.f32.vlgmr.msra.gmra.mrb[92].mxu0 %vm473_vm2, %v9488_v19 }
0x1d08   :  { %8169 = vmatpush3.bf16.msra.mxu0 %v8168_v25  ;;  %7567 = vmatprep.mubr.msk.f32.mxu0 %vm8501_vm0, %v8502_v15  ;;  %v6383_v25 = vld [vmem:[%s9575_s28 + $0x48] sm:$0xff] }
0x1d09   :  { %8170 = vmatprep.subr.bf16.mxu0 %v8500_v14  ;;  %v8192_v59 = vpack.c.bf16 %v6383_v25, %v6382_v23  ;;  %v6393_v25 = vld [vmem:[%s9652_s26] ss:$0 sm:$0xff] }
0x1d0c   :  { %8172 = vmatpush3.bf16.msra.mxu0 %v8171_v30  ;;  %v6385_v30 = vld [vmem:[%s9575_s28 + $0x58] sm:$0xff] }
0x1d0d   :  { %7575 = vmatprep.subr.mxu0 %v8502_v15 }
0x1d0f   :  { %7568 = vmatmul.mubr.msk.f32.vlgmr.msra.gmra.mrb[94].mxu0 %vm473_vm2, %v9488_v19 }
0x1d10   :  { %7577 = vmatprep.mubr.msk.f32.mxu0 %vm8501_vm0, %v8502_v15 }
0x1dd2   :  { %v3778_v29 = vpop.f32.mrb[90].mxu0 }
0x1dd3   :  { %v7547_v31 = vpop.f32.mrb[91].mxu0 }
0x1dd4   :  { %v6386_v31 = vld [vmem:[%s9575_s28 + $0x60] sm:$0xff] }
0x1dd5   :  { %v8198_v32 = vpack.c.bf16 %v6387_v38, %v6386_v31  ;;  %v4783_v31 = vld [vmem:[%s9638_s18 + $0x30] sm:$0xff]  ;;  %v4784_v38 = vld [vmem:[%s9638_s18 + $0x38] sm:$0xff] }
0x1dda   :  { %v3852_v33 = vpop.f32.mrb[92].mxu0 }
0x1ddb   :  { %v7558_v0 = vpop.f32.mrb[93].mxu0  ;;  %7571 = vmatpush3.xpose.msk.msra.mxu1 %vm794_vm5, %v3852_v33  ;;  %v6388_v33 = vld [vmem:[%s9575_s28 + $0x70] sm:$0xff] }
0x1ddc   :  { %8173 = vmatprep.subr.bf16.mxu1 %v8500_v14  ;;  %v6389_v0 = vld [vmem:[%s9575_s28 + $0x78] sm:$0xff] }
0x1dde   :  { %7573 = vmatmul.mubr.msk.f32.vlgmr.msra.gmra.mrb[92].mxu1 %vm794_vm5, %v3778_v29  ;;  %v8195_v29 = vpack.c.bf16 %v6385_v30, %v6384_v55 }
0x1ddf   :  { %8175 = vmatpush3.bf16.msra.mxu1 %v8174_v36  ;;  %7588 = vmatprep.mubr.msk.f32.mxu1 %vm8501_vm0, %v8502_v15  ;;  %v8201_v36 = vpack.c.bf16 %v6389_v0, %v6388_v33  ;;  %v4785_v33 = vld [vmem:[%s9638_s18 + $0x40] sm:$0xff]  ;;  %v4786_v0 = vld [vmem:[%s9638_s18 + $0x48] sm:$0xff] }
0x1de0   :  { %8176 = vmatprep.subr.bf16.mxu1 %v8500_v14 }
0x1de2   :  { %v3926_v47 = vpop.f32.mrb[94].mxu0 }
0x1de3   :  { %v7569_v49 = vpop.f32.mrb[95].mxu0  ;;  %7576 = vmatpush3.msk.msra.mxu0 %vm943_vm4, %v3926_v47  ;;  %8178 = vmatpush3.bf16.msra.mxu1 %v8177_v41  ;;  %v4098_v41 = vld [vmem:[%s9575_s28 + $0x8] sm:$0xff] }
0x1de4   :  { %8185 = vmatprep.subr.bf16.mxu1 %v8500_v14  ;;  %8179 = vmatprep.subr.bf16.mxu0 %v8500_v14  ;;  %v8204_v34 = vpack.c.bf16 %v4098_v41, %v4097_v37  ;;  %v4099_v49 = vld [vmem:[%s9575_s28 + $0x10] sm:$0xff]  ;;  %v4788_v37 = vld [vmem:[%s9638_s18 + $0x58] sm:$0xff] }
0x1de6   :  { %7589 = vmatmul.mubr.msk.f32.vlgmr.msra.gmra.mrb[94].mxu1 %vm473_vm2, %v9488_v19 }
0x1de7   :  { %8187 = vmatpush3.bf16.msra.mxu1 %v8186_v50  ;;  %7610 = vmatprep.mubr.msk.f32.mxu1 %vm8501_vm0, %v8502_v15  ;;  %v4100_v50 = vld [vmem:[%s9575_s28 + $0x18] sm:$0xff] }
0x1de8   :  { %8188 = vmatprep.subr.bf16.mxu1 %v8500_v14  ;;  %v8207_v52 = vpack.c.bf16 %v4100_v50, %v4099_v49  ;;  %v4791_v49 = vld [vmem:[%s9638_s18 + $0x70] sm:$0xff]  ;;  %v4792_v50 = vld [vmem:[%s9638_s18 + $0x78] sm:$0xff] }
0x1deb   :  { %8190 = vmatpush3.bf16.msra.mxu1 %v8189_v27  ;;  %v4102_v27 = vld [vmem:[%s9575_s28 + $0x28] sm:$0xff] }
0x1dec   :  { %8191 = vmatprep.subr.bf16.mxu1 %v8500_v14 }
0x1dee   :  { %7611 = vmatmul.mubr.msk.f32.vlgmr.msra.gmra.mrb[96].mxu1 %vm473_vm2, %v9488_v19 }
0x1def   :  { %7639 = vmatprep.mubr.msk.f32.mxu1 %vm8501_vm0, %v8502_v15  ;;  %8193 = vmatpush3.bf16.msra.mxu1 %v8192_v59  ;;  %v6394_v59 = vld [vmem:[%s9657_s11] ss:$0 sm:$0xff] }
0x1df0   :  { %8194 = vmatprep.subr.bf16.mxu1 %v8500_v14 }
0x1df3   :  { %8196 = vmatpush3.bf16.msra.mxu1 %v8195_v29 }
0x1df4   :  { %8197 = vmatprep.subr.bf16.mxu1 %v8500_v14 }
0x1df7   :  { %8199 = vmatpush3.bf16.msra.mxu1 %v8198_v32  ;;  %v8231_v32 = vpack.c.bf16 %v4784_v38, %v4783_v31 }
0x1df8   :  { %8200 = vmatprep.subr.bf16.mxu1 %v8500_v14 }
0x1dfb   :  { %8202 = vmatpush3.bf16.msra.mxu1 %v8201_v36  ;;  %v8234_v36 = vpack.c.bf16 %v4786_v0, %v4785_v33  ;;  %v6429_v33 = vld [vmem:[%s9456_s6 + $0x60] sm:$0xff]  ;;  %v6430_v0 = vld [vmem:[%s9456_s6 + $0x68] sm:$0xff] }
0x1dfc   :  { %8215 = vmatprep.subr.bf16.mxu1 %v8500_v14 }
0x1eb1   :  { %v4002_v53 = vpop.f32.mrb[92].mxu1 }
0x1eb2   :  { %v4006_v57 = vmul.f32 0.125, %v4002_v53  ;;  %v7574_v17 = vpop.f32.mrb[93].mxu1  ;;  %v8210_v53 = vpack.c.bf16 %v4102_v27, %v4101_v26  ;;  %v6395_v26 = vld [vmem:[%s9682_s27] ss:$0 sm:$0xff] }
0x1eb3   :  { %v4104_v17 = vld [vmem:[%s9575_s28 + $0x38] sm:$0xff] }
0x1eb4   :  { %v4007_v58 = vadd.f32 %v4006_v57, %v9542_v54  ;;  %v4103_v57 = vld [vmem:[%s9575_s28 + $0x30] sm:$0xff] }
0x1eb6   :  { %v4009_v61 = vsel %vm4008_vm9, %v4007_v58, -inf }
0x1eb7   :  { %4010 = vmax.xlane.f32.xlu0 %v4009_v61 }
0x1eb9   :  { %v4176_v62 = vpop.f32.mrb[94].mxu1 }
0x1eba   :  { %v7590_v63 = vpop.f32.mrb[95].mxu1 }
0x1ec1   :  { %v4326_v56 = vpop.f32.mrb[96].mxu1 }
0x1ec2   :  { %v7612_v1 = vpop.f32.mrb[97].mxu1 }
0x1f44   :  { %v4011_v28 = vpop.xlane.xlu0 %4010 }
0x1f45   :  { %v4012_v2 = vsub.f32 %v4007_v58, %v4011_v28  ;;  %v8213_v58 = vpack.c.bf16 %v4104_v17, %v4103_v57 }
0x1f47   :  { %v4013_v60 = vmul.f32 1.442695, %v4012_v2 }
0x1f49   :  { %8468 = vpow2.f32 %v4013_v60  ;;  %v6392_v60 = vld [vmem:[%s9614_s4] ss:$0 sm:$0xff] }
0x1f53   :  { %v8469_v48 = vpop.eup %8468 }
0x1f54   :  { %v4015_v3 = vsel %vm4008_vm9, %v8469_v48, 0.0 }
0x1f55   :  { %4016 = vadd.xlane.f32.xlu1 %v4015_v3 }
0x1fe2   :  { %v4017_v51 = vpop.xlane.xlu1 %4016 }
0x1fe3   :  { %8470 = vrcp.f32 %v4017_v51 }
0x1fed   :  { %v8471_v8 = vpop.eup %8470 }
0x1fee   :  { %v4019_v6 = vmul.f32 %v8471_v8, %v8469_v48 }
0x1ff0   :  { %7578 = vmatmul.mubr.msk.f32.vlgmr.msra.gmra.mrb[96].mxu0 %vm4020_vm10, %v4019_v6 }
0x1ff1   :  { %8181 = vmatpush3.bf16.msra.mxu0 %v8180_v22  ;;  %7599 = vmatprep.mubr.msk.f32.mxu0 %vm8501_vm0, %v8502_v15 }
0x1ff2   :  { %8182 = vmatprep.subr.bf16.mxu0 %v8500_v14 }
0x1ff5   :  { %8184 = vmatpush3.bf16.msra.mxu0 %v8183_v35  ;;  %v4690_v35 = vld [vmem:[%s9627_s10 + $0x10] sm:$0xff] }
0x1ff6   :  { %7613 = vmatprep.subr.mxu0 %v8502_v15 }
0x1ff8   :  { %7600 = vmatmul.mubr.msk.f32.vlgmr.msra.gmra.mrb[98].mxu0 %vm473_vm2, %v9488_v19 }
0x1ff9   :  { %7615 = vmatprep.mubr.msk.f32.mxu0 %vm8501_vm0, %v8502_v15 }
0x20c3   :  { %v9560_v40 = vpop.f32.mrb[96].mxu0 }
0x20c4   :  { %v7579_v9 = vpop.f32.mrb[97].mxu0 }
0x20cb   :  { %v4251_v10 = vpop.f32.mrb[98].mxu0 }
0x20cc   :  { %v7601_v11 = vpop.f32.mrb[99].mxu0  ;;  %7614 = vmatpush3.xpose.msk.msra.mxu0 %vm794_vm5, %v4251_v10  ;;  %v4777_v10 = vld [vmem:[%s9638_s18] sm:$0xff] }
0x20cd   :  { %7618 = vmatprep.subr.mxu0 %v8502_v15  ;;  %v4778_v11 = vld [vmem:[%s9638_s18 + $0x8] sm:$0xff] }
0x20cf   :  { %7616 = vmatmul.mubr.msk.f32.vlgmr.msra.gmra.mrb[100].mxu0 %vm794_vm5, %v4176_v62 }
0x20d0   :  { %7619 = vmatpush3.msk.msra.mxu0 %vm943_vm4, %v4326_v56  ;;  %7620 = vmatprep.mubr.msk.f32.mxu0 %vm8501_vm0, %v8502_v15 }
0x20d1   :  { %8203 = vmatprep.subr.bf16.mxu0 %v8500_v14 }
0x21a2   :  { %v4402_v39 = vpop.f32.mrb[100].mxu0 }
0x21a3   :  { %v4406_v12 = vmul.f32 0.125, %v4402_v39  ;;  %v7617_v13 = vpop.f32.mrb[101].mxu0  ;;  %v4779_v39 = vld [vmem:[%s9638_s18 + $0x10] sm:$0xff] }
0x21a4   :  { %v4780_v13 = vld [vmem:[%s9638_s18 + $0x18] sm:$0xff] }
0x21a5   :  { %v4407_v42 = vadd.f32 %v4406_v12, %v9542_v54  ;;  %v8222_v12 = vpack.c.bf16 %v4778_v11, %v4777_v10 }
0x21a7   :  { %v4408_v45 = vsel %vm4008_vm9, %v4407_v42, -inf }
0x21a8   :  { %4409 = vmax.xlane.f32.xlu0 %v4408_v45  ;;  %v4781_v45 = vld [vmem:[%s9638_s18 + $0x20] sm:$0xff] }
0x2235   :  { %v4410_v19 = vpop.xlane.xlu0 %4409 }
0x2236   :  { %v4411_v16 = vsub.f32 %v4407_v42, %v4410_v19  ;;  %v8225_v42 = vpack.c.bf16 %v4780_v13, %v4779_v39  ;;  %v4782_v19 = vld [vmem:[%s9638_s18 + $0x28] sm:$0xff]  ;;  %v6400_v39 = vld [vmem:[%s9467_s12 + $0x1] ss:$0 sm:$0xff] }
0x2237   :  { %v6407_v13 = vld [vmem:[%s9472_s17 + $0x40] sm:$0xff] }
0x2238   :  { %v4412_v18 = vmul.f32 1.442695, %v4411_v16  ;;  %v8228_v16 = vpack.c.bf16 %v4782_v19, %v4781_v45  ;;  %v6401_v45 = vld [vmem:[%s9477_s22 + $0x1] ss:$0 sm:$0xff] }
0x223a   :  { %8472 = vpow2.f32 %v4412_v18 }
0x2244   :  { %v8473_v20 = vpop.eup %8472 }
0x2245   :  { %v4414_v21 = vsel %vm4008_vm9, %v8473_v20, 0.0 }
0x2246   :  { %4415 = vadd.xlane.f32.xlu1 %v4414_v21 }
0x22d3   :  { %v4416_v43 = vpop.xlane.xlu1 %4415 }
0x22d4   :  { %8474 = vrcp.f32 %v4416_v43  ;;  %v4787_v43 = vld [vmem:[%s9638_s18 + $0x50] sm:$0xff] }
0x22d5   :  { %v8237_v41 = vpack.c.bf16 %v4788_v37, %v4787_v43  ;;  %v8264_v37 = vpack.c.bf16 %v6430_v0, %v6429_v33  ;;  %v6454_v0 = vld [vmem:[%s9575_s28 + $0xf0] sm:$0xff] }
0x22de   :  { %v8475_v46 = vpop.eup %8474 }
0x22df   :  { %v4418_v47 = vmul.f32 %v8475_v46, %v8473_v20  ;;  %v4789_v46 = vld [vmem:[%s9638_s18 + $0x60] sm:$0xff] }
0x22e1   :  { %7621 = vmatmul.mubr.msk.f32.vlgmr.msra.gmra.mrb[102].mxu0 %vm4020_vm10, %v4418_v47 }
0x22e2   :  { %8205 = vmatpush3.bf16.msra.mxu0 %v8204_v34  ;;  %7658 = vmatprep.mubr.msk.f32.mxu0 %vm8501_vm0, %v8502_v15  ;;  %v4790_v34 = vld [vmem:[%s9638_s18 + $0x68] sm:$0xff] }
0x22e3   :  { %8206 = vmatprep.subr.bf16.mxu0 %v8500_v14  ;;  %v8240_v47 = vpack.c.bf16 %v4790_v34, %v4789_v46  ;;  %v6432_v46 = vld [vmem:[%s9456_s6 + $0x78] sm:$0xff] }
0x22e6   :  { %8208 = vmatpush3.bf16.msra.mxu0 %v8207_v52  ;;  %v8243_v52 = vpack.c.bf16 %v4792_v50, %v4791_v49  ;;  %v6440_v49 = vld [vmem:[%s9485_s29 + $0x68] sm:$0xff] }
0x22e7   :  { %8209 = vmatprep.subr.bf16.mxu0 %v8500_v14 }
0x22ea   :  { %8211 = vmatpush3.bf16.msra.mxu0 %v8210_v53 }
0x22eb   :  { %8212 = vmatprep.subr.bf16.mxu0 %v8500_v14 }
0x22ee   :  { %8214 = vmatpush3.bf16.msra.mxu0 %v8213_v58 }
0x22ef   :  { %8221 = vmatprep.subr.bf16.mxu0 %v8500_v14 }
0x22f1   :  { %7659 = vmatmul.mubr.msk.f32.vlgmr.msra.gmra.mrb[104].mxu0 %vm794_vm5, %v9560_v40  ;;  %v4691_v40 = vld [vmem:[%s9627_s10 + $0x18] sm:$0xff] }
0x22f2   :  { %7704 = vmatprep.mubr.msk.f32.mxu0 %vm8501_vm0, %v8502_v15  ;;  %v8219_v9 = vpack.c.bf16 %v4691_v40, %v4690_v35  ;;  %8223 = vmatpush3.bf16.msra.mxu0 %v8222_v12 }
0x22f3   :  { %8224 = vmatprep.subr.bf16.mxu0 %v8500_v14 }
0x22f6   :  { %8226 = vmatpush3.bf16.msra.mxu0 %v8225_v42  ;;  %v6408_v42 = vld [vmem:[%s9472_s17 + $0x48] sm:$0xff] }
0x22f7   :  { %8227 = vmatprep.subr.bf16.mxu0 %v8500_v14 }
0x22fa   :  { %8229 = vmatpush3.bf16.msra.mxu0 %v8228_v16  ;;  %v8252_v16 = vpack.c.bf16 %v6408_v42, %v6407_v13 }
0x22fb   :  { %8230 = vmatprep.subr.bf16.mxu0 %v8500_v14 }
0x22fe   :  { %8232 = vmatpush3.bf16.msra.mxu0 %v8231_v32 }
0x22ff   :  { %8233 = vmatprep.subr.bf16.mxu0 %v8500_v14 }
0x2302   :  { %8235 = vmatpush3.bf16.msra.mxu0 %v8234_v36 }
0x2303   :  { %8236 = vmatprep.subr.bf16.mxu0 %v8500_v14 }
0x2306   :  { %8238 = vmatpush3.bf16.msra.mxu0 %v8237_v41  ;;  %v6431_v41 = vld [vmem:[%s9456_s6 + $0x70] sm:$0xff] }
0x2307   :  { %8239 = vmatprep.subr.bf16.mxu0 %v8500_v14  ;;  %v8267_v34 = vpack.c.bf16 %v6432_v46, %v6431_v41  ;;  %v6421_v41 = vld [vmem:[%s9575_s28 + $0x80] sm:$0xff]  ;;  %v6422_v46 = vld [vmem:[%s9575_s28 + $0x88] sm:$0xff] }
0x230a   :  { %8241 = vmatpush3.bf16.msra.mxu0 %v8240_v47  ;;  %v6439_v47 = vld [vmem:[%s9485_s29 + $0x60] sm:$0xff] }
0x230b   :  { %8242 = vmatprep.subr.bf16.mxu0 %v8500_v14 }
0x230e   :  { %8244 = vmatpush3.bf16.msra.mxu0 %v8243_v52 }
0x230f   :  { %7745 = vmatprep.subr.mxu0 %v8502_v15 }
0x23b4   :  { %v4491_v61 = vpop.f32.mrb[102].mxu0 }
0x23b5   :  { %v7622_v62 = vpop.f32.mrb[103].mxu0  ;;  %7640 = vmatmul.mubr.msk.f32.vlgmr.msra.gmra.mrb[98].mxu1 %vm794_vm5, %v4491_v61 }
0x23b6   :  { %7669 = vmatprep.mubr.msk.f32.mxu1 %vm8501_vm0, %v8502_v15 }
0x23c4   :  { %v4646_v63 = vpop.f32.mrb[104].mxu0 }
0x23c5   :  { %v7660_v56 = vpop.f32.mrb[105].mxu0 }
0x2488   :  { %v4573_v1 = vpop.f32.mrb[98].mxu1 }
0x2489   :  { %v4647_v28 = vadd.f32 %v4646_v63, %v4573_v1  ;;  %v7641_v2 = vpop.f32.mrb[99].mxu1  ;;  %v6397_v1 = vld [vmem:[%s9690_s5] ss:$0 sm:$0xff] }
0x248b   :  { %v4650_v48 = vadd.f32 %v4647_v28, %v9447_v4  ;;  %v4688_v4 = vld [vmem:[%s9627_s10] sm:$0xff] }
0x248c   :  { %v8216_v44 = vpack.c.bf16 %v4689_v7, %v4688_v4  ;;  %v6404_v7 = vld [vmem:[%s9456_s6 + $0x50] sm:$0xff] }
0x248d   :  { %v9618_v3 = vadd.f32 %v6392_v60, %v4650_v48 }
0x248e   :  { %8217 = vmatpush3.bf16.msra.mxu1 %v8216_v44  ;;  %v6405_v44 = vld [vmem:[%s9456_s6 + $0x58] sm:$0xff] }
0x248f   :  { %v4661_v51 = vsel %vm480_vm3, %v9618_v3, 0.0  ;;  %8218 = vmatprep.subr.bf16.mxu1 %v8500_v14  ;;  %v8249_v35 = vpack.c.bf16 %v6405_v44, %v6404_v7 }
0x2490   :  { %4662 = vadd.xlane.f32.xlu0 %v4661_v51 }
0x2492   :  { %8220 = vmatpush3.bf16.msra.mxu1 %v8219_v9 }
0x2493   :  { %8245 = vmatprep.subr.bf16.mxu1 %v8500_v14 }
0x251d   :  { %v4663_v24 = vpop.xlane.xlu0 %4662 }
0x251e   :  { %v4664_v5 = vmul.f32 0.03125, %v4663_v24 }
0x2520   :  { %v4665_v8 = vsub.f32 %v9618_v3, %v4664_v5 }
0x2522   :  { %v4666_v22 = vmul.f32 %v4665_v8, %v4665_v8 }
0x2524   :  { %v4667_v6 = vsel %vm480_vm3, %v4666_v22, 0.0 }
0x2525   :  { %4668 = vadd.xlane.f32.xlu1 %v4667_v6  ;;  %v6402_v6 = vld [vmem:[%s9456_s6 + $0x40] sm:$0xff] }
0x25b2   :  { %v4669_v18 = vpop.xlane.xlu1 %4668 }
0x25b3   :  { %v4670_v20 = vmul.f32 0.03125, %v4669_v18 }
0x25b5   :  { %v4671_v21 = vadd.f32 1e-05, %v4670_v20  ;;  %v6409_v20 = vld [vmem:[%s9472_s17 + $0x50] sm:$0xff] }
0x25b7   :  { %8476 = vrsqrt.f32 %v4671_v21  ;;  %v6410_v21 = vld [vmem:[%s9472_s17 + $0x58] sm:$0xff] }
0x25c1   :  { %v8477_v23 = vpop.eup %8476 }
0x25c2   :  { %v4673_v55 = vmul.f32 %v8477_v23, %v4665_v8  ;;  %v8255_v23 = vpack.c.bf16 %v6410_v21, %v6409_v20 }
0x25c4   :  { %v4680_v30 = vmul.f32 %v6393_v25, %v4673_v55  ;;  %v6412_v25 = vld [vmem:[%s9485_s29 + $0x40] sm:$0xff]  ;;  %v6413_v55 = vld [vmem:[%s9485_s29 + $0x48] sm:$0xff] }
0x25c6   :  { %v4687_v29 = vadd.f32 %v6394_v59, %v4680_v30  ;;  %v8258_v59 = vpack.c.bf16 %v6413_v55, %v6412_v25  ;;  %v6414_v30 = vld [vmem:[%s9485_s29 + $0x50] sm:$0xff]  ;;  %v6448_v55 = vld [vmem:[%s9575_s28 + $0xc0] sm:$0xff] }
0x25c8   :  { %7670 = vmatmul.mubr.msk.f32.vlgmr.msra.gmra.mrb[100].mxu1 %vm473_vm2, %v4687_v29  ;;  %v6415_v29 = vld [vmem:[%s9485_s29 + $0x58] sm:$0xff] }
0x25c9   :  { %7715 = vmatprep.mubr.msk.f32.mxu1 %vm8501_vm0, %v8502_v15  ;;  %v8261_v31 = vpack.c.bf16 %v6415_v29, %v6414_v30  ;;  %v6450_v30 = vld [vmem:[%s9575_s28 + $0xd0] sm:$0xff] }
0x269b   :  { %v4768_v27 = vpop.f32.mrb[100].mxu1 }
0x269c   :  { %v4769_v53 = vadd.f32 %v6395_v26, %v4768_v27  ;;  %v7671_v57 = vpop.f32.mrb[101].mxu1  ;;  %v8276_v26 = vpack.c.bf16 %v6440_v49, %v6439_v47  ;;  %v6441_v27 = vld [vmem:[%s9485_s29 + $0x70] sm:$0xff]  ;;  %v8294_v47 = vpack.c.bf16 %v6422_v46, %v6421_v41  ;;  %v6483_v41 = vld [vmem:[%s9638_s18 + $0xe0] sm:$0xff]  ;;  %v6484_v46 = vld [vmem:[%s9638_s18 + $0xe8] sm:$0xff] }
0x269e   :  { %v4773_v17 = vmul.f32 0.70710677, %v4769_v53  ;;  %v4772_v61 = vmul.f32 0.5, %v4769_v53  ;;  %v6442_v53 = vld [vmem:[%s9485_s29 + $0x78] sm:$0xff]  ;;  %s8538_s29 = smov 37  }
0x269f   :  { %v8279_v57 = vpack.c.bf16 %v6442_v53, %v6441_v27  ;;  %v6425_v27 = vld [vmem:[%s9575_s28 + $0xa0] sm:$0xff]  ;;  %v6426_v53 = vld [vmem:[%s9575_s28 + $0xa8] sm:$0xff]  ;;  %s6149_s8 = sld [smem:[%s9877_s0 + %s8538_s29]]  }
0x26a0   :  { %8478 = verf.f32 %v4773_v17 }
0x26aa   :  { %v8479_v58 = vpop.eup %8478 }
0x26ab   :  { %v4775_v62 = vadd.f32 1.0, %v8479_v58 }
0x26ad   :  { %v4776_v63 = vmul.f32 %v4775_v62, %v4772_v61 }
0x26af   :  { %7705 = vmatmul.mubr.f32.vlgmr.msra.gmra.mrb[106].mxu0 %v4776_v63 }
0x26b0   :  { %7747 = vmatprep.mubr.msk.f32.mxu0 %vm8501_vm0, %v8502_v15 }
0x2782   :  { %v4859_v56 = vpop.f32.mrb[106].mxu0 }
0x2783   :  { %v4863_v28 = vadd.f32 %v4859_v56, %v9618_v3  ;;  %v7706_v2 = vpop.f32.mrb[107].mxu0  ;;  %v6403_v3 = vld [vmem:[%s9456_s6 + $0x48] sm:$0xff]  ;;  %s8537_s6 = smov 36  }
0x2784   :  { %v8246_v4 = vpack.c.bf16 %v6403_v3, %v6402_v6  ;;  %v6434_v6 = vld [vmem:[%s9472_s17 + $0x60] sm:$0xff]  ;;  %v6435_v3 = vld [vmem:[%s9472_s17 + $0x68] sm:$0xff]  ;;  %s6148_s22 = sld [smem:[%s9877_s0 + %s8537_s6]]  }
0x2785   :  { %v9694_v60 = vadd.f32 %v6397_v1, %v4863_v28  ;;  %v8270_v7 = vpack.c.bf16 %v6435_v3, %v6434_v6 }
0x2786   :  { %8247 = vmatpush3.bf16.msra.mxu1 %v8246_v4 }
0x2787   :  { %v4876_v48 = vsel %vm480_vm3, %v9694_v60, 0.0  ;;  %8248 = vmatprep.subr.bf16.mxu1 %v8500_v14 }
0x2788   :  { %4877 = vadd.xlane.f32.xlu0 %v4876_v48 }
0x278a   :  { %8250 = vmatpush3.bf16.msra.mxu1 %v8249_v35  ;;  %v6436_v35 = vld [vmem:[%s9472_s17 + $0x70] sm:$0xff] }
0x278b   :  { %8251 = vmatprep.subr.bf16.mxu1 %v8500_v14 }
0x2815   :  { %v4878_v51 = vpop.xlane.xlu0 %4877 }
0x2816   :  { %v4879_v24 = vmul.f32 0.03125, %v4878_v51 }
0x2818   :  { %v4880_v5 = vsub.f32 %v9694_v60, %v4879_v24 }
0x281a   :  { %v4881_v8 = vmul.f32 %v4880_v5, %v4880_v5 }
0x281c   :  { %v4882_v22 = vsel %vm480_vm3, %v4881_v8, 0.0 }
0x281d   :  { %4883 = vadd.xlane.f32.xlu1 %v4882_v22 }
0x28aa   :  { %v4884_v40 = vpop.xlane.xlu1 %4883 }
0x28ab   :  { %v4885_v9 = vmul.f32 0.03125, %v4884_v40  ;;  %v6437_v40 = vld [vmem:[%s9472_s17 + $0x78] sm:$0xff] }
0x28ad   :  { %v4886_v10 = vadd.f32 1e-05, %v4885_v9  ;;  %v8273_v9 = vpack.c.bf16 %v6437_v40, %v6436_v35  ;;  %v6466_v35 = vld [vmem:[%s9627_s10 + $0x30] sm:$0xff]  ;;  %v6467_v40 = vld [vmem:[%s9627_s10 + $0x38] sm:$0xff] }
0x28af   :  { %8480 = vrsqrt.f32 %v4886_v10 }
0x28b9   :  { %v8481_v11 = vpop.eup %8480 }
0x28ba   :  { %v4888_v12 = vmul.f32 %v8481_v11, %v4880_v5 }
0x28bc   :  { %v4895_v19 = vmul.f32 %v6400_v39, %v4888_v12 }
0x28be   :  { %v9710_v18 = vadd.f32 %v6401_v45, %v4895_v19 }
0x28c0   :  { %7716 = vmatmul.mubr.msk.f32.vlgmr.msra.gmra.mrb[102].mxu1 %vm473_vm2, %v9710_v18 }
0x28c1   :  { %8253 = vmatpush3.bf16.msra.mxu1 %v8252_v16  ;;  %7726 = vmatprep.mubr.msk.f32.mxu1 %vm8501_vm0, %v8502_v15 }
0x28c2   :  { %8254 = vmatprep.subr.bf16.mxu1 %v8500_v14 }
0x28c5   :  { %8256 = vmatpush3.bf16.msra.mxu1 %v8255_v23 }
0x28c6   :  { %8257 = vmatprep.subr.bf16.mxu1 %v8500_v14 }
0x28c8   :  { %7727 = vmatmul.mubr.msk.f32.vlgmr.msra.gmra.mrb[104].mxu1 %vm473_vm2, %v9710_v18 }
0x28c9   :  { %8259 = vmatpush3.bf16.msra.mxu1 %v8258_v59  ;;  %7737 = vmatprep.mubr.msk.f32.mxu1 %vm8501_vm0, %v8502_v15  ;;  %v6449_v59 = vld [vmem:[%s9575_s28 + $0xc8] sm:$0xff] }
0x28ca   :  { %8260 = vmatprep.subr.bf16.mxu1 %v8500_v14  ;;  %v8282_v29 = vpack.c.bf16 %v6449_v59, %v6448_v55  ;;  %v6463_v59 = vld [vmem:[%s9657_s11 + $0x1] ss:$0 sm:$0xff] }
0x28cd   :  { %8262 = vmatpush3.bf16.msra.mxu1 %v8261_v31 }
0x28ce   :  { %7740 = vmatprep.subr.mxu1 %v8502_v15 }
0x28d0   :  { %7738 = vmatmul.mubr.msk.f32.vlgmr.msra.gmra.mrb[106].mxu1 %vm473_vm2, %v9710_v18 }
0x28d1   :  { %7742 = vmatprep.mubr.msk.f32.mxu1 %vm8501_vm0, %v8502_v15 }
0x2993   :  { %v4977_v38 = vpop.f32.mrb[102].mxu1 }
0x2994   :  { %v7717_v32 = vpop.f32.mrb[103].mxu1 }
0x2995   :  { %v6453_v32 = vld [vmem:[%s9575_s28 + $0xe8] sm:$0xff] }
0x299b   :  { %v5052_v36 = vpop.f32.mrb[104].mxu1 }
0x299c   :  { %v7728_v43 = vpop.f32.mrb[105].mxu1  ;;  %7741 = vmatpush3.xpose.msk.msra.mxu1 %vm794_vm5, %v5052_v36  ;;  %v6455_v36 = vld [vmem:[%s9575_s28 + $0xf8] sm:$0xff] }
0x299d   :  { %8263 = vmatprep.subr.bf16.mxu1 %v8500_v14  ;;  %v8291_v43 = vpack.c.bf16 %v6455_v36, %v6454_v0  ;;  %v6481_v36 = vld [vmem:[%s9638_s18 + $0xd0] sm:$0xff] }
0x299f   :  { %7743 = vmatmul.mubr.msk.f32.vlgmr.msra.gmra.mrb[108].mxu1 %vm794_vm5, %v4977_v38  ;;  %v6452_v38 = vld [vmem:[%s9575_s28 + $0xe0] sm:$0xff] }
0x29a0   :  { %8265 = vmatpush3.bf16.msra.mxu1 %v8264_v37  ;;  %7758 = vmatprep.mubr.msk.f32.mxu1 %vm8501_vm0, %v8502_v15  ;;  %v8288_v33 = vpack.c.bf16 %v6453_v32, %v6452_v38  ;;  %v6479_v32 = vld [vmem:[%s9638_s18 + $0xc0] sm:$0xff] }
0x29a1   :  { %8266 = vmatprep.subr.bf16.mxu1 %v8500_v14 }
0x29a3   :  { %v5127_v50 = vpop.f32.mrb[106].mxu1 }
0x29a4   :  { %v7739_v52 = vpop.f32.mrb[107].mxu1  ;;  %7746 = vmatpush3.msk.msra.mxu0 %vm943_vm4, %v5127_v50  ;;  %8268 = vmatpush3.bf16.msra.mxu1 %v8267_v34  ;;  %v6423_v50 = vld [vmem:[%s9575_s28 + $0x90] sm:$0xff] }
0x29a5   :  { %8275 = vmatprep.subr.bf16.mxu1 %v8500_v14  ;;  %8269 = vmatprep.subr.bf16.mxu0 %v8500_v14  ;;  %v6424_v52 = vld [vmem:[%s9575_s28 + $0x98] sm:$0xff] }
0x29a7   :  { %7759 = vmatmul.mubr.msk.f32.vlgmr.msra.gmra.mrb[110].mxu1 %vm473_vm2, %v9710_v18 }
0x29a8   :  { %8277 = vmatpush3.bf16.msra.mxu1 %v8276_v26  ;;  %7780 = vmatprep.mubr.msk.f32.mxu1 %vm8501_vm0, %v8502_v15  ;;  %v8297_v26 = vpack.c.bf16 %v6424_v52, %v6423_v50  ;;  %v6469_v52 = vld [vmem:[%s9682_s27 + $0x1] ss:$0 sm:$0xff] }
0x29a9   :  { %8278 = vmatprep.subr.bf16.mxu1 %v8500_v14 }
0x29ac   :  { %8280 = vmatpush3.bf16.msra.mxu1 %v8279_v57  ;;  %v8300_v57 = vpack.c.bf16 %v6426_v53, %v6425_v27 }
0x29ad   :  { %8281 = vmatprep.subr.bf16.mxu1 %v8500_v14 }
0x29af   :  { %7781 = vmatmul.mubr.msk.f32.vlgmr.msra.gmra.mrb[112].mxu1 %vm473_vm2, %v9710_v18 }
0x29b0   :  { %7809 = vmatprep.mubr.msk.f32.mxu1 %vm8501_vm0, %v8502_v15  ;;  %8283 = vmatpush3.bf16.msra.mxu1 %v8282_v29 }
0x29b1   :  { %8284 = vmatprep.subr.bf16.mxu1 %v8500_v14 }
0x2a72   :  { %v5203_v17 = vpop.f32.mrb[108].mxu1 }
0x2a73   :  { %v5207_v58 = vmul.f32 0.125, %v5203_v17  ;;  %v7744_v61 = vpop.f32.mrb[109].mxu1  ;;  %v6427_v17 = vld [vmem:[%s9575_s28 + $0xb0] sm:$0xff] }
0x2a75   :  { %v5208_v62 = vadd.f32 %v5207_v58, %v9542_v54  ;;  %v6428_v58 = vld [vmem:[%s9575_s28 + $0xb8] sm:$0xff] }
0x2a76   :  { %v8303_v61 = vpack.c.bf16 %v6428_v58, %v6427_v17 }
0x2a77   :  { %v5209_v63 = vsel %vm4008_vm9, %v5208_v62, -inf }
0x2a78   :  { %5210 = vmax.xlane.f32.xlu0 %v5209_v63 }
0x2a7a   :  { %v5376_v56 = vpop.f32.mrb[110].mxu1 }
0x2a7b   :  { %v7760_v1 = vpop.f32.mrb[111].mxu1 }
0x2a82   :  { %v5526_v28 = vpop.f32.mrb[112].mxu1 }
0x2a83   :  { %v7782_v2 = vpop.f32.mrb[113].mxu1 }
0x2b05   :  { %v5211_v48 = vpop.xlane.xlu0 %5210 }
0x2b06   :  { %v5212_v51 = vsub.f32 %v5208_v62, %v5211_v48 }
0x2b08   :  { %v5213_v24 = vmul.f32 1.442695, %v5212_v51  ;;  %v6459_v51 = vld [vmem:[%s9614_s4 + $0x1] ss:$0 sm:$0xff] }
0x2b0a   :  { %8482 = vpow2.f32 %v5213_v24 }
0x2b14   :  { %v8483_v5 = vpop.eup %8482 }
0x2b15   :  { %v5215_v8 = vsel %vm4008_vm9, %v8483_v5, 0.0 }
0x2b16   :  { %5216 = vadd.xlane.f32.xlu1 %v5215_v8 }
0x2ba3   :  { %v5217_v22 = vpop.xlane.xlu1 %5216 }
0x2ba4   :  { %8484 = vrcp.f32 %v5217_v22 }
0x2bae   :  { %v8485_v4 = vpop.eup %8484 }
0x2baf   :  { %v5219_v44 = vmul.f32 %v8485_v4, %v8483_v5 }
0x2bb1   :  { %7748 = vmatmul.mubr.msk.f32.vlgmr.msra.gmra.mrb[108].mxu0 %vm4020_vm10, %v5219_v44 }
0x2bb2   :  { %8271 = vmatpush3.bf16.msra.mxu0 %v8270_v7  ;;  %7769 = vmatprep.mubr.msk.f32.mxu0 %vm8501_vm0, %v8502_v15  ;;  %v6464_v7 = vld [vmem:[%s9627_s10 + $0x20] sm:$0xff] }
0x2bb3   :  { %8272 = vmatprep.subr.bf16.mxu0 %v8500_v14 }
0x2bb6   :  { %8274 = vmatpush3.bf16.msra.mxu0 %v8273_v9  ;;  %v8309_v9 = vpack.c.bf16 %v6467_v40, %v6466_v35 }
0x2bb7   :  { %7783 = vmatprep.subr.mxu0 %v8502_v15 }
0x2bb9   :  { %7770 = vmatmul.mubr.msk.f32.vlgmr.msra.gmra.mrb[110].mxu0 %vm473_vm2, %v9710_v18 }
0x2bba   :  { %7785 = vmatprep.mubr.msk.f32.mxu0 %vm8501_vm0, %v8502_v15 }
0x2c84   :  { %v9777_v10 = vpop.f32.mrb[108].mxu0 }
0x2c85   :  { %v7749_v11 = vpop.f32.mrb[109].mxu0 }
0x2c86   :  { %v6472_v11 = vld [vmem:[%s9638_s18 + $0x88] sm:$0xff] }
0x2c8c   :  { %v5451_v39 = vpop.f32.mrb[110].mxu0 }
0x2c8d   :  { %v7771_v12 = vpop.f32.mrb[111].mxu0  ;;  %7784 = vmatpush3.xpose.msk.msra.mxu0 %vm794_vm5, %v5451_v39  ;;  %v6473_v39 = vld [vmem:[%s9638_s18 + $0x90] sm:$0xff] }
0x2c8e   :  { %7788 = vmatprep.subr.mxu0 %v8502_v15 }
0x2c90   :  { %7786 = vmatmul.mubr.msk.f32.vlgmr.msra.gmra.mrb[112].mxu0 %vm794_vm5, %v5376_v56 }
0x2c91   :  { %7789 = vmatpush3.msk.msra.mxu0 %vm943_vm4, %v5526_v28  ;;  %7790 = vmatprep.mubr.msk.f32.mxu0 %vm8501_vm0, %v8502_v15 }
0x2c92   :  { %8293 = vmatprep.subr.bf16.mxu0 %v8500_v14 }
0x2d63   :  { %v5602_v13 = vpop.f32.mrb[112].mxu0 }
0x2d64   :  { %v5606_v42 = vmul.f32 0.125, %v5602_v13  ;;  %v7787_v45 = vpop.f32.mrb[113].mxu0  ;;  %v6474_v13 = vld [vmem:[%s9638_s18 + $0x98] sm:$0xff] }
0x2d65   :  { %v6475_v45 = vld [vmem:[%s9638_s18 + $0xa0] sm:$0xff] }
0x2d66   :  { %v5607_v19 = vadd.f32 %v5606_v42, %v9542_v54  ;;  %v6451_v54 = vld [vmem:[%s9575_s28 + $0xd8] sm:$0xff]  ;;  %v8315_v42 = vpack.c.bf16 %v6474_v13, %v6473_v39 }
0x2d67   :  { %v8285_v31 = vpack.c.bf16 %v6451_v54, %v6450_v30  ;;  %v6477_v54 = vld [vmem:[%s9638_s18 + $0xb0] sm:$0xff] }
0x2d68   :  { %v5608_v16 = vsel %vm4008_vm9, %v5607_v19, -inf }
0x2d69   :  { %5609 = vmax.xlane.f32.xlu0 %v5608_v16  ;;  %8286 = vmatpush3.bf16.msra.mxu1 %v8285_v31  ;;  %v6478_v31 = vld [vmem:[%s9638_s18 + $0xb8] sm:$0xff] }
0x2d6a   :  { %8287 = vmatprep.subr.bf16.mxu1 %v8500_v14  ;;  %v8321_v38 = vpack.c.bf16 %v6478_v31, %v6477_v54 }
0x2d6d   :  { %8289 = vmatpush3.bf16.msra.mxu1 %v8288_v33  ;;  %v6480_v33 = vld [vmem:[%s9638_s18 + $0xc8] sm:$0xff] }
0x2d6e   :  { %8290 = vmatprep.subr.bf16.mxu1 %v8500_v14  ;;  %v8324_v0 = vpack.c.bf16 %v6480_v33, %v6479_v32 }
0x2d71   :  { %8292 = vmatpush3.bf16.msra.mxu1 %v8291_v43  ;;  %v6482_v43 = vld [vmem:[%s9638_s18 + $0xd8] sm:$0xff] }
0x2d72   :  { %8305 = vmatprep.subr.bf16.mxu1 %v8500_v14 }
0x2df6   :  { %v5610_v18 = vpop.xlane.xlu0 %5609 }
0x2df7   :  { %v5611_v20 = vsub.f32 %v5607_v19, %v5610_v18  ;;  %v6476_v19 = vld [vmem:[%s9638_s18 + $0xa8] sm:$0xff] }
0x2df8   :  { %v8318_v16 = vpack.c.bf16 %v6476_v19, %v6475_v45 }
0x2df9   :  { %v5612_v21 = vmul.f32 1.442695, %v5611_v20 }
0x2dfb   :  { %8486 = vpow2.f32 %v5612_v21 }
0x2e05   :  { %v8487_v23 = vpop.eup %8486 }
0x2e06   :  { %v5614_v25 = vsel %vm4008_vm9, %v8487_v23, 0.0 }
0x2e07   :  { %5615 = vadd.xlane.f32.xlu1 %v5614_v25  ;;  %v6462_v25 = vld [vmem:[%s9652_s26 + $0x1] ss:$0 sm:$0xff] }
0x2e94   :  { %v5616_v37 = vpop.xlane.xlu1 %5615 }
0x2e95   :  { %8488 = vrcp.f32 %v5616_v37  ;;  %v8327_v37 = vpack.c.bf16 %v6482_v43, %v6481_v36 }
0x2e9f   :  { %v8489_v34 = vpop.eup %8488 }
0x2ea0   :  { %v5618_v49 = vmul.f32 %v8489_v34, %v8487_v23  ;;  %v8330_v34 = vpack.c.bf16 %v6484_v46, %v6483_v41 }
0x2ea2   :  { %7791 = vmatmul.mubr.msk.f32.vlgmr.msra.gmra.mrb[114].mxu0 %vm4020_vm10, %v5618_v49  ;;  %v6486_v49 = vld [vmem:[%s9638_s18 + $0xf8] sm:$0xff] }
0x2ea3   :  { %8295 = vmatpush3.bf16.msra.mxu0 %v8294_v47  ;;  %7828 = vmatprep.mubr.msk.f32.mxu0 %vm8501_vm0, %v8502_v15  ;;  %v6485_v47 = vld [vmem:[%s9638_s18 + $0xf0] sm:$0xff] }
0x2ea4   :  { %8296 = vmatprep.subr.bf16.mxu0 %v8500_v14  ;;  %v8333_v50 = vpack.c.bf16 %v6486_v49, %v6485_v47 }
0x2ea7   :  { %8298 = vmatpush3.bf16.msra.mxu0 %v8297_v26 }
0x2ea8   :  { %8299 = vmatprep.subr.bf16.mxu0 %v8500_v14 }
0x2eab   :  { %8301 = vmatpush3.bf16.msra.mxu0 %v8300_v57 }
0x2eac   :  { %8302 = vmatprep.subr.bf16.mxu0 %v8500_v14 }
0x2eaf   :  { %8304 = vmatpush3.bf16.msra.mxu0 %v8303_v61 }
0x2eb0   :  { %8311 = vmatprep.subr.bf16.mxu0 %v8500_v14 }
0x2eb2   :  { %7829 = vmatmul.mubr.msk.f32.vlgmr.msra.gmra.mrb[116].mxu0 %vm794_vm5, %v9777_v10  ;;  %v6471_v10 = vld [vmem:[%s9638_s18 + $0x80] sm:$0xff] }
0x2eb3   :  { %7874 = vmatprep.mubr.msk.f32.mxu0 %vm8501_vm0, %v8502_v15  ;;  %v8312_v12 = vpack.c.bf16 %v6472_v11, %v6471_v10 }
0x2eb5   :  { %8313 = vmatpush3.bf16.msra.mxu0 %v8312_v12 }
0x2eb6   :  { %8314 = vmatprep.subr.bf16.mxu0 %v8500_v14 }
0x2eb9   :  { %8316 = vmatpush3.bf16.msra.mxu0 %v8315_v42 }
0x2eba   :  { %8317 = vmatprep.subr.bf16.mxu0 %v8500_v14 }
0x2ebd   :  { %8319 = vmatpush3.bf16.msra.mxu0 %v8318_v16 }
0x2ebe   :  { %8320 = vmatprep.subr.bf16.mxu0 %v8500_v14 }
0x2ec1   :  { %8322 = vmatpush3.bf16.msra.mxu0 %v8321_v38 }
0x2ec2   :  { %8323 = vmatprep.subr.bf16.mxu0 %v8500_v14 }
0x2ec5   :  { %8325 = vmatpush3.bf16.msra.mxu0 %v8324_v0 }
0x2ec6   :  { %8326 = vmatprep.subr.bf16.mxu0 %v8500_v14 }
0x2ec9   :  { %8328 = vmatpush3.bf16.msra.mxu0 %v8327_v37 }
0x2eca   :  { %8329 = vmatprep.subr.bf16.mxu0 %v8500_v14 }
0x2ecd   :  { %8331 = vmatpush3.bf16.msra.mxu0 %v8330_v34 }
0x2ece   :  { %8332 = vmatprep.subr.bf16.mxu0 %v8500_v14 }
0x2ed1   :  { %8334 = vmatpush3.bf16.msra.mxu0 %v8333_v50 }
0x2f75   :  { %v5691_v62 = vpop.f32.mrb[114].mxu0 }
0x2f76   :  { %v7792_v63 = vpop.f32.mrb[115].mxu0  ;;  %7810 = vmatmul.mubr.msk.f32.vlgmr.msra.gmra.mrb[114].mxu1 %vm794_vm5, %v5691_v62 }
0x2f77   :  { %7839 = vmatprep.mubr.msk.f32.mxu1 %vm8501_vm0, %v8502_v15 }
0x2f85   :  { %v5846_v56 = vpop.f32.mrb[116].mxu0 }
0x2f86   :  { %v7830_v1 = vpop.f32.mrb[117].mxu0 }
0x3049   :  { %v5773_v28 = vpop.f32.mrb[114].mxu1 }
0x304a   :  { %v5847_v2 = vadd.f32 %v5846_v56, %v5773_v28  ;;  %v7811_v48 = vpop.f32.mrb[115].mxu1  ;;  %v6488_v56 = vld [vmem:[%s9690_s5 + $0x1] ss:$0 sm:$0xff] }
0x304c   :  { %v5850_v24 = vadd.f32 %v5847_v2, %v9694_v60  ;;  %v6465_v60 = vld [vmem:[%s9627_s10 + $0x28] sm:$0xff] }
0x304d   :  { %v8306_v44 = vpack.c.bf16 %v6465_v60, %v6464_v7  ;;  %v6490_v60 = vld [vmem:[%s6149_s8] ss:$0 sm:$0xff] }
0x304e   :  { %v9825_v5 = vadd.f32 %v6459_v51, %v5850_v24 }
0x304f   :  { %8307 = vmatpush3.bf16.msra.mxu1 %v8306_v44 }
0x3050   :  { %v5864_v8 = vsel %vm480_vm3, %v9825_v5, 0.0  ;;  %8308 = vmatprep.subr.bf16.mxu1 %v8500_v14 }
0x3051   :  { %5865 = vadd.xlane.f32.xlu0 %v5864_v8 }
0x3053   :  { %8310 = vmatpush3.bf16.msra.mxu1 %v8309_v9 }
0x30de   :  { %v5866_v15 = vpop.xlane.xlu0 %5865 }
0x30df   :  { %v5867_v22 = vmul.f32 0.03125, %v5866_v15 }
0x30e1   :  { %v5868_v6 = vsub.f32 %v9825_v5, %v5867_v22 }
0x30e3   :  { %v5869_v3 = vmul.f32 %v5868_v6, %v5868_v6 }
0x30e5   :  { %v5870_v4 = vsel %vm480_vm3, %v5869_v3, 0.0 }
0x30e6   :  { %5871 = vadd.xlane.f32.xlu1 %v5870_v4  ;;  %v6489_v4 = vld [vmem:[%s6148_s22] ss:$0 sm:$0xff] }
0x3173   :  { %v5872_v18 = vpop.xlane.xlu1 %5871 }
0x3174   :  { %v5873_v20 = vmul.f32 0.03125, %v5872_v18 }
0x3176   :  { %v5874_v21 = vadd.f32 1e-05, %v5873_v20 }
0x3178   :  { %8490 = vrsqrt.f32 %v5874_v21 }
0x3182   :  { %v8491_v23 = vpop.eup %8490 }
0x3183   :  { %v5876_v55 = vmul.f32 %v8491_v23, %v5868_v6 }
0x3185   :  { %v5883_v30 = vmul.f32 %v6462_v25, %v5876_v55 }
0x3187   :  { %v5890_v29 = vadd.f32 %v6463_v59, %v5883_v30 }
0x3189   :  { %7840 = vmatmul.mubr.msk.f32.vlgmr.msra.gmra.mrb[116].mxu1 %vm473_vm2, %v5890_v29 }
0x325c   :  { %v5973_v26 = vpop.f32.mrb[116].mxu1 }
0x325d   :  { %v5974_v27 = vadd.f32 %v6469_v52, %v5973_v26  ;;  %v7841_v53 = vpop.f32.mrb[117].mxu1 }
0x325f   :  { %v5978_v57 = vmul.f32 0.70710677, %v5974_v27  ;;  %v5977_v58 = vmul.f32 0.5, %v5974_v27 }
0x3261   :  { %8492 = verf.f32 %v5978_v57 }
0x326b   :  { %v8493_v17 = vpop.eup %8492 }
0x326c   :  { %v5980_v61 = vadd.f32 1.0, %v8493_v17 }
0x326e   :  { %v5981_v62 = vmul.f32 %v5980_v61, %v5977_v58 }
0x3270   :  { %7875 = vmatmul.mubr.f32.vlgmr.msra.gmra.mrb[118].mxu0 %v5981_v62 }
0x3343   :  { %v6065_v63 = vpop.f32.mrb[118].mxu0 }
0x3344   :  { %v6069_v14 = vadd.f32 %v6065_v63, %v9825_v5  ;;  %v7876_v1 = vpop.f32.mrb[119].mxu0 }
0x3346   :  { %v6078_v28 = vadd.f32 %v6488_v56, %v6069_v14 }
0x3348   :  { %v6081_v2 = vsel %vm480_vm3, %v6078_v28, 0.0 }
0x3349   :  { %6082 = vadd.xlane.f32.xlu0 %v6081_v2 }
0x33d6   :  { %v6083_v48 = vpop.xlane.xlu0 %6082 }
0x33d7   :  { %v6084_v51 = vmul.f32 0.03125, %v6083_v48 }
0x33d9   :  { %v6085_v24 = vsub.f32 %v6078_v28, %v6084_v51 }
0x33db   :  { %v6086_v8 = vmul.f32 %v6085_v24, %v6085_v24 }
0x33dd   :  { %v6087_v15 = vsel %vm480_vm3, %v6086_v8, 0.0 }
0x33de   :  { %6088 = vadd.xlane.f32.xlu1 %v6087_v15 }
0x346b   :  { %v6089_v22 = vpop.xlane.xlu1 %6088 }
0x346c   :  { %v6090_v6 = vmul.f32 0.03125, %v6089_v22 }
0x346e   :  { %v6091_v3 = vadd.f32 1e-05, %v6090_v6 }
0x3470   :  { %8494 = vrsqrt.f32 %v6091_v3 }
0x347a   :  { %v8495_v5 = vpop.eup %8494 }
0x347b   :  { %v6093_v7 = vmul.f32 %v8495_v5, %v6085_v24 }
0x347d   :  { %v6100_v44 = vmul.f32 %v6489_v4, %v6093_v7 }
0x347f   :  { %v6107_v35 = vadd.f32 %v6490_v60, %v6100_v44 }
0x3481   :  { %6108 = vst.msk [vmem:[%s6150_s14] sm:$0xf] %vm480_vm3, %v6107_v35 }

</bundles_post_ra>
